<compile_context>
chip_gen: v6e
topology: v6e:2x2x1
jax: 0.10.0
libtpu: 0.0.40
codegen_flags: <defaults>
</compile_context>

<pallas_src>
import numpy as np

import jax
import jax.numpy as jnp
from jax import lax
from jax.experimental import pallas as pl
from jax.experimental.pallas import tpu as pltpu

_BN_EPS = 1e-5


# ---------------------------------------------------------------------------
# Static geometry helpers (host side, trace time only)
# ---------------------------------------------------------------------------

def _conv_geom(hin, win, pad, dil):
    """Geometry for a 3x3 conv evaluated on a flattened, zero-padded buffer.

    The conv is evaluated on a 'virtual' stride-1, full-width anchor grid of
    Mv = (Hp - 2*dil) * Wp positions; tap (ti, tj) then reads the contiguous
    row slice [off, off + Mv) with off = (ti*Wp + tj)*dil.  Anchors whose
    window wraps a row edge produce garbage rows that the next stage's scatter
    matrix never selects.  R = Hp*Wp + 2*dil rows keep every tap slice in bounds.
    """
    hp, wp = hin + 2 * pad, win + 2 * pad
    hv = hp - 2 * dil
    return hp, wp, hv, hv * wp, hp * wp + 2 * dil


def _conv_out(hin, win, pad, dil, stride):
    return ((hin + 2 * pad - 2 * dil - 1) // stride + 1,
            (win + 2 * pad - 2 * dil - 1) // stride + 1)


def _scatter_matrix(r_dst, wp_dst, pad_dst, ho, wo, stride_src, wp_src, m_src):
    """0/1 matrix taking conv outputs (on their virtual grid, stride folded in)
    directly into the next layer's zero-padded flattened buffer.  All-zero rows
    realize the zero padding; garbage virtual rows are simply never selected."""
    p = np.zeros((r_dst, m_src), np.float32)
    for ao in range(ho):
        for bo in range(wo):
            src = stride_src * (ao * wp_src + bo)
            dst = (ao + pad_dst) * wp_dst + (bo + pad_dst)
            p[dst, src] = 1.0
    return jnp.asarray(p)


# ---------------------------------------------------------------------------
# Parameter init (deterministic, synthetic) — shapes follow Net.__init__
# ---------------------------------------------------------------------------

def _bn_fold(key, c):
    kg, kb, km, kv = jax.random.split(key, 4)
    gamma = jax.random.uniform(kg, (c,), minval=0.5, maxval=1.5)   # > 0
    beta = 0.1 * jax.random.normal(kb, (c,))
    mean = 0.1 * jax.random.normal(km, (c,))
    var = jax.random.uniform(kv, (c,), minval=0.5, maxval=1.5)
    scale = gamma / jnp.sqrt(var + _BN_EPS)     # > 0 (needed for ReLU/scale swap)
    shift = beta - mean * scale
    return scale.astype(jnp.float32), shift.astype(jnp.float32)


def init_params(key):
    keys = jax.random.split(key, 9)
    p = {}
    # convblock1: 3 -> 32, 3x3 (HWIO)
    p["w1"] = 0.1 * jax.random.normal(keys[0], (3, 3, 3, 32), jnp.float32)
    p["bn1_scale"], p["bn1_shift"] = _bn_fold(keys[1], 32)
    # convblock2 grouped conv (groups=32, each in-channel -> 2 out-channels);
    # stored as (3, 3, 32, 2): tap, group/in-channel c, its two outputs (2c, 2c+1)
    p["w2_g"] = 0.1 * jax.random.normal(keys[2], (3, 3, 32, 2), jnp.float32)
    # convblock2 pointwise 1x1: 64 -> 64 (HWIO)
    p["w2_pw"] = 0.1 * jax.random.normal(keys[3], (1, 1, 64, 64), jnp.float32)
    p["bn2_scale"], p["bn2_shift"] = _bn_fold(keys[4], 64)
    # convblock3: 64 -> 128, 3x3, dilation 2
    p["w3"] = 0.1 * jax.random.normal(keys[5], (3, 3, 64, 128), jnp.float32)
    p["bn3_scale"], p["bn3_shift"] = _bn_fold(keys[6], 128)
    # convblock4: 128 -> 128, 3x3
    p["w4"] = 0.05 * jax.random.normal(keys[7], (3, 3, 128, 128), jnp.float32)
    p["bn4_scale"], p["bn4_shift"] = _bn_fold(keys[8], 128)
    return p


# ---------------------------------------------------------------------------
# Fused forward pass: one pallas_call for the whole network
# ---------------------------------------------------------------------------

def net_forward(x_nchw, params):
    # TODO(synk): Dropout(0.1) has no inference-time effect (eval mode); BatchNorm
    # uses folded running statistics (inference-mode affine only).
    n, cin, h, w = x_nchw.shape

    # ---- fold BN scale into conv weights; reshape to per-tap 2-D matrices ----
    w1 = (params["w1"] * params["bn1_scale"]).reshape(9 * cin, 32)
    b1 = params["bn1_shift"].reshape(1, 32)
    w2a0 = params["w2_g"][..., 0].reshape(9, 32)          # depthwise taps -> out 2c
    w2a1 = params["w2_g"][..., 1].reshape(9, 32)          # depthwise taps -> out 2c+1
    wpw = params["w2_pw"].reshape(64, 64) * params["bn2_scale"]
    wpw_e = wpw[0::2, :]                                  # 1x1 rows fed by channels 2c
    wpw_o = wpw[1::2, :]                                  # 1x1 rows fed by channels 2c+1
    b2 = params["bn2_shift"].reshape(1, 64)
    w3 = (params["w3"] * params["bn3_scale"]).reshape(9 * 64, 128)
    b3 = params["bn3_shift"].reshape(1, 128)
    w4 = (params["w4"] * params["bn4_scale"]).reshape(9 * 128, 128)
    b4 = params["bn4_shift"].reshape(1, 128)

    # ---- static geometry + scatter/zero-pad matrices (numpy constants) ----
    _, wp1, _, mv1, r1 = _conv_geom(h, w, 1, 1)            # convblock1: s1 p1 d1
    ho1, wo1 = _conv_out(h, w, 1, 1, 1)
    _, wp2, _, mv2, r2 = _conv_geom(ho1, wo1, 1, 1)        # convblock2: s2 p1 d1
    ho2, wo2 = _conv_out(ho1, wo1, 1, 1, 2)
    _, wp3, _, mv3, r3 = _conv_geom(ho2, wo2, 2, 2)        # convblock3: s2 p2 d2
    ho3, wo3 = _conv_out(ho2, wo2, 2, 2, 2)
    _, wp4, _, mv4, r4 = _conv_geom(ho3, wo3, 1, 1)        # convblock4: s2 p1 d1
    ho4, wo4 = _conv_out(ho3, wo3, 1, 1, 2)

    p0 = _scatter_matrix(r1, wp1, 1, h, w, 1, w, h * w)      # image -> conv1 buffer
    p1 = _scatter_matrix(r2, wp2, 1, ho1, wo1, 1, wp1, mv1)  # conv1 -> conv2 buffer
    p2 = _scatter_matrix(r3, wp3, 2, ho2, wo2, 2, wp2, mv2)  # conv2 -> conv3 buffer
    p3 = _scatter_matrix(r4, wp4, 1, ho3, wo3, 2, wp3, mv3)  # conv3 -> conv4 buffer
    gap_rows = [2 * (ao * wp4 + bo) for ao in range(ho4) for bo in range(wo4)]

    # ---- the fused kernel: one image per grid step, all stages in VMEM ----
    def kernel(x_ref, p0_ref, w1_ref, b1_ref,
               p1_ref, w2a0_ref, w2a1_ref, wpe_ref, wpo_ref, b2_ref,
               p2_ref, w3_ref, b3_ref, p3_ref, w4_ref, b4_ref,
               o_ref, xp1_ref, xp2_ref, xp3_ref, xp4_ref):

        def conv3x3(xp_ref, w_ref, c_in, mv, wp, dil):
            """3x3 conv = 9 accumulating MXU dots on row-shifted buffer slices."""
            acc = None
            for ti in range(3):
                for tj in range(3):
                    off = (ti * wp + tj) * dil
                    t = 3 * ti + tj
                    d = jnp.dot(xp_ref[off:off + mv, :],
                                w_ref[t * c_in:(t + 1) * c_in, :],
                                preferred_element_type=jnp.float32)
                    acc = d if acc is None else acc + d
            return acc

        # Scatter the raw image into convblock1's zero-padded buffer.
        xp1_ref[...] = jnp.dot(p0_ref[...], x_ref[0],
                               preferred_element_type=jnp.float32)

        # convblock1: 3x3 s1 p1 (3->32) -> ReLU -> BN (scale folded into w1).
        y = jnp.maximum(conv3x3(xp1_ref, w1_ref, 3, mv1, wp1, 1), 0.0) + b1_ref[...]
        xp2_ref[...] = jnp.dot(p1_ref[...], y, preferred_element_type=jnp.float32)

        # convblock2: grouped 3x3 s2 p1 (32->64) as a depthwise VPU conv, fused with
        # the 1x1 (64->64) by splitting its rows into even/odd input-channel halves,
        # then ReLU -> BN (scale folded into the 1x1 weights).
        acc_e = None
        acc_o = None
        for ti in range(3):
            for tj in range(3):
                off = ti * wp2 + tj
                t = 3 * ti + tj
                xs = xp2_ref[off:off + mv2, :]
                de = xs * w2a0_ref[t:t + 1, :]
                do = xs * w2a1_ref[t:t + 1, :]
                acc_e = de if acc_e is None else acc_e + de
                acc_o = do if acc_o is None else acc_o + do
        y = (jnp.dot(acc_e, wpe_ref[...], preferred_element_type=jnp.float32)
             + jnp.dot(acc_o, wpo_ref[...], preferred_element_type=jnp.float32))
        y = jnp.maximum(y, 0.0) + b2_ref[...]
        xp3_ref[...] = jnp.dot(p2_ref[...], y, preferred_element_type=jnp.float32)

        # convblock3: 3x3 s2 p2 d2 (64->128) -> ReLU -> BN.
        y = jnp.maximum(conv3x3(xp3_ref, w3_ref, 64, mv3, wp3, 2), 0.0) + b3_ref[...]
        xp4_ref[...] = jnp.dot(p3_ref[...], y, preferred_element_type=jnp.float32)

        # convblock4: 3x3 s2 p1 (128->128) -> ReLU -> BN.
        y = jnp.maximum(conv3x3(xp4_ref, w4_ref, 128, mv4, wp4, 1), 0.0) + b4_ref[...]

        # GAP over the valid 2x2 output positions, then log_softmax over channels.
        g = None
        for r in gap_rows:
            gr = y[r:r + 1, :]
            g = gr if g is None else g + gr
        g = g * (1.0 / float(len(gap_rows)))
        z = g - jnp.max(g, axis=-1, keepdims=True)
        lse = jnp.log(jnp.sum(jnp.exp(z), axis=-1, keepdims=True))
        o_ref[...] = jnp.reshape(z - lse, (1, 1, 128))

    # ---- NCHW -> (N, H*W, C) layout glue for the (tiny) raw input ----
    x_rows = jnp.transpose(x_nchw, (0, 2, 3, 1)).reshape(n, h * w, cin)
    x_rows = x_rows.astype(jnp.float32)

    consts = [p0, w1, b1, p1, w2a0, w2a1, wpw_e, wpw_o, b2, p2, w3, b3, p3, w4, b4]

    def _const_spec(a):
        # Full-array block + constant index -> stays resident in VMEM across steps.
        assert a.ndim == 2
        return pl.BlockSpec(a.shape, lambda b: (0, 0))

    out = pl.pallas_call(
        kernel,
        out_shape=jax.ShapeDtypeStruct((n, 1, 128), jnp.float32),
        grid=(n,),
        in_specs=[pl.BlockSpec((1, h * w, cin), lambda b: (b, 0, 0))]
                 + [_const_spec(c) for c in consts],
        out_specs=pl.BlockSpec((1, 1, 128), lambda b: (b, 0, 0)),
        scratch_shapes=[
            pltpu.VMEM((r1, cin), jnp.float32),   # zero-padded image
            pltpu.VMEM((r2, 32), jnp.float32),    # zero-padded convblock1 output
            pltpu.VMEM((r3, 64), jnp.float32),    # zero-padded convblock2 output
            pltpu.VMEM((r4, 128), jnp.float32),   # zero-padded convblock3 output
        ],
        compiler_params=pltpu.CompilerParams(
            dimension_semantics=("parallel",)),   # lets v7x split the batch over 2 TCs
    )(x_rows, *consts)

    return out.reshape(n, 128)


# ---------------------------------------------------------------------------
# Pure-XLA reference (no Pallas) for correctness checking
# ---------------------------------------------------------------------------

def reference_forward(x_nchw, p):
    dn = ("NHWC", "HWIO", "NHWC")
    hi = lax.Precision.HIGHEST

    def conv(x, kernel, stride, pad, dil=1, groups=1):
        return lax.conv_general_dilated(
            x, kernel, (stride, stride), [(pad, pad), (pad, pad)],
            rhs_dilation=(dil, dil), dimension_numbers=dn,
            feature_group_count=groups, precision=hi)

    def bn(y, s, b):
        return y * s + b

    x = jnp.transpose(x_nchw, (0, 2, 3, 1)).astype(jnp.float32)
    y = bn(jax.nn.relu(conv(x, p["w1"], 1, 1)), p["bn1_scale"], p["bn1_shift"])
    y = conv(y, p["w2_g"].reshape(3, 3, 1, 64), 2, 1, groups=32)
    y = conv(y, p["w2_pw"], 1, 0)
    y = bn(jax.nn.relu(y), p["bn2_scale"], p["bn2_shift"])
    y = conv(y, p["w3"], 2, 2, dil=2)
    y = bn(jax.nn.relu(y), p["bn3_scale"], p["bn3_shift"])
    y = conv(y, p["w4"], 2, 1)
    y = bn(jax.nn.relu(y), p["bn4_scale"], p["bn4_shift"])
    g = jnp.mean(y, axis=(1, 2))
    return jax.nn.log_softmax(g, axis=-1)


# ---------------------------------------------------------------------------
# Main
# ---------------------------------------------------------------------------

if __name__ == "__main__":
    key = jax.random.PRNGKey(0)
    k_param, k_input = jax.random.split(key)

    params = init_params(k_param)
    x = jax.random.normal(k_input, (2, 3, 16, 16), jnp.float32)   # NCHW input

    # BN-scale-into-weight folding requires positive scales (true by construction).
    for k in ("bn1_scale", "bn2_scale", "bn3_scale", "bn4_scale"):
        assert bool(jnp.all(params[k] > 0.0)), k

    out = jax.block_until_ready(jax.jit(net_forward)(x, params))

    assert out.shape == (2, 128), out.shape
    assert bool(jnp.all(jnp.isfinite(out)))
    # log_softmax rows should sum (in prob space) to ~1
    assert bool(jnp.allclose(jnp.sum(jnp.exp(out), axis=-1), 1.0, atol=1e-4))

    # Cross-check the fused Pallas kernel against the plain XLA reference.
    # (Loose tolerance covers possible MXU pass-precision differences.)
    ref = jax.block_until_ready(jax.jit(reference_forward)(x, params))
    max_err = float(jnp.max(jnp.abs(out - ref)))
    assert max_err < 5e-2, f"kernel/reference mismatch: max|diff|={max_err:.3e}"

    print("KERNEL_OK")
</pallas_src>

<mosaic_0001>
module attributes {stable_mosaic.version = 11 : i64} {
  func.func @kernel(%arg0: i32, %arg1: memref<1x256x3xf32, #tpu.memory_space<vmem>>, %arg2: memref<326x256xf32, #tpu.memory_space<vmem>>, %arg3: memref<27x32xf32, #tpu.memory_space<vmem>>, %arg4: memref<1x32xf32, #tpu.memory_space<vmem>>, %arg5: memref<326x288xf32, #tpu.memory_space<vmem>>, %arg6: memref<9x32xf32, #tpu.memory_space<vmem>>, %arg7: memref<9x32xf32, #tpu.memory_space<vmem>>, %arg8: memref<32x64xf32, #tpu.memory_space<vmem>>, %arg9: memref<32x64xf32, #tpu.memory_space<vmem>>, %arg10: memref<1x64xf32, #tpu.memory_space<vmem>>, %arg11: memref<148x288xf32, #tpu.memory_space<vmem>>, %arg12: memref<576x128xf32, #tpu.memory_space<vmem>>, %arg13: memref<1x128xf32, #tpu.memory_space<vmem>>, %arg14: memref<38x96xf32, #tpu.memory_space<vmem>>, %arg15: memref<1152x128xf32, #tpu.memory_space<vmem>>, %arg16: memref<1x128xf32, #tpu.memory_space<vmem>>, %arg17: memref<1x1x128xf32, #tpu.memory_space<vmem>>, %arg18: memref<326x3xf32, #tpu.memory_space<vmem>>, %arg19: memref<326x32xf32, #tpu.memory_space<vmem>>, %arg20: memref<148x64xf32, #tpu.memory_space<vmem>>, %arg21: memref<38x128xf32, #tpu.memory_space<vmem>>) attributes {dimension_semantics = [#tpu.dimension_semantics<parallel>], iteration_bounds = array<i64: 2>, scalar_prefetch = 0 : i64, scratch_operands = 4 : i64, tpu.core_type = #tpu.core_type<tc>, window_params = [{transform_indices = @transform_0, window_bounds = array<i64: 1, 256, 3>}, {pipeline_mode = #tpu.pipeline_mode<synchronous>, transform_indices = @transform_1, window_bounds = array<i64: 326, 256>}, {pipeline_mode = #tpu.pipeline_mode<synchronous>, transform_indices = @transform_2, window_bounds = array<i64: 27, 32>}, {pipeline_mode = #tpu.pipeline_mode<synchronous>, transform_indices = @transform_3, window_bounds = array<i64: 1, 32>}, {pipeline_mode = #tpu.pipeline_mode<synchronous>, transform_indices = @transform_4, window_bounds = array<i64: 326, 288>}, {pipeline_mode = #tpu.pipeline_mode<synchronous>, transform_indices = @transform_5, window_bounds = array<i64: 9, 32>}, {pipeline_mode = #tpu.pipeline_mode<synchronous>, transform_indices = @transform_6, window_bounds = array<i64: 9, 32>}, {pipeline_mode = #tpu.pipeline_mode<synchronous>, transform_indices = @transform_7, window_bounds = array<i64: 32, 64>}, {pipeline_mode = #tpu.pipeline_mode<synchronous>, transform_indices = @transform_8, window_bounds = array<i64: 32, 64>}, {pipeline_mode = #tpu.pipeline_mode<synchronous>, transform_indices = @transform_9, window_bounds = array<i64: 1, 64>}, {pipeline_mode = #tpu.pipeline_mode<synchronous>, transform_indices = @transform_10, window_bounds = array<i64: 148, 288>}, {pipeline_mode = #tpu.pipeline_mode<synchronous>, transform_indices = @transform_11, window_bounds = array<i64: 576, 128>}, {pipeline_mode = #tpu.pipeline_mode<synchronous>, transform_indices = @transform_12, window_bounds = array<i64: 1, 128>}, {pipeline_mode = #tpu.pipeline_mode<synchronous>, transform_indices = @transform_13, window_bounds = array<i64: 38, 96>}, {pipeline_mode = #tpu.pipeline_mode<synchronous>, transform_indices = @transform_14, window_bounds = array<i64: 1152, 128>}, {pipeline_mode = #tpu.pipeline_mode<synchronous>, transform_indices = @transform_15, window_bounds = array<i64: 1, 128>}, {transform_indices = @transform_16, window_bounds = array<i64: 1, 1, 128>}]} {
    %c0 = arith.constant 0 : index
    %c0_0 = arith.constant 0 : index
    %0 = vector.load %arg2[%c0, %c0_0] : memref<326x256xf32, #tpu.memory_space<vmem>>, vector<326x256xf32>
    %c0_1 = arith.constant 0 : index
    %c0_2 = arith.constant 0 : index
    %c0_3 = arith.constant 0 : index
    %1 = vector.load %arg1[%c0_1, %c0_2, %c0_3] : memref<1x256x3xf32, #tpu.memory_space<vmem>>, vector<1x256x3xf32>
    %2 = vector.shape_cast %1 : vector<1x256x3xf32> to vector<256x3xf32>
    %cst = arith.constant dense<0.000000e+00> : vector<326x3xf32>
    %3 = tpu.matmul %0, %2, %cst {dimension_numbers = #tpu.dot_dimension_numbers<[1], [0], [0], [1], [0, 0, 1, 1], [], []>} : vector<326x256xf32>, vector<256x3xf32>, vector<326x3xf32> -> vector<326x3xf32>
    %c0_4 = arith.constant 0 : index
    %c0_5 = arith.constant 0 : index
    %4 = vector.load %arg18[%c0_4, %c0_5] : memref<326x3xf32, #tpu.memory_space<vmem>>, vector<326x3xf32>
    tpu.vector_store %arg18[%c0_4, %c0_5], %3 {strides = array<i32>} : memref<326x3xf32, #tpu.memory_space<vmem>>, vector<326x3xf32>,
    %c0_6 = arith.constant 0 : index
    %c0_7 = arith.constant 0 : index
    %5 = vector.load %arg18[%c0_6, %c0_7] : memref<326x3xf32, #tpu.memory_space<vmem>>, vector<288x3xf32>
    %c0_8 = arith.constant 0 : index
    %c0_9 = arith.constant 0 : index
    %6 = vector.load %arg3[%c0_8, %c0_9] : memref<27x32xf32, #tpu.memory_space<vmem>>, vector<3x32xf32>
    %cst_10 = arith.constant dense<0.000000e+00> : vector<288x32xf32>
    %7 = tpu.matmul %5, %6, %cst_10 {dimension_numbers = #tpu.dot_dimension_numbers<[1], [0], [0], [1], [0, 0, 1, 1], [], []>} : vector<288x3xf32>, vector<3x32xf32>, vector<288x32xf32> -> vector<288x32xf32>
    %c1 = arith.constant 1 : index
    %c0_11 = arith.constant 0 : index
    %8 = vector.load %arg18[%c1, %c0_11] : memref<326x3xf32, #tpu.memory_space<vmem>>, vector<288x3xf32>
    %c3 = arith.constant 3 : index
    %c0_12 = arith.constant 0 : index
    %9 = vector.load %arg3[%c3, %c0_12] : memref<27x32xf32, #tpu.memory_space<vmem>>, vector<3x32xf32>
    %cst_13 = arith.constant dense<0.000000e+00> : vector<288x32xf32>
    %10 = tpu.matmul %8, %9, %cst_13 {dimension_numbers = #tpu.dot_dimension_numbers<[1], [0], [0], [1], [0, 0, 1, 1], [], []>} : vector<288x3xf32>, vector<3x32xf32>, vector<288x32xf32> -> vector<288x32xf32>
    %11 = arith.addf %7, %10 : vector<288x32xf32>
    %c2 = arith.constant 2 : index
    %c0_14 = arith.constant 0 : index
    %12 = vector.load %arg18[%c2, %c0_14] : memref<326x3xf32, #tpu.memory_space<vmem>>, vector<288x3xf32>
    %c6 = arith.constant 6 : index
    %c0_15 = arith.constant 0 : index
    %13 = vector.load %arg3[%c6, %c0_15] : memref<27x32xf32, #tpu.memory_space<vmem>>, vector<3x32xf32>
    %cst_16 = arith.constant dense<0.000000e+00> : vector<288x32xf32>
    %14 = tpu.matmul %12, %13, %cst_16 {dimension_numbers = #tpu.dot_dimension_numbers<[1], [0], [0], [1], [0, 0, 1, 1], [], []>} : vector<288x3xf32>, vector<3x32xf32>, vector<288x32xf32> -> vector<288x32xf32>
    %15 = arith.addf %11, %14 : vector<288x32xf32>
    %c18 = arith.constant 18 : index
    %c0_17 = arith.constant 0 : index
    %16 = vector.load %arg18[%c18, %c0_17] : memref<326x3xf32, #tpu.memory_space<vmem>>, vector<288x3xf32>
    %c9 = arith.constant 9 : index
    %c0_18 = arith.constant 0 : index
    %17 = vector.load %arg3[%c9, %c0_18] : memref<27x32xf32, #tpu.memory_space<vmem>>, vector<3x32xf32>
    %cst_19 = arith.constant dense<0.000000e+00> : vector<288x32xf32>
    %18 = tpu.matmul %16, %17, %cst_19 {dimension_numbers = #tpu.dot_dimension_numbers<[1], [0], [0], [1], [0, 0, 1, 1], [], []>} : vector<288x3xf32>, vector<3x32xf32>, vector<288x32xf32> -> vector<288x32xf32>
    %19 = arith.addf %15, %18 : vector<288x32xf32>
    %c19 = arith.constant 19 : index
    %c0_20 = arith.constant 0 : index
    %20 = vector.load %arg18[%c19, %c0_20] : memref<326x3xf32, #tpu.memory_space<vmem>>, vector<288x3xf32>
    %c12 = arith.constant 12 : index
    %c0_21 = arith.constant 0 : index
    %21 = vector.load %arg3[%c12, %c0_21] : memref<27x32xf32, #tpu.memory_space<vmem>>, vector<3x32xf32>
    %cst_22 = arith.constant dense<0.000000e+00> : vector<288x32xf32>
    %22 = tpu.matmul %20, %21, %cst_22 {dimension_numbers = #tpu.dot_dimension_numbers<[1], [0], [0], [1], [0, 0, 1, 1], [], []>} : vector<288x3xf32>, vector<3x32xf32>, vector<288x32xf32> -> vector<288x32xf32>
    %23 = arith.addf %19, %22 : vector<288x32xf32>
    %c20 = arith.constant 20 : index
    %c0_23 = arith.constant 0 : index
    %24 = vector.load %arg18[%c20, %c0_23] : memref<326x3xf32, #tpu.memory_space<vmem>>, vector<288x3xf32>
    %c15 = arith.constant 15 : index
    %c0_24 = arith.constant 0 : index
    %25 = vector.load %arg3[%c15, %c0_24] : memref<27x32xf32, #tpu.memory_space<vmem>>, vector<3x32xf32>
    %cst_25 = arith.constant dense<0.000000e+00> : vector<288x32xf32>
    %26 = tpu.matmul %24, %25, %cst_25 {dimension_numbers = #tpu.dot_dimension_numbers<[1], [0], [0], [1], [0, 0, 1, 1], [], []>} : vector<288x3xf32>, vector<3x32xf32>, vector<288x32xf32> -> vector<288x32xf32>
    %27 = arith.addf %23, %26 : vector<288x32xf32>
    %c36 = arith.constant 36 : index
    %c0_26 = arith.constant 0 : index
    %28 = vector.load %arg18[%c36, %c0_26] : memref<326x3xf32, #tpu.memory_space<vmem>>, vector<288x3xf32>
    %c18_27 = arith.constant 18 : index
    %c0_28 = arith.constant 0 : index
    %29 = vector.load %arg3[%c18_27, %c0_28] : memref<27x32xf32, #tpu.memory_space<vmem>>, vector<3x32xf32>
    %cst_29 = arith.constant dense<0.000000e+00> : vector<288x32xf32>
    %30 = tpu.matmul %28, %29, %cst_29 {dimension_numbers = #tpu.dot_dimension_numbers<[1], [0], [0], [1], [0, 0, 1, 1], [], []>} : vector<288x3xf32>, vector<3x32xf32>, vector<288x32xf32> -> vector<288x32xf32>
    %31 = arith.addf %27, %30 : vector<288x32xf32>
    %c37 = arith.constant 37 : index
    %c0_30 = arith.constant 0 : index
    %32 = vector.load %arg18[%c37, %c0_30] : memref<326x3xf32, #tpu.memory_space<vmem>>, vector<288x3xf32>
    %c21 = arith.constant 21 : index
    %c0_31 = arith.constant 0 : index
    %33 = vector.load %arg3[%c21, %c0_31] : memref<27x32xf32, #tpu.memory_space<vmem>>, vector<3x32xf32>
    %cst_32 = arith.constant dense<0.000000e+00> : vector<288x32xf32>
    %34 = tpu.matmul %32, %33, %cst_32 {dimension_numbers = #tpu.dot_dimension_numbers<[1], [0], [0], [1], [0, 0, 1, 1], [], []>} : vector<288x3xf32>, vector<3x32xf32>, vector<288x32xf32> -> vector<288x32xf32>
    %35 = arith.addf %31, %34 : vector<288x32xf32>
    %c38 = arith.constant 38 : index
    %c0_33 = arith.constant 0 : index
    %36 = vector.load %arg18[%c38, %c0_33] : memref<326x3xf32, #tpu.memory_space<vmem>>, vector<288x3xf32>
    %c24 = arith.constant 24 : index
    %c0_34 = arith.constant 0 : index
    %37 = vector.load %arg3[%c24, %c0_34] : memref<27x32xf32, #tpu.memory_space<vmem>>, vector<3x32xf32>
    %cst_35 = arith.constant dense<0.000000e+00> : vector<288x32xf32>
    %38 = tpu.matmul %36, %37, %cst_35 {dimension_numbers = #tpu.dot_dimension_numbers<[1], [0], [0], [1], [0, 0, 1, 1], [], []>} : vector<288x3xf32>, vector<3x32xf32>, vector<288x32xf32> -> vector<288x32xf32>
    %39 = arith.addf %35, %38 : vector<288x32xf32>
    %cst_36 = arith.constant 0.000000e+00 : f32
    %40 = vector.broadcast %cst_36 : f32 to vector<288x32xf32>
    %41 = arith.maximumf %39, %40 : vector<288x32xf32>
    %c0_37 = arith.constant 0 : index
    %c0_38 = arith.constant 0 : index
    %42 = vector.load %arg4[%c0_37, %c0_38] : memref<1x32xf32, #tpu.memory_space<vmem>>, vector<1x32xf32>
    %43 = vector.broadcast %42 : vector<1x32xf32> to vector<288x32xf32>
    %44 = arith.addf %41, %43 : vector<288x32xf32>
    %c0_39 = arith.constant 0 : index
    %c0_40 = arith.constant 0 : index
    %45 = vector.load %arg5[%c0_39, %c0_40] : memref<326x288xf32, #tpu.memory_space<vmem>>, vector<326x288xf32>
    %cst_41 = arith.constant dense<0.000000e+00> : vector<326x32xf32>
    %46 = tpu.matmul %45, %44, %cst_41 {dimension_numbers = #tpu.dot_dimension_numbers<[1], [0], [0], [1], [0, 0, 1, 1], [], []>} : vector<326x288xf32>, vector<288x32xf32>, vector<326x32xf32> -> vector<326x32xf32>
    %c0_42 = arith.constant 0 : index
    %c0_43 = arith.constant 0 : index
    %47 = vector.load %arg19[%c0_42, %c0_43] : memref<326x32xf32, #tpu.memory_space<vmem>>, vector<326x32xf32>
    tpu.vector_store %arg19[%c0_42, %c0_43], %46 {strides = array<i32>} : memref<326x32xf32, #tpu.memory_space<vmem>>, vector<326x32xf32>,
    %c0_44 = arith.constant 0 : index
    %c0_45 = arith.constant 0 : index
    %48 = vector.load %arg19[%c0_44, %c0_45] : memref<326x32xf32, #tpu.memory_space<vmem>>, vector<288x32xf32>
    %c0_46 = arith.constant 0 : index
    %c0_47 = arith.constant 0 : index
    %49 = vector.load %arg6[%c0_46, %c0_47] : memref<9x32xf32, #tpu.memory_space<vmem>>, vector<1x32xf32>
    %50 = vector.broadcast %49 : vector<1x32xf32> to vector<288x32xf32>
    %51 = arith.mulf %48, %50 : vector<288x32xf32>
    %c0_48 = arith.constant 0 : index
    %c0_49 = arith.constant 0 : index
    %52 = vector.load %arg7[%c0_48, %c0_49] : memref<9x32xf32, #tpu.memory_space<vmem>>, vector<1x32xf32>
    %53 = vector.broadcast %52 : vector<1x32xf32> to vector<288x32xf32>
    %54 = arith.mulf %48, %53 : vector<288x32xf32>
    %c1_50 = arith.constant 1 : index
    %c0_51 = arith.constant 0 : index
    %55 = vector.load %arg19[%c1_50, %c0_51] : memref<326x32xf32, #tpu.memory_space<vmem>>, vector<288x32xf32>
    %c1_52 = arith.constant 1 : index
    %c0_53 = arith.constant 0 : index
    %56 = vector.load %arg6[%c1_52, %c0_53] : memref<9x32xf32, #tpu.memory_space<vmem>>, vector<1x32xf32>
    %57 = vector.broadcast %56 : vector<1x32xf32> to vector<288x32xf32>
    %58 = arith.mulf %55, %57 : vector<288x32xf32>
    %c1_54 = arith.constant 1 : index
    %c0_55 = arith.constant 0 : index
    %59 = vector.load %arg7[%c1_54, %c0_55] : memref<9x32xf32, #tpu.memory_space<vmem>>, vector<1x32xf32>
    %60 = vector.broadcast %59 : vector<1x32xf32> to vector<288x32xf32>
    %61 = arith.mulf %55, %60 : vector<288x32xf32>
    %62 = arith.addf %51, %58 : vector<288x32xf32>
    %63 = arith.addf %54, %61 : vector<288x32xf32>
    %c2_56 = arith.constant 2 : index
    %c0_57 = arith.constant 0 : index
    %64 = vector.load %arg19[%c2_56, %c0_57] : memref<326x32xf32, #tpu.memory_space<vmem>>, vector<288x32xf32>
    %c2_58 = arith.constant 2 : index
    %c0_59 = arith.constant 0 : index
    %65 = vector.load %arg6[%c2_58, %c0_59] : memref<9x32xf32, #tpu.memory_space<vmem>>, vector<1x32xf32>
    %66 = vector.broadcast %65 : vector<1x32xf32> to vector<288x32xf32>
    %67 = arith.mulf %64, %66 : vector<288x32xf32>
    %c2_60 = arith.constant 2 : index
    %c0_61 = arith.constant 0 : index
    %68 = vector.load %arg7[%c2_60, %c0_61] : memref<9x32xf32, #tpu.memory_space<vmem>>, vector<1x32xf32>
    %69 = vector.broadcast %68 : vector<1x32xf32> to vector<288x32xf32>
    %70 = arith.mulf %64, %69 : vector<288x32xf32>
    %71 = arith.addf %62, %67 : vector<288x32xf32>
    %72 = arith.addf %63, %70 : vector<288x32xf32>
    %c18_62 = arith.constant 18 : index
    %c0_63 = arith.constant 0 : index
    %73 = vector.load %arg19[%c18_62, %c0_63] : memref<326x32xf32, #tpu.memory_space<vmem>>, vector<288x32xf32>
    %c3_64 = arith.constant 3 : index
    %c0_65 = arith.constant 0 : index
    %74 = vector.load %arg6[%c3_64, %c0_65] : memref<9x32xf32, #tpu.memory_space<vmem>>, vector<1x32xf32>
    %75 = vector.broadcast %74 : vector<1x32xf32> to vector<288x32xf32>
    %76 = arith.mulf %73, %75 : vector<288x32xf32>
    %c3_66 = arith.constant 3 : index
    %c0_67 = arith.constant 0 : index
    %77 = vector.load %arg7[%c3_66, %c0_67] : memref<9x32xf32, #tpu.memory_space<vmem>>, vector<1x32xf32>
    %78 = vector.broadcast %77 : vector<1x32xf32> to vector<288x32xf32>
    %79 = arith.mulf %73, %78 : vector<288x32xf32>
    %80 = arith.addf %71, %76 : vector<288x32xf32>
    %81 = arith.addf %72, %79 : vector<288x32xf32>
    %c19_68 = arith.constant 19 : index
    %c0_69 = arith.constant 0 : index
    %82 = vector.load %arg19[%c19_68, %c0_69] : memref<326x32xf32, #tpu.memory_space<vmem>>, vector<288x32xf32>
    %c4 = arith.constant 4 : index
    %c0_70 = arith.constant 0 : index
    %83 = vector.load %arg6[%c4, %c0_70] : memref<9x32xf32, #tpu.memory_space<vmem>>, vector<1x32xf32>
    %84 = vector.broadcast %83 : vector<1x32xf32> to vector<288x32xf32>
    %85 = arith.mulf %82, %84 : vector<288x32xf32>
    %c4_71 = arith.constant 4 : index
    %c0_72 = arith.constant 0 : index
    %86 = vector.load %arg7[%c4_71, %c0_72] : memref<9x32xf32, #tpu.memory_space<vmem>>, vector<1x32xf32>
    %87 = vector.broadcast %86 : vector<1x32xf32> to vector<288x32xf32>
    %88 = arith.mulf %82, %87 : vector<288x32xf32>
    %89 = arith.addf %80, %85 : vector<288x32xf32>
    %90 = arith.addf %81, %88 : vector<288x32xf32>
    %c20_73 = arith.constant 20 : index
    %c0_74 = arith.constant 0 : index
    %91 = vector.load %arg19[%c20_73, %c0_74] : memref<326x32xf32, #tpu.memory_space<vmem>>, vector<288x32xf32>
    %c5 = arith.constant 5 : index
    %c0_75 = arith.constant 0 : index
    %92 = vector.load %arg6[%c5, %c0_75] : memref<9x32xf32, #tpu.memory_space<vmem>>, vector<1x32xf32>
    %93 = vector.broadcast %92 : vector<1x32xf32> to vector<288x32xf32>
    %94 = arith.mulf %91, %93 : vector<288x32xf32>
    %c5_76 = arith.constant 5 : index
    %c0_77 = arith.constant 0 : index
    %95 = vector.load %arg7[%c5_76, %c0_77] : memref<9x32xf32, #tpu.memory_space<vmem>>, vector<1x32xf32>
    %96 = vector.broadcast %95 : vector<1x32xf32> to vector<288x32xf32>
    %97 = arith.mulf %91, %96 : vector<288x32xf32>
    %98 = arith.addf %89, %94 : vector<288x32xf32>
    %99 = arith.addf %90, %97 : vector<288x32xf32>
    %c36_78 = arith.constant 36 : index
    %c0_79 = arith.constant 0 : index
    %100 = vector.load %arg19[%c36_78, %c0_79] : memref<326x32xf32, #tpu.memory_space<vmem>>, vector<288x32xf32>
    %c6_80 = arith.constant 6 : index
    %c0_81 = arith.constant 0 : index
    %101 = vector.load %arg6[%c6_80, %c0_81] : memref<9x32xf32, #tpu.memory_space<vmem>>, vector<1x32xf32>
    %102 = vector.broadcast %101 : vector<1x32xf32> to vector<288x32xf32>
    %103 = arith.mulf %100, %102 : vector<288x32xf32>
    %c6_82 = arith.constant 6 : index
    %c0_83 = arith.constant 0 : index
    %104 = vector.load %arg7[%c6_82, %c0_83] : memref<9x32xf32, #tpu.memory_space<vmem>>, vector<1x32xf32>
    %105 = vector.broadcast %104 : vector<1x32xf32> to vector<288x32xf32>
    %106 = arith.mulf %100, %105 : vector<288x32xf32>
    %107 = arith.addf %98, %103 : vector<288x32xf32>
    %108 = arith.addf %99, %106 : vector<288x32xf32>
    %c37_84 = arith.constant 37 : index
    %c0_85 = arith.constant 0 : index
    %109 = vector.load %arg19[%c37_84, %c0_85] : memref<326x32xf32, #tpu.memory_space<vmem>>, vector<288x32xf32>
    %c7 = arith.constant 7 : index
    %c0_86 = arith.constant 0 : index
    %110 = vector.load %arg6[%c7, %c0_86] : memref<9x32xf32, #tpu.memory_space<vmem>>, vector<1x32xf32>
    %111 = vector.broadcast %110 : vector<1x32xf32> to vector<288x32xf32>
    %112 = arith.mulf %109, %111 : vector<288x32xf32>
    %c7_87 = arith.constant 7 : index
    %c0_88 = arith.constant 0 : index
    %113 = vector.load %arg7[%c7_87, %c0_88] : memref<9x32xf32, #tpu.memory_space<vmem>>, vector<1x32xf32>
    %114 = vector.broadcast %113 : vector<1x32xf32> to vector<288x32xf32>
    %115 = arith.mulf %109, %114 : vector<288x32xf32>
    %116 = arith.addf %107, %112 : vector<288x32xf32>
    %117 = arith.addf %108, %115 : vector<288x32xf32>
    %c38_89 = arith.constant 38 : index
    %c0_90 = arith.constant 0 : index
    %118 = vector.load %arg19[%c38_89, %c0_90] : memref<326x32xf32, #tpu.memory_space<vmem>>, vector<288x32xf32>
    %c8 = arith.constant 8 : index
    %c0_91 = arith.constant 0 : index
    %119 = vector.load %arg6[%c8, %c0_91] : memref<9x32xf32, #tpu.memory_space<vmem>>, vector<1x32xf32>
    %120 = vector.broadcast %119 : vector<1x32xf32> to vector<288x32xf32>
    %121 = arith.mulf %118, %120 : vector<288x32xf32>
    %c8_92 = arith.constant 8 : index
    %c0_93 = arith.constant 0 : index
    %122 = vector.load %arg7[%c8_92, %c0_93] : memref<9x32xf32, #tpu.memory_space<vmem>>, vector<1x32xf32>
    %123 = vector.broadcast %122 : vector<1x32xf32> to vector<288x32xf32>
    %124 = arith.mulf %118, %123 : vector<288x32xf32>
    %125 = arith.addf %116, %121 : vector<288x32xf32>
    %126 = arith.addf %117, %124 : vector<288x32xf32>
    %c0_94 = arith.constant 0 : index
    %c0_95 = arith.constant 0 : index
    %127 = vector.load %arg8[%c0_94, %c0_95] : memref<32x64xf32, #tpu.memory_space<vmem>>, vector<32x64xf32>
    %cst_96 = arith.constant dense<0.000000e+00> : vector<288x64xf32>
    %128 = tpu.matmul %125, %127, %cst_96 {dimension_numbers = #tpu.dot_dimension_numbers<[1], [0], [0], [1], [0, 0, 1, 1], [], []>} : vector<288x32xf32>, vector<32x64xf32>, vector<288x64xf32> -> vector<288x64xf32>
    %c0_97 = arith.constant 0 : index
    %c0_98 = arith.constant 0 : index
    %129 = vector.load %arg9[%c0_97, %c0_98] : memref<32x64xf32, #tpu.memory_space<vmem>>, vector<32x64xf32>
    %cst_99 = arith.constant dense<0.000000e+00> : vector<288x64xf32>
    %130 = tpu.matmul %126, %129, %cst_99 {dimension_numbers = #tpu.dot_dimension_numbers<[1], [0], [0], [1], [0, 0, 1, 1], [], []>} : vector<288x32xf32>, vector<32x64xf32>, vector<288x64xf32> -> vector<288x64xf32>
    %131 = arith.addf %128, %130 : vector<288x64xf32>
    %cst_100 = arith.constant 0.000000e+00 : f32
    %132 = vector.broadcast %cst_100 : f32 to vector<288x64xf32>
    %133 = arith.maximumf %131, %132 : vector<288x64xf32>
    %c0_101 = arith.constant 0 : index
    %c0_102 = arith.constant 0 : index
    %134 = vector.load %arg10[%c0_101, %c0_102] : memref<1x64xf32, #tpu.memory_space<vmem>>, vector<1x64xf32>
    %135 = vector.broadcast %134 : vector<1x64xf32> to vector<288x64xf32>
    %136 = arith.addf %133, %135 : vector<288x64xf32>
    %c0_103 = arith.constant 0 : index
    %c0_104 = arith.constant 0 : index
    %137 = vector.load %arg11[%c0_103, %c0_104] : memref<148x288xf32, #tpu.memory_space<vmem>>, vector<148x288xf32>
    %cst_105 = arith.constant dense<0.000000e+00> : vector<148x64xf32>
    %138 = tpu.matmul %137, %136, %cst_105 {dimension_numbers = #tpu.dot_dimension_numbers<[1], [0], [0], [1], [0, 0, 1, 1], [], []>} : vector<148x288xf32>, vector<288x64xf32>, vector<148x64xf32> -> vector<148x64xf32>
    %c0_106 = arith.constant 0 : index
    %c0_107 = arith.constant 0 : index
    %139 = vector.load %arg20[%c0_106, %c0_107] : memref<148x64xf32, #tpu.memory_space<vmem>>, vector<148x64xf32>
    tpu.vector_store %arg20[%c0_106, %c0_107], %138 {strides = array<i32>} : memref<148x64xf32, #tpu.memory_space<vmem>>, vector<148x64xf32>,
    %c0_108 = arith.constant 0 : index
    %c0_109 = arith.constant 0 : index
    %140 = vector.load %arg20[%c0_108, %c0_109] : memref<148x64xf32, #tpu.memory_space<vmem>>, vector<96x64xf32>
    %c0_110 = arith.constant 0 : index
    %c0_111 = arith.constant 0 : index
    %141 = vector.load %arg12[%c0_110, %c0_111] : memref<576x128xf32, #tpu.memory_space<vmem>>, vector<64x128xf32>
    %cst_112 = arith.constant dense<0.000000e+00> : vector<96x128xf32>
    %142 = tpu.matmul %140, %141, %cst_112 {dimension_numbers = #tpu.dot_dimension_numbers<[1], [0], [0], [1], [0, 0, 1, 1], [], []>} : vector<96x64xf32>, vector<64x128xf32>, vector<96x128xf32> -> vector<96x128xf32>
    %c2_113 = arith.constant 2 : index
    %c0_114 = arith.constant 0 : index
    %143 = vector.load %arg20[%c2_113, %c0_114] : memref<148x64xf32, #tpu.memory_space<vmem>>, vector<96x64xf32>
    %c64 = arith.constant 64 : index
    %c0_115 = arith.constant 0 : index
    %144 = vector.load %arg12[%c64, %c0_115] : memref<576x128xf32, #tpu.memory_space<vmem>>, vector<64x128xf32>
    %cst_116 = arith.constant dense<0.000000e+00> : vector<96x128xf32>
    %145 = tpu.matmul %143, %144, %cst_116 {dimension_numbers = #tpu.dot_dimension_numbers<[1], [0], [0], [1], [0, 0, 1, 1], [], []>} : vector<96x64xf32>, vector<64x128xf32>, vector<96x128xf32> -> vector<96x128xf32>
    %146 = arith.addf %142, %145 : vector<96x128xf32>
    %c4_117 = arith.constant 4 : index
    %c0_118 = arith.constant 0 : index
    %147 = vector.load %arg20[%c4_117, %c0_118] : memref<148x64xf32, #tpu.memory_space<vmem>>, vector<96x64xf32>
    %c128 = arith.constant 128 : index
    %c0_119 = arith.constant 0 : index
    %148 = vector.load %arg12[%c128, %c0_119] : memref<576x128xf32, #tpu.memory_space<vmem>>, vector<64x128xf32>
    %cst_120 = arith.constant dense<0.000000e+00> : vector<96x128xf32>
    %149 = tpu.matmul %147, %148, %cst_120 {dimension_numbers = #tpu.dot_dimension_numbers<[1], [0], [0], [1], [0, 0, 1, 1], [], []>} : vector<96x64xf32>, vector<64x128xf32>, vector<96x128xf32> -> vector<96x128xf32>
    %150 = arith.addf %146, %149 : vector<96x128xf32>
    %c24_121 = arith.constant 24 : index
    %c0_122 = arith.constant 0 : index
    %151 = vector.load %arg20[%c24_121, %c0_122] : memref<148x64xf32, #tpu.memory_space<vmem>>, vector<96x64xf32>
    %c192 = arith.constant 192 : index
    %c0_123 = arith.constant 0 : index
    %152 = vector.load %arg12[%c192, %c0_123] : memref<576x128xf32, #tpu.memory_space<vmem>>, vector<64x128xf32>
    %cst_124 = arith.constant dense<0.000000e+00> : vector<96x128xf32>
    %153 = tpu.matmul %151, %152, %cst_124 {dimension_numbers = #tpu.dot_dimension_numbers<[1], [0], [0], [1], [0, 0, 1, 1], [], []>} : vector<96x64xf32>, vector<64x128xf32>, vector<96x128xf32> -> vector<96x128xf32>
    %154 = arith.addf %150, %153 : vector<96x128xf32>
    %c26 = arith.constant 26 : index
    %c0_125 = arith.constant 0 : index
    %155 = vector.load %arg20[%c26, %c0_125] : memref<148x64xf32, #tpu.memory_space<vmem>>, vector<96x64xf32>
    %c256 = arith.constant 256 : index
    %c0_126 = arith.constant 0 : index
    %156 = vector.load %arg12[%c256, %c0_126] : memref<576x128xf32, #tpu.memory_space<vmem>>, vector<64x128xf32>
    %cst_127 = arith.constant dense<0.000000e+00> : vector<96x128xf32>
    %157 = tpu.matmul %155, %156, %cst_127 {dimension_numbers = #tpu.dot_dimension_numbers<[1], [0], [0], [1], [0, 0, 1, 1], [], []>} : vector<96x64xf32>, vector<64x128xf32>, vector<96x128xf32> -> vector<96x128xf32>
    %158 = arith.addf %154, %157 : vector<96x128xf32>
    %c28 = arith.constant 28 : index
    %c0_128 = arith.constant 0 : index
    %159 = vector.load %arg20[%c28, %c0_128] : memref<148x64xf32, #tpu.memory_space<vmem>>, vector<96x64xf32>
    %c320 = arith.constant 320 : index
    %c0_129 = arith.constant 0 : index
    %160 = vector.load %arg12[%c320, %c0_129] : memref<576x128xf32, #tpu.memory_space<vmem>>, vector<64x128xf32>
    %cst_130 = arith.constant dense<0.000000e+00> : vector<96x128xf32>
    %161 = tpu.matmul %159, %160, %cst_130 {dimension_numbers = #tpu.dot_dimension_numbers<[1], [0], [0], [1], [0, 0, 1, 1], [], []>} : vector<96x64xf32>, vector<64x128xf32>, vector<96x128xf32> -> vector<96x128xf32>
    %162 = arith.addf %158, %161 : vector<96x128xf32>
    %c48 = arith.constant 48 : index
    %c0_131 = arith.constant 0 : index
    %163 = vector.load %arg20[%c48, %c0_131] : memref<148x64xf32, #tpu.memory_space<vmem>>, vector<96x64xf32>
    %c384 = arith.constant 384 : index
    %c0_132 = arith.constant 0 : index
    %164 = vector.load %arg12[%c384, %c0_132] : memref<576x128xf32, #tpu.memory_space<vmem>>, vector<64x128xf32>
    %cst_133 = arith.constant dense<0.000000e+00> : vector<96x128xf32>
    %165 = tpu.matmul %163, %164, %cst_133 {dimension_numbers = #tpu.dot_dimension_numbers<[1], [0], [0], [1], [0, 0, 1, 1], [], []>} : vector<96x64xf32>, vector<64x128xf32>, vector<96x128xf32> -> vector<96x128xf32>
    %166 = arith.addf %162, %165 : vector<96x128xf32>
    %c50 = arith.constant 50 : index
    %c0_134 = arith.constant 0 : index
    %167 = vector.load %arg20[%c50, %c0_134] : memref<148x64xf32, #tpu.memory_space<vmem>>, vector<96x64xf32>
    %c448 = arith.constant 448 : index
    %c0_135 = arith.constant 0 : index
    %168 = vector.load %arg12[%c448, %c0_135] : memref<576x128xf32, #tpu.memory_space<vmem>>, vector<64x128xf32>
    %cst_136 = arith.constant dense<0.000000e+00> : vector<96x128xf32>
    %169 = tpu.matmul %167, %168, %cst_136 {dimension_numbers = #tpu.dot_dimension_numbers<[1], [0], [0], [1], [0, 0, 1, 1], [], []>} : vector<96x64xf32>, vector<64x128xf32>, vector<96x128xf32> -> vector<96x128xf32>
    %170 = arith.addf %166, %169 : vector<96x128xf32>
    %c52 = arith.constant 52 : index
    %c0_137 = arith.constant 0 : index
    %171 = vector.load %arg20[%c52, %c0_137] : memref<148x64xf32, #tpu.memory_space<vmem>>, vector<96x64xf32>
    %c512 = arith.constant 512 : index
    %c0_138 = arith.constant 0 : index
    %172 = vector.load %arg12[%c512, %c0_138] : memref<576x128xf32, #tpu.memory_space<vmem>>, vector<64x128xf32>
    %cst_139 = arith.constant dense<0.000000e+00> : vector<96x128xf32>
    %173 = tpu.matmul %171, %172, %cst_139 {dimension_numbers = #tpu.dot_dimension_numbers<[1], [0], [0], [1], [0, 0, 1, 1], [], []>} : vector<96x64xf32>, vector<64x128xf32>, vector<96x128xf32> -> vector<96x128xf32>
    %174 = arith.addf %170, %173 : vector<96x128xf32>
    %cst_140 = arith.constant 0.000000e+00 : f32
    %175 = vector.broadcast %cst_140 : f32 to vector<96x128xf32>
    %176 = arith.maximumf %174, %175 : vector<96x128xf32>
    %c0_141 = arith.constant 0 : index
    %c0_142 = arith.constant 0 : index
    %177 = vector.load %arg13[%c0_141, %c0_142] : memref<1x128xf32, #tpu.memory_space<vmem>>, vector<1x128xf32>
    %178 = vector.broadcast %177 : vector<1x128xf32> to vector<96x128xf32>
    %179 = arith.addf %176, %178 : vector<96x128xf32>
    %c0_143 = arith.constant 0 : index
    %c0_144 = arith.constant 0 : index
    %180 = vector.load %arg14[%c0_143, %c0_144] : memref<38x96xf32, #tpu.memory_space<vmem>>, vector<38x96xf32>
    %cst_145 = arith.constant dense<0.000000e+00> : vector<38x128xf32>
    %181 = tpu.matmul %180, %179, %cst_145 {dimension_numbers = #tpu.dot_dimension_numbers<[1], [0], [0], [1], [0, 0, 1, 1], [], []>} : vector<38x96xf32>, vector<96x128xf32>, vector<38x128xf32> -> vector<38x128xf32>
    %c0_146 = arith.constant 0 : index
    %c0_147 = arith.constant 0 : index
    %182 = vector.load %arg21[%c0_146, %c0_147] : memref<38x128xf32, #tpu.memory_space<vmem>>, vector<38x128xf32>
    tpu.vector_store %arg21[%c0_146, %c0_147], %181 {strides = array<i32>} : memref<38x128xf32, #tpu.memory_space<vmem>>, vector<38x128xf32>,
    %c0_148 = arith.constant 0 : index
    %c0_149 = arith.constant 0 : index
    %183 = vector.load %arg21[%c0_148, %c0_149] : memref<38x128xf32, #tpu.memory_space<vmem>>, vector<24x128xf32>
    %c0_150 = arith.constant 0 : index
    %c0_151 = arith.constant 0 : index
    %184 = vector.load %arg15[%c0_150, %c0_151] : memref<1152x128xf32, #tpu.memory_space<vmem>>, vector<128x128xf32>
    %cst_152 = arith.constant dense<0.000000e+00> : vector<24x128xf32>
    %185 = tpu.matmul %183, %184, %cst_152 {dimension_numbers = #tpu.dot_dimension_numbers<[1], [0], [0], [1], [0, 0, 1, 1], [], []>} : vector<24x128xf32>, vector<128x128xf32>, vector<24x128xf32> -> vector<24x128xf32>
    %c1_153 = arith.constant 1 : index
    %c0_154 = arith.constant 0 : index
    %186 = vector.load %arg21[%c1_153, %c0_154] : memref<38x128xf32, #tpu.memory_space<vmem>>, vector<24x128xf32>
    %c128_155 = arith.constant 128 : index
    %c0_156 = arith.constant 0 : index
    %187 = vector.load %arg15[%c128_155, %c0_156] : memref<1152x128xf32, #tpu.memory_space<vmem>>, vector<128x128xf32>
    %cst_157 = arith.constant dense<0.000000e+00> : vector<24x128xf32>
    %188 = tpu.matmul %186, %187, %cst_157 {dimension_numbers = #tpu.dot_dimension_numbers<[1], [0], [0], [1], [0, 0, 1, 1], [], []>} : vector<24x128xf32>, vector<128x128xf32>, vector<24x128xf32> -> vector<24x128xf32>
    %189 = arith.addf %185, %188 : vector<24x128xf32>
    %c2_158 = arith.constant 2 : index
    %c0_159 = arith.constant 0 : index
    %190 = vector.load %arg21[%c2_158, %c0_159] : memref<38x128xf32, #tpu.memory_space<vmem>>, vector<24x128xf32>
    %c256_160 = arith.constant 256 : index
    %c0_161 = arith.constant 0 : index
    %191 = vector.load %arg15[%c256_160, %c0_161] : memref<1152x128xf32, #tpu.memory_space<vmem>>, vector<128x128xf32>
    %cst_162 = arith.constant dense<0.000000e+00> : vector<24x128xf32>
    %192 = tpu.matmul %190, %191, %cst_162 {dimension_numbers = #tpu.dot_dimension_numbers<[1], [0], [0], [1], [0, 0, 1, 1], [], []>} : vector<24x128xf32>, vector<128x128xf32>, vector<24x128xf32> -> vector<24x128xf32>
    %193 = arith.addf %189, %192 : vector<24x128xf32>
    %c6_163 = arith.constant 6 : index
    %c0_164 = arith.constant 0 : index
    %194 = vector.load %arg21[%c6_163, %c0_164] : memref<38x128xf32, #tpu.memory_space<vmem>>, vector<24x128xf32>
    %c384_165 = arith.constant 384 : index
    %c0_166 = arith.constant 0 : index
    %195 = vector.load %arg15[%c384_165, %c0_166] : memref<1152x128xf32, #tpu.memory_space<vmem>>, vector<128x128xf32>
    %cst_167 = arith.constant dense<0.000000e+00> : vector<24x128xf32>
    %196 = tpu.matmul %194, %195, %cst_167 {dimension_numbers = #tpu.dot_dimension_numbers<[1], [0], [0], [1], [0, 0, 1, 1], [], []>} : vector<24x128xf32>, vector<128x128xf32>, vector<24x128xf32> -> vector<24x128xf32>
    %197 = arith.addf %193, %196 : vector<24x128xf32>
    %c7_168 = arith.constant 7 : index
    %c0_169 = arith.constant 0 : index
    %198 = vector.load %arg21[%c7_168, %c0_169] : memref<38x128xf32, #tpu.memory_space<vmem>>, vector<24x128xf32>
    %c512_170 = arith.constant 512 : index
    %c0_171 = arith.constant 0 : index
    %199 = vector.load %arg15[%c512_170, %c0_171] : memref<1152x128xf32, #tpu.memory_space<vmem>>, vector<128x128xf32>
    %cst_172 = arith.constant dense<0.000000e+00> : vector<24x128xf32>
    %200 = tpu.matmul %198, %199, %cst_172 {dimension_numbers = #tpu.dot_dimension_numbers<[1], [0], [0], [1], [0, 0, 1, 1], [], []>} : vector<24x128xf32>, vector<128x128xf32>, vector<24x128xf32> -> vector<24x128xf32>
    %201 = arith.addf %197, %200 : vector<24x128xf32>
    %c8_173 = arith.constant 8 : index
    %c0_174 = arith.constant 0 : index
    %202 = vector.load %arg21[%c8_173, %c0_174] : memref<38x128xf32, #tpu.memory_space<vmem>>, vector<24x128xf32>
    %c640 = arith.constant 640 : index
    %c0_175 = arith.constant 0 : index
    %203 = vector.load %arg15[%c640, %c0_175] : memref<1152x128xf32, #tpu.memory_space<vmem>>, vector<128x128xf32>
    %cst_176 = arith.constant dense<0.000000e+00> : vector<24x128xf32>
    %204 = tpu.matmul %202, %203, %cst_176 {dimension_numbers = #tpu.dot_dimension_numbers<[1], [0], [0], [1], [0, 0, 1, 1], [], []>} : vector<24x128xf32>, vector<128x128xf32>, vector<24x128xf32> -> vector<24x128xf32>
    %205 = arith.addf %201, %204 : vector<24x128xf32>
    %c12_177 = arith.constant 12 : index
    %c0_178 = arith.constant 0 : index
    %206 = vector.load %arg21[%c12_177, %c0_178] : memref<38x128xf32, #tpu.memory_space<vmem>>, vector<24x128xf32>
    %c768 = arith.constant 768 : index
    %c0_179 = arith.constant 0 : index
    %207 = vector.load %arg15[%c768, %c0_179] : memref<1152x128xf32, #tpu.memory_space<vmem>>, vector<128x128xf32>
    %cst_180 = arith.constant dense<0.000000e+00> : vector<24x128xf32>
    %208 = tpu.matmul %206, %207, %cst_180 {dimension_numbers = #tpu.dot_dimension_numbers<[1], [0], [0], [1], [0, 0, 1, 1], [], []>} : vector<24x128xf32>, vector<128x128xf32>, vector<24x128xf32> -> vector<24x128xf32>
    %209 = arith.addf %205, %208 : vector<24x128xf32>
    %c13 = arith.constant 13 : index
    %c0_181 = arith.constant 0 : index
    %210 = vector.load %arg21[%c13, %c0_181] : memref<38x128xf32, #tpu.memory_space<vmem>>, vector<24x128xf32>
    %c896 = arith.constant 896 : index
    %c0_182 = arith.constant 0 : index
    %211 = vector.load %arg15[%c896, %c0_182] : memref<1152x128xf32, #tpu.memory_space<vmem>>, vector<128x128xf32>
    %cst_183 = arith.constant dense<0.000000e+00> : vector<24x128xf32>
    %212 = tpu.matmul %210, %211, %cst_183 {dimension_numbers = #tpu.dot_dimension_numbers<[1], [0], [0], [1], [0, 0, 1, 1], [], []>} : vector<24x128xf32>, vector<128x128xf32>, vector<24x128xf32> -> vector<24x128xf32>
    %213 = arith.addf %209, %212 : vector<24x128xf32>
    %c14 = arith.constant 14 : index
    %c0_184 = arith.constant 0 : index
    %214 = vector.load %arg21[%c14, %c0_184] : memref<38x128xf32, #tpu.memory_space<vmem>>, vector<24x128xf32>
    %c1024 = arith.constant 1024 : index
    %c0_185 = arith.constant 0 : index
    %215 = vector.load %arg15[%c1024, %c0_185] : memref<1152x128xf32, #tpu.memory_space<vmem>>, vector<128x128xf32>
    %cst_186 = arith.constant dense<0.000000e+00> : vector<24x128xf32>
    %216 = tpu.matmul %214, %215, %cst_186 {dimension_numbers = #tpu.dot_dimension_numbers<[1], [0], [0], [1], [0, 0, 1, 1], [], []>} : vector<24x128xf32>, vector<128x128xf32>, vector<24x128xf32> -> vector<24x128xf32>
    %217 = arith.addf %213, %216 : vector<24x128xf32>
    %cst_187 = arith.constant 0.000000e+00 : f32
    %218 = vector.broadcast %cst_187 : f32 to vector<24x128xf32>
    %219 = arith.maximumf %217, %218 : vector<24x128xf32>
    %c0_188 = arith.constant 0 : index
    %c0_189 = arith.constant 0 : index
    %220 = vector.load %arg16[%c0_188, %c0_189] : memref<1x128xf32, #tpu.memory_space<vmem>>, vector<1x128xf32>
    %221 = vector.broadcast %220 : vector<1x128xf32> to vector<24x128xf32>
    %222 = arith.addf %219, %221 : vector<24x128xf32>
    %223 = vector.extract_strided_slice %222 {offsets = [0, 0], sizes = [1, 128], strides = [1, 1]} : vector<24x128xf32> to vector<1x128xf32>
    %224 = vector.extract_strided_slice %222 {offsets = [2, 0], sizes = [1, 128], strides = [1, 1]} : vector<24x128xf32> to vector<1x128xf32>
    %225 = arith.addf %223, %224 : vector<1x128xf32>
    %226 = vector.extract_strided_slice %222 {offsets = [12, 0], sizes = [1, 128], strides = [1, 1]} : vector<24x128xf32> to vector<1x128xf32>
    %227 = arith.addf %225, %226 : vector<1x128xf32>
    %228 = vector.extract_strided_slice %222 {offsets = [14, 0], sizes = [1, 128], strides = [1, 1]} : vector<24x128xf32> to vector<1x128xf32>
    %229 = arith.addf %227, %228 : vector<1x128xf32>
    %cst_190 = arith.constant 2.500000e-01 : f32
    %230 = vector.broadcast %cst_190 : f32 to vector<1x128xf32>
    %231 = arith.mulf %229, %230 : vector<1x128xf32>
    %cst_191 = arith.constant dense<0xFF800000> : vector<1xf32>
    %232 = vector.multi_reduction <maximumf>, %231, %cst_191 [1] : vector<1x128xf32> to vector<1xf32>
    %233 = vector.shape_cast %232 : vector<1xf32> to vector<1x1xf32>
    %234 = vector.broadcast %233 : vector<1x1xf32> to vector<1x128xf32>
    %235 = arith.subf %231, %234 : vector<1x128xf32>
    %236 = math.exp %235 : vector<1x128xf32>
    %cst_192 = arith.constant dense<0.000000e+00> : vector<1xf32>
    %237 = vector.multi_reduction <add>, %236, %cst_192 [1] : vector<1x128xf32> to vector<1xf32>
    %238 = vector.shape_cast %237 : vector<1xf32> to vector<1x1xf32>
    %239 = math.log %238 : vector<1x1xf32>
    %240 = vector.broadcast %239 : vector<1x1xf32> to vector<1x128xf32>
    %241 = arith.subf %235, %240 : vector<1x128xf32>
    %242 = vector.shape_cast %241 : vector<1x128xf32> to vector<1x1x128xf32>
    %c0_193 = arith.constant 0 : index
    %c0_194 = arith.constant 0 : index
    %c0_195 = arith.constant 0 : index
    %243 = vector.load %arg17[%c0_193, %c0_194, %c0_195] : memref<1x1x128xf32, #tpu.memory_space<vmem>>, vector<1x1x128xf32>
    tpu.vector_store %arg17[%c0_193, %c0_194, %c0_195], %242 {strides = array<i32>} : memref<1x1x128xf32, #tpu.memory_space<vmem>>, vector<1x1x128xf32>,
    return
  }
  func.func @transform_0(%arg0: i32) -> (i32, i32, i32) {
    %c0_i32 = arith.constant 0 : i32
    %c0_i32_0 = arith.constant 0 : i32
    %c0_i32_1 = arith.constant 0 : i32
    return %arg0, %c0_i32, %c0_i32_0 : i32, i32, i32
  }
  func.func @transform_1(%arg0: i32) -> (i32, i32) {
    %c0_i32 = arith.constant 0 : i32
    %c0_i32_0 = arith.constant 0 : i32
    %c0_i32_1 = arith.constant 0 : i32
    return %c0_i32, %c0_i32_0 : i32, i32
  }
  func.func @transform_2(%arg0: i32) -> (i32, i32) {
    %c0_i32 = arith.constant 0 : i32
    %c0_i32_0 = arith.constant 0 : i32
    %c0_i32_1 = arith.constant 0 : i32
    return %c0_i32, %c0_i32_0 : i32, i32
  }
  func.func @transform_3(%arg0: i32) -> (i32, i32) {
    %c0_i32 = arith.constant 0 : i32
    %c0_i32_0 = arith.constant 0 : i32
    %c0_i32_1 = arith.constant 0 : i32
    return %c0_i32, %c0_i32_0 : i32, i32
  }
  func.func @transform_4(%arg0: i32) -> (i32, i32) {
    %c0_i32 = arith.constant 0 : i32
    %c0_i32_0 = arith.constant 0 : i32
    %c0_i32_1 = arith.constant 0 : i32
    return %c0_i32, %c0_i32_0 : i32, i32
  }
  func.func @transform_5(%arg0: i32) -> (i32, i32) {
    %c0_i32 = arith.constant 0 : i32
    %c0_i32_0 = arith.constant 0 : i32
    %c0_i32_1 = arith.constant 0 : i32
    return %c0_i32, %c0_i32_0 : i32, i32
  }
  func.func @transform_6(%arg0: i32) -> (i32, i32) {
    %c0_i32 = arith.constant 0 : i32
    %c0_i32_0 = arith.constant 0 : i32
    %c0_i32_1 = arith.constant 0 : i32
    return %c0_i32, %c0_i32_0 : i32, i32
  }
  func.func @transform_7(%arg0: i32) -> (i32, i32) {
    %c0_i32 = arith.constant 0 : i32
    %c0_i32_0 = arith.constant 0 : i32
    %c0_i32_1 = arith.constant 0 : i32
    return %c0_i32, %c0_i32_0 : i32, i32
  }
  func.func @transform_8(%arg0: i32) -> (i32, i32) {
    %c0_i32 = arith.constant 0 : i32
    %c0_i32_0 = arith.constant 0 : i32
    %c0_i32_1 = arith.constant 0 : i32
    return %c0_i32, %c0_i32_0 : i32, i32
  }
  func.func @transform_9(%arg0: i32) -> (i32, i32) {
    %c0_i32 = arith.constant 0 : i32
    %c0_i32_0 = arith.constant 0 : i32
    %c0_i32_1 = arith.constant 0 : i32
    return %c0_i32, %c0_i32_0 : i32, i32
  }
  func.func @transform_10(%arg0: i32) -> (i32, i32) {
    %c0_i32 = arith.constant 0 : i32
    %c0_i32_0 = arith.constant 0 : i32
    %c0_i32_1 = arith.constant 0 : i32
    return %c0_i32, %c0_i32_0 : i32, i32
  }
  func.func @transform_11(%arg0: i32) -> (i32, i32) {
    %c0_i32 = arith.constant 0 : i32
    %c0_i32_0 = arith.constant 0 : i32
    %c0_i32_1 = arith.constant 0 : i32
    return %c0_i32, %c0_i32_0 : i32, i32
  }
  func.func @transform_12(%arg0: i32) -> (i32, i32) {
    %c0_i32 = arith.constant 0 : i32
    %c0_i32_0 = arith.constant 0 : i32
    %c0_i32_1 = arith.constant 0 : i32
    return %c0_i32, %c0_i32_0 : i32, i32
  }
  func.func @transform_13(%arg0: i32) -> (i32, i32) {
    %c0_i32 = arith.constant 0 : i32
    %c0_i32_0 = arith.constant 0 : i32
    %c0_i32_1 = arith.constant 0 : i32
    return %c0_i32, %c0_i32_0 : i32, i32
  }
  func.func @transform_14(%arg0: i32) -> (i32, i32) {
    %c0_i32 = arith.constant 0 : i32
    %c0_i32_0 = arith.constant 0 : i32
    %c0_i32_1 = arith.constant 0 : i32
    return %c0_i32, %c0_i32_0 : i32, i32
  }
  func.func @transform_15(%arg0: i32) -> (i32, i32) {
    %c0_i32 = arith.constant 0 : i32
    %c0_i32_0 = arith.constant 0 : i32
    %c0_i32_1 = arith.constant 0 : i32
    return %c0_i32, %c0_i32_0 : i32, i32
  }
  func.func @transform_16(%arg0: i32) -> (i32, i32, i32) {
    %c0_i32 = arith.constant 0 : i32
    %c0_i32_0 = arith.constant 0 : i32
    %c0_i32_1 = arith.constant 0 : i32
    return %arg0, %c0_i32, %c0_i32_0 : i32, i32, i32
  }
}

</mosaic_0001>

<bundles_post_ra>
// kernel: squeeze.3
= control target key start
LH: loop header
LB: loop body
LE: loop exit
PB: predicated region body
PF: predicated region fallthrough
CT: control target
= control target key end

     0   :  { %vm17_vm0 = vcmask 261120   ;;  %s62_s0 = inlined_call_operand.vmem [shape: f32[3,3,32], index: 0, kind: input, shape index: {}]   ;;  %s63_s1 = inlined_call_operand.vmem [shape: f32[9,32], index: 1, kind: output, shape index: {}]  }
   0x1   :  { %v30_v0 = vld [vmem:[%s62_s0 + $0x8] sm:$0xf]  ;;  %v31_v1 = vld [vmem:[%s62_s0 + $0x4] sm:$0xf]  ;;  %v14_v2 = vld [vmem:[%s62_s0] sm:$0xf] }
   0x2   :  { %9 = vst [vmem:[#allocation0] sm:$0xf] %v30_v0  ;;  %13 = vst [vmem:[#allocation0 + $0x10] sm:$0xf] %v31_v1 }
   0x3   :  { %15 = vst [vmem:[#allocation0 + $0x8] sm:$0xf] %v14_v2 }
   0x9   :  { %v20_v4 = vld [vmem:[#allocation0 + $0x10] sm:$0x7]   ;;  %v25_v5 = vld [vmem:[#allocation0] sm:$0x7]  }
   0xa   :  { %v16_v3 = vld [vmem:[#allocation0 + $0x8] sm:$0x7]   ;;  %32 = vst.msk [vmem:[%s63_s1 + $0x3] sm:$0x7] %vm17_vm0, %v20_v4   ;;  %33 = vst.msk [vmem:[%s63_s1 + $0x6] sm:$0x7] %vm17_vm0, %v25_v5  }
   0xb   :  { %18 = vst.msk [vmem:[%s63_s1] sm:$0x7] %vm17_vm0, %v16_v3  }

// kernel: net_forward.1
= control target key start
LH: loop header
LB: loop body
LE: loop exit
PB: predicated region body
PF: predicated region fallthrough
CT: control target
= control target key end

     0   :  { %s20604_s0 = inlined_call_operand.vmem [shape: f32[2,256,3], index: 0, kind: input, shape index: {}]   ;;  %s20605_s1 = inlined_call_operand.vmem [shape: f32[326,256], index: 1, kind: input, shape index: {}]   ;;  %s20606_s2 = inlined_call_operand.vmem [shape: f32[27,32], index: 2, kind: input, shape index: {}]   ;;  %s20607_s3 = inlined_call_operand.vmem [shape: f32[1,32], index: 3, kind: input, shape index: {}]   ;;  %s20608_s4 = inlined_call_operand.vmem [shape: f32[326,288], index: 4, kind: input, shape index: {}]   ;;  %s20609_s5 = inlined_call_operand.vmem [shape: f32[9,32], index: 5, kind: input, shape index: {}]   ;;  %s20610_s6 = inlined_call_operand.vmem [shape: f32[9,32], index: 6, kind: input, shape index: {}]   ;;  %s20611_s7 = inlined_call_operand.vmem [shape: f32[32,64], index: 7, kind: input, shape index: {}]   ;;  %s20612_s8 = inlined_call_operand.vmem [shape: f32[32,64], index: 8, kind: input, shape index: {}]   ;;  %s20613_s9 = inlined_call_operand.vmem [shape: f32[1,64], index: 9, kind: input, shape index: {}]   ;;  %s20614_s10 = inlined_call_operand.vmem [shape: f32[148,288], index: 10, kind: input, shape index: {}]   ;;  %s20615_s11 = inlined_call_operand.vmem [shape: f32[576,128], index: 11, kind: input, shape index: {}]   ;;  %s20616_s12 = inlined_call_operand.vmem [shape: f32[1,128], index: 12, kind: input, shape index: {}]   ;;  %s20617_s13 = inlined_call_operand.vmem [shape: f32[38,96], index: 13, kind: input, shape index: {}]   ;;  %s20618_s14 = inlined_call_operand.vmem [shape: f32[1152,128], index: 14, kind: input, shape index: {}]   ;;  %s20619_s15 = inlined_call_operand.vmem [shape: f32[1,128], index: 15, kind: input, shape index: {}]   ;;  %s20620_s16 = inlined_call_operand.hbm [shape: f32[2,1,128], index: 16, kind: output, shape index: {}]  }
   0x1   :  { %20640 = sst [smem:[#allocation124_spill]] %s20604_s0 }
   0x2   :  { %20641 = sst [smem:[#allocation125_spill]] %s20605_s1 }
   0x3   :  { %20642 = sst [smem:[#allocation126_spill]] %s20606_s2 }
   0x4   :  { %21 = vsyncpa [#allocation7], 0 }
   0x5   :  { %23 = vsyncpa [#allocation7 + $0x1], 0  ;;  %s14571_s21 = smov 0   ;;  %s14573_s22 = smov 0  }
   0x6   :  { %s14575_s23 = smov 0   ;;  %s14577_s24 = smov 0  }
   0x7 LB: > { %20643 = sst [smem:[#allocation9_spill]] %s14477_s23  ;;  %s14592_s25 = sadd.s32 4294967295, %s14481_s24   ;;  %s14481_s24 = sphi %s14577_s24, %s21026_s24   ;;  %s14477_s23 = sphi %s14575_s23, %s21028_s23   ;;  %s14473_s22 = sphi %s14573_s22, %s21030_s22   ;;  %s14469_s21 = sphi %s14571_s21, %s21029_s21  }
   0x8   : > { %s11323_s26 = sadd.s32 4294967294, %s14481_s24   ;;  %s14596_s27 = sadd.s32 1, %s14481_s24  }
   0x9   : > { %20644 = sst [smem:[#allocation10_spill]] %s14596_s27  ;;  %s377_s28 = sadd.s32 1, %s14477_s23 }
   0xa   : > { %s374_s29 = ssub.s32 %s14481_s24, %s14596_s27  ;;  %p387_p0 = scmp.ne.s32.totalorder %s14477_s23, %s14473_s22 }
   0xb   : > { %p375_p1 = scmp.eq.s32.totalorder %s374_s29, 0  ;;  %p388_p2 = scmp.eq.s32.totalorder %s14592_s25, 1 }
   0xc   : > { %p393_p3 = scmp.ne.s32.totalorder %s14473_s22, %s14469_s21  ;;  %p394_p4 = scmp.eq.s32.totalorder %s11323_s26, 1 }
   0xd   : > { %s14607_s30 = scalar_select %p375_p1, %s14477_s23, %s377_s28  }
   0xe   : > { %p14609_p5 = por %p388_p2, %p387_p0  ;;  %p14613_p6 = por %p394_p4, %p393_p3 }
   0xf   : > { %20645 = sst [smem:[#allocation11_spill]] %s14607_s30  ;;  %p11326_p7 = scmp.ge.s32.totalorder %s14481_s24, 1 }
  0x10   : > { %s20647_s17 = scalar_select %p14613_p6, 1, 0 }
  0x11   : > { %p465_p8 = scmp.lt.s32.totalorder %s14481_s24, 3 }
  0x12   : > { %20648 = sst [smem:[#allocation12_spill]] %s20647_s17 }
  0x13   : > { %p466_p9 = pnand %p11326_p7, %p465_p8 }
  0x15   : > { %469 = sbr.rel (%p466_p9) target bundleno = 3228 (0xc9c), region = 84 }
  0x1a   : > { %p514_p10 = scmp.lt.s32.totalorder %s14592_s25, 1  ;;  %s20649_s1 = sld [smem:[#allocation125_spill]]  ;;  %v20625_v1 = vmov 0.0   ;;  %vm1128_vm0 = vcmask 1042432   ;;  %vm903_vm1 = vcmask 23552   ;;  %vm944_vm2 = vcmask 21504  }
  0x1b   : > { %633 = vmatprep.subr.mxu0 %v20625_v1  ;;  %s20650_s30 = sld [smem:[#allocation124_spill]]  ;;  %vm14484_vm3 = vmmov 0   ;;  %vm4938_vm4 = vcmask 261120   ;;  %vm5642_vm5 = vcmask 259072   ;;  %vm8441_vm6 = vcmask 523264   ;;  %s512_s27 = sand.u32 1, %s14473_s22  }
  0x1c   : > { %s515_s20 = scalar_select %p514_p10, %s14592_s25, 1  ;;  %vm8460_vm7 = vcmask 519168   ;;  %vm10211_vm8 = vcmask 785408   ;;  %vm11241_vm9 = vcmask 1040384  }
  0x1d   : > { %s20651_s2 = sld [smem:[#allocation126_spill]]  ;;  %s11929_s19 = sshll.u32 %s14592_s25, 4 }
  0x1e   : > { %s11932_s26 = sshll.u32 %s515_s20, 8  ;;  %s513_s17 = scalar_lea.vmem [#allocation6], %s512_s27 }
  0x1f   : > { %s11268_s20 = sshll.u32 %s513_s17, 4  ;;  %s11266_s29 = scalar_lea.hbm %s20620_s16, %s11929_s19  ;;  %s11269_s20 = int_to_ptr.vmem [resolvable:$true] %s11268_s20 }
  0x20   : > { %v520_v0 = vld [vmem:[%s20649_s1 + $0x8] sm:$0xff]  ;;  %v519_v34 = vld [vmem:[%s20649_s1] sm:$0xff]  ;;  %v522_v35 = vld [vmem:[%s20649_s1 + $0x18] sm:$0xff]  ;;  %s14485_s18 = smov [#allocation6]  }
  0x21   : > { %697 = vmatprep.mubr.f32.mxu0 %v520_v0  ;;  %s14628_s23 = scalar_lea.vmem %s20650_s30, %s11932_s26  ;;  %v521_v36 = vld [vmem:[%s20649_s1 + $0x10] sm:$0xff]  ;;  %v524_v37 = vld [vmem:[%s20649_s1 + $0x28] sm:$0xff]  ;;  %v523_v38 = vld [vmem:[%s20649_s1 + $0x20] sm:$0xff]  ;;  %s14421_s30 = scalar_lea.vmem %s11269_s20, 16 }
  0x22   : > { %v616_v2 = vld [vmem:[%s14628_s23 + $0x78] sm:$0xff]  ;;  %v615_v3 = vld [vmem:[%s14628_s23 + $0x70] sm:$0xff]  ;;  %v614_v4 = vld [vmem:[%s14628_s23 + $0x68] sm:$0xff]  ;;  %p14422_p11 = scmp.ne.s32.totalorder %s11269_s20, %s14421_s30 }
  0x23   : > { %634 = vmatpush1.msra.mxu0 %v616_v2  ;;  %v613_v5 = vld [vmem:[%s14628_s23 + $0x60] sm:$0xff]  ;;  %v612_v6 = vld [vmem:[%s14628_s23 + $0x58] sm:$0xff]  ;;  %v611_v7 = vld [vmem:[%s14628_s23 + $0x50] sm:$0xff] }
  0x24   : > { %635 = vmatprep.subr.mxu0 %v20625_v1  ;;  %v610_v8 = vld [vmem:[%s14628_s23 + $0x48] sm:$0xff]  ;;  %v609_v9 = vld [vmem:[%s14628_s23 + $0x40] sm:$0xff]  ;;  %v608_v10 = vld [vmem:[%s14628_s23 + $0x38] sm:$0xff]  ;;  %p14423_p12 = pnand %p14422_p11, %p14609_p5 }
  0x25   : > { %636 = vmatpush1.msra.mxu0 %v615_v3  ;;  %v607_v11 = vld [vmem:[%s14628_s23 + $0x30] sm:$0xff]  ;;  %v606_v12 = vld [vmem:[%s14628_s23 + $0x28] sm:$0xff]  ;;  %v605_v13 = vld [vmem:[%s14628_s23 + $0x20] sm:$0xff] }
  0x26   : > { %637 = vmatprep.subr.mxu0 %v20625_v1  ;;  %v604_v14 = vld [vmem:[%s14628_s23 + $0x18] sm:$0xff]  ;;  %v603_v15 = vld [vmem:[%s14628_s23 + $0x10] sm:$0xff]  ;;  %v602_v16 = vld [vmem:[%s14628_s23 + $0x8] sm:$0xff]  ;;  %p14424_p13 = pneg %p14423_p12 }
  0x27   : > { %638 = vmatpush1.msra.mxu0 %v614_v4  ;;  %v601_v17 = vld [vmem:[%s14628_s23] sm:$0xff]  ;;  %v632_v18 = vld [vmem:[%s14628_s23 + $0xf8] sm:$0xff]  ;;  %v631_v19 = vld [vmem:[%s14628_s23 + $0xf0] sm:$0xff] }
  0x28   : > { %639 = vmatprep.subr.mxu0 %v20625_v1  ;;  %v630_v20 = vld [vmem:[%s14628_s23 + $0xe8] sm:$0xff]  ;;  %v629_v21 = vld [vmem:[%s14628_s23 + $0xe0] sm:$0xff]  ;;  %v628_v22 = vld [vmem:[%s14628_s23 + $0xd8] sm:$0xff] }
  0x29   : > { %640 = vmatpush1.msra.mxu0 %v613_v5  ;;  %v627_v23 = vld [vmem:[%s14628_s23 + $0xd0] sm:$0xff]  ;;  %v626_v24 = vld [vmem:[%s14628_s23 + $0xc8] sm:$0xff]  ;;  %v625_v25 = vld [vmem:[%s14628_s23 + $0xc0] sm:$0xff] }
  0x2a   : > { %641 = vmatprep.subr.mxu0 %v20625_v1  ;;  %v624_v26 = vld [vmem:[%s14628_s23 + $0xb8] sm:$0xff]  ;;  %v623_v27 = vld [vmem:[%s14628_s23 + $0xb0] sm:$0xff]  ;;  %v622_v28 = vld [vmem:[%s14628_s23 + $0xa8] sm:$0xff] }
  0x2b   : > { %642 = vmatpush1.msra.mxu0 %v612_v6  ;;  %v621_v29 = vld [vmem:[%s14628_s23 + $0xa0] sm:$0xff]  ;;  %v620_v30 = vld [vmem:[%s14628_s23 + $0x98] sm:$0xff]  ;;  %v619_v31 = vld [vmem:[%s14628_s23 + $0x90] sm:$0xff] }
  0x2c   : > { %643 = vmatprep.subr.mxu0 %v20625_v1  ;;  %v618_v32 = vld [vmem:[%s14628_s23 + $0x88] sm:$0xff]  ;;  %v617_v33 = vld [vmem:[%s14628_s23 + $0x80] sm:$0xff]  ;;  %v526_v39 = vld [vmem:[%s20649_s1 + $0x38] sm:$0xff]  ;;  %s11256_s23 = scalar_lea.sflag [#allocation7], %s512_s27 }
  0x2d   : > { %644 = vmatpush1.msra.mxu0 %v611_v7  ;;  %v525_v40 = vld [vmem:[%s20649_s1 + $0x30] sm:$0xff]  ;;  %v528_v41 = vld [vmem:[%s20649_s1 + $0x48] sm:$0xff]  ;;  %v527_v42 = vld [vmem:[%s20649_s1 + $0x40] sm:$0xff] }
  0x2e   : > { %645 = vmatprep.subr.mxu0 %v20625_v1  ;;  %v530_v43 = vld [vmem:[%s20649_s1 + $0x58] sm:$0xff]  ;;  %v529_v44 = vld [vmem:[%s20649_s1 + $0x50] sm:$0xff]  ;;  %v532_v45 = vld [vmem:[%s20649_s1 + $0x68] sm:$0xff] }
  0x2f   : > { %646 = vmatpush1.msra.mxu0 %v610_v8  ;;  %v531_v46 = vld [vmem:[%s20649_s1 + $0x60] sm:$0xff]  ;;  %v534_v47 = vld [vmem:[%s20649_s1 + $0x78] sm:$0xff]  ;;  %v533_v48 = vld [vmem:[%s20649_s1 + $0x70] sm:$0xff] }
  0x30   : > { %647 = vmatprep.subr.mxu0 %v20625_v1  ;;  %v536_v49 = vld [vmem:[%s20649_s1 + $0x88] sm:$0xff]  ;;  %v535_v50 = vld [vmem:[%s20649_s1 + $0x80] sm:$0xff]  ;;  %v538_v51 = vld [vmem:[%s20649_s1 + $0x98] sm:$0xff] }
  0x31   : > { %648 = vmatpush1.msra.mxu0 %v609_v9  ;;  %v537_v52 = vld [vmem:[%s20649_s1 + $0x90] sm:$0xff]  ;;  %v540_v53 = vld [vmem:[%s20649_s1 + $0xa8] sm:$0xff]  ;;  %v539_v54 = vld [vmem:[%s20649_s1 + $0xa0] sm:$0xff] }
  0x32   : > { %649 = vmatprep.subr.mxu0 %v20625_v1  ;;  %v542_v55 = vld [vmem:[%s20649_s1 + $0xb8] sm:$0xff]  ;;  %v541_v56 = vld [vmem:[%s20649_s1 + $0xb0] sm:$0xff]  ;;  %v544_v57 = vld [vmem:[%s20649_s1 + $0xc8] sm:$0xff] }
  0x33   : > { %650 = vmatpush1.msra.mxu0 %v608_v10  ;;  %v543_v58 = vld [vmem:[%s20649_s1 + $0xc0] sm:$0xff]  ;;  %v546_v59 = vld [vmem:[%s20649_s1 + $0xd8] sm:$0xff]  ;;  %v545_v60 = vld [vmem:[%s20649_s1 + $0xd0] sm:$0xff] }
  0x34   : > { %651 = vmatprep.subr.mxu0 %v20625_v1  ;;  %v548_v61 = vld [vmem:[%s20649_s1 + $0xe8] sm:$0xff]  ;;  %v547_v62 = vld [vmem:[%s20649_s1 + $0xe0] sm:$0xff]  ;;  %v550_v63 = vld [vmem:[%s20649_s1 + $0xf8] sm:$0xff] }
  0x35   : > { %652 = vmatpush1.msra.mxu0 %v607_v11  ;;  %v549_v0 = vld [vmem:[%s20649_s1 + $0xf0] sm:$0xff]  ;;  %v552_v2 = vld [vmem:[%s20649_s1 + $0x108] sm:$0xff]  ;;  %v551_v3 = vld [vmem:[%s20649_s1 + $0x100] sm:$0xff] }
  0x36   : > { %653 = vmatprep.subr.mxu0 %v20625_v1  ;;  %v554_v4 = vld [vmem:[%s20649_s1 + $0x118] sm:$0xff]  ;;  %v553_v5 = vld [vmem:[%s20649_s1 + $0x110] sm:$0xff]  ;;  %v556_v6 = vld [vmem:[%s20649_s1 + $0x128] sm:$0xff] }
  0x37   : > { %654 = vmatpush1.msra.mxu0 %v606_v12  ;;  %v555_v7 = vld [vmem:[%s20649_s1 + $0x120] sm:$0xff]  ;;  %v558_v8 = vld [vmem:[%s20649_s1 + $0x138] sm:$0xff]  ;;  %v557_v9 = vld [vmem:[%s20649_s1 + $0x130] sm:$0xff] }
  0x38   : > { %655 = vmatprep.subr.mxu0 %v20625_v1  ;;  %v560_v10 = vld [vmem:[%s20649_s1 + $0x148] sm:$0xff]  ;;  %v559_v11 = vld [vmem:[%s20649_s1 + $0x140] sm:$0xff]  ;;  %v562_v12 = vld [vmem:[%s20649_s1 + $0x158] sm:$0xff] }
  0x39   : > { %656 = vmatpush1.msra.mxu0 %v605_v13  ;;  %v1019_v13 = vld [vmem:[%s20651_s2 + $0x3] sm:$0x7] }
  0x3a   : > { %657 = vmatprep.subr.mxu0 %v20625_v1  ;;  %14320 = vmatprep.subr.msk.mxu1 %vm1128_vm0, %v1019_v13 }
  0x3b   : > { %658 = vmatpush1.msra.mxu0 %v604_v14  ;;  %14321 = vmatpush3.msk.msra.mxu1 %vm1128_vm0, %v1019_v13  ;;  %v561_v14 = vld [vmem:[%s20649_s1 + $0x150] sm:$0xff] }
  0x3c   : > { %659 = vmatprep.subr.mxu0 %v20625_v1 }
  0x3d   : > { %660 = vmatpush1.msra.mxu0 %v603_v15  ;;  %v564_v15 = vld [vmem:[%s20649_s1 + $0x168] sm:$0xff] }
  0x3e   : > { %661 = vmatprep.subr.mxu0 %v20625_v1 }
  0x3f   : > { %662 = vmatpush1.msra.mxu0 %v602_v16  ;;  %v563_v16 = vld [vmem:[%s20649_s1 + $0x160] sm:$0xff] }
  0x40   : > { %663 = vmatprep.subr.mxu0 %v20625_v1 }
  0x41   : > { %664 = vmatpush1.msra.mxu0 %v601_v17  ;;  %v566_v17 = vld [vmem:[%s20649_s1 + $0x178] sm:$0xff] }
  0x42   : > { %665 = vmatprep.subr.mxu0 %v20625_v1 }
  0x43   : > { %666 = vmatpush2.msra.mxu0 %v632_v18  ;;  %v565_v18 = vld [vmem:[%s20649_s1 + $0x170] sm:$0xff] }
  0x44   : > { %667 = vmatprep.subr.mxu0 %v20625_v1 }
  0x45   : > { %668 = vmatpush2.msra.mxu0 %v631_v19  ;;  %v568_v19 = vld [vmem:[%s20649_s1 + $0x188] sm:$0xff] }
  0x46   : > { %669 = vmatprep.subr.mxu0 %v20625_v1 }
  0x47   : > { %670 = vmatpush2.msra.mxu0 %v630_v20  ;;  %v14847_v20 = vld [vmem:[%s20651_s2 + $0xc] sm:$0x7] }
  0x48   : > { %671 = vmatprep.subr.mxu0 %v20625_v1 }
  0x49   : > { %672 = vmatpush2.msra.mxu0 %v629_v21  ;;  %v567_v21 = vld [vmem:[%s20649_s1 + $0x180] sm:$0xff] }
  0x4a   : > { %673 = vmatprep.subr.mxu0 %v20625_v1 }
  0x4b   : > { %674 = vmatpush2.msra.mxu0 %v628_v22  ;;  %v570_v22 = vld [vmem:[%s20649_s1 + $0x198] sm:$0xff] }
  0x4c   : > { %675 = vmatprep.subr.mxu0 %v20625_v1 }
  0x4d   : > { %676 = vmatpush2.msra.mxu0 %v627_v23  ;;  %v569_v23 = vld [vmem:[%s20649_s1 + $0x190] sm:$0xff] }
  0x4e   : > { %677 = vmatprep.subr.mxu0 %v20625_v1 }
  0x4f   : > { %678 = vmatpush2.msra.mxu0 %v626_v24  ;;  %v572_v24 = vld [vmem:[%s20649_s1 + $0x1a8] sm:$0xff] }
  0x50   : > { %679 = vmatprep.subr.mxu0 %v20625_v1 }
  0x51   : > { %680 = vmatpush2.msra.mxu0 %v625_v25  ;;  %v571_v25 = vld [vmem:[%s20649_s1 + $0x1a0] sm:$0xff] }
  0x52   : > { %681 = vmatprep.subr.mxu0 %v20625_v1 }
  0x53   : > { %682 = vmatpush2.msra.mxu0 %v624_v26  ;;  %v574_v26 = vld [vmem:[%s20649_s1 + $0x1b8] sm:$0xff] }
  0x54   : > { %683 = vmatprep.subr.mxu0 %v20625_v1 }
  0x55   : > { %684 = vmatpush2.msra.mxu0 %v623_v27  ;;  %v573_v27 = vld [vmem:[%s20649_s1 + $0x1b0] sm:$0xff] }
  0x56   : > { %685 = vmatprep.subr.mxu0 %v20625_v1 }
  0x57   : > { %686 = vmatpush2.msra.mxu0 %v622_v28  ;;  %v576_v28 = vld [vmem:[%s20649_s1 + $0x1c8] sm:$0xff] }
  0x58   : > { %687 = vmatprep.subr.mxu0 %v20625_v1 }
  0x59   : > { %688 = vmatpush2.msra.mxu0 %v621_v29  ;;  %v575_v29 = vld [vmem:[%s20649_s1 + $0x1c0] sm:$0xff] }
  0x5a   : > { %689 = vmatprep.subr.mxu0 %v20625_v1 }
  0x5b   : > { %690 = vmatpush2.msra.mxu0 %v620_v30  ;;  %v578_v30 = vld [vmem:[%s20649_s1 + $0x1d8] sm:$0xff] }
  0x5c   : > { %691 = vmatprep.subr.mxu0 %v20625_v1 }
  0x5d   : > { %692 = vmatpush2.msra.mxu0 %v619_v31  ;;  %v577_v31 = vld [vmem:[%s20649_s1 + $0x1d0] sm:$0xff] }
  0x5e   : > { %693 = vmatprep.subr.mxu0 %v20625_v1 }
  0x5f   : > { %694 = vmatpush2.msra.mxu0 %v618_v32  ;;  %v580_v32 = vld [vmem:[%s20649_s1 + $0x1e8] sm:$0xff] }
  0x60   : > { %695 = vmatprep.subr.mxu0 %v20625_v1 }
  0x61   : > { %696 = vmatpush2.msra.mxu0 %v617_v33  ;;  %v579_v33 = vld [vmem:[%s20649_s1 + $0x1e0] sm:$0xff] }
  0x62   : > { %698 = vmatmul.mubr.f32.vlgmr.msra.gmra.mxu0 %v519_v34  ;;  %12782 = vmatprep.subr.msk.mxu0 %vm1128_vm0, %v1019_v13  ;;  %v582_v34 = vld [vmem:[%s20649_s1 + $0x1f8] sm:$0xff] }
  0x63   : > { %702 = vmatprep.mubr.f32.mxu0 %v522_v35  ;;  %12783 = vmatpush3.msk.msra.mxu0 %vm1128_vm0, %v1019_v13  ;;  %v581_v35 = vld [vmem:[%s20649_s1 + $0x1f0] sm:$0xff] }
  0x64   : > { %13006 = vmatprep.subr.msk.mxu0 %vm1128_vm0, %v14847_v20 }
  0x66   : > { %703 = vmatmul.mubr.f32.gmra.mxu0 %v521_v36  ;;  %v584_v36 = vld [vmem:[%s20649_s1 + $0x208] sm:$0xff] }
  0x67   : > { %707 = vmatprep.mubr.f32.mxu0 %v524_v37  ;;  %v583_v37 = vld [vmem:[%s20649_s1 + $0x200] sm:$0xff] }
  0x6a   : > { %708 = vmatmul.mubr.f32.gmra.mxu0 %v523_v38  ;;  %v586_v38 = vld [vmem:[%s20649_s1 + $0x218] sm:$0xff] }
  0x6b   : > { %712 = vmatprep.mubr.f32.mxu0 %v526_v39  ;;  %v585_v39 = vld [vmem:[%s20649_s1 + $0x210] sm:$0xff] }
  0x6e   : > { %713 = vmatmul.mubr.f32.gmra.mxu0 %v525_v40  ;;  %v588_v40 = vld [vmem:[%s20649_s1 + $0x228] sm:$0xff] }
  0x6f   : > { %717 = vmatprep.mubr.f32.mxu0 %v528_v41  ;;  %v587_v41 = vld [vmem:[%s20649_s1 + $0x220] sm:$0xff] }
  0x72   : > { %718 = vmatmul.mubr.f32.gmra.mxu0 %v527_v42  ;;  %v590_v42 = vld [vmem:[%s20649_s1 + $0x238] sm:$0xff] }
  0x73   : > { %722 = vmatprep.mubr.f32.mxu0 %v530_v43  ;;  %v589_v43 = vld [vmem:[%s20649_s1 + $0x230] sm:$0xff] }
  0x76   : > { %723 = vmatmul.mubr.f32.gmra.mxu0 %v529_v44  ;;  %v592_v44 = vld [vmem:[%s20649_s1 + $0x248] sm:$0xff] }
  0x77   : > { %727 = vmatprep.mubr.f32.mxu0 %v532_v45  ;;  %v591_v45 = vld [vmem:[%s20649_s1 + $0x240] sm:$0xff] }
  0x7a   : > { %728 = vmatmul.mubr.f32.gmra.mxu0 %v531_v46  ;;  %v594_v46 = vld [vmem:[%s20649_s1 + $0x258] sm:$0xff] }
  0x7b   : > { %732 = vmatprep.mubr.f32.mxu0 %v534_v47  ;;  %v593_v47 = vld [vmem:[%s20649_s1 + $0x250] sm:$0xff] }
  0x7e   : > { %733 = vmatmul.mubr.f32.gmra.mxu0 %v533_v48  ;;  %v596_v48 = vld [vmem:[%s20649_s1 + $0x268] sm:$0xff] }
  0x7f   : > { %737 = vmatprep.mubr.f32.mxu0 %v536_v49  ;;  %v595_v49 = vld [vmem:[%s20649_s1 + $0x260] sm:$0xff] }
  0x82   : > { %738 = vmatmul.mubr.f32.gmra.mxu0 %v535_v50  ;;  %v598_v50 = vld [vmem:[%s20649_s1 + $0x278] sm:$0xff] }
  0x83   : > { %742 = vmatprep.mubr.f32.mxu0 %v538_v51  ;;  %v597_v51 = vld [vmem:[%s20649_s1 + $0x270] sm:$0xff] }
  0x86   : > { %743 = vmatmul.mubr.f32.gmra.mxu0 %v537_v52  ;;  %v600_v52 = vld [vmem:[%s20649_s1 + $0x288] sm:$0x3f] }
  0x87   : > { %747 = vmatprep.mubr.f32.mxu0 %v540_v53  ;;  %v599_v53 = vld [vmem:[%s20649_s1 + $0x280] sm:$0x3f]  ;;  %s14425_s1 = sshll.u32 %s14485_s18, 4  ;;  %s14426_s1 = int_to_ptr.vmem [resolvable:$false] %s14425_s1 }
  0x88   : > { %s14427_s25 = scalar_lea.vmem %s14426_s1, 32  ;;  %p14428_p0 = scmp.lt.s32.totalorder %s11269_s20, %s14426_s1 }
  0x89   : > { %p14429_p1 = scmp.lt.s32.totalorder %s14427_s25, %s14421_s30 }
  0x8a   : > { %748 = vmatmul.mubr.f32.gmra.mxu0 %v539_v54 }
  0x8b   : > { %752 = vmatprep.mubr.f32.mxu0 %v542_v55  ;;  %p14430_p2 = por %p14429_p1, %p14428_p0 }
  0x8d   : > { %p14431_p3 = pnand %p14430_p2, %p14424_p13 }
  0x8e   : > { %753 = vmatmul.mubr.f32.gmra.mxu0 %v541_v56 }
  0x8f   : > { %757 = vmatprep.mubr.f32.mxu0 %v544_v57 }
  0x92   : > { %758 = vmatmul.mubr.f32.gmra.mxu0 %v543_v58 }
  0x93   : > { %762 = vmatprep.mubr.f32.mxu0 %v546_v59 }
  0x96   : > { %763 = vmatmul.mubr.f32.gmra.mxu0 %v545_v60 }
  0x97   : > { %767 = vmatprep.mubr.f32.mxu0 %v548_v61 }
  0x9a   : > { %768 = vmatmul.mubr.f32.gmra.mxu0 %v547_v62 }
  0x9b   : > { %772 = vmatprep.mubr.f32.mxu0 %v550_v63 }
  0x9e   : > { %773 = vmatmul.mubr.f32.gmra.mxu0 %v549_v0 }
  0x9f   : > { %777 = vmatprep.mubr.f32.mxu0 %v552_v2 }
  0xa2   : > { %778 = vmatmul.mubr.f32.gmra.mxu0 %v551_v3 }
  0xa3   : > { %782 = vmatprep.mubr.f32.mxu0 %v554_v4 }
  0xa6   : > { %783 = vmatmul.mubr.f32.gmra.mxu0 %v553_v5  ;;  %v982_v5 = vld [vmem:[%s20651_s2] sm:$0x7] }
  0xa7   : > { %787 = vmatprep.mubr.f32.mxu0 %v556_v6  ;;  %12838 = vmatprep.subr.msk.mxu1 %vm1128_vm0, %v982_v5 }
  0xaa   : > { %788 = vmatmul.mubr.f32.gmra.mxu0 %v555_v7 }
  0xab   : > { %792 = vmatprep.mubr.f32.mxu0 %v558_v8 }
  0xae   : > { %793 = vmatmul.mubr.f32.gmra.mxu0 %v557_v9 }
  0xaf   : > { %797 = vmatprep.mubr.f32.mxu0 %v560_v10 }
  0xb2   : > { %798 = vmatmul.mubr.f32.gmra.mxu0 %v559_v11 }
  0xb3   : > { %802 = vmatprep.mubr.f32.mxu0 %v562_v12 }
  0xb6   : > { %803 = vmatmul.mubr.f32.gmra.mxu0 %v561_v14 }
  0xb7   : > { %807 = vmatprep.mubr.f32.mxu0 %v564_v15 }
  0xba   : > { %808 = vmatmul.mubr.f32.gmra.mxu0 %v563_v16 }
  0xbb   : > { %812 = vmatprep.mubr.f32.mxu0 %v566_v17 }
  0xbe   : > { %813 = vmatmul.mubr.f32.gmra.mxu0 %v565_v18 }
  0xbf   : > { %817 = vmatprep.mubr.f32.mxu0 %v568_v19 }
  0xc2   : > { %818 = vmatmul.mubr.f32.gmra.mxu0 %v567_v21 }
  0xc3   : > { %822 = vmatprep.mubr.f32.mxu0 %v570_v22 }
  0xc6   : > { %823 = vmatmul.mubr.f32.gmra.mxu0 %v569_v23 }
  0xc7   : > { %827 = vmatprep.mubr.f32.mxu0 %v572_v24 }
  0xca   : > { %828 = vmatmul.mubr.f32.gmra.mxu0 %v571_v25 }
  0xcb   : > { %832 = vmatprep.mubr.f32.mxu0 %v574_v26 }
  0xce   : > { %833 = vmatmul.mubr.f32.gmra.mxu0 %v573_v27 }
  0xcf   : > { %837 = vmatprep.mubr.f32.mxu0 %v576_v28 }
  0xd2   : > { %838 = vmatmul.mubr.f32.gmra.mxu0 %v575_v29 }
  0xd3   : > { %842 = vmatprep.mubr.f32.mxu0 %v578_v30 }
  0xd6   : > { %843 = vmatmul.mubr.f32.gmra.mxu0 %v577_v31 }
  0xd7   : > { %847 = vmatprep.mubr.f32.mxu0 %v580_v32 }
  0xda   : > { %848 = vmatmul.mubr.f32.gmra.mxu0 %v579_v33 }
  0xdb   : > { %852 = vmatprep.mubr.f32.mxu0 %v582_v34 }
  0xde   : > { %853 = vmatmul.mubr.f32.gmra.mxu0 %v581_v35 }
  0xdf   : > { %857 = vmatprep.mubr.f32.mxu0 %v584_v36 }
  0xe2   : > { %858 = vmatmul.mubr.f32.gmra.mxu0 %v583_v37 }
  0xe3   : > { %862 = vmatprep.mubr.f32.mxu0 %v586_v38 }
  0xe6   : > { %863 = vmatmul.mubr.f32.gmra.mxu0 %v585_v39 }
  0xe7   : > { %867 = vmatprep.mubr.f32.mxu0 %v588_v40 }
  0xea   : > { %868 = vmatmul.mubr.f32.gmra.mxu0 %v587_v41 }
  0xeb   : > { %872 = vmatprep.mubr.f32.mxu0 %v590_v42 }
  0xee   : > { %873 = vmatmul.mubr.f32.gmra.mxu0 %v589_v43 }
  0xef   : > { %877 = vmatprep.mubr.f32.mxu0 %v592_v44 }
  0xf2   : > { %878 = vmatmul.mubr.f32.gmra.mxu0 %v591_v45 }
  0xf3   : > { %882 = vmatprep.mubr.f32.mxu0 %v594_v46 }
  0xf6   : > { %883 = vmatmul.mubr.f32.gmra.mxu0 %v593_v47 }
  0xf7   : > { %887 = vmatprep.mubr.f32.mxu0 %v596_v48 }
  0xfa   : > { %888 = vmatmul.mubr.f32.gmra.mxu0 %v595_v49 }
  0xfb   : > { %892 = vmatprep.mubr.f32.mxu0 %v598_v50 }
  0xfe   : > { %893 = vmatmul.mubr.f32.gmra.mxu0 %v597_v51 }
  0xff   : > { %897 = vmatprep.mubr.f32.mxu0 %v600_v52 }
 0x102   : > { %898 = vmatmul.mubr.f32.gmra.mxu0 %v599_v53 }
 0x122   : > { %v699_v54 = vpop.f32.mrf.mxu0 }
 0x123   : > { %904 = vst.msk [vmem:[#allocation2] sm:$0xff] %vm903_vm1, %v699_v54 }
 0x124   : > { %v701_v55 = vpop.f32.mrf.mxu0 }
 0x126   : > { %v704_v56 = vpop.f32.mrf.mxu0 }
 0x127   : > { %905 = vst.msk [vmem:[#allocation2 + $0x8] sm:$0xff] %vm903_vm1, %v704_v56 }
 0x128   : > { %v706_v57 = vpop.f32.mrf.mxu0 }
 0x12a   : > { %v709_v58 = vpop.f32.mrf.mxu0 }
 0x12b   : > { %906 = vst.msk [vmem:[#allocation2 + $0x10] sm:$0xff] %vm903_vm1, %v709_v58 }
 0x12c   : > { %v711_v59 = vpop.f32.mrf.mxu0 }
 0x12e   : > { %v714_v60 = vpop.f32.mrf.mxu0  ;;  %v983_v61 = vld [vmem:[#allocation2 + $0x1] sm:$0xff] }
 0x12f   : > { %907 = vst.msk [vmem:[#allocation2 + $0x18] sm:$0xff] %vm903_vm1, %v714_v60  ;;  %12784 = vmatprep.mubr.msk.f32.mxu0 %vm903_vm1, %v983_v61 }
 0x130   : > { %v716_v62 = vpop.f32.mrf.mxu0 }
 0x132   : > { %v719_v63 = vpop.f32.mrf.mxu0  ;;  %v984_v0 = vld [vmem:[#allocation2 + $0x9] sm:$0xff] }
 0x133   : > { %908 = vst.msk [vmem:[#allocation2 + $0x20] sm:$0xff] %vm903_vm1, %v719_v63  ;;  %12785 = vmatmul.mubr.msk.f32.vlgmr.msra.gmra.mxu0 %vm903_vm1, %v984_v0 }
 0x134   : > { %v721_v2 = vpop.f32.mrf.mxu0  ;;  %13007 = vmatpush3.msk.msra.mxu0 %vm1128_vm0, %v14847_v20  ;;  %v3485_v20 = vld [vmem:[%s20651_s2 + $0x12] sm:$0x7] }
 0x135   : > { %13118 = vmatprep.subr.msk.mxu0 %vm1128_vm0, %v3485_v20 }
 0x136   : > { %v724_v3 = vpop.f32.mrf.mxu0  ;;  %v985_v4 = vld [vmem:[#allocation2 + $0x11] sm:$0xff] }
 0x137   : > { %909 = vst.msk [vmem:[#allocation2 + $0x28] sm:$0xff] %vm903_vm1, %v724_v3  ;;  %12787 = vmatprep.mubr.msk.f32.mxu0 %vm903_vm1, %v985_v4  ;;  %v2591_v9 = vld [vmem:[#allocation2 + $0x13] sm:$0xff] }
 0x138   : > { %v726_v6 = vpop.f32.mrf.mxu0 }
 0x13a   : > { %v729_v7 = vpop.f32.mrf.mxu0  ;;  %v986_v8 = vld [vmem:[#allocation2 + $0x19] sm:$0xff] }
 0x13b   : > { %910 = vst.msk [vmem:[#allocation2 + $0x30] sm:$0xff] %vm903_vm1, %v729_v7  ;;  %12788 = vmatmul.mubr.msk.f32.gmra.mxu0 %vm903_vm1, %v986_v8  ;;  %v2592_v13 = vld [vmem:[#allocation2 + $0x1b] sm:$0xff] }
 0x13c   : > { %v731_v10 = vpop.f32.mrf.mxu0  ;;  %13008 = vmatprep.mubr.msk.f32.mxu0 %vm903_vm1, %v2591_v9  ;;  %v15023_v9 = vld [vmem:[%s20651_s2 + $0x6] sm:$0x7] }
 0x13e   : > { %v734_v11 = vpop.f32.mrf.mxu0  ;;  %v987_v12 = vld [vmem:[#allocation2 + $0x21] sm:$0xff] }
 0x13f   : > { %v2593_v14 = vld [vmem:[#allocation2 + $0x23] sm:$0xff]  ;;  %911 = vst.msk [vmem:[#allocation2 + $0x38] sm:$0xff] %vm903_vm1, %v734_v11  ;;  %12790 = vmatprep.mubr.msk.f32.mxu1 %vm903_vm1, %v987_v12  ;;  %13009 = vmatmul.mubr.msk.f32.vlgmr.msra.gmra.mxu0 %vm903_vm1, %v2592_v13 }
 0x140   : > { %v736_v15 = vpop.f32.mrf.mxu0  ;;  %13011 = vmatprep.mubr.msk.f32.mxu0 %vm903_vm1, %v2593_v14  ;;  %13119 = vmatpush3.msk.msra.mxu0 %vm1128_vm0, %v3485_v20 }
 0x142   : > { %v739_v16 = vpop.f32.mrf.mxu0  ;;  %v988_v17 = vld [vmem:[#allocation2 + $0x29] sm:$0xff] }
 0x143   : > { %v2594_v18 = vld [vmem:[#allocation2 + $0x2b] sm:$0xff]  ;;  %912 = vst.msk [vmem:[#allocation2 + $0x40] sm:$0xff] %vm903_vm1, %v739_v16  ;;  %12791 = vmatmul.mubr.msk.f32.vlgmr.msra.gmra.mxu1 %vm903_vm1, %v988_v17 }
 0x144   : > { %13012 = vmatmul.mubr.msk.f32.gmra.mxu0 %vm903_vm1, %v2594_v18  ;;  %v741_v19 = vpop.f32.mrf.mxu0  ;;  %12839 = vmatpush3.msk.msra.mxu1 %vm1128_vm0, %v982_v5 }
 0x145   : > { %12894 = vmatprep.subr.msk.mxu1 %vm1128_vm0, %v15023_v9 }
 0x146   : > { %v744_v21 = vpop.f32.mrf.mxu0  ;;  %v989_v22 = vld [vmem:[#allocation2 + $0x31] sm:$0xff] }
 0x147   : > { %v2595_v23 = vld [vmem:[#allocation2 + $0x33] sm:$0xff]  ;;  %913 = vst.msk [vmem:[#allocation2 + $0x48] sm:$0xff] %vm903_vm1, %v744_v21  ;;  %12793 = vmatprep.mubr.msk.f32.mxu1 %vm903_vm1, %v989_v22 }
 0x148   : > { %13014 = vmatprep.mubr.msk.f32.mxu0 %vm903_vm1, %v2595_v23  ;;  %v746_v24 = vpop.f32.mrf.mxu0 }
 0x14a   : > { %v749_v25 = vpop.f32.mrf.mxu0  ;;  %v990_v26 = vld [vmem:[#allocation2 + $0x39] sm:$0xff] }
 0x14b   : > { %v2596_v27 = vld [vmem:[#allocation2 + $0x3b] sm:$0xff]  ;;  %914 = vst.msk [vmem:[#allocation2 + $0x50] sm:$0xff] %vm903_vm1, %v749_v25  ;;  %12794 = vmatmul.mubr.msk.f32.gmra.mxu1 %vm903_vm1, %v990_v26 }
 0x14c   : > { %13015 = vmatmul.mubr.msk.f32.gmra.mxu0 %vm903_vm1, %v2596_v27  ;;  %v751_v28 = vpop.f32.mrf.mxu0 }
 0x14e   : > { %v754_v29 = vpop.f32.mrf.mxu0  ;;  %v991_v30 = vld [vmem:[#allocation2 + $0x41] sm:$0xff] }
 0x14f   : > { %v2597_v31 = vld [vmem:[#allocation2 + $0x43] sm:$0xff]  ;;  %915 = vst.msk [vmem:[#allocation2 + $0x58] sm:$0xff] %vm903_vm1, %v754_v29  ;;  %12796 = vmatprep.mubr.msk.f32.mxu1 %vm903_vm1, %v991_v30 }
 0x150   : > { %13017 = vmatprep.mubr.msk.f32.mxu0 %vm903_vm1, %v2597_v31  ;;  %v756_v32 = vpop.f32.mrf.mxu0  ;;  %v15045_v31 = vld [vmem:[%s20651_s2 + $0x18] sm:$0x7] }
 0x151   : > { %13230 = vmatprep.subr.msk.mxu0 %vm1128_vm0, %v15045_v31 }
 0x152   : > { %v759_v33 = vpop.f32.mrf.mxu0  ;;  %v992_v34 = vld [vmem:[#allocation2 + $0x49] sm:$0xff] }
 0x153   : > { %v2598_v35 = vld [vmem:[#allocation2 + $0x4b] sm:$0xff]  ;;  %916 = vst.msk [vmem:[#allocation2 + $0x60] sm:$0xff] %vm903_vm1, %v759_v33  ;;  %12797 = vmatmul.mubr.msk.f32.gmra.mxu1 %vm903_vm1, %v992_v34 }
 0x154   : > { %13018 = vmatmul.mubr.msk.f32.gmra.mxu0 %vm903_vm1, %v2598_v35  ;;  %v761_v36 = vpop.f32.mrf.mxu0 }
 0x156   : > { %v764_v37 = vpop.f32.mrf.mxu0  ;;  %v993_v38 = vld [vmem:[#allocation2 + $0x51] sm:$0xff] }
 0x157   : > { %v2599_v39 = vld [vmem:[#allocation2 + $0x53] sm:$0xff]  ;;  %917 = vst.msk [vmem:[#allocation2 + $0x68] sm:$0xff] %vm903_vm1, %v764_v37  ;;  %12799 = vmatprep.mubr.msk.f32.mxu1 %vm903_vm1, %v993_v38 }
 0x158   : > { %13020 = vmatprep.mubr.msk.f32.mxu0 %vm903_vm1, %v2599_v39  ;;  %v766_v40 = vpop.f32.mrf.mxu0 }
 0x15a   : > { %v769_v41 = vpop.f32.mrf.mxu0  ;;  %v994_v42 = vld [vmem:[#allocation2 + $0x59] sm:$0xff] }
 0x15b   : > { %v2600_v43 = vld [vmem:[#allocation2 + $0x5b] sm:$0xff]  ;;  %918 = vst.msk [vmem:[#allocation2 + $0x70] sm:$0xff] %vm903_vm1, %v769_v41  ;;  %12800 = vmatmul.mubr.msk.f32.gmra.mxu1 %vm903_vm1, %v994_v42 }
 0x15c   : > { %13021 = vmatmul.mubr.msk.f32.gmra.mxu0 %vm903_vm1, %v2600_v43  ;;  %v771_v44 = vpop.f32.mrf.mxu0 }
 0x15e   : > { %v774_v45 = vpop.f32.mrf.mxu0  ;;  %v995_v46 = vld [vmem:[#allocation2 + $0x61] sm:$0xff] }
 0x15f   : > { %v2601_v47 = vld [vmem:[#allocation2 + $0x63] sm:$0xff]  ;;  %919 = vst.msk [vmem:[#allocation2 + $0x78] sm:$0xff] %vm903_vm1, %v774_v45  ;;  %12802 = vmatprep.mubr.msk.f32.mxu1 %vm903_vm1, %v995_v46 }
 0x160   : > { %13023 = vmatprep.mubr.msk.f32.mxu0 %vm903_vm1, %v2601_v47  ;;  %v776_v48 = vpop.f32.mrf.mxu0 }
 0x162   : > { %v779_v49 = vpop.f32.mrf.mxu0  ;;  %v996_v50 = vld [vmem:[#allocation2 + $0x69] sm:$0xff] }
 0x163   : > { %v2602_v51 = vld [vmem:[#allocation2 + $0x6b] sm:$0xff]  ;;  %920 = vst.msk [vmem:[#allocation2 + $0x80] sm:$0xff] %vm903_vm1, %v779_v49  ;;  %12803 = vmatmul.mubr.msk.f32.gmra.mxu1 %vm903_vm1, %v996_v50 }
 0x164   : > { %13024 = vmatmul.mubr.msk.f32.gmra.mxu0 %vm903_vm1, %v2602_v51  ;;  %v781_v52 = vpop.f32.mrf.mxu0 }
 0x166   : > { %v784_v53 = vpop.f32.mrf.mxu0  ;;  %v997_v54 = vld [vmem:[#allocation2 + $0x71] sm:$0xff] }
 0x167   : > { %v2603_v55 = vld [vmem:[#allocation2 + $0x73] sm:$0xff]  ;;  %921 = vst.msk [vmem:[#allocation2 + $0x88] sm:$0xff] %vm903_vm1, %v784_v53  ;;  %12805 = vmatprep.mubr.msk.f32.mxu1 %vm903_vm1, %v997_v54 }
 0x168   : > { %13026 = vmatprep.mubr.msk.f32.mxu0 %vm903_vm1, %v2603_v55  ;;  %v786_v56 = vpop.f32.mrf.mxu0 }
 0x16a   : > { %v789_v57 = vpop.f32.mrf.mxu0  ;;  %v998_v58 = vld [vmem:[#allocation2 + $0x79] sm:$0xff] }
 0x16b   : > { %v2604_v59 = vld [vmem:[#allocation2 + $0x7b] sm:$0xff]  ;;  %922 = vst.msk [vmem:[#allocation2 + $0x90] sm:$0xff] %vm903_vm1, %v789_v57  ;;  %12806 = vmatmul.mubr.msk.f32.gmra.mxu1 %vm903_vm1, %v998_v58 }
 0x16c   : > { %13027 = vmatmul.mubr.msk.f32.gmra.mxu0 %vm903_vm1, %v2604_v59  ;;  %v791_v60 = vpop.f32.mrf.mxu0 }
 0x16e   : > { %v794_v61 = vpop.f32.mrf.mxu0  ;;  %v999_v62 = vld [vmem:[#allocation2 + $0x81] sm:$0xff] }
 0x16f   : > { %v2605_v63 = vld [vmem:[#allocation2 + $0x83] sm:$0xff]  ;;  %923 = vst.msk [vmem:[#allocation2 + $0x98] sm:$0xff] %vm903_vm1, %v794_v61  ;;  %12808 = vmatprep.mubr.msk.f32.mxu1 %vm903_vm1, %v999_v62 }
 0x170   : > { %13029 = vmatprep.mubr.msk.f32.mxu0 %vm903_vm1, %v2605_v63  ;;  %v796_v0 = vpop.f32.mrf.mxu0 }
 0x172   : > { %v799_v2 = vpop.f32.mrf.mxu0  ;;  %v1000_v3 = vld [vmem:[#allocation2 + $0x89] sm:$0xff] }
 0x173   : > { %v2606_v4 = vld [vmem:[#allocation2 + $0x8b] sm:$0xff]  ;;  %924 = vst.msk [vmem:[#allocation2 + $0xa0] sm:$0xff] %vm903_vm1, %v799_v2  ;;  %12809 = vmatmul.mubr.msk.f32.gmra.mxu1 %vm903_vm1, %v1000_v3 }
 0x174   : > { %13030 = vmatmul.mubr.msk.f32.gmra.mxu0 %vm903_vm1, %v2606_v4  ;;  %v801_v5 = vpop.f32.mrf.mxu0 }
 0x176   : > { %v804_v6 = vpop.f32.mrf.mxu0  ;;  %v1001_v7 = vld [vmem:[#allocation2 + $0x91] sm:$0xff] }
 0x177   : > { %v2607_v8 = vld [vmem:[#allocation2 + $0x93] sm:$0xff]  ;;  %925 = vst.msk [vmem:[#allocation2 + $0xa8] sm:$0xff] %vm903_vm1, %v804_v6  ;;  %12811 = vmatprep.mubr.msk.f32.mxu1 %vm903_vm1, %v1001_v7 }
 0x178   : > { %13032 = vmatprep.mubr.msk.f32.mxu0 %vm903_vm1, %v2607_v8  ;;  %v806_v10 = vpop.f32.mrf.mxu0 }
 0x17a   : > { %v809_v11 = vpop.f32.mrf.mxu0  ;;  %v1002_v12 = vld [vmem:[#allocation2 + $0x99] sm:$0xff] }
 0x17b   : > { %v2608_v13 = vld [vmem:[#allocation2 + $0x9b] sm:$0xff]  ;;  %926 = vst.msk [vmem:[#allocation2 + $0xb0] sm:$0xff] %vm903_vm1, %v809_v11  ;;  %12812 = vmatmul.mubr.msk.f32.gmra.mxu1 %vm903_vm1, %v1002_v12 }
 0x17c   : > { %13033 = vmatmul.mubr.msk.f32.gmra.mxu0 %vm903_vm1, %v2608_v13  ;;  %v811_v14 = vpop.f32.mrf.mxu0 }
 0x17e   : > { %v814_v15 = vpop.f32.mrf.mxu0  ;;  %v1003_v16 = vld [vmem:[#allocation2 + $0xa1] sm:$0xff] }
 0x17f   : > { %v2609_v17 = vld [vmem:[#allocation2 + $0xa3] sm:$0xff]  ;;  %927 = vst.msk [vmem:[#allocation2 + $0xb8] sm:$0xff] %vm903_vm1, %v814_v15  ;;  %12814 = vmatprep.mubr.msk.f32.mxu1 %vm903_vm1, %v1003_v16 }
 0x180   : > { %13035 = vmatprep.mubr.msk.f32.mxu0 %vm903_vm1, %v2609_v17  ;;  %v816_v18 = vpop.f32.mrf.mxu0  ;;  %v946_v17 = vld [vmem:[#allocation2] sm:$0xff] }
 0x182   : > { %v819_v19 = vpop.f32.mrf.mxu0  ;;  %v1004_v20 = vld [vmem:[#allocation2 + $0xa9] sm:$0xff] }
 0x183   : > { %v2610_v21 = vld [vmem:[#allocation2 + $0xab] sm:$0xff]  ;;  %928 = vst.msk [vmem:[#allocation2 + $0xc0] sm:$0xff] %vm903_vm1, %v819_v19  ;;  %12815 = vmatmul.mubr.msk.f32.gmra.mxu1 %vm903_vm1, %v1004_v20 }
 0x184   : > { %13036 = vmatmul.mubr.msk.f32.gmra.mxu0 %vm903_vm1, %v2610_v21  ;;  %v821_v22 = vpop.f32.mrf.mxu0  ;;  %v947_v19 = vld [vmem:[#allocation2 + $0x8] sm:$0xff] }
 0x185   : > { %v948_v22 = vld [vmem:[#allocation2 + $0x10] sm:$0xff] }
 0x186   : > { %v824_v23 = vpop.f32.mrf.mxu0  ;;  %v1005_v24 = vld [vmem:[#allocation2 + $0xb1] sm:$0xff] }
 0x187   : > { %v2611_v25 = vld [vmem:[#allocation2 + $0xb3] sm:$0xff]  ;;  %929 = vst.msk [vmem:[#allocation2 + $0xc8] sm:$0xff] %vm903_vm1, %v824_v23  ;;  %12817 = vmatprep.mubr.msk.f32.mxu1 %vm903_vm1, %v1005_v24  ;;  %v15092_v23 = vld [vmem:[%s20651_s2 + $0x9] sm:$0x7] }
 0x188   : > { %13038 = vmatprep.mubr.msk.f32.mxu0 %vm903_vm1, %v2611_v25  ;;  %v826_v26 = vpop.f32.mrf.mxu0  ;;  %v949_v25 = vld [vmem:[#allocation2 + $0x18] sm:$0xff] }
 0x18a   : > { %v829_v27 = vpop.f32.mrf.mxu0  ;;  %v1006_v28 = vld [vmem:[#allocation2 + $0xb9] sm:$0xff] }
 0x18b   : > { %v2612_v29 = vld [vmem:[#allocation2 + $0xbb] sm:$0xff]  ;;  %930 = vst.msk [vmem:[#allocation2 + $0xd0] sm:$0xff] %vm903_vm1, %v829_v27  ;;  %12818 = vmatmul.mubr.msk.f32.gmra.mxu1 %vm903_vm1, %v1006_v28 }
 0x18c   : > { %13039 = vmatmul.mubr.msk.f32.gmra.mxu0 %vm903_vm1, %v2612_v29  ;;  %v831_v30 = vpop.f32.mrf.mxu0  ;;  %v950_v28 = vld [vmem:[#allocation2 + $0x20] sm:$0xff] }
 0x18d   : > { %v15101_v29 = vld [vmem:[#allocation2 + $0x24] sm:$0xff] }
 0x18e   : > { %v834_v32 = vpop.f32.mrf.mxu0  ;;  %v1007_v33 = vld [vmem:[#allocation2 + $0xc1] sm:$0xff] }
 0x18f   : > { %v2613_v34 = vld [vmem:[#allocation2 + $0xc3] sm:$0xff]  ;;  %931 = vst.msk [vmem:[#allocation2 + $0xd8] sm:$0xff] %vm903_vm1, %v834_v32  ;;  %12820 = vmatprep.mubr.msk.f32.mxu1 %vm903_vm1, %v1007_v33  ;;  %v15106_v32 = vld [vmem:[#allocation2 + $0x2c] sm:$0xff] }
 0x190   : > { %13041 = vmatprep.mubr.msk.f32.mxu0 %vm903_vm1, %v2613_v34  ;;  %v836_v35 = vpop.f32.mrf.mxu0  ;;  %v951_v30 = vld [vmem:[#allocation2 + $0x28] sm:$0xff]  ;;  %v952_v33 = vld [vmem:[#allocation2 + $0x30] sm:$0xff] }
 0x191   : > { %v15111_v34 = vld [vmem:[#allocation2 + $0x34] sm:$0xff] }
 0x192   : > { %v839_v36 = vpop.f32.mrf.mxu0  ;;  %v1008_v37 = vld [vmem:[#allocation2 + $0xc9] sm:$0xff]  ;;  %v953_v35 = vld [vmem:[#allocation2 + $0x38] sm:$0xff] }
 0x193   : > { %v2614_v38 = vld [vmem:[#allocation2 + $0xcb] sm:$0xff]  ;;  %932 = vst.msk [vmem:[#allocation2 + $0xe0] sm:$0xff] %vm903_vm1, %v839_v36  ;;  %12821 = vmatmul.mubr.msk.f32.gmra.mxu1 %vm903_vm1, %v1008_v37  ;;  %v15118_v36 = vld [vmem:[#allocation2 + $0x3c] sm:$0xff] }
 0x194   : > { %13042 = vmatmul.mubr.msk.f32.gmra.mxu0 %vm903_vm1, %v2614_v38  ;;  %v841_v39 = vpop.f32.mrf.mxu0  ;;  %v954_v37 = vld [vmem:[#allocation2 + $0x40] sm:$0xff] }
 0x195   : > { %v15124_v38 = vld [vmem:[#allocation2 + $0x44] sm:$0xff] }
 0x196   : > { %v844_v40 = vpop.f32.mrf.mxu0  ;;  %v1009_v41 = vld [vmem:[#allocation2 + $0xd1] sm:$0xff]  ;;  %v955_v39 = vld [vmem:[#allocation2 + $0x48] sm:$0xff] }
 0x197   : > { %v2615_v42 = vld [vmem:[#allocation2 + $0xd3] sm:$0xff]  ;;  %933 = vst.msk [vmem:[#allocation2 + $0xe8] sm:$0xff] %vm903_vm1, %v844_v40  ;;  %12823 = vmatprep.mubr.msk.f32.mxu1 %vm903_vm1, %v1009_v41 }
 0x198   : > { %13044 = vmatprep.mubr.msk.f32.mxu0 %vm903_vm1, %v2615_v42  ;;  %v846_v43 = vpop.f32.mrf.mxu0  ;;  %v956_v40 = vld [vmem:[#allocation2 + $0x50] sm:$0xff]  ;;  %v957_v42 = vld [vmem:[#allocation2 + $0x58] sm:$0xff] }
 0x199   : > { %v15134_v41 = vld [vmem:[#allocation2 + $0x54] sm:$0xff]  ;;  %v15139_v43 = vld [vmem:[#allocation2 + $0x5c] sm:$0xff] }
 0x19a   : > { %v849_v44 = vpop.f32.mrf.mxu0  ;;  %v1010_v45 = vld [vmem:[#allocation2 + $0xd9] sm:$0xff] }
 0x19b   : > { %v2616_v46 = vld [vmem:[#allocation2 + $0xdb] sm:$0xff]  ;;  %934 = vst.msk [vmem:[#allocation2 + $0xf0] sm:$0xff] %vm903_vm1, %v849_v44  ;;  %12824 = vmatmul.mubr.msk.f32.gmra.mxu1 %vm903_vm1, %v1010_v45  ;;  %v15144_v45 = vld [vmem:[#allocation2 + $0x64] sm:$0xff] }
 0x19c   : > { %13045 = vmatmul.mubr.msk.f32.gmra.mxu0 %vm903_vm1, %v2616_v46  ;;  %v851_v47 = vpop.f32.mrf.mxu0  ;;  %v958_v44 = vld [vmem:[#allocation2 + $0x60] sm:$0xff]  ;;  %v959_v46 = vld [vmem:[#allocation2 + $0x68] sm:$0xff] }
 0x19d   : > { %v15149_v47 = vld [vmem:[#allocation2 + $0x6c] sm:$0xff] }
 0x19e   : > { %v854_v48 = vpop.f32.mrf.mxu0  ;;  %v1011_v49 = vld [vmem:[#allocation2 + $0xe1] sm:$0xff] }
 0x19f   : > { %v2617_v50 = vld [vmem:[#allocation2 + $0xe3] sm:$0xff]  ;;  %935 = vst.msk [vmem:[#allocation2 + $0xf8] sm:$0xff] %vm903_vm1, %v854_v48  ;;  %12826 = vmatprep.mubr.msk.f32.mxu1 %vm903_vm1, %v1011_v49  ;;  %v960_v48 = vld [vmem:[#allocation2 + $0x70] sm:$0xff] }
 0x1a0   : > { %13047 = vmatprep.mubr.msk.f32.mxu0 %vm903_vm1, %v2617_v50  ;;  %v856_v51 = vpop.f32.mrf.mxu0  ;;  %v15154_v49 = vld [vmem:[#allocation2 + $0x74] sm:$0xff] }
 0x1a1   : > { %v961_v50 = vld [vmem:[#allocation2 + $0x78] sm:$0xff] }
 0x1a2   : > { %v859_v52 = vpop.f32.mrf.mxu0  ;;  %v1012_v53 = vld [vmem:[#allocation2 + $0xe9] sm:$0xff]  ;;  %v15159_v51 = vld [vmem:[#allocation2 + $0x7c] sm:$0xff] }
 0x1a3   : > { %v2618_v54 = vld [vmem:[#allocation2 + $0xeb] sm:$0xff]  ;;  %936 = vst.msk [vmem:[#allocation2 + $0x100] sm:$0xff] %vm903_vm1, %v859_v52  ;;  %12827 = vmatmul.mubr.msk.f32.gmra.mxu1 %vm903_vm1, %v1012_v53  ;;  %v962_v52 = vld [vmem:[#allocation2 + $0x80] sm:$0xff] }
 0x1a4   : > { %13048 = vmatmul.mubr.msk.f32.gmra.mxu0 %vm903_vm1, %v2618_v54  ;;  %v861_v55 = vpop.f32.mrf.mxu0  ;;  %v15164_v53 = vld [vmem:[#allocation2 + $0x84] sm:$0xff] }
 0x1a5   : > { %v963_v54 = vld [vmem:[#allocation2 + $0x88] sm:$0xff] }
 0x1a6   : > { %v864_v56 = vpop.f32.mrf.mxu0  ;;  %v1013_v57 = vld [vmem:[#allocation2 + $0xf1] sm:$0xff] }
 0x1a7   : > { %v2619_v58 = vld [vmem:[#allocation2 + $0xf3] sm:$0xff]  ;;  %937 = vst.msk [vmem:[#allocation2 + $0x108] sm:$0xff] %vm903_vm1, %v864_v56  ;;  %12829 = vmatprep.mubr.msk.f32.mxu1 %vm903_vm1, %v1013_v57 }
 0x1a8   : > { %13050 = vmatprep.mubr.msk.f32.mxu0 %vm903_vm1, %v2619_v58  ;;  %v866_v59 = vpop.f32.mrf.mxu0  ;;  %v15169_v55 = vld [vmem:[#allocation2 + $0x8c] sm:$0xff]  ;;  %v15174_v57 = vld [vmem:[#allocation2 + $0x94] sm:$0xff] }
 0x1a9   : > { %v964_v56 = vld [vmem:[#allocation2 + $0x90] sm:$0xff]  ;;  %v965_v58 = vld [vmem:[#allocation2 + $0x98] sm:$0xff] }
 0x1aa   : > { %v869_v60 = vpop.f32.mrf.mxu0  ;;  %v1014_v61 = vld [vmem:[#allocation2 + $0xf9] sm:$0xff] }
 0x1ab   : > { %v2620_v62 = vld [vmem:[#allocation2 + $0xfb] sm:$0xff]  ;;  %938 = vst.msk [vmem:[#allocation2 + $0x110] sm:$0xff] %vm903_vm1, %v869_v60  ;;  %12830 = vmatmul.mubr.msk.f32.gmra.mxu1 %vm903_vm1, %v1014_v61  ;;  %v15184_v61 = vld [vmem:[#allocation2 + $0xa4] sm:$0xff] }
 0x1ac   : > { %13051 = vmatmul.mubr.msk.f32.gmra.mxu0 %vm903_vm1, %v2620_v62  ;;  %v871_v63 = vpop.f32.mrf.mxu0  ;;  %v15179_v59 = vld [vmem:[#allocation2 + $0x9c] sm:$0xff]  ;;  %v967_v62 = vld [vmem:[#allocation2 + $0xa8] sm:$0xff] }
 0x1ad   : > { %v966_v60 = vld [vmem:[#allocation2 + $0xa0] sm:$0xff]  ;;  %v15189_v63 = vld [vmem:[#allocation2 + $0xac] sm:$0xff] }
 0x1ae   : > { %v874_v0 = vpop.f32.mrf.mxu0  ;;  %v1015_v2 = vld [vmem:[#allocation2 + $0x101] sm:$0xff] }
 0x1af   : > { %v2621_v3 = vld [vmem:[#allocation2 + $0x103] sm:$0xff]  ;;  %939 = vst.msk [vmem:[#allocation2 + $0x118] sm:$0xff] %vm903_vm1, %v874_v0  ;;  %12832 = vmatprep.mubr.msk.f32.mxu1 %vm903_vm1, %v1015_v2  ;;  %v968_v0 = vld [vmem:[#allocation2 + $0xb0] sm:$0xff] }
 0x1b0   : > { %13053 = vmatprep.mubr.msk.f32.mxu0 %vm903_vm1, %v2621_v3  ;;  %v876_v4 = vpop.f32.mrf.mxu0  ;;  %v15194_v2 = vld [vmem:[#allocation2 + $0xb4] sm:$0xff] }
 0x1b1   : > { %v969_v3 = vld [vmem:[#allocation2 + $0xb8] sm:$0xff] }
 0x1b2   : > { %v879_v5 = vpop.f32.mrf.mxu0  ;;  %v1016_v6 = vld [vmem:[#allocation2 + $0x109] sm:$0xff]  ;;  %v15199_v4 = vld [vmem:[#allocation2 + $0xbc] sm:$0xff] }
 0x1b3   : > { %v2622_v7 = vld [vmem:[#allocation2 + $0x10b] sm:$0xff]  ;;  %940 = vst.msk [vmem:[#allocation2 + $0x120] sm:$0xff] %vm903_vm1, %v879_v5  ;;  %12833 = vmatmul.mubr.msk.f32.gmra.mxu1 %vm903_vm1, %v1016_v6  ;;  %v970_v5 = vld [vmem:[#allocation2 + $0xc0] sm:$0xff] }
 0x1b4   : > { %13054 = vmatmul.mubr.msk.f32.gmra.mxu0 %vm903_vm1, %v2622_v7  ;;  %v881_v8 = vpop.f32.mrf.mxu0  ;;  %v15204_v6 = vld [vmem:[#allocation2 + $0xc4] sm:$0xff] }
 0x1b5   : > { %v971_v7 = vld [vmem:[#allocation2 + $0xc8] sm:$0xff] }
 0x1b6   : > { %v884_v10 = vpop.f32.mrf.mxu0  ;;  %v1017_v11 = vld [vmem:[#allocation2 + $0x111] sm:$0xff] }
 0x1b7   : > { %v2623_v12 = vld [vmem:[#allocation2 + $0x113] sm:$0xff]  ;;  %941 = vst.msk [vmem:[#allocation2 + $0x128] sm:$0xff] %vm903_vm1, %v884_v10  ;;  %12835 = vmatprep.mubr.msk.f32.mxu1 %vm903_vm1, %v1017_v11 }
 0x1b8   : > { %13056 = vmatprep.mubr.msk.f32.mxu0 %vm903_vm1, %v2623_v12  ;;  %v886_v13 = vpop.f32.mrf.mxu0  ;;  %v15209_v8 = vld [vmem:[#allocation2 + $0xcc] sm:$0xff]  ;;  %v15214_v11 = vld [vmem:[#allocation2 + $0xd4] sm:$0xff] }
 0x1b9   : > { %v972_v10 = vld [vmem:[#allocation2 + $0xd0] sm:$0xff]  ;;  %20652 = vst [vmem:[#allocation13_spill] sm:$0xff] %v15214_v11  ;;  %v973_v12 = vld [vmem:[#allocation2 + $0xd8] sm:$0xff] }
 0x1ba   : > { %v889_v14 = vpop.f32.mrf.mxu0  ;;  %v1018_v15 = vld [vmem:[#allocation2 + $0x119] sm:$0xff] }
 0x1bb   : > { %v2624_v16 = vld [vmem:[#allocation2 + $0x11b] sm:$0xff]  ;;  %942 = vst.msk [vmem:[#allocation2 + $0x130] sm:$0xff] %vm903_vm1, %v889_v14  ;;  %12836 = vmatmul.mubr.msk.f32.gmra.mxu1 %vm903_vm1, %v1018_v15  ;;  %v15224_v15 = vld [vmem:[#allocation2 + $0xe4] sm:$0xff] }
 0x1bc   : > { %13057 = vmatmul.mubr.msk.f32.gmra.mxu0 %vm903_vm1, %v2624_v16  ;;  %12840 = vmatprep.mubr.msk.f32.mxu1 %vm903_vm1, %v946_v17  ;;  %v891_v18 = vpop.f32.mrf.mxu0  ;;  %v15219_v13 = vld [vmem:[#allocation2 + $0xdc] sm:$0xff]  ;;  %20654 = vst [vmem:[#allocation15_spill] sm:$0xff] %v15224_v15  ;;  %v975_v16 = vld [vmem:[#allocation2 + $0xe8] sm:$0xff] }
 0x1bd   : > { %20653 = vst [vmem:[#allocation14_spill] sm:$0xff] %v15219_v13  ;;  %v974_v14 = vld [vmem:[#allocation2 + $0xe0] sm:$0xff]  ;;  %v15229_v17 = vld [vmem:[#allocation2 + $0xec] sm:$0xff] }
 0x1be   : > { %v2625_v20 = vld [vmem:[#allocation2 + $0x123] sm:$0xff]  ;;  %v894_v21 = vpop.f32.mrf.mxu0  ;;  %20655 = vst [vmem:[#allocation16_spill] sm:$0xff] %v15229_v17  ;;  %v976_v18 = vld [vmem:[#allocation2 + $0xf0] sm:$0xff] }
 0x1bf   : > { %12841 = vmatmul.mubr.msk.f32.vlgmr.msra.gmra.mxu1 %vm903_vm1, %v947_v19  ;;  %13059 = vmatprep.mubr.msk.f32.mxu0 %vm903_vm1, %v2625_v20  ;;  %943 = vst.msk [vmem:[#allocation2 + $0x138] sm:$0xff] %vm903_vm1, %v894_v21  ;;  %v15234_v19 = vld [vmem:[#allocation2 + $0xf4] sm:$0xff]  ;;  %v15239_v21 = vld [vmem:[#allocation2 + $0xfc] sm:$0xff] }
 0x1c0   : > { %12843 = vmatprep.mubr.msk.f32.mxu1 %vm903_vm1, %v948_v22  ;;  %v896_v24 = vpop.f32.mrf.mxu0  ;;  %12895 = vmatpush3.msk.msra.mxu1 %vm1128_vm0, %v15023_v9  ;;  %20656 = vst [vmem:[#allocation17_spill] sm:$0xff] %v15234_v19  ;;  %v977_v20 = vld [vmem:[#allocation2 + $0xf8] sm:$0xff]  ;;  %20657 = vst [vmem:[#allocation18_spill] sm:$0xff] %v15239_v21  ;;  %v978_v22 = vld [vmem:[#allocation2 + $0x100] sm:$0xff] }
 0x1c1   : > { %12950 = vmatprep.subr.msk.mxu1 %vm1128_vm0, %v15092_v23  ;;  %v15244_v24 = vld [vmem:[#allocation2 + $0x104] sm:$0xff] }
 0x1c2   : > { %v2626_v26 = vld [vmem:[#allocation2 + $0x12b] sm:$0xff]  ;;  %v899_v27 = vpop.f32.mrf.mxu0  ;;  %20658 = vst [vmem:[#allocation19_spill] sm:$0xff] %v15244_v24 }
 0x1c3   : > { %12844 = vmatmul.mubr.msk.f32.gmra.mxu1 %vm903_vm1, %v949_v25  ;;  %13060 = vmatmul.mubr.msk.f32.gmra.mxu0 %vm903_vm1, %v2626_v26  ;;  %945 = vst.msk [vmem:[#allocation2 + $0x140] sm:$0x3f] %vm944_vm2, %v899_v27  ;;  %v979_v25 = vld [vmem:[#allocation2 + $0x108] sm:$0xff]  ;;  %v980_v27 = vld [vmem:[#allocation2 + $0x110] sm:$0xff] }
 0x1c4   : > { %12846 = vmatprep.mubr.msk.f32.mxu1 %vm903_vm1, %v950_v28  ;;  %13120 = vmatprep.mubr.msk.f32.mxu0 %vm903_vm1, %v15101_v29  ;;  %v901_v9 = vpop.f32.mrf.mxu0  ;;  %v15249_v26 = vld [vmem:[#allocation2 + $0x10c] sm:$0xff]  ;;  %v15254_v28 = vld [vmem:[#allocation2 + $0x114] sm:$0xff] }
 0x1c5   : > { %20659 = vst [vmem:[#allocation20_spill] sm:$0xff] %v15249_v26  ;;  %20660 = vst [vmem:[#allocation21_spill] sm:$0xff] %v15254_v28  ;;  %v981_v9 = vld [vmem:[#allocation2 + $0x118] sm:$0xff] }
 0x1c7   : > { %12847 = vmatmul.mubr.msk.f32.gmra.mxu1 %vm903_vm1, %v951_v30  ;;  %13121 = vmatmul.mubr.msk.f32.vlgmr.msra.gmra.mxu0 %vm903_vm1, %v15106_v32  ;;  %v15259_v30 = vld [vmem:[#allocation2 + $0x11c] sm:$0xff] }
 0x1c8   : > { %12849 = vmatprep.mubr.msk.f32.mxu1 %vm903_vm1, %v952_v33  ;;  %13123 = vmatprep.mubr.msk.f32.mxu0 %vm903_vm1, %v15111_v34  ;;  %20661 = vst [vmem:[#allocation22_spill] sm:$0xff] %v15259_v30  ;;  %v1733_v33 = vld [vmem:[#allocation2 + $0x2] sm:$0xff] }
 0x1c9   : > { %13231 = vmatpush3.msk.msra.mxu0 %vm1128_vm0, %v15045_v31  ;;  %v15129_v31 = vld [vmem:[#allocation2 + $0x4c] sm:$0xff] }
 0x1ca   : > { %13286 = vmatprep.subr.mxu0 %v20625_v1  ;;  %v15393_v1 = vld [vmem:[#allocation2 + $0xb2] sm:$0xff] }
 0x1cb   : > { %12850 = vmatmul.mubr.msk.f32.gmra.mxu1 %vm903_vm1, %v953_v35  ;;  %13124 = vmatmul.mubr.msk.f32.gmra.mxu0 %vm903_vm1, %v15118_v36  ;;  %v15264_v35 = vld [vmem:[#allocation2 + $0x124] sm:$0xff] }
 0x1cc   : > { %12852 = vmatprep.mubr.msk.f32.mxu1 %vm903_vm1, %v954_v37  ;;  %13126 = vmatprep.mubr.msk.f32.mxu0 %vm903_vm1, %v15124_v38  ;;  %20662 = vst [vmem:[#allocation23_spill] sm:$0xff] %v15264_v35  ;;  %v15269_v37 = vld [vmem:[#allocation2 + $0x12c] sm:$0xff] }
 0x1cd   : > { %20663 = vst [vmem:[#allocation24_spill] sm:$0xff] %v15269_v37 }
 0x1cf   : > { %12853 = vmatmul.mubr.msk.f32.gmra.mxu1 %vm903_vm1, %v955_v39  ;;  %13127 = vmatmul.mubr.msk.f32.gmra.mxu0 %vm903_vm1, %v15129_v31  ;;  %v3483_v39 = vld [vmem:[#allocation2 + $0x134] sm:$0xff] }
 0x1d0   : > { %12855 = vmatprep.mubr.msk.f32.mxu1 %vm903_vm1, %v956_v40  ;;  %13129 = vmatprep.mubr.msk.f32.mxu0 %vm903_vm1, %v15134_v41  ;;  %v1734_v40 = vld [vmem:[#allocation2 + $0xa] sm:$0xff] }
 0x1d3   : > { %12856 = vmatmul.mubr.msk.f32.gmra.mxu1 %vm903_vm1, %v957_v42  ;;  %13130 = vmatmul.mubr.msk.f32.gmra.mxu0 %vm903_vm1, %v15139_v43  ;;  %v15274_v42 = vld [vmem:[#allocation2 + $0x12] sm:$0xff] }
 0x1d4   : > { %12858 = vmatprep.mubr.msk.f32.mxu1 %vm903_vm1, %v958_v44  ;;  %13132 = vmatprep.mubr.msk.f32.mxu0 %vm903_vm1, %v15144_v45  ;;  %v3484_v44 = vld [vmem:[#allocation2 + $0x13c] sm:$0xff] }
 0x1d7   : > { %12859 = vmatmul.mubr.msk.f32.gmra.mxu1 %vm903_vm1, %v959_v46  ;;  %13133 = vmatmul.mubr.msk.f32.gmra.mxu0 %vm903_vm1, %v15149_v47  ;;  %v15282_v46 = vld [vmem:[%s20651_s2 + $0xf] sm:$0x7] }
 0x1d8   : > { %12861 = vmatprep.mubr.msk.f32.mxu1 %vm903_vm1, %v960_v48  ;;  %13135 = vmatprep.mubr.msk.f32.mxu0 %vm903_vm1, %v15154_v49  ;;  %v15286_v48 = vld [vmem:[#allocation2 + $0x1a] sm:$0xff] }
 0x1db   : > { %12862 = vmatmul.mubr.msk.f32.gmra.mxu1 %vm903_vm1, %v961_v50  ;;  %13136 = vmatmul.mubr.msk.f32.gmra.mxu0 %vm903_vm1, %v15159_v51  ;;  %v15293_v50 = vld [vmem:[#allocation2 + $0x22] sm:$0xff] }
 0x1dc   : > { %12864 = vmatprep.mubr.msk.f32.mxu1 %vm903_vm1, %v962_v52  ;;  %13138 = vmatprep.mubr.msk.f32.mxu0 %vm903_vm1, %v15164_v53  ;;  %v4307_v52 = vld [vmem:[#allocation2 + $0x26] sm:$0xff] }
 0x1df   : > { %12865 = vmatmul.mubr.msk.f32.gmra.mxu1 %vm903_vm1, %v963_v54  ;;  %13139 = vmatmul.mubr.msk.f32.gmra.mxu0 %vm903_vm1, %v15169_v55  ;;  %v15298_v54 = vld [vmem:[#allocation2 + $0x2a] sm:$0xff] }
 0x1e0   : > { %12867 = vmatprep.mubr.msk.f32.mxu1 %vm903_vm1, %v964_v56  ;;  %13141 = vmatprep.mubr.msk.f32.mxu0 %vm903_vm1, %v15174_v57  ;;  %v15303_v56 = vld [vmem:[#allocation2 + $0x32] sm:$0xff] }
 0x1e3   : > { %12868 = vmatmul.mubr.msk.f32.gmra.mxu1 %vm903_vm1, %v965_v58  ;;  %13142 = vmatmul.mubr.msk.f32.gmra.mxu0 %vm903_vm1, %v15179_v59  ;;  %v4309_v58 = vld [vmem:[#allocation2 + $0x36] sm:$0xff] }
 0x1e4   : > { %12870 = vmatprep.mubr.msk.f32.mxu1 %vm903_vm1, %v966_v60  ;;  %13144 = vmatprep.mubr.msk.f32.mxu0 %vm903_vm1, %v15184_v61  ;;  %v15308_v60 = vld [vmem:[#allocation2 + $0x3a] sm:$0xff] }
 0x1e7   : > { %12871 = vmatmul.mubr.msk.f32.gmra.mxu1 %vm903_vm1, %v967_v62  ;;  %13145 = vmatmul.mubr.msk.f32.gmra.mxu0 %vm903_vm1, %v15189_v63  ;;  %v4310_v62 = vld [vmem:[#allocation2 + $0x3e] sm:$0xff] }
 0x1e8   : > { %12873 = vmatprep.mubr.msk.f32.mxu1 %vm903_vm1, %v968_v0  ;;  %13147 = vmatprep.mubr.msk.f32.mxu0 %vm903_vm1, %v15194_v2  ;;  %v15313_v0 = vld [vmem:[#allocation2 + $0x42] sm:$0xff] }
 0x1eb   : > { %12874 = vmatmul.mubr.msk.f32.gmra.mxu1 %vm903_vm1, %v969_v3  ;;  %13148 = vmatmul.mubr.msk.f32.gmra.mxu0 %vm903_vm1, %v15199_v4  ;;  %v4311_v3 = vld [vmem:[#allocation2 + $0x46] sm:$0xff] }
 0x1ec   : > { %12876 = vmatprep.mubr.msk.f32.mxu1 %vm903_vm1, %v970_v5  ;;  %13150 = vmatprep.mubr.msk.f32.mxu0 %vm903_vm1, %v15204_v6  ;;  %v15318_v5 = vld [vmem:[#allocation2 + $0x4a] sm:$0xff] }
 0x1ef   : > { %12877 = vmatmul.mubr.msk.f32.gmra.mxu1 %vm903_vm1, %v971_v7  ;;  %13151 = vmatmul.mubr.msk.f32.gmra.mxu0 %vm903_vm1, %v15209_v8  ;;  %v4312_v7 = vld [vmem:[#allocation2 + $0x4e] sm:$0xff] }
 0x1f0   : > { %12879 = vmatprep.mubr.msk.f32.mxu1 %vm903_vm1, %v972_v10  ;;  %13153 = vmatprep.mubr.msk.f32.mxu0 %vm903_vm1, %v15214_v11  ;;  %v15323_v10 = vld [vmem:[#allocation2 + $0x52] sm:$0xff] }
 0x1f3   : > { %12880 = vmatmul.mubr.msk.f32.gmra.mxu1 %vm903_vm1, %v973_v12  ;;  %13154 = vmatmul.mubr.msk.f32.gmra.mxu0 %vm903_vm1, %v15219_v13  ;;  %v4313_v12 = vld [vmem:[#allocation2 + $0x56] sm:$0xff]  ;;  %v4340_v13 = vld [vmem:[#allocation2 + $0x12e] sm:$0xff] }
 0x1f4   : > { %12882 = vmatprep.mubr.msk.f32.mxu1 %vm903_vm1, %v974_v14  ;;  %13156 = vmatprep.mubr.msk.f32.mxu0 %vm903_vm1, %v15224_v15  ;;  %v15328_v14 = vld [vmem:[#allocation2 + $0x5a] sm:$0xff] }
 0x1f7   : > { %12883 = vmatmul.mubr.msk.f32.gmra.mxu1 %vm903_vm1, %v975_v16  ;;  %13157 = vmatmul.mubr.msk.f32.gmra.mxu0 %vm903_vm1, %v15229_v17  ;;  %v4314_v16 = vld [vmem:[#allocation2 + $0x5e] sm:$0xff] }
 0x1f8   : > { %12885 = vmatprep.mubr.msk.f32.mxu1 %vm903_vm1, %v976_v18  ;;  %13159 = vmatprep.mubr.msk.f32.mxu0 %vm903_vm1, %v15234_v19  ;;  %v15333_v18 = vld [vmem:[#allocation2 + $0x62] sm:$0xff]  ;;  %v4336_v19 = vld [vmem:[#allocation2 + $0x10e] sm:$0xff] }
 0x1fb   : > { %12886 = vmatmul.mubr.msk.f32.gmra.mxu1 %vm903_vm1, %v977_v20  ;;  %13160 = vmatmul.mubr.msk.f32.gmra.mxu0 %vm903_vm1, %v15239_v21  ;;  %v4315_v20 = vld [vmem:[#allocation2 + $0x66] sm:$0xff] }
 0x1fc   : > { %12888 = vmatprep.mubr.msk.f32.mxu1 %vm903_vm1, %v978_v22  ;;  %13162 = vmatprep.mubr.msk.f32.mxu0 %vm903_vm1, %v15244_v24  ;;  %v15338_v22 = vld [vmem:[#allocation2 + $0x6a] sm:$0xff] }
 0x1ff   : > { %12889 = vmatmul.mubr.msk.f32.gmra.mxu1 %vm903_vm1, %v979_v25  ;;  %13163 = vmatmul.mubr.msk.f32.gmra.mxu0 %vm903_vm1, %v15249_v26  ;;  %v4316_v25 = vld [vmem:[#allocation2 + $0x6e] sm:$0xff]  ;;  %v4330_v26 = vld [vmem:[#allocation2 + $0xde] sm:$0xff] }
 0x200   : > { %12891 = vmatprep.mubr.msk.f32.mxu1 %vm903_vm1, %v980_v27  ;;  %13165 = vmatprep.mubr.msk.f32.mxu0 %vm903_vm1, %v15254_v28  ;;  %v15343_v27 = vld [vmem:[#allocation2 + $0x72] sm:$0xff] }
 0x203   : > { %12892 = vmatmul.mubr.msk.f32.gmra.mxu1 %vm903_vm1, %v981_v9  ;;  %13166 = vmatmul.mubr.msk.f32.gmra.mxu0 %vm903_vm1, %v15259_v30  ;;  %v4317_v9 = vld [vmem:[#allocation2 + $0x76] sm:$0xff] }
 0x204   : > { %12896 = vmatprep.mubr.msk.f32.mxu1 %vm903_vm1, %v1733_v33  ;;  %13168 = vmatprep.mubr.msk.f32.mxu0 %vm903_vm1, %v15264_v35  ;;  %v15348_v33 = vpop.f32.mrf.mxu1  ;;  %v4326_v35 = vld [vmem:[#allocation2 + $0xbe] sm:$0xff] }
 0x205   : > { %20664 = vst [vmem:[#allocation25_spill] sm:$0xff] %v15348_v33 }
 0x207   : > { %12897 = vmatmul.mubr.msk.f32.vlgmr.msra.gmra.mxu1 %vm903_vm1, %v1734_v40  ;;  %13169 = vmatmul.mubr.msk.f32.gmra.mxu0 %vm903_vm1, %v15269_v37  ;;  %v4318_v40 = vld [vmem:[#allocation2 + $0x7e] sm:$0xff] }
 0x208   : > { %12899 = vmatprep.mubr.msk.f32.mxu1 %vm903_vm1, %v15274_v42  ;;  %13171 = vmatprep.mubr.msk.f32.mxu0 %vm903_vm1, %v3483_v39  ;;  %v15350_v39 = vld [vmem:[#allocation2 + $0x7a] sm:$0xff] }
 0x209   : > { %12951 = vmatpush3.msk.msra.mxu1 %vm1128_vm0, %v15092_v23  ;;  %v4308_v23 = vld [vmem:[#allocation2 + $0x2e] sm:$0xff] }
 0x20a   : > { %13062 = vmatprep.subr.msk.mxu1 %vm1128_vm0, %v15282_v46 }
 0x20b   : > { %12900 = vmatmul.mubr.msk.f32.gmra.mxu1 %vm903_vm1, %v15286_v48  ;;  %13172 = vmatmul.mubr.msk.f32.gmra.mxu0 %vm903_vm1, %v3484_v44  ;;  %v15355_v44 = vld [vmem:[#allocation2 + $0x82] sm:$0xff] }
 0x20c   : > { %12902 = vmatprep.mubr.msk.f32.mxu1 %vm903_vm1, %v15293_v50  ;;  %13232 = vmatprep.mubr.msk.f32.mxu0 %vm903_vm1, %v4307_v52  ;;  %v4319_v52 = vld [vmem:[#allocation2 + $0x86] sm:$0xff] }
 0x20f   : > { %12903 = vmatmul.mubr.msk.f32.gmra.mxu1 %vm903_vm1, %v15298_v54  ;;  %13233 = vmatmul.mubr.msk.f32.vlgmr.msra.gmra.mxu0 %vm903_vm1, %v4308_v23  ;;  %v15360_v23 = vpop.f32.mrf.mxu1 }
 0x210   : > { %12905 = vmatprep.mubr.msk.f32.mxu1 %vm903_vm1, %v15303_v56  ;;  %13235 = vmatprep.mubr.msk.f32.mxu0 %vm903_vm1, %v4309_v58  ;;  %20665 = vst [vmem:[#allocation26_spill] sm:$0xff] %v15360_v23  ;;  %v15362_v58 = vld [vmem:[#allocation2 + $0x8a] sm:$0xff]  ;;  %v4333_v23 = vld [vmem:[#allocation2 + $0xf6] sm:$0xff] }
 0x213   : > { %12906 = vmatmul.mubr.msk.f32.gmra.mxu1 %vm903_vm1, %v15308_v60  ;;  %13236 = vmatmul.mubr.msk.f32.gmra.mxu0 %vm903_vm1, %v4310_v62  ;;  %v4320_v62 = vld [vmem:[#allocation2 + $0x8e] sm:$0xff] }
 0x214   : > { %12908 = vmatprep.mubr.msk.f32.mxu1 %vm903_vm1, %v15313_v0  ;;  %13238 = vmatprep.mubr.msk.f32.mxu0 %vm903_vm1, %v4311_v3  ;;  %v15364_v3 = vpop.f32.mrf.mxu1 }
 0x215   : > { %20666 = vst [vmem:[#allocation27_spill] sm:$0xff] %v15364_v3 }
 0x217   : > { %12909 = vmatmul.mubr.msk.f32.gmra.mxu1 %vm903_vm1, %v15318_v5  ;;  %13239 = vmatmul.mubr.msk.f32.gmra.mxu0 %vm903_vm1, %v4312_v7  ;;  %v15369_v7 = vld [vmem:[#allocation2 + $0x92] sm:$0xff] }
 0x218   : > { %12911 = vmatprep.mubr.msk.f32.mxu1 %vm903_vm1, %v15323_v10  ;;  %13241 = vmatprep.mubr.msk.f32.mxu0 %vm903_vm1, %v4313_v12  ;;  %v4321_v12 = vld [vmem:[#allocation2 + $0x96] sm:$0xff] }
 0x21b   : > { %12912 = vmatmul.mubr.msk.f32.gmra.mxu1 %vm903_vm1, %v15328_v14  ;;  %13242 = vmatmul.mubr.msk.f32.gmra.mxu0 %vm903_vm1, %v4314_v16  ;;  %v15374_v16 = vld [vmem:[#allocation2 + $0x9a] sm:$0xff] }
 0x21c   : > { %12914 = vmatprep.mubr.msk.f32.mxu1 %vm903_vm1, %v15333_v18  ;;  %13244 = vmatprep.mubr.msk.f32.mxu0 %vm903_vm1, %v4315_v20  ;;  %v4322_v20 = vld [vmem:[#allocation2 + $0x9e] sm:$0xff] }
 0x21f   : > { %12915 = vmatmul.mubr.msk.f32.gmra.mxu1 %vm903_vm1, %v15338_v22  ;;  %13245 = vmatmul.mubr.msk.f32.gmra.mxu0 %vm903_vm1, %v4316_v25  ;;  %v15376_v25 = vpop.f32.mrf.mxu1 }
 0x220   : > { %12917 = vmatprep.mubr.msk.f32.mxu1 %vm903_vm1, %v15343_v27  ;;  %13247 = vmatprep.mubr.msk.f32.mxu0 %vm903_vm1, %v4317_v9  ;;  %20667 = vst [vmem:[#allocation28_spill] sm:$0xff] %v15376_v25  ;;  %v15381_v9 = vld [vmem:[#allocation2 + $0xa2] sm:$0xff] }
 0x223   : > { %12918 = vmatmul.mubr.msk.f32.gmra.mxu1 %vm903_vm1, %v15350_v39  ;;  %13248 = vmatmul.mubr.msk.f32.gmra.mxu0 %vm903_vm1, %v4318_v40  ;;  %v4323_v40 = vld [vmem:[#allocation2 + $0xa6] sm:$0xff] }
 0x224   : > { %12920 = vmatprep.mubr.msk.f32.mxu1 %vm903_vm1, %v15355_v44  ;;  %13250 = vmatprep.mubr.msk.f32.mxu0 %vm903_vm1, %v4319_v52  ;;  %v15386_v52 = vpop.f32.mrf.mxu1 }
 0x225   : > { %20668 = vst [vmem:[#allocation29_spill] sm:$0xff] %v15386_v52  ;;  %v4327_v52 = vld [vmem:[#allocation2 + $0xc6] sm:$0xff] }
 0x226   : > { %v15398_v37 = vpop.f32.mrf.mxu1 }
 0x227   : > { %12921 = vmatmul.mubr.msk.f32.gmra.mxu1 %vm903_vm1, %v15362_v58  ;;  %13251 = vmatmul.mubr.msk.f32.gmra.mxu0 %vm903_vm1, %v4320_v62  ;;  %v15388_v62 = vld [vmem:[#allocation2 + $0xaa] sm:$0xff]  ;;  %20669 = vst [vmem:[#allocation30_spill] sm:$0xff] %v15398_v37 }
 0x228   : > { %12923 = vmatprep.mubr.msk.f32.mxu1 %vm903_vm1, %v15369_v7  ;;  %13253 = vmatprep.mubr.msk.f32.mxu0 %vm903_vm1, %v4321_v12  ;;  %v4324_v12 = vld [vmem:[#allocation2 + $0xae] sm:$0xff]  ;;  %v15402_v30 = vpop.f32.mrf.mxu1 }
 0x229   : > { %20670 = vst [vmem:[#allocation31_spill] sm:$0xff] %v15402_v30  ;;  %v4328_v37 = vld [vmem:[#allocation2 + $0xce] sm:$0xff] }
 0x22a   : > { %v15414_v28 = vpop.f32.mrf.mxu1  ;;  %v15419_v30 = vld [vmem:[#allocation2 + $0xd2] sm:$0xff] }
 0x22b   : > { %12924 = vmatmul.mubr.msk.f32.gmra.mxu1 %vm903_vm1, %v15374_v16  ;;  %13254 = vmatmul.mubr.msk.f32.gmra.mxu0 %vm903_vm1, %v4322_v20  ;;  %v4325_v20 = vld [vmem:[#allocation2 + $0xb6] sm:$0xff]  ;;  %20671 = vst [vmem:[#allocation32_spill] sm:$0xff] %v15414_v28  ;;  %v15431_v28 = vld [vmem:[#allocation2 + $0xe2] sm:$0xff] }
 0x22c   : > { %12926 = vmatprep.mubr.msk.f32.mxu1 %vm903_vm1, %v15381_v9  ;;  %13256 = vmatprep.mubr.msk.f32.mxu0 %vm903_vm1, %v4323_v40  ;;  %v15400_v40 = vld [vmem:[#allocation2 + $0xba] sm:$0xff]  ;;  %v15424_v25 = vpop.f32.mrf.mxu1 }
 0x22d   : > { %20672 = vst [vmem:[#allocation33_spill] sm:$0xff] %v15424_v25  ;;  %v4332_v25 = vld [vmem:[#allocation2 + $0xee] sm:$0xff] }
 0x22e   : > { %v15436_v3 = vpop.f32.mrf.mxu1 }
 0x22f   : > { %12927 = vmatmul.mubr.msk.f32.gmra.mxu1 %vm903_vm1, %v15388_v62  ;;  %13257 = vmatmul.mubr.msk.f32.gmra.mxu0 %vm903_vm1, %v4324_v12  ;;  %v15407_v12 = vld [vmem:[#allocation2 + $0xc2] sm:$0xff]  ;;  %20673 = vst [vmem:[#allocation34_spill] sm:$0xff] %v15436_v3 }
 0x230   : > { %12929 = vmatprep.mubr.msk.f32.mxu1 %vm903_vm1, %v15393_v1  ;;  %13259 = vmatprep.mubr.msk.f32.mxu0 %vm903_vm1, %v4325_v20  ;;  %v15412_v20 = vld [vmem:[#allocation2 + $0xca] sm:$0xff]  ;;  %v15440_v24 = vpop.f32.mrf.mxu1  ;;  %v4334_v3 = vld [vmem:[#allocation2 + $0xfe] sm:$0xff] }
 0x231   : > { %20674 = vst [vmem:[#allocation35_spill] sm:$0xff] %v15440_v24  ;;  %v15457_v24 = vld [vmem:[#allocation2 + $0x102] sm:$0xff] }
 0x232   : > { %v15452_v21 = vpop.f32.mrf.mxu1 }
 0x233   : > { %12930 = vmatmul.mubr.msk.f32.gmra.mxu1 %vm903_vm1, %v15400_v40  ;;  %13260 = vmatmul.mubr.msk.f32.gmra.mxu0 %vm903_vm1, %v4326_v35  ;;  %v4329_v35 = vld [vmem:[#allocation2 + $0xd6] sm:$0xff]  ;;  %20675 = vst [vmem:[#allocation36_spill] sm:$0xff] %v15452_v21 }
 0x234   : > { %12932 = vmatprep.mubr.msk.f32.mxu1 %vm903_vm1, %v15407_v12  ;;  %13262 = vmatprep.mubr.msk.f32.mxu0 %vm903_vm1, %v4327_v52  ;;  %v15426_v52 = vld [vmem:[#allocation2 + $0xda] sm:$0xff]  ;;  %v15462_v33 = vpop.f32.mrf.mxu1  ;;  %v15469_v21 = vld [vmem:[#allocation2 + $0x112] sm:$0xff] }
 0x235   : > { %20676 = vst [vmem:[#allocation37_spill] sm:$0xff] %v15462_v33  ;;  %v4338_v33 = vld [vmem:[#allocation2 + $0x11e] sm:$0xff] }
 0x236   : > { %v15474_v17 = vpop.f32.mrf.mxu1 }
 0x237   : > { %12933 = vmatmul.mubr.msk.f32.gmra.mxu1 %vm903_vm1, %v15412_v20  ;;  %13263 = vmatmul.mubr.msk.f32.gmra.mxu0 %vm903_vm1, %v4328_v37  ;;  %v4331_v37 = vld [vmem:[#allocation2 + $0xe6] sm:$0xff] }
 0x238   : > { %12935 = vmatprep.mubr.msk.f32.mxu1 %vm903_vm1, %v15419_v30  ;;  %13265 = vmatprep.mubr.msk.f32.mxu0 %vm903_vm1, %v4329_v35  ;;  %v15438_v35 = vld [vmem:[#allocation2 + $0xea] sm:$0xff] }
 0x23b   : > { %12936 = vmatmul.mubr.msk.f32.gmra.mxu1 %vm903_vm1, %v15426_v52  ;;  %13266 = vmatmul.mubr.msk.f32.gmra.mxu0 %vm903_vm1, %v4330_v26  ;;  %v15445_v26 = vld [vmem:[#allocation2 + $0xf2] sm:$0xff]  ;;  %v15478_v15 = vpop.f32.mrf.mxu1 }
 0x23c   : > { %12938 = vmatprep.mubr.msk.f32.mxu1 %vm903_vm1, %v15431_v28  ;;  %13268 = vmatprep.mubr.msk.f32.mxu0 %vm903_vm1, %v4331_v37  ;;  %v15450_v37 = vld [vmem:[#allocation2 + $0xfa] sm:$0xff] }
 0x23d   : > { %v15486_v11 = vpop.f32.mrf.mxu1 }
 0x23f   : > { %12939 = vmatmul.mubr.msk.f32.gmra.mxu1 %vm903_vm1, %v15438_v35  ;;  %13269 = vmatmul.mubr.msk.f32.gmra.mxu0 %vm903_vm1, %v4332_v25  ;;  %v4335_v25 = vld [vmem:[#allocation2 + $0x106] sm:$0xff] }
 0x240   : > { %12941 = vmatprep.mubr.msk.f32.mxu1 %vm903_vm1, %v15445_v26  ;;  %13271 = vmatprep.mubr.msk.f32.mxu0 %vm903_vm1, %v4333_v23  ;;  %v15464_v23 = vld [vmem:[#allocation2 + $0x10a] sm:$0xff] }
 0x243   : > { %12942 = vmatmul.mubr.msk.f32.gmra.mxu1 %vm903_vm1, %v15450_v37  ;;  %13272 = vmatmul.mubr.msk.f32.gmra.mxu0 %vm903_vm1, %v4334_v3  ;;  %v4337_v3 = vld [vmem:[#allocation2 + $0x116] sm:$0xff] }
 0x244   : > { %12944 = vmatprep.mubr.msk.f32.mxu1 %vm903_vm1, %v15457_v24  ;;  %13274 = vmatprep.mubr.msk.f32.mxu0 %vm903_vm1, %v4335_v25  ;;  %v15476_v25 = vld [vmem:[#allocation2 + $0x11a] sm:$0xff] }
 0x247   : > { %12945 = vmatmul.mubr.msk.f32.gmra.mxu1 %vm903_vm1, %v15464_v23  ;;  %13275 = vmatmul.mubr.msk.f32.gmra.mxu0 %vm903_vm1, %v4336_v19  ;;  %v4339_v19 = vld [vmem:[#allocation2 + $0x126] sm:$0xff] }
 0x248   : > { %12947 = vmatprep.mubr.msk.f32.mxu1 %vm903_vm1, %v15469_v21  ;;  %13277 = vmatprep.mubr.msk.f32.mxu0 %vm903_vm1, %v4337_v3  ;;  %v4341_v3 = vld [vmem:[#allocation2 + $0x136] sm:$0xff] }
 0x24b   : > { %12948 = vmatmul.mubr.msk.f32.gmra.mxu1 %vm903_vm1, %v15476_v25  ;;  %13278 = vmatmul.mubr.msk.f32.gmra.mxu0 %vm903_vm1, %v4338_v33  ;;  %v15500_v33 = vpop.f32.mrf.mxu0 }
 0x24c   : > { %12952 = vmatprep.mubr.msk.f32.mxu1 %vm903_vm1, %v15274_v42  ;;  %13280 = vmatprep.mubr.msk.f32.mxu0 %vm903_vm1, %v4339_v19  ;;  %v15498_v42 = vld [vmem:[%s20651_s2 + $0x15] sm:$0x7]  ;;  %v15502_v19 = vpop.f32.mrf.mxu1 }
 0x24f   : > { %12953 = vmatmul.mubr.msk.f32.vlgmr.msra.gmra.mxu1 %vm903_vm1, %v15286_v48  ;;  %13281 = vmatmul.mubr.msk.f32.gmra.mxu0 %vm903_vm1, %v4340_v13  ;;  %v15511_v13 = vpop.f32.mrf.mxu0 }
 0x250   : > { %12955 = vmatprep.mubr.msk.f32.mxu1 %vm903_vm1, %v15293_v50  ;;  %13063 = vmatpush3.msk.msra.mxu1 %vm1128_vm0, %v15282_v46  ;;  %v15513_v46 = vpop.f32.mrf.mxu1 }
 0x251   : > { %13283 = vmatprep.mubr.msk.f32.mxu0 %vm903_vm1, %v4341_v3  ;;  %13174 = vmatprep.subr.msk.mxu1 %vm1128_vm0, %v15498_v42  ;;  %20677 = vst [vmem:[#allocation38_spill] sm:$0xff] %v15513_v46  ;;  %v15515_v48 = vpop.f32.mrf.mxu0  ;;  %v4342_v3 = vld [vmem:[#allocation2 + $0x13e] sm:$0xff] }
 0x252   : > { %v15517_v50 = vpop.f32.mrf.mxu1 }
 0x253   : > { %12956 = vmatmul.mubr.msk.f32.gmra.mxu1 %vm903_vm1, %v15298_v54  ;;  %20678 = vst [vmem:[#allocation39_spill] sm:$0xff] %v15517_v50  ;;  %13284 = vmatmul.mubr.msk.f32.gmra.mxu0 %vm903_vm1, %v4342_v3  ;;  %v15524_v54 = vpop.f32.mrf.mxu0 }
 0x254   : > { %12958 = vmatprep.mubr.msk.f32.mxu1 %vm903_vm1, %v15303_v56  ;;  %v15526_v56 = vpop.f32.mrf.mxu1 }
 0x255   : > { %v15534_v46 = vpop.f32.mrf.mxu0 }
 0x256   : > { %v15532_v50 = vpop.f32.mrf.mxu1 }
 0x257   : > { %12959 = vmatmul.mubr.msk.f32.gmra.mxu1 %vm903_vm1, %v15308_v60 }
 0x258   : > { %12961 = vmatprep.mubr.msk.f32.mxu1 %vm903_vm1, %v15313_v0  ;;  %v15540_v60 = vpop.f32.mrf.mxu1  ;;  %v15542_v0 = vpop.f32.mrf.mxu0 }
 0x259   : > { %20679 = vst [vmem:[#allocation40_spill] sm:$0xff] %v15542_v0 }
 0x25b   : > { %12962 = vmatmul.mubr.msk.f32.gmra.mxu1 %vm903_vm1, %v15318_v5  ;;  %v15544_v3 = vpop.f32.mrf.mxu1  ;;  %v15550_v5 = vpop.f32.mrf.mxu0 }
 0x25c   : > { %12964 = vmatprep.mubr.msk.f32.mxu1 %vm903_vm1, %v15323_v10  ;;  %20680 = vst [vmem:[#allocation41_spill] sm:$0xff] %v15550_v5  ;;  %v20720_v5 = vld [vmem:[#allocation15_spill] sm:$0xff] }
 0x25d   : > { %v15552_v10 = vpop.f32.mrf.mxu1 }
 0x25f   : > { %12965 = vmatmul.mubr.msk.f32.gmra.mxu1 %vm903_vm1, %v15328_v14 }
 0x260   : > { %12967 = vmatprep.mubr.msk.f32.mxu1 %vm903_vm1, %v15333_v18  ;;  %v15560_v18 = vpop.f32.mrf.mxu0 }
 0x261   : > { %20681 = vst [vmem:[#allocation42_spill] sm:$0xff] %v15560_v18 }
 0x263   : > { %12968 = vmatmul.mubr.msk.f32.gmra.mxu1 %vm903_vm1, %v15338_v22  ;;  %v15558_v14 = vpop.f32.mrf.mxu1  ;;  %v15566_v22 = vpop.f32.mrf.mxu0 }
 0x264   : > { %12970 = vmatprep.mubr.msk.f32.mxu1 %vm903_vm1, %v15343_v27  ;;  %20682 = vst [vmem:[#allocation43_spill] sm:$0xff] %v15566_v22  ;;  %v20719_v22 = vld [vmem:[#allocation14_spill] sm:$0xff] }
 0x265   : > { %v15568_v27 = vpop.f32.mrf.mxu1 }
 0x267   : > { %12971 = vmatmul.mubr.msk.f32.gmra.mxu1 %vm903_vm1, %v15350_v39  ;;  %v15576_v39 = vpop.f32.mrf.mxu0 }
 0x268   : > { %12973 = vmatprep.mubr.msk.f32.mxu1 %vm903_vm1, %v15355_v44  ;;  %20683 = vst [vmem:[#allocation44_spill] sm:$0xff] %v15576_v39 }
 0x269   : > { %v15578_v44 = vpop.f32.mrf.mxu0 }
 0x26a   : > { %20684 = vst [vmem:[#allocation45_spill] sm:$0xff] %v15578_v44 }
 0x26b   : > { %12974 = vmatmul.mubr.msk.f32.gmra.mxu1 %vm903_vm1, %v15362_v58  ;;  %v15570_v0 = vpop.f32.mrf.mxu1  ;;  %v15588_v18 = vpop.f32.mrf.mxu0 }
 0x26c   : > { %12976 = vmatprep.mubr.msk.f32.mxu1 %vm903_vm1, %v15369_v7  ;;  %20685 = vst [vmem:[#allocation46_spill] sm:$0xff] %v15588_v18 }
 0x26d   : > { %v15580_v58 = vpop.f32.mrf.mxu1 }
 0x26f   : > { %12977 = vmatmul.mubr.msk.f32.gmra.mxu1 %vm903_vm1, %v15374_v16  ;;  %v15594_v16 = vpop.f32.mrf.mxu0 }
 0x270   : > { %12979 = vmatprep.mubr.msk.f32.mxu1 %vm903_vm1, %v15381_v9  ;;  %20686 = vst [vmem:[#allocation47_spill] sm:$0xff] %v15594_v16 }
 0x273   : > { %12980 = vmatmul.mubr.msk.f32.gmra.mxu1 %vm903_vm1, %v15388_v62  ;;  %v15586_v7 = vpop.f32.mrf.mxu1 }
 0x274   : > { %12982 = vmatprep.mubr.msk.f32.mxu1 %vm903_vm1, %v15393_v1  ;;  %v15604_v1 = vpop.f32.mrf.mxu0 }
 0x275   : > { %v15596_v9 = vpop.f32.mrf.mxu1  ;;  %20688 = vst [vmem:[#allocation49_spill] sm:$0xff] %v15604_v1 }
 0x276   : > { %20687 = vst [vmem:[#allocation48_spill] sm:$0xff] %v15596_v9 }
 0x277   : > { %12983 = vmatmul.mubr.msk.f32.gmra.mxu1 %vm903_vm1, %v15400_v40  ;;  %v15608_v40 = vpop.f32.mrf.mxu0 }
 0x278   : > { %12985 = vmatprep.mubr.msk.f32.mxu1 %vm903_vm1, %v15407_v12  ;;  %20690 = vst [vmem:[#allocation51_spill] sm:$0xff] %v15608_v40 }
 0x27b   : > { %v15598_v39 = vpop.f32.mrf.mxu1  ;;  %12986 = vmatmul.mubr.msk.f32.gmra.mxu1 %vm903_vm1, %v15412_v20  ;;  %v15618_v20 = vpop.f32.mrf.mxu0 }
 0x27c   : > { %12988 = vmatprep.mubr.msk.f32.mxu1 %vm903_vm1, %v15419_v30  ;;  %20691 = vst [vmem:[#allocation52_spill] sm:$0xff] %v15618_v20 }
 0x27d   : > { %v15606_v62 = vpop.f32.mrf.mxu1  ;;  %v15626_v30 = vpop.f32.mrf.mxu0 }
 0x27e   : > { %20689 = vst [vmem:[#allocation50_spill] sm:$0xff] %v15606_v62  ;;  %20692 = vst [vmem:[#allocation53_spill] sm:$0xff] %v15626_v30 }
 0x27f   : > { %v15610_v18 = vpop.f32.mrf.mxu1  ;;  %12989 = vmatmul.mubr.msk.f32.gmra.mxu1 %vm903_vm1, %v15426_v52 }
 0x280   : > { %12991 = vmatprep.mubr.msk.f32.mxu1 %vm903_vm1, %v15431_v28  ;;  %v15636_v28 = vpop.f32.mrf.mxu0 }
 0x281   : > { %v15616_v12 = vpop.f32.mrf.mxu1  ;;  %20693 = vst [vmem:[#allocation54_spill] sm:$0xff] %v15636_v28 }
 0x283   : > { %v15620_v9 = vpop.f32.mrf.mxu1  ;;  %12992 = vmatmul.mubr.msk.f32.gmra.mxu1 %vm903_vm1, %v15438_v35  ;;  %v15640_v35 = vpop.f32.mrf.mxu0 }
 0x284   : > { %12994 = vmatprep.mubr.msk.f32.mxu1 %vm903_vm1, %v15445_v26  ;;  %20694 = vst [vmem:[#allocation55_spill] sm:$0xff] %v15640_v35 }
 0x285   : > { %v15628_v62 = vpop.f32.mrf.mxu1 }
 0x287   : > { %v15630_v52 = vpop.f32.mrf.mxu1  ;;  %12995 = vmatmul.mubr.msk.f32.gmra.mxu1 %vm903_vm1, %v15450_v37  ;;  %v15650_v37 = vpop.f32.mrf.mxu0 }
 0x288   : > { %12997 = vmatprep.mubr.msk.f32.mxu1 %vm903_vm1, %v15457_v24  ;;  %20695 = vst [vmem:[#allocation56_spill] sm:$0xff] %v15650_v37  ;;  %v2196_v24 = vld [vmem:[#allocation2 + $0x122] sm:$0xff] }
 0x289   : > { %v15638_v1 = vpop.f32.mrf.mxu1  ;;  %v15657_v28 = vpop.f32.mrf.mxu0 }
 0x28a   : > { %20696 = vst [vmem:[#allocation57_spill] sm:$0xff] %v15657_v28 }
 0x28b   : > { %v15642_v20 = vpop.f32.mrf.mxu1  ;;  %12998 = vmatmul.mubr.msk.f32.gmra.mxu1 %vm903_vm1, %v15464_v23  ;;  %v2197_v23 = vld [vmem:[#allocation2 + $0x12a] sm:$0xff]  ;;  %v15665_v37 = vpop.f32.mrf.mxu0 }
 0x28c   : > { %13000 = vmatprep.mubr.msk.f32.mxu1 %vm903_vm1, %v15469_v21  ;;  %v3020_v21 = vld [vmem:[#allocation2 + $0x14] sm:$0xff]  ;;  %20697 = vst [vmem:[#allocation58_spill] sm:$0xff] %v15665_v37 }
 0x28d   : > { %v15648_v26 = vpop.f32.mrf.mxu1  ;;  %v15669_v44 = vpop.f32.mrf.mxu0 }
 0x28e   : > { %20698 = vst [vmem:[#allocation59_spill] sm:$0xff] %v15669_v44 }
 0x28f   : > { %v15652_v30 = vpop.f32.mrf.mxu1  ;;  %13001 = vmatmul.mubr.msk.f32.gmra.mxu1 %vm903_vm1, %v15476_v25  ;;  %v3021_v25 = vld [vmem:[#allocation2 + $0x1c] sm:$0xff]  ;;  %v15681_v37 = vpop.f32.mrf.mxu0 }
 0x290   : > { %13003 = vmatprep.mubr.msk.f32.mxu1 %vm903_vm1, %v2196_v24  ;;  %20700 = vst [vmem:[#allocation60_spill] sm:$0xff] %v15681_v37 }
 0x291   : > { %v15659_v35 = vpop.f32.mrf.mxu1 }
 0x293   : > { %v15661_v40 = vpop.f32.mrf.mxu1  ;;  %13004 = vmatmul.mubr.msk.f32.gmra.mxu1 %vm903_vm1, %v2197_v23 }
 0x294   : > { %13064 = vmatprep.mubr.msk.f32.mxu1 %vm903_vm1, %v3020_v21  ;;  %v20699_v21 = vmov 0.0  }
 0x295   : > { %v15667_v16 = vpop.f32.mrf.mxu1 }
 0x297   : > { %v15671_v24 = vpop.f32.mrf.mxu1  ;;  %13065 = vmatmul.mubr.msk.f32.vlgmr.msra.gmra.mxu1 %vm903_vm1, %v3021_v25  ;;  %v15689_v25 = vpop.f32.mrf.mxu0 }
 0x298   : > { %13067 = vmatprep.mubr.msk.f32.mxu1 %vm903_vm1, %v15101_v29  ;;  %13175 = vmatpush3.msk.msra.mxu1 %vm1128_vm0, %v15498_v42  ;;  %20701 = vst [vmem:[#allocation61_spill] sm:$0xff] %v15689_v25 }
 0x299   : > { %v15678_v23 = vpop.f32.mrf.mxu1  ;;  %5062 = vmatprep.subr.mxu1 %v20699_v21  ;;  %v15699_v42 = vpop.f32.mrf.mxu0 }
 0x29a   : > { %20702 = vst [vmem:[#allocation62_spill] sm:$0xff] %v15699_v42 }
 0x29b   : > { %v15683_v28 = vpop.f32.mrf.mxu1  ;;  %13068 = vmatmul.mubr.msk.f32.gmra.mxu1 %vm903_vm1, %v15106_v32  ;;  %v15703_v32 = vpop.f32.mrf.mxu0 }
 0x29c   : > { %13070 = vmatprep.mubr.msk.f32.mxu1 %vm903_vm1, %v15111_v34  ;;  %20703 = vst [vmem:[#allocation63_spill] sm:$0xff] %v15703_v32 }
 0x29d   : > { %v15691_v29 = vpop.f32.mrf.mxu1 }
 0x29f   : > { %v15693_v44 = vpop.f32.mrf.mxu1  ;;  %13071 = vmatmul.mubr.msk.f32.gmra.mxu1 %vm903_vm1, %v15118_v36  ;;  %v15713_v36 = vpop.f32.mrf.mxu0 }
 0x2a0   : > { %13073 = vmatprep.mubr.msk.f32.mxu1 %vm903_vm1, %v15124_v38  ;;  %20704 = vst [vmem:[#allocation64_spill] sm:$0xff] %v15713_v36 }
 0x2a1   : > { %v15701_v37 = vpop.f32.mrf.mxu1  ;;  %v15721_v38 = vpop.f32.mrf.mxu0 }
 0x2a2   : > { %20705 = vst [vmem:[#allocation65_spill] sm:$0xff] %v15721_v38 }
 0x2a3   : > { %v15705_v21 = vpop.f32.mrf.mxu1  ;;  %13074 = vmatmul.mubr.msk.f32.gmra.mxu1 %vm903_vm1, %v15129_v31 }
 0x2a4   : > { %13076 = vmatprep.mubr.msk.f32.mxu1 %vm903_vm1, %v15134_v41  ;;  %v15731_v41 = vpop.f32.mrf.mxu0 }
 0x2a5   : > { %v15711_v34 = vpop.f32.mrf.mxu1  ;;  %20706 = vst [vmem:[#allocation66_spill] sm:$0xff] %v15731_v41 }
 0x2a7   : > { %v15715_v25 = vpop.f32.mrf.mxu1  ;;  %13077 = vmatmul.mubr.msk.f32.gmra.mxu1 %vm903_vm1, %v15139_v43  ;;  %v15735_v43 = vpop.f32.mrf.mxu0 }
 0x2a8   : > { %13079 = vmatprep.mubr.msk.f32.mxu1 %vm903_vm1, %v15144_v45  ;;  %20707 = vst [vmem:[#allocation67_spill] sm:$0xff] %v15735_v43 }
 0x2a9   : > { %v15723_v42 = vpop.f32.mrf.mxu1 }
 0x2ab   : > { %v15725_v31 = vpop.f32.mrf.mxu1  ;;  %13080 = vmatmul.mubr.msk.f32.gmra.mxu1 %vm903_vm1, %v15149_v47  ;;  %v15745_v47 = vpop.f32.mrf.mxu0 }
 0x2ac   : > { %13082 = vmatprep.mubr.msk.f32.mxu1 %vm903_vm1, %v15154_v49  ;;  %20708 = vst [vmem:[#allocation68_spill] sm:$0xff] %v15745_v47 }
 0x2ad   : > { %v15733_v36 = vpop.f32.mrf.mxu1  ;;  %v15753_v49 = vpop.f32.mrf.mxu0 }
 0x2ae   : > { %20709 = vst [vmem:[#allocation69_spill] sm:$0xff] %v15753_v49 }
 0x2af   : > { %v15737_v32 = vpop.f32.mrf.mxu1  ;;  %13083 = vmatmul.mubr.msk.f32.gmra.mxu1 %vm903_vm1, %v15159_v51 }
 0x2b0   : > { %13085 = vmatprep.mubr.msk.f32.mxu1 %vm903_vm1, %v15164_v53  ;;  %v15763_v53 = vpop.f32.mrf.mxu0 }
 0x2b1   : > { %v15743_v45 = vpop.f32.mrf.mxu1  ;;  %20710 = vst [vmem:[#allocation70_spill] sm:$0xff] %v15763_v53 }
 0x2b3   : > { %v15747_v38 = vpop.f32.mrf.mxu1  ;;  %13086 = vmatmul.mubr.msk.f32.gmra.mxu1 %vm903_vm1, %v15169_v55  ;;  %v15767_v55 = vpop.f32.mrf.mxu0 }
 0x2b4   : > { %13088 = vmatprep.mubr.msk.f32.mxu1 %vm903_vm1, %v15174_v57  ;;  %20711 = vst [vmem:[#allocation71_spill] sm:$0xff] %v15767_v55 }
 0x2b5   : > { %v15755_v41 = vpop.f32.mrf.mxu1 }
 0x2b7   : > { %v15757_v51 = vpop.f32.mrf.mxu1  ;;  %13089 = vmatmul.mubr.msk.f32.gmra.mxu1 %vm903_vm1, %v15179_v59  ;;  %v15777_v59 = vpop.f32.mrf.mxu0 }
 0x2b8   : > { %13091 = vmatprep.mubr.msk.f32.mxu1 %vm903_vm1, %v15184_v61  ;;  %20712 = vst [vmem:[#allocation72_spill] sm:$0xff] %v15777_v59 }
 0x2b9   : > { %v15765_v47 = vpop.f32.mrf.mxu1  ;;  %v15785_v61 = vpop.f32.mrf.mxu0 }
 0x2ba   : > { %20713 = vst [vmem:[#allocation73_spill] sm:$0xff] %v15785_v61 }
 0x2bb   : > { %v15769_v43 = vpop.f32.mrf.mxu1  ;;  %13092 = vmatmul.mubr.msk.f32.gmra.mxu1 %vm903_vm1, %v15189_v63  ;;  %v15795_v59 = vpop.f32.mrf.mxu0 }
 0x2bc   : > { %13094 = vmatprep.mubr.msk.f32.mxu1 %vm903_vm1, %v15194_v2  ;;  %v20715_v2 = vld [vmem:[#allocation13_spill] sm:$0xff] }
 0x2bd   : > { %v15775_v57 = vpop.f32.mrf.mxu1  ;;  %20716 = vst [vmem:[#allocation13_spill] sm:$0xff] %v15795_v59  ;;  %v1570_v59 = vadd.f32 %v15620_v9, %v15515_v48 }
 0x2bf   : > { %v15779_v49 = vpop.f32.mrf.mxu1  ;;  %13095 = vmatmul.mubr.msk.f32.gmra.mxu1 %vm903_vm1, %v15199_v4  ;;  %v1560_v4 = vadd.f32 %v15610_v18, %v15500_v33 }
 0x2c0   : > { %13097 = vmatprep.mubr.msk.f32.mxu1 %vm903_vm1, %v15204_v6  ;;  %v15801_v6 = vpop.f32.mrf.mxu0 }
 0x2c1   : > { %v15787_v53 = vpop.f32.mrf.mxu1  ;;  %20718 = vst [vmem:[#allocation76_spill] sm:$0xff] %v15801_v6  ;;  %v20722_v6 = vld [vmem:[#allocation16_spill] sm:$0xff] }
 0x2c2   : > { %20714 = vst [vmem:[#allocation74_spill] sm:$0xff] %v15787_v53  ;;  %v1555_v53 = vadd.f32 %v15616_v12, %v15511_v13  ;;  %v15815_v33 = vpop.f32.mrf.mxu0  ;;  %v1565_v13 = vadd.f32 %v15628_v62, %v15524_v54  ;;  %v20723_v12 = vld [vmem:[#allocation17_spill] sm:$0xff] }
 0x2c3   : > { %v15789_v63 = vpop.f32.mrf.mxu1  ;;  %13098 = vmatmul.mubr.msk.f32.gmra.mxu1 %vm903_vm1, %v15209_v8  ;;  %20721 = vst [vmem:[#allocation14_spill] sm:$0xff] %v15815_v33  ;;  %v20731_v33 = vld [vmem:[#allocation20_spill] sm:$0xff] }
 0x2c4   : > { %13100 = vmatprep.mubr.msk.f32.mxu1 %vm903_vm1, %v20715_v2 }
 0x2c5   : > { %v15797_v55 = vpop.f32.mrf.mxu1 }
 0x2c6   : > { %20717 = vst [vmem:[#allocation75_spill] sm:$0xff] %v15797_v55 }
 0x2c7   : > { %v12898_v61 = vpop.f32.mrf.mxu1  ;;  %13101 = vmatmul.mubr.msk.f32.gmra.mxu1 %vm903_vm1, %v20719_v22 }
 0x2c8   : > { %v15807_v8 = vadd.f32 %v12898_v61, %v1560_v4  ;;  %13103 = vmatprep.mubr.msk.f32.mxu1 %vm903_vm1, %v20720_v5  ;;  %v20724_v61 = vld [vmem:[#allocation25_spill] sm:$0xff] }
 0x2c9   : > { %v1947_v2 = vpop.f32.mrf.mxu1  ;;  %v1580_v48 = vadd.f32 %v15630_v52, %v20724_v61 }
 0x2ca   : > { %v15813_v55 = vadd.f32 %v1947_v2, %v1555_v53  ;;  %v15829_v53 = vpop.f32.mrf.mxu0  ;;  %v20726_v2 = vld [vmem:[#allocation18_spill] sm:$0xff] }
 0x2cb   : > { %v12901_v18 = vpop.f32.mrf.mxu1  ;;  %13104 = vmatmul.mubr.msk.f32.gmra.mxu1 %vm903_vm1, %v20722_v6  ;;  %20725 = vst [vmem:[#allocation15_spill] sm:$0xff] %v15829_v53  ;;  %v20727_v6 = vld [vmem:[#allocation26_spill] sm:$0xff]  ;;  %v20741_v53 = vld [vmem:[#allocation24_spill] sm:$0xff] }
 0x2cc   : > { %v15821_v22 = vadd.f32 %v12901_v18, %v1570_v59  ;;  %13106 = vmatprep.mubr.msk.f32.mxu1 %vm903_vm1, %v20723_v12  ;;  %v1575_v54 = vadd.f32 %v15638_v1, %v20727_v6  ;;  %v20728_v59 = vld [vmem:[#allocation19_spill] sm:$0xff] }
 0x2cd   : > { %v1957_v5 = vpop.f32.mrf.mxu1  ;;  %v20729_v12 = vld [vmem:[#allocation27_spill] sm:$0xff] }
 0x2ce   : > { %v15827_v9 = vadd.f32 %v1957_v5, %v1565_v13  ;;  %v1590_v52 = vadd.f32 %v15642_v20, %v20729_v12  ;;  %v15843_v5 = vpop.f32.mrf.mxu0 }
 0x2cf   : > { %v12904_v4 = vpop.f32.mrf.mxu1  ;;  %13107 = vmatmul.mubr.msk.f32.gmra.mxu1 %vm903_vm1, %v20726_v2  ;;  %20730 = vst [vmem:[#allocation16_spill] sm:$0xff] %v15843_v5  ;;  %v20732_v2 = vld [vmem:[#allocation28_spill] sm:$0xff]  ;;  %v20736_v5 = vld [vmem:[#allocation22_spill] sm:$0xff] }
 0x2d0   : > { %v15835_v62 = vadd.f32 %v12904_v4, %v1580_v48  ;;  %13109 = vmatprep.mubr.msk.f32.mxu1 %vm903_vm1, %v20728_v59  ;;  %v1585_v1 = vadd.f32 %v15648_v26, %v20732_v2  ;;  %v20733_v4 = vld [vmem:[#allocation21_spill] sm:$0xff] }
 0x2d1   : > { %v1967_v18 = vpop.f32.mrf.mxu1  ;;  %v20734_v59 = vld [vmem:[#allocation29_spill] sm:$0xff] }
 0x2d2   : > { %v15841_v13 = vadd.f32 %v1967_v18, %v1575_v54  ;;  %v1600_v20 = vadd.f32 %v15652_v30, %v20734_v59  ;;  %v15857_v18 = vpop.f32.mrf.mxu0 }
 0x2d3   : > { %v12907_v61 = vpop.f32.mrf.mxu1  ;;  %13110 = vmatmul.mubr.msk.f32.gmra.mxu1 %vm903_vm1, %v20731_v33  ;;  %20735 = vst [vmem:[#allocation17_spill] sm:$0xff] %v15857_v18  ;;  %v20737_v33 = vld [vmem:[#allocation30_spill] sm:$0xff]  ;;  %v20742_v18 = vld [vmem:[#allocation32_spill] sm:$0xff] }
 0x2d4   : > { %v15849_v48 = vadd.f32 %v12907_v61, %v1590_v52  ;;  %13112 = vmatprep.mubr.msk.f32.mxu1 %vm903_vm1, %v20733_v4  ;;  %v1595_v26 = vadd.f32 %v15659_v35, %v20737_v33  ;;  %v20738_v61 = vld [vmem:[#allocation23_spill] sm:$0xff]  ;;  %v1605_v35 = vadd.f32 %v15667_v16, %v20742_v18  ;;  %v20743_v33 = vld [vmem:[#allocation33_spill] sm:$0xff] }
 0x2d5   : > { %v1977_v6 = vpop.f32.mrf.mxu1  ;;  %v20739_v4 = vld [vmem:[#allocation31_spill] sm:$0xff] }
 0x2d6   : > { %v15855_v54 = vadd.f32 %v1977_v6, %v1585_v1  ;;  %v1610_v30 = vadd.f32 %v15661_v40, %v20739_v4  ;;  %v15871_v6 = vpop.f32.mrf.mxu0  ;;  %v1620_v40 = vadd.f32 %v15671_v24, %v20743_v33 }
 0x2d7   : > { %v12910_v12 = vpop.f32.mrf.mxu1  ;;  %13113 = vmatmul.mubr.msk.f32.gmra.mxu1 %vm903_vm1, %v20736_v5  ;;  %20740 = vst [vmem:[#allocation25_spill] sm:$0xff] %v15871_v6  ;;  %v3878_v5 = vld [vmem:[#allocation2 + $0x25] sm:$0xff]  ;;  %v20745_v6 = vld [vmem:[#allocation34_spill] sm:$0xff] }
 0x2d8   : > { %v15863_v52 = vadd.f32 %v12910_v12, %v1600_v20  ;;  %13115 = vmatprep.mubr.msk.f32.mxu1 %vm903_vm1, %v20738_v61  ;;  %v3879_v61 = vld [vmem:[#allocation2 + $0x2d] sm:$0xff]  ;;  %v1615_v16 = vadd.f32 %v15678_v23, %v20745_v6 }
 0x2d9   : > { %v1987_v2 = vpop.f32.mrf.mxu1 }
 0x2da   : > { %v15869_v1 = vadd.f32 %v1987_v2, %v1595_v26  ;;  %v15884_v2 = vpop.f32.mrf.mxu0 }
 0x2db   : > { %v12913_v59 = vpop.f32.mrf.mxu1  ;;  %13116 = vmatmul.mubr.msk.f32.gmra.mxu1 %vm903_vm1, %v20741_v53  ;;  %20744 = vst [vmem:[#allocation18_spill] sm:$0xff] %v15884_v2  ;;  %v3880_v53 = vld [vmem:[#allocation2 + $0x35] sm:$0xff]  ;;  %v20748_v2 = vld [vmem:[#allocation36_spill] sm:$0xff] }
 0x2dc   : > { %v15877_v20 = vadd.f32 %v12913_v59, %v1610_v30  ;;  %13176 = vmatprep.mubr.msk.f32.mxu1 %vm903_vm1, %v3878_v5  ;;  %v20746_v59 = vld [vmem:[#allocation35_spill] sm:$0xff]  ;;  %v1625_v23 = vadd.f32 %v15691_v29, %v20748_v2  ;;  %v1635_v29 = vadd.f32 %v15701_v37, %v15474_v17  ;;  %v1645_v17 = vadd.f32 %v15711_v34, %v15486_v11 }
 0x2dd   : > { %v1997_v12 = vpop.f32.mrf.mxu1  ;;  %v1630_v24 = vadd.f32 %v15683_v28, %v20746_v59 }
 0x2de   : > { %v15882_v26 = vadd.f32 %v1997_v12, %v1605_v35  ;;  %v3881_v35 = vld [vmem:[#allocation2 + $0x3d] sm:$0xff]  ;;  %v15896_v12 = vpop.f32.mrf.mxu0 }
 0x2df   : > { %v12916_v4 = vpop.f32.mrf.mxu1  ;;  %13177 = vmatmul.mubr.msk.f32.vlgmr.msra.gmra.mxu1 %vm903_vm1, %v3879_v61  ;;  %20747 = vst [vmem:[#allocation26_spill] sm:$0xff] %v15896_v12  ;;  %v3882_v61 = vld [vmem:[#allocation2 + $0x45] sm:$0xff] }
 0x2e0   : > { %v15889_v18 = vadd.f32 %v12916_v4, %v1620_v40  ;;  %13179 = vmatprep.mubr.msk.f32.mxu1 %vm903_vm1, %v3880_v53  ;;  %v20749_v4 = vld [vmem:[#allocation37_spill] sm:$0xff] }
 0x2e1   : > { %v2007_v30 = vpop.f32.mrf.mxu1  ;;  %v1640_v28 = vadd.f32 %v15693_v44, %v20749_v4  ;;  %v1650_v44 = vadd.f32 %v15705_v21, %v15478_v15  ;;  %v3886_v4 = vld [vmem:[#allocation2 + $0x65] sm:$0xff]  ;;  %v1660_v15 = vadd.f32 %v15715_v25, %v15502_v19 }
 0x2e2   : > { %v15894_v5 = vadd.f32 %v2007_v30, %v1615_v16  ;;  %v3883_v16 = vld [vmem:[#allocation2 + $0x4d] sm:$0xff]  ;;  %v15908_v30 = vpop.f32.mrf.mxu0 }
 0x2e3   : > { %v12919_v33 = vpop.f32.mrf.mxu1  ;;  %13180 = vmatmul.mubr.msk.f32.gmra.mxu1 %vm903_vm1, %v3881_v35  ;;  %v3884_v35 = vld [vmem:[#allocation2 + $0x55] sm:$0xff] }
 0x2e4   : > { %v15901_v6 = vadd.f32 %v12919_v33, %v1630_v24  ;;  %13182 = vmatprep.mubr.msk.f32.mxu1 %vm903_vm1, %v3882_v61  ;;  %v3885_v61 = vld [vmem:[#allocation2 + $0x5d] sm:$0xff] }
 0x2e5   : > { %v2017_v40 = vpop.f32.mrf.mxu1 }
 0x2e6   : > { %v15906_v53 = vadd.f32 %v2017_v40, %v1625_v23  ;;  %v15920_v23 = vpop.f32.mrf.mxu0 }
 0x2e7   : > { %v12922_v59 = vpop.f32.mrf.mxu1  ;;  %13183 = vmatmul.mubr.msk.f32.gmra.mxu1 %vm903_vm1, %v3883_v16  ;;  %v3887_v16 = vld [vmem:[#allocation2 + $0x6d] sm:$0xff] }
 0x2e8   : > { %v15913_v2 = vadd.f32 %v12922_v59, %v1640_v28  ;;  %13185 = vmatprep.mubr.msk.f32.mxu1 %vm903_vm1, %v3884_v35  ;;  %v15932_v59 = vpop.f32.mrf.mxu0 }
 0x2e9   : > { %v2027_v24 = vpop.f32.mrf.mxu1 }
 0x2ea   : > { %v15918_v33 = vadd.f32 %v2027_v24, %v1635_v29  ;;  %v3888_v29 = vld [vmem:[#allocation2 + $0x75] sm:$0xff] }
 0x2eb   : > { %v12925_v40 = vpop.f32.mrf.mxu1  ;;  %13186 = vmatmul.mubr.msk.f32.gmra.mxu1 %vm903_vm1, %v3885_v61  ;;  %v20752_v24 = vld [vmem:[#allocation38_spill] sm:$0xff]  ;;  %v20753_v61 = vld [vmem:[#allocation39_spill] sm:$0xff] }
 0x2ec   : > { %20750 = vst [vmem:[#allocation19_spill] sm:$0xff] %v15918_v33  ;;  %v15925_v37 = vadd.f32 %v12925_v40, %v1650_v44  ;;  %13188 = vmatprep.mubr.msk.f32.mxu1 %vm903_vm1, %v3886_v4  ;;  %v1655_v11 = vadd.f32 %v15723_v42, %v20752_v24  ;;  %v1670_v19 = vadd.f32 %v15725_v31, %v20753_v61  ;;  %v3889_v40 = vld [vmem:[#allocation2 + $0x7d] sm:$0xff]  ;;  %v15944_v4 = vpop.f32.mrf.mxu0  ;;  %v20804_v33 = vld [vmem:[#allocation53_spill] sm:$0xff] }
 0x2ed   : > { %v2037_v28 = vpop.f32.mrf.mxu1  ;;  %v1665_v42 = vadd.f32 %v15733_v36, %v15526_v56  ;;  %v1680_v31 = vadd.f32 %v15737_v32, %v15532_v50  ;;  %v1675_v56 = vadd.f32 %v15743_v45, %v15540_v60  ;;  %v1690_v50 = vadd.f32 %v15747_v38, %v15544_v3 }
 0x2ee   : > { %v15930_v21 = vadd.f32 %v2037_v28, %v1645_v17  ;;  %v3890_v28 = vld [vmem:[#allocation2 + $0x85] sm:$0xff]  ;;  %v15956_v24 = vpop.f32.mrf.mxu0  ;;  %v1685_v60 = vadd.f32 %v15755_v41, %v15552_v10  ;;  %v1700_v3 = vadd.f32 %v15757_v51, %v15558_v14  ;;  %v1695_v10 = vadd.f32 %v15765_v47, %v15568_v27 }
 0x2ef   : > { %v12928_v35 = vpop.f32.mrf.mxu1  ;;  %13189 = vmatmul.mubr.msk.f32.gmra.mxu1 %vm903_vm1, %v3887_v16  ;;  %v1710_v14 = vadd.f32 %v15769_v43, %v15570_v0  ;;  %v1705_v27 = vadd.f32 %v15775_v57, %v15580_v58  ;;  %v1720_v0 = vadd.f32 %v15779_v49, %v15586_v7  ;;  %v1730_v57 = vadd.f32 %v15789_v63, %v15598_v39  ;;  %v3904_v39 = vld [vmem:[#allocation2 + $0xf5] sm:$0xff] }
 0x2f0   : > { %20751 = vst [vmem:[#allocation27_spill] sm:$0xff] %v15930_v21  ;;  %v15937_v34 = vadd.f32 %v12928_v35, %v1660_v15  ;;  %13191 = vmatprep.mubr.msk.f32.mxu1 %vm903_vm1, %v3888_v29  ;;  %v3891_v29 = vld [vmem:[#allocation2 + $0x8d] sm:$0xff] }
 0x2f1   : > { %v2047_v44 = vpop.f32.mrf.mxu1  ;;  %v20816_v21 = vld [vmem:[#allocation61_spill] sm:$0xff] }
 0x2f2   : > { %v15942_v25 = vadd.f32 %v2047_v44, %v1655_v11  ;;  %v3892_v44 = vld [vmem:[#allocation2 + $0x95] sm:$0xff] }
 0x2f3   : > { %v12931_v17 = vpop.f32.mrf.mxu1  ;;  %13192 = vmatmul.mubr.msk.f32.gmra.mxu1 %vm903_vm1, %v3889_v40  ;;  %v15968_v40 = vpop.f32.mrf.mxu0 }
 0x2f4   : > { %20754 = vst [vmem:[#allocation20_spill] sm:$0xff] %v15942_v25  ;;  %v15949_v15 = vadd.f32 %v12931_v17, %v1670_v19  ;;  %13194 = vmatprep.mubr.msk.f32.mxu1 %vm903_vm1, %v3890_v28  ;;  %v3893_v19 = vld [vmem:[#allocation2 + $0x9d] sm:$0xff]  ;;  %v3894_v28 = vld [vmem:[#allocation2 + $0xa5] sm:$0xff] }
 0x2f5   : > { %v2057_v16 = vpop.f32.mrf.mxu1 }
 0x2f6   : > { %v15954_v35 = vadd.f32 %v2057_v16, %v1665_v42  ;;  %v3895_v16 = vld [vmem:[#allocation2 + $0xad] sm:$0xff] }
 0x2f7   : > { %v12934_v11 = vpop.f32.mrf.mxu1  ;;  %13195 = vmatmul.mubr.msk.f32.gmra.mxu1 %vm903_vm1, %v3891_v29 }
 0x2f8   : > { %20755 = vst [vmem:[#allocation28_spill] sm:$0xff] %v15954_v35  ;;  %v15961_v36 = vadd.f32 %v12934_v11, %v1680_v31  ;;  %13197 = vmatprep.mubr.msk.f32.mxu1 %vm903_vm1, %v3892_v44  ;;  %v15980_v31 = vpop.f32.mrf.mxu0  ;;  %v3896_v11 = vld [vmem:[#allocation2 + $0xb5] sm:$0xff] }
 0x2f9   : > { %v2067_v61 = vpop.f32.mrf.mxu1 }
 0x2fa   : > { %v15966_v32 = vadd.f32 %v2067_v61, %v1675_v56  ;;  %v3897_v56 = vld [vmem:[#allocation2 + $0xbd] sm:$0xff]  ;;  %v15992_v61 = vpop.f32.mrf.mxu0 }
 0x2fb   : > { %v12937_v17 = vpop.f32.mrf.mxu1  ;;  %13198 = vmatmul.mubr.msk.f32.gmra.mxu1 %vm903_vm1, %v3893_v19  ;;  %v3898_v19 = vld [vmem:[#allocation2 + $0xc5] sm:$0xff] }
 0x2fc   : > { %20756 = vst [vmem:[#allocation21_spill] sm:$0xff] %v15966_v32  ;;  %v15973_v45 = vadd.f32 %v12937_v17, %v1690_v50  ;;  %13200 = vmatprep.mubr.msk.f32.mxu1 %vm903_vm1, %v3894_v28  ;;  %v3899_v28 = vld [vmem:[#allocation2 + $0xcd] sm:$0xff] }
 0x2fd   : > { %v2077_v42 = vpop.f32.mrf.mxu1 }
 0x2fe   : > { %v15978_v38 = vadd.f32 %v2077_v42, %v1685_v60  ;;  %v16004_v60 = vpop.f32.mrf.mxu0 }
 0x2ff   : > { %v12940_v29 = vpop.f32.mrf.mxu1  ;;  %13201 = vmatmul.mubr.msk.f32.gmra.mxu1 %vm903_vm1, %v3895_v16 }
 0x300   : > { %20757 = vst [vmem:[#allocation29_spill] sm:$0xff] %v15978_v38  ;;  %v15985_v41 = vadd.f32 %v12940_v29, %v1700_v3  ;;  %13203 = vmatprep.mubr.msk.f32.mxu1 %vm903_vm1, %v3896_v11  ;;  %v3900_v3 = vld [vmem:[#allocation2 + $0xd5] sm:$0xff]  ;;  %v3901_v29 = vld [vmem:[#allocation2 + $0xdd] sm:$0xff]  ;;  %v16014_v7 = vpop.f32.mrf.mxu0  ;;  %v3902_v11 = vld [vmem:[#allocation2 + $0xe5] sm:$0xff] }
 0x301   : > { %v2087_v44 = vpop.f32.mrf.mxu1 }
 0x302   : > { %v15990_v51 = vadd.f32 %v2087_v44, %v1695_v10 }
 0x303   : > { %v12943_v50 = vpop.f32.mrf.mxu1  ;;  %13204 = vmatmul.mubr.msk.f32.gmra.mxu1 %vm903_vm1, %v3897_v56  ;;  %v16022_v56 = vpop.f32.mrf.mxu0 }
 0x304   : > { %20758 = vst [vmem:[#allocation22_spill] sm:$0xff] %v15990_v51  ;;  %v15997_v47 = vadd.f32 %v12943_v50, %v1710_v14  ;;  %13206 = vmatprep.mubr.msk.f32.mxu1 %vm903_vm1, %v3898_v19  ;;  %v3903_v14 = vld [vmem:[#allocation2 + $0xed] sm:$0xff]  ;;  %20762 = vst [vmem:[#allocation24_spill] sm:$0xff] %v16022_v56 }
 0x305   : > { %v2097_v17 = vpop.f32.mrf.mxu1 }
 0x306   : > { %v16002_v43 = vadd.f32 %v2097_v17, %v1705_v27  ;;  %v3905_v27 = vld [vmem:[#allocation2 + $0xfd] sm:$0xff]  ;;  %v16031_v17 = vpop.f32.mrf.mxu0 }
 0x307   : > { %v12946_v42 = vpop.f32.mrf.mxu1  ;;  %13207 = vmatmul.mubr.msk.f32.gmra.mxu1 %vm903_vm1, %v3899_v28  ;;  %20763 = vst [vmem:[#allocation32_spill] sm:$0xff] %v16031_v17  ;;  %v3906_v28 = vld [vmem:[#allocation2 + $0x105] sm:$0xff] }
 0x308   : > { %20759 = vst [vmem:[#allocation30_spill] sm:$0xff] %v16002_v43  ;;  %v16007_v16 = vadd.f32 %v12946_v42, %v1720_v0  ;;  %13209 = vmatprep.mubr.msk.f32.mxu1 %vm903_vm1, %v3900_v3 }
 0x309   : > { %v16010_v58 = vpop.f32.mrf.mxu1 }
 0x30a   : > { %20760 = vst [vmem:[#allocation23_spill] sm:$0xff] %v16010_v58 }
 0x30b   : > { %v12949_v49 = vpop.f32.mrf.mxu1  ;;  %13210 = vmatmul.mubr.msk.f32.gmra.mxu1 %vm903_vm1, %v3901_v29 }
 0x30c   : > { %v16017_v10 = vadd.f32 %v12949_v49, %v1730_v57  ;;  %13212 = vmatprep.mubr.msk.f32.mxu1 %vm903_vm1, %v3902_v11  ;;  %v16040_v57 = vpop.f32.mrf.mxu0  ;;  %v3908_v49 = vld [vmem:[#allocation2 + $0x115] sm:$0xff] }
 0x30d   : > { %v16020_v44 = vpop.f32.mrf.mxu1  ;;  %20764 = vst [vmem:[#allocation33_spill] sm:$0xff] %v16040_v57 }
 0x30e   : > { %20761 = vst [vmem:[#allocation31_spill] sm:$0xff] %v16020_v44  ;;  %v20806_v44 = vld [vmem:[#allocation55_spill] sm:$0xff] }
 0x30f   : > { %v12954_v50 = vpop.f32.mrf.mxu1  ;;  %13213 = vmatmul.mubr.msk.f32.gmra.mxu1 %vm903_vm1, %v3903_v14 }
 0x310   : > { %v16026_v63 = vadd.f32 %v12954_v50, %v15807_v8  ;;  %13215 = vmatprep.mubr.msk.f32.mxu1 %vm903_vm1, %v3904_v39  ;;  %v3907_v8 = vld [vmem:[#allocation2 + $0x10d] sm:$0xff]  ;;  %v16049_v50 = vpop.f32.mrf.mxu0 }
 0x311   : > { %v16029_v19 = vpop.f32.mrf.mxu1  ;;  %20765 = vst [vmem:[#allocation34_spill] sm:$0xff] %v16049_v50 }
 0x313   : > { %v12957_v0 = vpop.f32.mrf.mxu1  ;;  %13216 = vmatmul.mubr.msk.f32.gmra.mxu1 %vm903_vm1, %v3905_v27  ;;  %v3910_v27 = vld [vmem:[#allocation2 + $0x125] sm:$0xff] }
 0x314   : > { %v16035_v42 = vadd.f32 %v12957_v0, %v15821_v22  ;;  %13218 = vmatprep.mubr.msk.f32.mxu1 %vm903_vm1, %v3906_v28  ;;  %v3909_v22 = vld [vmem:[#allocation2 + $0x11d] sm:$0xff] }
 0x315   : > { %v16038_v3 = vpop.f32.mrf.mxu1 }
 0x317   : > { %v12960_v29 = vpop.f32.mrf.mxu1  ;;  %13219 = vmatmul.mubr.msk.f32.gmra.mxu1 %vm903_vm1, %v3907_v8  ;;  %v16058_v8 = vpop.f32.mrf.mxu0 }
 0x318   : > { %v16044_v11 = vadd.f32 %v12960_v29, %v15835_v62  ;;  %13221 = vmatprep.mubr.msk.f32.mxu1 %vm903_vm1, %v3908_v49  ;;  %v3911_v62 = vld [vmem:[#allocation2 + $0x12d] sm:$0xff]  ;;  %20766 = vst [vmem:[#allocation35_spill] sm:$0xff] %v16058_v8  ;;  %v3912_v49 = vld [vmem:[#allocation2 + $0x135] sm:$0xff] }
 0x319   : > { %v16047_v14 = vpop.f32.mrf.mxu1 }
 0x31b   : > { %v12963_v39 = vpop.f32.mrf.mxu1  ;;  %13222 = vmatmul.mubr.msk.f32.gmra.mxu1 %vm903_vm1, %v3909_v22 }
 0x31c   : > { %v16053_v0 = vadd.f32 %v12963_v39, %v15849_v48  ;;  %13224 = vmatprep.mubr.msk.f32.mxu1 %vm903_vm1, %v3910_v27  ;;  %v3913_v48 = vld [vmem:[#allocation2 + $0x13d] sm:$0xff]  ;;  %v16067_v39 = vpop.f32.mrf.mxu0 }
 0x31d   : > { %v16056_v28 = vpop.f32.mrf.mxu1  ;;  %20767 = vst [vmem:[#allocation36_spill] sm:$0xff] %v16067_v39 }
 0x31f   : > { %v12966_v29 = vpop.f32.mrf.mxu1  ;;  %13225 = vmatmul.mubr.msk.f32.gmra.mxu1 %vm903_vm1, %v3911_v62  ;;  %v16075_v62 = vpop.f32.mrf.mxu0 }
 0x320   : > { %v16062_v17 = vadd.f32 %v12966_v29, %v15863_v52  ;;  %13227 = vmatprep.mubr.msk.f32.mxu1 %vm903_vm1, %v3912_v49  ;;  %20768 = vst [vmem:[#allocation37_spill] sm:$0xff] %v16075_v62 }
 0x321   : > { %v16065_v22 = vpop.f32.mrf.mxu1  ;;  %v16082_v49 = vpop.f32.mrf.mxu0 }
 0x322   : > { %20769 = vst [vmem:[#allocation38_spill] sm:$0xff] %v16082_v49 }
 0x323   : > { %v12969_v27 = vpop.f32.mrf.mxu1  ;;  %13228 = vmatmul.mubr.msk.f32.gmra.mxu1 %vm903_vm1, %v3913_v48 }
 0x324   : > { %v16071_v56 = vadd.f32 %v12969_v27, %v15877_v20  ;;  %v16089_v20 = vpop.f32.mrf.mxu0 }
 0x325   : > { %v16073_v50 = vpop.f32.mrf.mxu1  ;;  %20770 = vst [vmem:[#allocation39_spill] sm:$0xff] %v16089_v20 }
 0x327   : > { %v12972_v57 = vpop.f32.mrf.mxu1 }
 0x328   : > { %v16078_v52 = vadd.f32 %v12972_v57, %v15889_v18  ;;  %v16096_v18 = vpop.f32.mrf.mxu0 }
 0x329   : > { %v16080_v29 = vpop.f32.mrf.mxu1  ;;  %20772 = vst [vmem:[#allocation78_spill] sm:$0xff] %v16096_v18 }
 0x32b   : > { %v12975_v8 = vpop.f32.mrf.mxu1 }
 0x32c   : > { %v16085_v39 = vadd.f32 %v12975_v8, %v15901_v6  ;;  %v16103_v6 = vpop.f32.mrf.mxu0 }
 0x32d   : > { %v16087_v48 = vpop.f32.mrf.mxu1  ;;  %20774 = vst [vmem:[#allocation80_spill] sm:$0xff] %v16103_v6 }
 0x32f   : > { %v12978_v27 = vpop.f32.mrf.mxu1 }
 0x330   : > { %v16092_v38 = vadd.f32 %v12978_v27, %v15913_v2  ;;  %v16110_v2 = vpop.f32.mrf.mxu0 }
 0x331   : > { %v16094_v62 = vpop.f32.mrf.mxu1  ;;  %20776 = vst [vmem:[#allocation82_spill] sm:$0xff] %v16110_v2 }
 0x332   : > { %20771 = vst [vmem:[#allocation77_spill] sm:$0xff] %v16094_v62  ;;  %v20802_v62 = vld [vmem:[#allocation51_spill] sm:$0xff] }
 0x333   : > { %v12981_v57 = vpop.f32.mrf.mxu1 }
 0x334   : > { %v16099_v43 = vadd.f32 %v12981_v57, %v15925_v37  ;;  %v16117_v37 = vpop.f32.mrf.mxu0 }
 0x335   : > { %v16101_v49 = vpop.f32.mrf.mxu1  ;;  %20778 = vst [vmem:[#allocation84_spill] sm:$0xff] %v16117_v37 }
 0x336   : > { %20773 = vst [vmem:[#allocation79_spill] sm:$0xff] %v16101_v49  ;;  %v20812_v49 = vld [vmem:[#allocation59_spill] sm:$0xff] }
 0x337   : > { %v12984_v8 = vpop.f32.mrf.mxu1 }
 0x338   : > { %v16106_v32 = vadd.f32 %v12984_v8, %v15937_v34  ;;  %v16124_v34 = vpop.f32.mrf.mxu0 }
 0x339   : > { %v16108_v20 = vpop.f32.mrf.mxu1  ;;  %20780 = vst [vmem:[#allocation86_spill] sm:$0xff] %v16124_v34 }
 0x33a   : > { %20775 = vst [vmem:[#allocation81_spill] sm:$0xff] %v16108_v20 }
 0x33b   : > { %v12987_v27 = vpop.f32.mrf.mxu1 }
 0x33c   : > { %v16113_v35 = vadd.f32 %v12987_v27, %v15949_v15  ;;  %v16131_v15 = vpop.f32.mrf.mxu0 }
 0x33d   : > { %v16115_v18 = vpop.f32.mrf.mxu1  ;;  %20782 = vst [vmem:[#allocation88_spill] sm:$0xff] %v16131_v15 }
 0x33e   : > { %20777 = vst [vmem:[#allocation83_spill] sm:$0xff] %v16115_v18 }
 0x33f   : > { %v12990_v57 = vpop.f32.mrf.mxu1 }
 0x340   : > { %v16120_v51 = vadd.f32 %v12990_v57, %v15961_v36  ;;  %v16138_v36 = vpop.f32.mrf.mxu0 }
 0x341   : > { %v16122_v6 = vpop.f32.mrf.mxu1  ;;  %20784 = vst [vmem:[#allocation90_spill] sm:$0xff] %v16138_v36 }
 0x342   : > { %20779 = vst [vmem:[#allocation85_spill] sm:$0xff] %v16122_v6 }
 0x343   : > { %v12993_v8 = vpop.f32.mrf.mxu1 }
 0x344   : > { %v16127_v20 = vadd.f32 %v12993_v8, %v15973_v45  ;;  %v16145_v45 = vpop.f32.mrf.mxu0 }
 0x345   : > { %v16129_v2 = vpop.f32.mrf.mxu1  ;;  %20786 = vst [vmem:[#allocation92_spill] sm:$0xff] %v16145_v45 }
 0x346   : > { %20781 = vst [vmem:[#allocation87_spill] sm:$0xff] %v16129_v2 }
 0x347   : > { %v12996_v27 = vpop.f32.mrf.mxu1 }
 0x348   : > { %v16134_v18 = vadd.f32 %v12996_v27, %v15985_v41  ;;  %v16152_v41 = vpop.f32.mrf.mxu0 }
 0x349   : > { %v16136_v37 = vpop.f32.mrf.mxu1  ;;  %20788 = vst [vmem:[#allocation94_spill] sm:$0xff] %v16152_v41 }
 0x34a   : > { %20783 = vst [vmem:[#allocation89_spill] sm:$0xff] %v16136_v37 }
 0x34b   : > { %v12999_v57 = vpop.f32.mrf.mxu1 }
 0x34c   : > { %v16141_v6 = vadd.f32 %v12999_v57, %v15997_v47  ;;  %v2985_v47 = vadd.f32 %v15534_v46, %v16026_v63  ;;  %v16161_v57 = vpop.f32.mrf.mxu0 }
 0x34d   : > { %v16143_v34 = vpop.f32.mrf.mxu1  ;;  %20790 = vst [vmem:[#allocation96_spill] sm:$0xff] %v16161_v57 }
 0x34e   : > { %20785 = vst [vmem:[#allocation91_spill] sm:$0xff] %v16143_v34  ;;  %v16169_v41 = vpop.f32.mrf.mxu0 }
 0x34f   : > { %v13002_v8 = vpop.f32.mrf.mxu1 }
 0x350   : > { %v16148_v2 = vadd.f32 %v13002_v8, %v16007_v16  ;;  %v20793_v8 = vld [vmem:[#allocation41_spill] sm:$0xff]  ;;  %v16177_v63 = vpop.f32.mrf.mxu0 }
 0x351   : > { %v16150_v15 = vpop.f32.mrf.mxu1  ;;  %20794 = vst [vmem:[#allocation41_spill] sm:$0xff] %v16169_v41 }
 0x352   : > { %20787 = vst [vmem:[#allocation93_spill] sm:$0xff] %v16150_v15  ;;  %v2987_v15 = vadd.f32 %v20793_v8, %v16035_v42  ;;  %v16185_v8 = vpop.f32.mrf.mxu0 }
 0x353   : > { %v13005_v27 = vpop.f32.mrf.mxu1 }
 0x354   : > { %v16155_v37 = vadd.f32 %v13005_v27, %v16017_v10 }
 0x355   : > { %v16157_v36 = vpop.f32.mrf.mxu1 }
 0x356   : > { %20789 = vst [vmem:[#allocation95_spill] sm:$0xff] %v16157_v36  ;;  %v20796_v36 = vld [vmem:[#allocation43_spill] sm:$0xff] }
 0x357   : > { %v13066_v45 = vpop.f32.mrf.mxu1  ;;  %v2989_v46 = vadd.f32 %v20796_v36, %v16044_v11  ;;  %20797 = vst [vmem:[#allocation43_spill] sm:$0xff] %v16177_v63  ;;  %v16193_v36 = vpop.f32.mrf.mxu0 }
 0x358   : > { %v16163_v34 = vadd.f32 %v13066_v45, %v2985_v47 }
 0x359   : > { %v16165_v16 = vpop.f32.mrf.mxu1 }
 0x35a   : > { %20791 = vst [vmem:[#allocation97_spill] sm:$0xff] %v16163_v34  ;;  %20792 = vst [vmem:[#allocation98_spill] sm:$0xff] %v16165_v16  ;;  %v20798_v34 = vld [vmem:[#allocation45_spill] sm:$0xff]  ;;  %v20800_v16 = vld [vmem:[#allocation47_spill] sm:$0xff] }
 0x35b   : > { %v13069_v25 = vpop.f32.mrf.mxu1  ;;  %v2991_v42 = vadd.f32 %v20798_v34, %v16053_v0  ;;  %20799 = vst [vmem:[#allocation45_spill] sm:$0xff] %v16185_v8  ;;  %v2993_v11 = vadd.f32 %v20800_v16, %v16062_v17  ;;  %20801 = vst [vmem:[#allocation47_spill] sm:$0xff] %v16193_v36  ;;  %v2995_v0 = vadd.f32 %v20802_v62, %v16071_v56  ;;  %v16201_v34 = vpop.f32.mrf.mxu0 }
 0x35c   : > { %v16171_v10 = vadd.f32 %v13069_v25, %v2987_v15  ;;  %20803 = vst [vmem:[#allocation51_spill] sm:$0xff] %v16201_v34  ;;  %v2997_v17 = vadd.f32 %v20804_v33, %v16078_v52  ;;  %v2999_v56 = vadd.f32 %v20806_v44, %v16085_v39  ;;  %v3003_v44 = vadd.f32 %v20812_v49, %v16099_v43  ;;  %v20820_v43 = vld [vmem:[#allocation63_spill] sm:$0xff] }
 0x35d   : > { %v16173_v27 = vpop.f32.mrf.mxu1  ;;  %v16209_v16 = vpop.f32.mrf.mxu0  ;;  %v3007_v49 = vadd.f32 %v20820_v43, %v16113_v35  ;;  %v20826_v43 = vld [vmem:[#allocation67_spill] sm:$0xff] }
 0x35e   : > { %20795 = vst [vmem:[#allocation99_spill] sm:$0xff] %v16171_v10  ;;  %20805 = vst [vmem:[#allocation53_spill] sm:$0xff] %v16209_v16  ;;  %v20808_v10 = vld [vmem:[#allocation57_spill] sm:$0xff] }
 0x35f   : > { %v13072_v57 = vpop.f32.mrf.mxu1  ;;  %v16217_v62 = vpop.f32.mrf.mxu0  ;;  %v3001_v33 = vadd.f32 %v20808_v10, %v16092_v38  ;;  %v3005_v38 = vadd.f32 %v20816_v21, %v16106_v32 }
 0x360   : > { %v16179_v45 = vadd.f32 %v13072_v57, %v2989_v46  ;;  %20807 = vst [vmem:[#allocation55_spill] sm:$0xff] %v16217_v62 }
 0x361   : > { %v16181_v47 = vpop.f32.mrf.mxu1  ;;  %v16225_v52 = vpop.f32.mrf.mxu0 }
 0x362   : > { %20809 = vst [vmem:[#allocation57_spill] sm:$0xff] %v16225_v52 }
 0x363   : > { %v13075_v41 = vpop.f32.mrf.mxu1  ;;  %v16233_v39 = vpop.f32.mrf.mxu0 }
 0x364   : > { %v16187_v25 = vadd.f32 %v13075_v41, %v2991_v42  ;;  %20813 = vst [vmem:[#allocation59_spill] sm:$0xff] %v16233_v39 }
 0x365   : > { %v16189_v15 = vpop.f32.mrf.mxu1  ;;  %v16241_v10 = vpop.f32.mrf.mxu0 }
 0x367   : > { %v13078_v63 = vpop.f32.mrf.mxu1 }
 0x368   : > { %v16195_v57 = vadd.f32 %v13078_v63, %v2993_v11 }
 0x369   : > { %v16197_v46 = vpop.f32.mrf.mxu1 }
 0x36b   : > { %v13081_v8 = vpop.f32.mrf.mxu1 }
 0x36c   : > { %v16203_v41 = vadd.f32 %v13081_v8, %v2995_v0 }
 0x36d   : > { %v16205_v42 = vpop.f32.mrf.mxu1 }
 0x36f   : > { %v13084_v36 = vpop.f32.mrf.mxu1 }
 0x370   : > { %v16211_v63 = vadd.f32 %v13084_v36, %v2997_v17 }
 0x371   : > { %v16213_v11 = vpop.f32.mrf.mxu1 }
 0x373   : > { %v13087_v34 = vpop.f32.mrf.mxu1 }
 0x374   : > { %v16219_v8 = vadd.f32 %v13087_v34, %v2999_v56 }
 0x375   : > { %v16221_v0 = vpop.f32.mrf.mxu1 }
 0x377   : > { %v13090_v16 = vpop.f32.mrf.mxu1 }
 0x378   : > { %v16227_v36 = vadd.f32 %v13090_v16, %v3001_v33 }
 0x379   : > { %v16229_v17 = vpop.f32.mrf.mxu1 }
 0x37a   : > { %20810 = vst [vmem:[#allocation100_spill] sm:$0xff] %v16227_v36  ;;  %20811 = vst [vmem:[#allocation101_spill] sm:$0xff] %v16229_v17  ;;  %v20819_v36 = vmov 0.0  }
 0x37b   : > { %v13093_v62 = vpop.f32.mrf.mxu1  ;;  %13294 = vmatprep.mubr.msk.f32.mxu0 %vm14484_vm3, %v20819_v36 }
 0x37c   : > { %v16235_v34 = vadd.f32 %v13093_v62, %v3003_v44  ;;  %v4816_v62 = vld [vmem:[%s20608_s4 + $0x8] sm:$0xff]  ;;  %v16254_v44 = vpop.f32.mrf.mxu0 }
 0x37d   : > { %v16237_v56 = vpop.f32.mrf.mxu1  ;;  %5126 = vmatprep.mubr.f32.mxu1 %v4816_v62 }
 0x37e   : > { %20814 = vst [vmem:[#allocation102_spill] sm:$0xff] %v16235_v34  ;;  %20815 = vst [vmem:[#allocation103_spill] sm:$0xff] %v16237_v56  ;;  %v16262_v34 = vpop.f32.mrf.mxu0  ;;  %v3011_v56 = vadd.f32 %v20826_v43, %v16127_v20 }
 0x37f   : > { %v13096_v58 = vpop.f32.mrf.mxu1 }
 0x380   : > { %v16243_v16 = vadd.f32 %v13096_v58, %v3005_v38  ;;  %v20823_v38 = vld [vmem:[#allocation65_spill] sm:$0xff]  ;;  %v16270_v39 = vpop.f32.mrf.mxu0 }
 0x381   : > { %v16245_v33 = vpop.f32.mrf.mxu1  ;;  %v3009_v17 = vadd.f32 %v20823_v38, %v16120_v51 }
 0x382   : > { %20817 = vst [vmem:[#allocation61_spill] sm:$0xff] %v16243_v16  ;;  %20818 = vst [vmem:[#allocation104_spill] sm:$0xff] %v16245_v33  ;;  %v16278_v38 = vpop.f32.mrf.mxu0 }
 0x383   : > { %v13099_v21 = vpop.f32.mrf.mxu1 }
 0x384   : > { %v16256_v32 = vadd.f32 %v13099_v21, %v3007_v49  ;;  %v16286_v43 = vpop.f32.mrf.mxu0 }
 0x385   : > { %v16258_v58 = vpop.f32.mrf.mxu1 }
 0x386   : > { %20821 = vst [vmem:[#allocation63_spill] sm:$0xff] %v16256_v32  ;;  %20822 = vst [vmem:[#allocation105_spill] sm:$0xff] %v16258_v58  ;;  %v20829_v32 = vld [vmem:[#allocation69_spill] sm:$0xff] }
 0x387   : > { %v13102_v16 = vpop.f32.mrf.mxu1  ;;  %v3013_v51 = vadd.f32 %v20829_v32, %v16134_v18  ;;  %v13255_v32 = vpop.f32.mrf.mxu0 }
 0x388   : > { %v16264_v33 = vadd.f32 %v13102_v16, %v3009_v17 }
 0x389   : > { %v16266_v35 = vpop.f32.mrf.mxu1 }
 0x38a   : > { %20824 = vst [vmem:[#allocation65_spill] sm:$0xff] %v16264_v33  ;;  %20825 = vst [vmem:[#allocation106_spill] sm:$0xff] %v16266_v35  ;;  %v20832_v33 = vld [vmem:[#allocation71_spill] sm:$0xff] }
 0x38b   : > { %v13105_v62 = vpop.f32.mrf.mxu1  ;;  %v3015_v20 = vadd.f32 %v20832_v33, %v16141_v6  ;;  %v4591_v6 = vpop.f32.mrf.mxu0 }
 0x38c   : > { %v16272_v49 = vadd.f32 %v13105_v62, %v3011_v56 }
 0x38d   : > { %v16274_v21 = vpop.f32.mrf.mxu1 }
 0x38e   : > { %20827 = vst [vmem:[#allocation67_spill] sm:$0xff] %v16272_v49  ;;  %20828 = vst [vmem:[#allocation107_spill] sm:$0xff] %v16274_v21  ;;  %v20835_v49 = vld [vmem:[#allocation73_spill] sm:$0xff] }
 0x38f   : > { %v13108_v58 = vpop.f32.mrf.mxu1  ;;  %v3017_v18 = vadd.f32 %v20835_v49, %v16148_v2 }
 0x390   : > { %v16280_v17 = vadd.f32 %v13108_v58, %v3013_v51  ;;  %v20838_v51 = vld [vmem:[#allocation76_spill] sm:$0xff] }
 0x391   : > { %v16282_v16 = vpop.f32.mrf.mxu1 }
 0x392   : > { %20830 = vst [vmem:[#allocation69_spill] sm:$0xff] %v16280_v17  ;;  %20831 = vst [vmem:[#allocation108_spill] sm:$0xff] %v16282_v16  ;;  %v3019_v17 = vadd.f32 %v20838_v51, %v16155_v37 }
 0x393   : > { %v13111_v35 = vpop.f32.mrf.mxu1 }
 0x394   : > { %v16288_v56 = vadd.f32 %v13111_v35, %v3015_v20  ;;  %v16304_v20 = vpop.f32.mrf.mxu0 }
 0x395   : > { %v16290_v62 = vpop.f32.mrf.mxu1  ;;  %20841 = vst [vmem:[#allocation112_spill] sm:$0xff] %v16304_v20 }
 0x396   : > { %20833 = vst [vmem:[#allocation71_spill] sm:$0xff] %v16288_v56  ;;  %20834 = vst [vmem:[#allocation109_spill] sm:$0xff] %v16290_v62  ;;  %v16310_v49 = vpop.f32.mrf.mxu0 }
 0x397   : > { %v13114_v21 = vpop.f32.mrf.mxu1  ;;  %20844 = vst [vmem:[#allocation115_spill] sm:$0xff] %v16310_v49  ;;  %v2567_v49 = vadd.f32 %v16080_v29, %v15894_v5  ;;  %v2563_v5 = vadd.f32 %v16065_v22, %v15869_v1  ;;  %v20855_v29 = vld [vmem:[#allocation52_spill] sm:$0xff]  ;;  %v2561_v1 = vadd.f32 %v16056_v28, %v15855_v54  ;;  %v20856_v22 = vld [vmem:[#allocation49_spill] sm:$0xff] }
 0x398   : > { %v16294_v52 = vadd.f32 %v13114_v21, %v3017_v18 }
 0x399   : > { %v16296_v58 = vpop.f32.mrf.mxu1 }
 0x39a   : > { %20836 = vst [vmem:[#allocation73_spill] sm:$0xff] %v16294_v52  ;;  %20837 = vst [vmem:[#allocation110_spill] sm:$0xff] %v16296_v58  ;;  %v16316_v52 = vpop.f32.mrf.mxu0 }
 0x39b   : > { %v13117_v33 = vpop.f32.mrf.mxu1  ;;  %20847 = vst [vmem:[#allocation118_spill] sm:$0xff] %v16316_v52  ;;  %v2569_v52 = vadd.f32 %v16087_v48, %v15906_v53 }
 0x39c   : > { %v16300_v16 = vadd.f32 %v13117_v33, %v3019_v17  ;;  %v16322_v51 = vpop.f32.mrf.mxu0 }
 0x39d   : > { %v16302_v35 = vpop.f32.mrf.mxu1  ;;  %20850 = vst [vmem:[#allocation121_spill] sm:$0xff] %v16322_v51 }
 0x39e   : > { %20839 = vst [vmem:[#allocation76_spill] sm:$0xff] %v16300_v16  ;;  %20840 = vst [vmem:[#allocation111_spill] sm:$0xff] %v16302_v35  ;;  %v16328_v16 = vpop.f32.mrf.mxu0 }
 0x39f   : > { %v16306_v56 = vpop.f32.mrf.mxu1  ;;  %20851 = vst [vmem:[#allocation122_spill] sm:$0xff] %v16328_v16  ;;  %v20854_v16 = vld [vmem:[#allocation56_spill] sm:$0xff] }
 0x3a0   : > { %20842 = vst [vmem:[#allocation113_spill] sm:$0xff] %v16306_v56  ;;  %v16334_v62 = vpop.f32.mrf.mxu0  ;;  %v20853_v56 = vld [vmem:[#allocation54_spill] sm:$0xff] }
 0x3a1   : > { %v16308_v2 = vpop.f32.mrf.mxu1  ;;  %20852 = vst [vmem:[#allocation123_spill] sm:$0xff] %v16334_v62 }
 0x3a2   : > { %20843 = vst [vmem:[#allocation114_spill] sm:$0xff] %v16308_v2  ;;  %v2565_v2 = vadd.f32 %v16073_v50, %v15882_v26  ;;  %v16341_v12 = vpop.f32.mrf.mxu0  ;;  %v3855_v26 = vadd.f32 %v15980_v31, %v16211_v63  ;;  %v3853_v31 = vadd.f32 %v15956_v24, %v16203_v41  ;;  %v20857_v24 = vld [vmem:[#allocation46_spill] sm:$0xff] }
 0x3a3   : > { %v16312_v21 = vpop.f32.mrf.mxu1  ;;  %v2990_v41 = vadd.f32 %v20857_v24, %v2561_v1 }
 0x3a4   : > { %20845 = vst [vmem:[#allocation116_spill] sm:$0xff] %v16312_v21  ;;  %v2994_v53 = vadd.f32 %v20855_v29, %v2565_v2  ;;  %v2992_v2 = vadd.f32 %v20856_v22, %v2563_v5  ;;  %v2559_v5 = vadd.f32 %v16047_v14, %v15841_v13 }
 0x3a5   : > { %v16314_v18 = vpop.f32.mrf.mxu1 }
 0x3a6   : > { %20846 = vst [vmem:[#allocation117_spill] sm:$0xff] %v16314_v18  ;;  %v2996_v18 = vadd.f32 %v20853_v56, %v2567_v49  ;;  %v3423_v50 = vadd.f32 %v16205_v42, %v2994_v53 }
 0x3a7   : > { %v16318_v37 = vpop.f32.mrf.mxu1 }
 0x3a8   : > { %20848 = vst [vmem:[#allocation119_spill] sm:$0xff] %v16318_v37  ;;  %v2998_v37 = vadd.f32 %v20854_v16, %v2569_v52  ;;  %v3857_v52 = vadd.f32 %v16004_v60, %v16219_v8  ;;  %v16353_v16 = vpop.f32.mrf.mxu0 }
 0x3a9   : > { %v16320_v17 = vpop.f32.mrf.mxu1 }
 0x3aa   : > { %20849 = vst [vmem:[#allocation120_spill] sm:$0xff] %v16320_v17  ;;  %v3425_v17 = vadd.f32 %v16213_v11, %v2996_v18  ;;  %v3427_v62 = vadd.f32 %v16221_v0, %v2998_v37  ;;  %v3852_v37 = vadd.f32 %v15968_v40, %v3423_v50  ;;  %v16364_v28 = vpop.f32.mrf.mxu0 }
 0x3ab   : > { %v16324_v33 = vpop.f32.mrf.mxu1 }
 0x3ac   : > { %v3854_v11 = vadd.f32 %v15992_v61, %v3425_v17  ;;  %v3856_v18 = vadd.f32 %v16014_v7, %v3427_v62  ;;  %v3421_v61 = vadd.f32 %v16197_v46, %v2992_v2  ;;  %v3851_v7 = vadd.f32 %v15932_v59, %v16195_v57 }
 0x3ad   : > { %v16326_v20 = vpop.f32.mrf.mxu1 }
 0x3ae   : > { %v3850_v14 = vadd.f32 %v15944_v4, %v3421_v61  ;;  %v20862_v61 = vld [vmem:[#allocation74_spill] sm:$0xff] }
 0x3af   : > { %v13190_v35 = vpop.f32.mrf.mxu1 }
 0x3b0   : > { %v4280_v13 = vadd.f32 %v13190_v35, %v3851_v7  ;;  %v3849_v35 = vadd.f32 %v15908_v30, %v16187_v25 }
 0x3b1   : > { %v4132_v58 = vpop.f32.mrf.mxu1 }
 0x3b2   : > { %v4279_v4 = vadd.f32 %v4132_v58, %v3850_v14  ;;  %v4709_v30 = vadd.f32 %v16241_v10, %v4280_v13  ;;  %v2555_v58 = vadd.f32 %v16029_v19, %v15813_v55  ;;  %v20863_v19 = vld [vmem:[#allocation50_spill] sm:$0xff]  ;;  %v20872_v14 = vld [vmem:[#allocation99_spill] sm:$0xff] }
 0x3b3   : > { %v13193_v51 = vpop.f32.mrf.mxu1 }
 0x3b4   : > { %v4282_v8 = vadd.f32 %v13193_v51, %v3853_v31  ;;  %v4745_v24 = vmax.f32 %v4709_v30, 0.0 }
 0x3b5   : > { %v4142_v21 = vpop.f32.mrf.mxu1 }
 0x3b6   : > { %v4281_v46 = vadd.f32 %v4142_v21, %v3852_v37  ;;  %v4711_v59 = vadd.f32 %v16262_v34, %v4282_v8  ;;  %v20864_v37 = vld [vmem:[#allocation75_spill] sm:$0xff]  ;;  %v20865_v8 = vld [vmem:[#allocation26_spill] sm:$0xff] }
 0x3b7   : > { %v13196_v48 = vpop.f32.mrf.mxu1 }
 0x3b8   : > { %v4284_v49 = vadd.f32 %v13196_v48, %v3855_v26  ;;  %v16385_v26 = vpop.f32.mrf.mxu0 }
 0x3b9   : > { %v4152_v56 = vpop.f32.mrf.mxu1 }
 0x3ba   : > { %v4283_v63 = vadd.f32 %v4152_v56, %v3854_v11  ;;  %v4713_v17 = vadd.f32 %v16278_v38, %v4284_v49  ;;  %v3419_v38 = vadd.f32 %v16189_v15, %v2990_v41  ;;  %v2557_v15 = vadd.f32 %v16038_v3, %v15827_v9 }
 0x3bb   : > { %v13199_v0 = vpop.f32.mrf.mxu1  ;;  %v4710_v49 = vadd.f32 %v16270_v39, %v4281_v46  ;;  %v4278_v9 = vadd.f32 %v16324_v33, %v3849_v35  ;;  %v4747_v3 = vmax.f32 %v4711_v59, 0.0  ;;  %v16404_v39 = vpop.f32.mrf.mxu0  ;;  %v4708_v33 = vadd.f32 %v16254_v44, %v4279_v4  ;;  %v20868_v46 = vld [vmem:[#allocation23_spill] sm:$0xff]  ;;  %v20873_v59 = vld [vmem:[#allocation17_spill] sm:$0xff] }
 0x3bc   : > { %v4286_v42 = vadd.f32 %v13199_v0, %v3857_v52  ;;  %v4712_v40 = vadd.f32 %v16286_v43, %v4283_v63  ;;  %v4749_v57 = vmax.f32 %v4713_v17, 0.0  ;;  %v3848_v1 = vadd.f32 %v15920_v23, %v3419_v38  ;;  %v20860_v23 = vld [vmem:[#allocation18_spill] sm:$0xff]  ;;  %v20871_v38 = vld [vmem:[#allocation40_spill] sm:$0xff] }
 0x3bd   : > { %v4162_v60 = vpop.f32.mrf.mxu1  ;;  %v3847_v0 = vadd.f32 %v20860_v23, %v16179_v45  ;;  %v4746_v63 = vmax.f32 %v4710_v49, 0.0  ;;  %v16429_v7 = vpop.f32.mrf.mxu0  ;;  %v2984_v13 = vadd.f32 %v20871_v38, %v2555_v58  ;;  %v4744_v35 = vmax.f32 %v4708_v33, 0.0  ;;  %v20876_v49 = vld [vmem:[#allocation31_spill] sm:$0xff]  ;;  %v20882_v23 = vld [vmem:[#allocation53_spill] sm:$0xff] }
 0x3be   : > { %v4715_v29 = vadd.f32 %v13255_v32, %v4286_v42  ;;  %v4285_v54 = vadd.f32 %v4162_v60, %v3856_v18  ;;  %v16378_v32 = vld [vmem:[%s20607_s3] ss:$0 sm:$0xff]  ;;  %v4748_v34 = vmax.f32 %v4712_v40, 0.0  ;;  %v4277_v10 = vadd.f32 %v16326_v20, %v3848_v1  ;;  %v20861_v18 = vld [vmem:[#allocation48_spill] sm:$0xff]  ;;  %v20866_v20 = vld [vmem:[#allocation119_spill] sm:$0xff] }
 0x3bf   : > { %v16371_v62 = vpop.f32.mrf.mxu1  ;;  %v4792_v25 = vadd.f32 %v16378_v32, %v4749_v57  ;;  %v1715_v55 = vadd.f32 %v20862_v61, %v20861_v18  ;;  %v1725_v60 = vadd.f32 %v20864_v37, %v20863_v19  ;;  %v4276_v44 = vadd.f32 %v20866_v20, %v3847_v0  ;;  %v20884_v18 = vld [vmem:[#allocation81_spill] sm:$0xff]  ;;  %v20893_v38 = vld [vmem:[#allocation83_spill] sm:$0xff] }
 0x3c0   : > { %v4751_v51 = vmax.f32 %v4715_v29, 0.0  ;;  %v4714_v53 = vadd.f32 %v4591_v6, %v4285_v54  ;;  %v20858_v6 = vld [vmem:[#allocation44_spill] sm:$0xff]  ;;  %v4791_v42 = vadd.f32 %v16378_v32, %v4748_v34  ;;  %v20867_v54 = vld [vmem:[#allocation57_spill] sm:$0xff]  ;;  %v4790_v41 = vadd.f32 %v16378_v32, %v4747_v3 }
 0x3c1   : > { %v16381_v48 = vpop.f32.mrf.mxu1  ;;  %v2988_v50 = vadd.f32 %v20858_v6, %v2559_v5  ;;  %v4707_v5 = vadd.f32 %v20867_v54, %v4278_v9  ;;  %v2158_v40 = vadd.f32 %v20868_v46, %v1715_v55  ;;  %v3845_v57 = vadd.f32 %v20873_v59, %v20872_v14  ;;  %v20875_v6 = vld [vmem:[#allocation59_spill] sm:$0xff]  ;;  %v20879_v9 = vld [vmem:[#allocation98_spill] sm:$0xff]  ;;  %v20880_v3 = vld [vmem:[#allocation25_spill] sm:$0xff] }
 0x3c2   : > { %v4794_v21 = vadd.f32 %v16378_v32, %v4751_v51  ;;  %v4750_v43 = vmax.f32 %v4714_v53, 0.0  ;;  %v20869_v51 = vld [vmem:[#allocation27_spill] sm:$0xff]  ;;  %v4789_v4 = vadd.f32 %v16378_v32, %v4746_v63  ;;  %v2160_v34 = vadd.f32 %v20876_v49, %v1725_v60  ;;  %v16456_v63 = vpop.f32.mrf.mxu0  ;;  %v20885_v55 = vld [vmem:[#allocation22_spill] sm:$0xff]  ;;  %v20886_v19 = vld [vmem:[#allocation89_spill] sm:$0xff] }
 0x3c3   : > { %v16392_v56 = vpop.f32.mrf.mxu1  ;;  %v3417_v52 = vadd.f32 %v16181_v47, %v2988_v50  ;;  %v20859_v47 = vld [vmem:[#allocation42_spill] sm:$0xff]  ;;  %v4706_v50 = vadd.f32 %v20875_v6, %v4277_v10  ;;  %v3413_v30 = vadd.f32 %v20879_v9, %v2984_v13  ;;  %v4705_v0 = vadd.f32 %v20882_v23, %v4276_v44  ;;  %v20887_v60 = vld [vmem:[#allocation60_spill] sm:$0xff]  ;;  %v20890_v44 = vld [vmem:[#allocation117_spill] sm:$0xff] }
 0x3c4   : > { %v4793_v11 = vadd.f32 %v16378_v32, %v4750_v43  ;;  %5063 = vmatpush1.msra.mxu1 %v4794_v21  ;;  %v2986_v2 = vadd.f32 %v20859_v47, %v2557_v15  ;;  %v20874_v43 = vld [vmem:[#allocation120_spill] sm:$0xff]  ;;  %v4743_v10 = vmax.f32 %v4707_v5, 0.0  ;;  %v4788_v33 = vadd.f32 %v16378_v32, %v4745_v24  ;;  %v20891_v24 = vld [vmem:[#allocation55_spill] sm:$0xff]  ;;  %v20894_v14 = vld [vmem:[#allocation21_spill] sm:$0xff] }
 0x3c5   : > { %v16398_v22 = vpop.f32.mrf.mxu1  ;;  %5064 = vmatprep.subr.mxu1 %v20819_v36  ;;  %v3846_v17 = vadd.f32 %v20865_v8, %v3417_v52  ;;  %v20878_v52 = vld [vmem:[#allocation77_spill] sm:$0xff]  ;;  %v20881_v47 = vld [vmem:[#allocation116_spill] sm:$0xff]  ;;  %v2583_v37 = vadd.f32 %v20886_v19, %v20885_v55  ;;  %v4742_v46 = vmax.f32 %v4706_v50, 0.0  ;;  %v4741_v9 = vmax.f32 %v4705_v0, 0.0  ;;  %v20902_v23 = vld [vmem:[#allocation87_spill] sm:$0xff] }
 0x3c6   : > { %5065 = vmatpush1.msra.mxu1 %v4793_v11  ;;  %v3415_v45 = vadd.f32 %v16173_v27, %v2986_v2  ;;  %v20870_v27 = vld [vmem:[#allocation79_spill] sm:$0xff]  ;;  %v4274_v2 = vadd.f32 %v20881_v47, %v3845_v57  ;;  %v20888_v8 = vld [vmem:[#allocation97_spill] sm:$0xff]  ;;  %v20896_v57 = vld [vmem:[#allocation30_spill] sm:$0xff] }
 0x3c7   : > { %v16411_v31 = vpop.f32.mrf.mxu1  ;;  %5066 = vmatprep.subr.mxu1 %v20819_v36  ;;  %v2573_v53 = vadd.f32 %v20870_v27, %v20869_v51  ;;  %v4275_v15 = vadd.f32 %v20874_v43, %v3846_v17  ;;  %v20877_v11 = vld [vmem:[#allocation19_spill] sm:$0xff]  ;;  %v4787_v51 = vadd.f32 %v16378_v32, %v4744_v35  ;;  %v20892_v27 = vld [vmem:[#allocation28_spill] sm:$0xff]  ;;  %v20901_v47 = vld [vmem:[#allocation29_spill] sm:$0xff] }
 0x3c8   : > { %5067 = vmatpush1.msra.mxu1 %v4792_v25  ;;  %v16446_v1 = vadd.f32 %v20878_v52, %v20877_v11  ;;  %v3844_v25 = vadd.f32 %v20880_v3, %v3415_v45  ;;  %v20889_v17 = vld [vmem:[#allocation15_spill] sm:$0xff]  ;;  %v2577_v13 = vadd.f32 %v20893_v38, %v20892_v27  ;;  %v4786_v3 = vadd.f32 %v16378_v32, %v4743_v10  ;;  %v20905_v19 = vld [vmem:[#allocation70_spill] sm:$0xff]  ;;  %v20909_v27 = vld [vmem:[#allocation64_spill] sm:$0xff] }
 0x3c9   : > { %v16423_v29 = vpop.f32.mrf.mxu1  ;;  %5068 = vmatprep.subr.mxu1 %v20819_v36  ;;  %v3002_v45 = vadd.f32 %v20887_v60, %v2573_v53  ;;  %v3843_v20 = vadd.f32 %v20889_v17, %v20888_v8  ;;  %v20895_v53 = vld [vmem:[#allocation85_spill] sm:$0xff]  ;;  %v20897_v43 = vld [vmem:[#allocation91_spill] sm:$0xff]  ;;  %v3012_v60 = vadd.f32 %v20905_v19, %v2583_v37  ;;  %v20906_v17 = vld [vmem:[#allocation114_spill] sm:$0xff] }
 0x3ca   : > { %5069 = vmatpush1.msra.mxu1 %v4791_v42  ;;  %v20883_v42 = vld [vmem:[#allocation20_spill] sm:$0xff]  ;;  %v4273_v5 = vadd.f32 %v20890_v44, %v3844_v25  ;;  %v2579_v59 = vadd.f32 %v20895_v53, %v20894_v14  ;;  %v2585_v6 = vadd.f32 %v20897_v43, %v20896_v57  ;;  %v20900_v52 = vld [vmem:[#allocation47_spill] sm:$0xff]  ;;  %v16484_v25 = vpop.f32.mrf.mxu0  ;;  %v4785_v44 = vadd.f32 %v16378_v32, %v4742_v46  ;;  %v20912_v57 = vld [vmem:[#allocation66_spill] sm:$0xff] }
 0x3cb   : > { %v16437_v21 = vpop.f32.mrf.mxu1  ;;  %5070 = vmatprep.subr.mxu1 %v20819_v36  ;;  %v2575_v61 = vadd.f32 %v20884_v18, %v20883_v42  ;;  %v4703_v35 = vadd.f32 %v20900_v52, %v4274_v2  ;;  %v20903_v42 = vld [vmem:[#allocation93_spill] sm:$0xff]  ;;  %v20907_v0 = vld [vmem:[#allocation51_spill] sm:$0xff]  ;;  %v3006_v38 = vadd.f32 %v20909_v27, %v2577_v13 }
 0x3cc   : > { %5071 = vmatpush1.msra.mxu1 %v4790_v41  ;;  %v4704_v41 = vadd.f32 %v20891_v24, %v4275_v15  ;;  %v20899_v15 = vld [vmem:[#allocation113_spill] sm:$0xff]  ;;  %v2587_v18 = vadd.f32 %v20903_v42, %v2158_v40  ;;  %v20908_v24 = vld [vmem:[#allocation62_spill] sm:$0xff]  ;;  %v20910_v40 = vld [vmem:[#allocation108_spill] sm:$0xff]  ;;  %v3008_v43 = vadd.f32 %v20912_v57, %v2579_v59  ;;  %v13279_v46 = vpop.f32.mrf.mxu0 }
 0x3cd   : > { %v16450_v58 = vpop.f32.mrf.mxu1  ;;  %5072 = vmatprep.subr.mxu1 %v20819_v36  ;;  %v4272_v50 = vadd.f32 %v20899_v15, %v3843_v20  ;;  %v4702_v20 = vadd.f32 %v20907_v0, %v4273_v5  ;;  %v3441_v14 = vadd.f32 %v20910_v40, %v3012_v60  ;;  %v4739_v5 = vmax.f32 %v4703_v35, 0.0  ;;  %v20914_v15 = vld [vmem:[#allocation68_spill] sm:$0xff]  ;;  %v20915_v52 = vld [vmem:[#allocation109_spill] sm:$0xff] }
 0x3ce   : > { %5073 = vmatpush1.msra.mxu1 %v4789_v4  ;;  %v20898_v4 = vld [vmem:[#allocation16_spill] sm:$0xff]  ;;  %v4740_v10 = vmax.f32 %v4704_v41, 0.0  ;;  %v4784_v41 = vadd.f32 %v16378_v32, %v4741_v9  ;;  %v20919_v35 = vld [vmem:[#allocation69_spill] sm:$0xff] }
 0x3cf   : > { %v16465_v54 = vpop.f32.mrf.mxu1  ;;  %5074 = vmatprep.subr.mxu1 %v20819_v36  ;;  %v3842_v49 = vadd.f32 %v20898_v4, %v3413_v30  ;;  %v20904_v30 = vld [vmem:[#allocation95_spill] sm:$0xff]  ;;  %v4738_v19 = vmax.f32 %v4702_v20, 0.0  ;;  %v20920_v9 = vld [vmem:[#allocation84_spill] sm:$0xff]  ;;  %v4782_v20 = vadd.f32 %v16378_v32, %v4739_v5 }
 0x3d0   : > { %5075 = vmatpush1.msra.mxu1 %v4788_v33  ;;  %v2581_v33 = vadd.f32 %v20902_v23, %v20901_v47  ;;  %v2589_v55 = vadd.f32 %v20904_v30, %v2160_v34  ;;  %v20911_v34 = vld [vmem:[#allocation72_spill] sm:$0xff]  ;;  %v20913_v4 = vld [vmem:[#allocation43_spill] sm:$0xff]  ;;  %v20917_v23 = vld [vmem:[#allocation14_spill] sm:$0xff]  ;;  %v3871_v60 = vadd.f32 %v20920_v9, %v20919_v35 }
 0x3d1   : > { %v16478_v11 = vpop.f32.mrf.mxu1  ;;  %5076 = vmatprep.subr.mxu1 %v20819_v36  ;;  %v4271_v2 = vadd.f32 %v20906_v17, %v3842_v49  ;;  %v3014_v53 = vadd.f32 %v20911_v34, %v2585_v6  ;;  %v4701_v49 = vadd.f32 %v20913_v4, %v4272_v50  ;;  %v20918_v30 = vld [vmem:[#allocation45_spill] sm:$0xff]  ;;  %v4783_v50 = vadd.f32 %v16378_v32, %v4740_v10  ;;  %v20921_v17 = vld [vmem:[#allocation103_spill] sm:$0xff]  ;;  %v20922_v0 = vld [vmem:[#allocation104_spill] sm:$0xff] }
 0x3d2   : > { %5077 = vmatpush1.msra.mxu1 %v4787_v51  ;;  %v3004_v51 = vadd.f32 %v20908_v24, %v2575_v61  ;;  %v3010_v61 = vadd.f32 %v20914_v15, %v2581_v33  ;;  %v3018_v6 = vadd.f32 %v20917_v23, %v2589_v55  ;;  %v16513_v33 = vadd.f32 %v20921_v17, %v3002_v45  ;;  %v20924_v24 = vld [vmem:[#allocation86_spill] sm:$0xff]  ;;  %v20925_v34 = vld [vmem:[#allocation71_spill] sm:$0xff]  ;;  %v4671_v45 = vpop.f32.mrf.mxu0  ;;  %v20927_v4 = vld [vmem:[#allocation105_spill] sm:$0xff] }
 0x3d3   : > { %v13217_v8 = vpop.f32.mrf.mxu1  ;;  %5078 = vmatprep.subr.mxu1 %v20819_v36  ;;  %v3443_v13 = vadd.f32 %v20915_v52, %v3014_v53  ;;  %v4700_v59 = vadd.f32 %v20918_v30, %v4271_v2  ;;  %v3870_v27 = vadd.f32 %v20924_v24, %v3441_v14  ;;  %v4737_v2 = vmax.f32 %v4701_v49, 0.0  ;;  %v20926_v53 = vld [vmem:[#allocation88_spill] sm:$0xff]  ;;  %v20929_v52 = vld [vmem:[#allocation67_spill] sm:$0xff]  ;;  %v20931_v23 = vld [vmem:[#allocation90_spill] sm:$0xff] }
 0x3d4   : > { %5079 = vmatpush1.msra.mxu1 %v4786_v3  ;;  %v20916_v3 = vld [vmem:[#allocation13_spill] sm:$0xff]  ;;  %v3873_v57 = vadd.f32 %v20926_v53, %v20925_v34  ;;  %v4781_v5 = vadd.f32 %v16378_v32, %v4738_v19  ;;  %v13282_v35 = vpop.f32.mrf.mxu0  ;;  %v20932_v9 = vld [vmem:[#allocation110_spill] sm:$0xff]  ;;  %v20934_v17 = vld [vmem:[#allocation39_spill] sm:$0xff] }
 0x3d5   : > { %v4222_v37 = vpop.f32.mrf.mxu1  ;;  %5080 = vmatprep.subr.mxu1 %v20819_v36  ;;  %v3016_v47 = vadd.f32 %v20916_v3, %v2587_v18  ;;  %v20923_v18 = vld [vmem:[#allocation107_spill] sm:$0xff]  ;;  %v3872_v49 = vadd.f32 %v20931_v23, %v3443_v13  ;;  %v4736_v30 = vmax.f32 %v4700_v59, 0.0  ;;  %v4780_v13 = vadd.f32 %v16378_v32, %v4737_v2  ;;  %v20937_v53 = vld [vmem:[#allocation78_spill] sm:$0xff]  ;;  %v20942_v23 = vld [vmem:[#allocation96_spill] sm:$0xff] }
 0x3d6   : > { %5081 = vmatpush1.msra.mxu1 %v4785_v44  ;;  %v16516_v44 = vadd.f32 %v20922_v0, %v3004_v51  ;;  %v3439_v55 = vadd.f32 %v20923_v18, %v3010_v61  ;;  %v20928_v51 = vld [vmem:[#allocation106_spill] sm:$0xff]  ;;  %v20930_v61 = vld [vmem:[#allocation80_spill] sm:$0xff] }
 0x3d7   : > { %v13220_v42 = vpop.f32.mrf.mxu1  ;;  %5082 = vmatprep.subr.mxu1 %v20819_v36  ;;  %v3437_v15 = vadd.f32 %v20928_v51, %v3008_v43  ;;  %v3869_v3 = vadd.f32 %v20930_v61, %v20929_v52  ;;  %v20935_v18 = vld [vmem:[#allocation82_spill] sm:$0xff]  ;;  %v20939_v51 = vld [vmem:[#allocation92_spill] sm:$0xff] }
 0x3d8   : > { %5083 = vmatpush1.msra.mxu1 %v4784_v41  ;;  %v4300_v10 = vadd.f32 %v13220_v42, %v3871_v60  ;;  %v3435_v41 = vadd.f32 %v20927_v4, %v3006_v38  ;;  %v3445_v60 = vadd.f32 %v20932_v9, %v3016_v47  ;;  %v20933_v38 = vld [vmem:[#allocation65_spill] sm:$0xff]  ;;  %v3868_v24 = vadd.f32 %v20935_v18, %v3439_v55 }
 0x3d9   : > { %v4232_v40 = vpop.f32.mrf.mxu1  ;;  %5084 = vmatprep.subr.mxu1 %v20819_v36  ;;  %v3867_v43 = vadd.f32 %v20934_v17, %v20933_v38  ;;  %v4298_v0 = vadd.f32 %v13217_v8, %v3869_v3  ;;  %v3866_v47 = vadd.f32 %v20937_v53, %v3437_v15  ;;  %v20938_v4 = vld [vmem:[#allocation73_spill] sm:$0xff]  ;;  %v4779_v55 = vadd.f32 %v16378_v32, %v4736_v30  ;;  %v20940_v15 = vld [vmem:[#allocation94_spill] sm:$0xff] }
 0x3da   : > { %5085 = vmatpush1.msra.mxu1 %v4783_v50  ;;  %v4299_v42 = vadd.f32 %v4232_v40, %v3870_v27  ;;  %v4729_v59 = vadd.f32 %v16456_v63, %v4300_v10  ;;  %v20936_v40 = vld [vmem:[#allocation111_spill] sm:$0xff]  ;;  %v3875_v8 = vadd.f32 %v20939_v51, %v20938_v4  ;;  %v20944_v9 = vld [vmem:[#allocation37_spill] sm:$0xff] }
 0x3db   : > { %v13223_v14 = vpop.f32.mrf.mxu1  ;;  %5086 = vmatprep.subr.mxu1 %v20819_v36  ;;  %v4296_v10 = vadd.f32 %v16465_v54, %v3867_v43  ;;  %v20945_v17 = vld [vmem:[#allocation41_spill] sm:$0xff]  ;;  %v20948_v51 = vld [vmem:[#allocation35_spill] sm:$0xff] }
 0x3dc   : > { %v4302_v50 = vadd.f32 %v13223_v14, %v3873_v57  ;;  %5087 = vmatpush1.msra.mxu1 %v4782_v20  ;;  %v3447_v20 = vadd.f32 %v20936_v40, %v3018_v6  ;;  %v4297_v57 = vadd.f32 %v4222_v37, %v3868_v24  ;;  %v4728_v2 = vadd.f32 %v16484_v25, %v4299_v42  ;;  %v20941_v14 = vld [vmem:[#allocation76_spill] sm:$0xff]  ;;  %v20947_v4 = vld [vmem:[#allocation61_spill] sm:$0xff] }
 0x3dd   : > { %v4242_v34 = vpop.f32.mrf.mxu1  ;;  %5088 = vmatprep.subr.mxu1 %v20819_v36  ;;  %v4727_v6 = vadd.f32 %v16404_v39, %v4298_v0  ;;  %v3874_v37 = vadd.f32 %v20940_v15, %v3445_v60  ;;  %v4295_v39 = vadd.f32 %v16478_v11, %v3866_v47 }
 0x3de   : > { %v4731_v19 = vadd.f32 %v13279_v46, %v4302_v50  ;;  %v4301_v27 = vadd.f32 %v4242_v34, %v3872_v49  ;;  %5089 = vmatpush1.msra.mxu1 %v4781_v5  ;;  %v4681_v46 = vpop.f32.mrf.mxu0  ;;  %v3877_v49 = vadd.f32 %v20942_v23, %v20941_v14  ;;  %v4765_v5 = vmax.f32 %v4729_v59, 0.0  ;;  %v20943_v50 = vld [vmem:[#allocation63_spill] sm:$0xff]  ;;  %v20946_v59 = vld [vmem:[#allocation38_spill] sm:$0xff] }
 0x3df   : > { %v13226_v52 = vpop.f32.mrf.mxu1  ;;  %5090 = vmatprep.subr.mxu1 %v20819_v36  ;;  %v3865_v54 = vadd.f32 %v20944_v9, %v20943_v50  ;;  %v4726_v60 = vadd.f32 %v16429_v7, %v4297_v57  ;;  %v3876_v43 = vadd.f32 %v20945_v17, %v3447_v20  ;;  %v4764_v0 = vmax.f32 %v4728_v2, 0.0  ;;  %v20951_v23 = vld [vmem:[#allocation102_spill] sm:$0xff]  ;;  %v20956_v17 = vld [vmem:[#allocation100_spill] sm:$0xff] }
 0x3e0   : > { %v4767_v61 = vmax.f32 %v4731_v19, 0.0  ;;  %v4730_v63 = vadd.f32 %v4671_v45, %v4301_v27  ;;  %5091 = vmatpush1.msra.mxu1 %v4780_v13  ;;  %v4304_v42 = vadd.f32 %v13226_v52, %v3875_v8  ;;  %v13285_v45 = vpop.f32.mrf.mxu0  ;;  %v3864_v19 = vadd.f32 %v20946_v59, %v3435_v41  ;;  %v20954_v9 = vld [vmem:[#allocation34_spill] sm:$0xff]  ;;  %v4817_v59 = vld [vmem:[%s20608_s4 + $0x10] sm:$0xff] }
 0x3e1   : > { %v4252_v3 = vpop.f32.mrf.mxu1  ;;  %5092 = vmatprep.subr.mxu1 %v20819_v36  ;;  %v4294_v13 = vadd.f32 %v16437_v21, %v3865_v54  ;;  %v4725_v27 = vadd.f32 %v16364_v28, %v4296_v10  ;;  %v4763_v11 = vmax.f32 %v4727_v6, 0.0  ;;  %v4808_v7 = vadd.f32 %v16378_v32, %v4765_v5 }
 0x3e2   : > { %v4810_v30 = vadd.f32 %v16378_v32, %v4767_v61  ;;  %v4766_v25 = vmax.f32 %v4730_v63, 0.0  ;;  %5093 = vmatpush1.msra.mxu1 %v4779_v55  ;;  %v4303_v24 = vadd.f32 %v4252_v3, %v3874_v37  ;;  %v4733_v53 = vadd.f32 %v13282_v35, %v4304_v42  ;;  %v4691_v57 = vpop.f32.mrf.mxu0  ;;  %v20949_v63 = vld [vmem:[#allocation36_spill] sm:$0xff] }
 0x3e3   : > { %v13229_v38 = vpop.f32.mrf.mxu1  ;;  %5094 = vmatprep.subr.mxu1 %v20819_v36  ;;  %v3863_v8 = vadd.f32 %v20948_v51, %v20947_v4  ;;  %v4293_v21 = vadd.f32 %v16450_v58, %v3864_v19  ;;  %v4724_v41 = vadd.f32 %v16385_v26, %v4295_v39  ;;  %v4762_v52 = vmax.f32 %v4726_v60, 0.0  ;;  %v20959_v19 = vld [vmem:[#allocation32_spill] sm:$0xff] }
 0x3e4   : > { %v4809_v18 = vadd.f32 %v16378_v32, %v4766_v25  ;;  %v4306_v34 = vadd.f32 %v13229_v38, %v3877_v49  ;;  %5095 = vmatpush2.msra.mxu1 %v4810_v30  ;;  %v4807_v28 = vadd.f32 %v16378_v32, %v4764_v0  ;;  %v4732_v55 = vadd.f32 %v4681_v46, %v4303_v24  ;;  %v20950_v46 = vld [vmem:[#allocation58_spill] sm:$0xff] }
 0x3e5   : > { %v4262_v40 = vpop.f32.mrf.mxu1  ;;  %5096 = vmatprep.subr.mxu1 %v20819_v36  ;;  %v4292_v35 = vadd.f32 %v16411_v31, %v3863_v8  ;;  %v3862_v10 = vadd.f32 %v20949_v63, %v16516_v44  ;;  %v4723_v6 = vadd.f32 %v16341_v12, %v4294_v13  ;;  %v4761_v15 = vmax.f32 %v4725_v27, 0.0  ;;  %v20952_v31 = vld [vmem:[#allocation33_spill] sm:$0xff]  ;;  %v20962_v8 = vld [vmem:[#allocation112_spill] sm:$0xff] }
 0x3e6   : > { %v4735_v20 = vadd.f32 %v13285_v45, %v4306_v34  ;;  %v4305_v47 = vadd.f32 %v4262_v40, %v3876_v43  ;;  %5097 = vmatpush2.msra.mxu1 %v4809_v18  ;;  %v4806_v26 = vadd.f32 %v16378_v32, %v4763_v11  ;;  %v4769_v58 = vmax.f32 %v4733_v53, 0.0  ;;  %v20953_v45 = vld [vmem:[#allocation101_spill] sm:$0xff]  ;;  %v20957_v43 = vld [vmem:[#allocation24_spill] sm:$0xff]  ;;  %v20960_v11 = vld [vmem:[#allocation118_spill] sm:$0xff] }
 0x3e7   : > { %5098 = vmatprep.subr.mxu1 %v20819_v36  ;;  %v3000_v14 = vadd.f32 %v20950_v46, %v16446_v1  ;;  %v3861_v49 = vadd.f32 %v20952_v31, %v20951_v23  ;;  %v4291_v44 = vadd.f32 %v16423_v29, %v3862_v10  ;;  %v4722_v12 = vadd.f32 %v16353_v16, %v4293_v21  ;;  %v20955_v16 = vld [vmem:[#allocation122_spill] sm:$0xff]  ;;  %v4821_v31 = vld [vmem:[%s20608_s4 + $0x30] sm:$0xff] }
 0x3e8   : > { %v4771_v2 = vmax.f32 %v4735_v20, 0.0  ;;  %v4734_v61 = vadd.f32 %v4691_v57, %v4305_v47  ;;  %5099 = vmatpush2.msra.mxu1 %v4808_v7  ;;  %v4760_v5 = vmax.f32 %v4724_v41, 0.0  ;;  %v4805_v30 = vadd.f32 %v16378_v32, %v4762_v52  ;;  %v20961_v47 = vld [vmem:[#allocation121_spill] sm:$0xff]  ;;  %v20963_v52 = vld [vmem:[#allocation115_spill] sm:$0xff] }
 0x3e9   : > { %5100 = vmatprep.subr.mxu1 %v20819_v36  ;;  %v4768_v25 = vmax.f32 %v4732_v55, 0.0  ;;  %v3429_v50 = vadd.f32 %v20953_v45, %v3000_v14  ;;  %v4290_v1 = vadd.f32 %v16392_v56, %v3861_v49  ;;  %v3860_v54 = vadd.f32 %v20954_v9, %v16513_v33  ;;  %v20958_v33 = vld [vmem:[#allocation123_spill] sm:$0xff]  ;;  %v4822_v23 = vld [vmem:[%s20608_s4 + $0x38] sm:$0xff] }
 0x3ea   : > { %v4814_v37 = vadd.f32 %v16378_v32, %v4771_v2  ;;  %v4770_v3 = vmax.f32 %v4734_v61, 0.0  ;;  %5101 = vmatpush2.msra.mxu1 %v4807_v28  ;;  %v4721_v29 = vadd.f32 %v20955_v16, %v4292_v35  ;;  %v4759_v39 = vmax.f32 %v4723_v6, 0.0  ;;  %v4823_v61 = vld [vmem:[%s20608_s4 + $0x40] sm:$0xff]  ;;  %v4832_v14 = vld [vmem:[%s20608_s4 + $0x88] sm:$0xff]  ;;  %v4834_v9 = vld [vmem:[%s20608_s4 + $0x98] sm:$0xff] }
 0x3eb   : > { %5102 = vmatprep.subr.mxu1 %v20819_v36  ;;  %v4804_v60 = vadd.f32 %v16378_v32, %v4761_v15  ;;  %v4812_v38 = vadd.f32 %v16378_v32, %v4769_v58  ;;  %v3859_v0 = vadd.f32 %v20957_v43, %v20956_v17  ;;  %v4289_v56 = vadd.f32 %v16398_v22, %v3860_v54  ;;  %v4826_v15 = vld [vmem:[%s20608_s4 + $0x58] sm:$0xff]  ;;  %v4819_v46 = vld [vmem:[%s20608_s4 + $0x20] sm:$0xff]  ;;  %v4833_v54 = vld [vmem:[%s20608_s4 + $0x90] sm:$0xff] }
 0x3ec   : > { %v4813_v42 = vadd.f32 %v16378_v32, %v4770_v3  ;;  %5103 = vmatpush2.msra.mxu1 %v4806_v26  ;;  %13287 = vmatpush3.msra.mxu0 %v4814_v37  ;;  %v4720_v18 = vadd.f32 %v20958_v33, %v4291_v44  ;;  %v4758_v24 = vmax.f32 %v4722_v12, 0.0  ;;  %v4803_v34 = vadd.f32 %v16378_v32, %v4760_v5  ;;  %v4815_v37 = vld [vmem:[%s20608_s4] sm:$0xff]  ;;  %v4829_v3 = vld [vmem:[%s20608_s4 + $0x70] sm:$0xff]  ;;  %v4824_v12 = vld [vmem:[%s20608_s4 + $0x48] sm:$0xff] }
 0x3ed   : > { %5104 = vmatprep.subr.mxu1 %v20819_v36  ;;  %13288 = vmatprep.subr.mxu0 %v20819_v36  ;;  %v4811_v13 = vadd.f32 %v16378_v32, %v4768_v25  ;;  %v3858_v22 = vadd.f32 %v20959_v19, %v3429_v50  ;;  %v4288_v27 = vadd.f32 %v16371_v62, %v3859_v0  ;;  %v4757_v7 = vmax.f32 %v4721_v29, 0.0  ;;  %v4820_v62 = vld [vmem:[%s20608_s4 + $0x28] sm:$0xff]  ;;  %v4835_v49 = vld [vmem:[%s20608_s4 + $0xa0] sm:$0xff]  ;;  %v4825_v44 = vld [vmem:[%s20608_s4 + $0x50] sm:$0xff] }
 0x3ee   : > { %5105 = vmatpush2.msra.mxu1 %v4805_v30  ;;  %13289 = vmatpush3.msra.mxu0 %v4813_v42  ;;  %v4719_v40 = vadd.f32 %v20960_v11, %v4290_v1  ;;  %v4802_v53 = vadd.f32 %v16378_v32, %v4759_v39  ;;  %v4718_v57 = vadd.f32 %v20961_v47, %v4289_v56  ;;  %v4756_v4 = vmax.f32 %v4720_v18, 0.0  ;;  %v4838_v5 = vld [vmem:[%s20608_s4 + $0xb8] sm:$0xff]  ;;  %v4828_v30 = vld [vmem:[%s20608_s4 + $0x68] sm:$0xff]  ;;  %v4827_v25 = vld [vmem:[%s20608_s4 + $0x60] sm:$0xff] }
 0x3ef   : > { %5106 = vmatprep.subr.mxu1 %v20819_v36  ;;  %13290 = vmatprep.subr.mxu0 %v20819_v36  ;;  %v4287_v20 = vadd.f32 %v16381_v48, %v3858_v22  ;;  %v4801_v51 = vadd.f32 %v16378_v32, %v4758_v24  ;;  %v4717_v21 = vadd.f32 %v20962_v8, %v4288_v27  ;;  %v4841_v42 = vld [vmem:[%s20608_s4 + $0xd0] sm:$0xff]  ;;  %v4831_v45 = vld [vmem:[%s20608_s4 + $0x80] sm:$0xff]  ;;  %v4830_v50 = vld [vmem:[%s20608_s4 + $0x78] sm:$0xff] }
 0x3f0   : > { %5107 = vmatpush2.msra.mxu1 %v4804_v60  ;;  %13291 = vmatpush3.msra.mxu0 %v4812_v38  ;;  %v4755_v41 = vmax.f32 %v4719_v40, 0.0  ;;  %v4800_v48 = vadd.f32 %v16378_v32, %v4757_v7  ;;  %v4754_v55 = vmax.f32 %v4718_v57, 0.0  ;;  %v4799_v2 = vadd.f32 %v16378_v32, %v4756_v4  ;;  %v4844_v1 = vld [vmem:[%s20608_s4 + $0xe8] sm:$0xff]  ;;  %v4847_v16 = vld [vmem:[%s20608_s4 + $0x100] sm:$0xff]  ;;  %v4837_v29 = vld [vmem:[%s20608_s4 + $0xb0] sm:$0xff] }
 0x3f1   : > { %5108 = vmatprep.subr.mxu1 %v20819_v36  ;;  %13292 = vmatprep.subr.mxu0 %v20819_v36  ;;  %v4716_v28 = vadd.f32 %v20963_v52, %v4287_v20  ;;  %v4753_v35 = vmax.f32 %v4717_v21, 0.0  ;;  %v4836_v39 = vld [vmem:[%s20608_s4 + $0xa8] sm:$0xff]  ;;  %v4850_v60 = vld [vmem:[%s20608_s4 + $0x118] sm:$0xff]  ;;  %v4839_v17 = vld [vmem:[%s20608_s4 + $0xc0] sm:$0xff] }
 0x3f2   : > { %5109 = vmatpush2.msra.mxu1 %v4803_v34  ;;  %13293 = vmatpush3.msra.mxu0 %v4811_v13  ;;  %v4798_v63 = vadd.f32 %v16378_v32, %v4755_v41  ;;  %v4797_v6 = vadd.f32 %v16378_v32, %v4754_v55  ;;  %v4840_v38 = vld [vmem:[%s20608_s4 + $0xc8] sm:$0xff]  ;;  %v4853_v43 = vld [vmem:[%s20608_s4 + $0x130] sm:$0xff]  ;;  %v4843_v0 = vld [vmem:[%s20608_s4 + $0xe0] sm:$0xff] }
 0x3f3   : > { %5110 = vmatprep.subr.mxu1 %v20819_v36  ;;  %13295 = vmatmul.mubr.msk.f32.vlgmr.msra.gmra.mxu0 %vm4938_vm4, %v4817_v59  ;;  %v4752_v10 = vmax.f32 %v4716_v28, 0.0  ;;  %v4796_v26 = vadd.f32 %v16378_v32, %v4753_v35  ;;  %v7221_v56 = vld [vmem:[%s20612_s8 + $0x18] sm:$0xff]  ;;  %v4856_v24 = vld [vmem:[%s20608_s4 + $0x148] sm:$0xff]  ;;  %v4845_v13 = vld [vmem:[%s20608_s4 + $0xf0] sm:$0xff] }
 0x3f4   : > { %5111 = vmatpush2.msra.mxu1 %v4802_v53  ;;  %13297 = vmatprep.mubr.msk.f32.mxu0 %vm14484_vm3, %v20819_v36  ;;  %v7217_v33 = vld [vmem:[%s20611_s7 + $0x18] sm:$0xff]  ;;  %v4859_v59 = vld [vmem:[%s20608_s4 + $0x160] sm:$0xff]  ;;  %v4849_v19 = vld [vmem:[%s20608_s4 + $0x110] sm:$0xff] }
 0x3f5   : > { %5112 = vmatprep.subr.mxu1 %v20819_v36  ;;  %v4795_v58 = vadd.f32 %v16378_v32, %v4752_v10  ;;  %v4818_v32 = vld [vmem:[%s20608_s4 + $0x18] sm:$0xff]  ;;  %13479 = vmatprep.subr.mxu0 %v7217_v33  ;;  %v4848_v22 = vld [vmem:[%s20608_s4 + $0x108] sm:$0xff]  ;;  %v4851_v40 = vld [vmem:[%s20608_s4 + $0x120] sm:$0xff] }
 0x3f6   : > { %5113 = vmatpush2.msra.mxu1 %v4801_v51  ;;  %v4842_v18 = vld [vmem:[%s20608_s4 + $0xd8] sm:$0xff]  ;;  %13480 = vmatpush3.msra.mxu0 %v7217_v33  ;;  %v4852_v11 = vld [vmem:[%s20608_s4 + $0x128] sm:$0xff]  ;;  %v4865_v7 = vld [vmem:[%s20608_s4 + $0x190] sm:$0xff] }
 0x3f7   : > { %5114 = vmatprep.subr.mxu1 %v20819_v36  ;;  %13298 = vmatmul.mubr.msk.f32.gmra.mxu0 %vm4938_vm4, %v4820_v62  ;;  %v4846_v34 = vld [vmem:[%s20608_s4 + $0xf8] sm:$0xff]  ;;  %v4855_v53 = vld [vmem:[%s20608_s4 + $0x140] sm:$0xff]  ;;  %v4868_v47 = vld [vmem:[%s20608_s4 + $0x1a8] sm:$0xff] }
 0x3f8   : > { %5115 = vmatpush2.msra.mxu1 %v4800_v48  ;;  %13300 = vmatprep.mubr.msk.f32.mxu0 %vm14484_vm3, %v20819_v36  ;;  %v4862_v27 = vld [vmem:[%s20608_s4 + $0x178] sm:$0xff]  ;;  %v4857_v4 = vld [vmem:[%s20608_s4 + $0x150] sm:$0xff]  ;;  %v4871_v51 = vld [vmem:[%s20608_s4 + $0x1c0] sm:$0xff] }
 0x3f9   : > { %5116 = vmatprep.subr.mxu1 %v20819_v36  ;;  %v4854_v20 = vld [vmem:[%s20608_s4 + $0x138] sm:$0xff]  ;;  %v4861_v62 = vld [vmem:[%s20608_s4 + $0x170] sm:$0xff]  ;;  %v4860_v8 = vld [vmem:[%s20608_s4 + $0x168] sm:$0xff] }
 0x3fa   : > { %5117 = vmatpush2.msra.mxu1 %v4799_v2  ;;  %v4858_v57 = vld [vmem:[%s20608_s4 + $0x158] sm:$0xff]  ;;  %v4864_v41 = vld [vmem:[%s20608_s4 + $0x188] sm:$0xff]  ;;  %v4863_v48 = vld [vmem:[%s20608_s4 + $0x180] sm:$0xff] }
 0x3fb   : > { %5118 = vmatprep.subr.mxu1 %v20819_v36  ;;  %13301 = vmatmul.mubr.msk.f32.gmra.mxu0 %vm4938_vm4, %v4823_v61  ;;  %v4874_v21 = vld [vmem:[%s20608_s4 + $0x1d8] sm:$0xff]  ;;  %v4877_v52 = vld [vmem:[%s20608_s4 + $0x1f0] sm:$0xff]  ;;  %v4867_v28 = vld [vmem:[%s20608_s4 + $0x1a0] sm:$0xff] }
 0x3fc   : > { %5119 = vmatpush2.msra.mxu1 %v4798_v63  ;;  %13303 = vmatprep.mubr.msk.f32.mxu0 %vm14484_vm3, %v20819_v36  ;;  %v4866_v55 = vld [vmem:[%s20608_s4 + $0x198] sm:$0xff]  ;;  %v4880_v2 = vld [vmem:[%s20608_s4 + $0x208] sm:$0xff]  ;;  %v4869_v35 = vld [vmem:[%s20608_s4 + $0x1b0] sm:$0xff] }
 0x3fd   : > { %5120 = vmatprep.subr.mxu1 %v20819_v36  ;;  %v4870_v61 = vld [vmem:[%s20608_s4 + $0x1b8] sm:$0xff]  ;;  %v4883_v63 = vld [vmem:[%s20608_s4 + $0x220] sm:$0xff]  ;;  %v4873_v10 = vld [vmem:[%s20608_s4 + $0x1d0] sm:$0xff] }
 0x3fe   : > { %5121 = vmatpush2.msra.mxu1 %v4797_v6  ;;  %v4872_v6 = vld [vmem:[%s20608_s4 + $0x1c8] sm:$0xff]  ;;  %v7214_v33 = vld [vmem:[%s20611_s7] sm:$0xff] }
 0x3ff   : > { %5122 = vmatprep.subr.mxu1 %v20819_v36  ;;  %13304 = vmatmul.mubr.msk.f32.gmra.mxu0 %vm4938_vm4, %v4826_v15  ;;  %v4886_v15 = vld [vmem:[%s20608_s4 + $0x238] sm:$0xff] }
 0x400   : > { %5123 = vmatpush2.msra.mxu1 %v4796_v26  ;;  %13306 = vmatprep.mubr.msk.f32.mxu0 %vm14484_vm3, %v20819_v36  ;;  %v4876_v26 = vld [vmem:[%s20608_s4 + $0x1e8] sm:$0xff] }
 0x401   : > { %5124 = vmatprep.subr.mxu1 %v20819_v36 }
 0x402   : > { %5125 = vmatpush2.msra.mxu1 %v4795_v58  ;;  %v4875_v58 = vld [vmem:[%s20608_s4 + $0x1e0] sm:$0xff] }
 0x403   : > { %5127 = vmatmul.mubr.f32.vlgmr.msra.gmra.mxu1 %v4815_v37  ;;  %13307 = vmatmul.mubr.msk.f32.gmra.mxu0 %vm4938_vm4, %v4829_v3  ;;  %v4889_v37 = vld [vmem:[%s20608_s4 + $0x250] sm:$0xff]  ;;  %v4879_v3 = vld [vmem:[%s20608_s4 + $0x200] sm:$0xff] }
 0x404   : > { %5131 = vmatprep.mubr.f32.mxu1 %v4819_v46  ;;  %13309 = vmatprep.mubr.msk.f32.mxu0 %vm14484_vm3, %v20819_v36  ;;  %v4878_v46 = vld [vmem:[%s20608_s4 + $0x1f8] sm:$0xff] }
 0x405   : > { %13417 = vmatprep.subr.mxu1 %v7221_v56 }
 0x406   : > { %13418 = vmatpush3.msra.mxu1 %v7221_v56  ;;  %v7218_v56 = vld [vmem:[%s20612_s8] sm:$0xff] }
 0x407   : > { %5132 = vmatmul.mubr.f32.gmra.mxu1 %v4818_v32  ;;  %13310 = vmatmul.mubr.msk.f32.gmra.mxu0 %vm4938_vm4, %v4832_v14  ;;  %v4892_v32 = vld [vmem:[%s20608_s4 + $0x268] sm:$0xff]  ;;  %v4882_v14 = vld [vmem:[%s20608_s4 + $0x218] sm:$0xff] }
 0x408   : > { %5136 = vmatprep.mubr.f32.mxu1 %v4822_v23  ;;  %13312 = vmatprep.mubr.msk.f32.mxu0 %vm14484_vm3, %v20819_v36  ;;  %v4881_v23 = vld [vmem:[%s20608_s4 + $0x210] sm:$0xff] }
 0x40b   : > { %5137 = vmatmul.mubr.f32.gmra.mxu1 %v4821_v31  ;;  %13313 = vmatmul.mubr.msk.f32.gmra.mxu0 %vm4938_vm4, %v4835_v49  ;;  %v4895_v31 = vld [vmem:[%s20608_s4 + $0x280] sm:$0xff]  ;;  %v4885_v49 = vld [vmem:[%s20608_s4 + $0x230] sm:$0xff] }
 0x40c   : > { %5141 = vmatprep.mubr.f32.mxu1 %v4825_v44  ;;  %13315 = vmatprep.mubr.msk.f32.mxu0 %vm14484_vm3, %v20819_v36  ;;  %v4884_v44 = vld [vmem:[%s20608_s4 + $0x228] sm:$0xff] }
 0x40f   : > { %5142 = vmatmul.mubr.f32.gmra.mxu1 %v4824_v12  ;;  %13316 = vmatmul.mubr.msk.f32.gmra.mxu0 %vm4938_vm4, %v4838_v5  ;;  %v4898_v12 = vld [vmem:[%s20608_s4 + $0x298] sm:$0xff]  ;;  %v4888_v5 = vld [vmem:[%s20608_s4 + $0x248] sm:$0xff] }
 0x410   : > { %5146 = vmatprep.mubr.f32.mxu1 %v4828_v30  ;;  %13318 = vmatprep.mubr.msk.f32.mxu0 %vm14484_vm3, %v20819_v36  ;;  %v4887_v30 = vld [vmem:[%s20608_s4 + $0x240] sm:$0xff] }
 0x413   : > { %5147 = vmatmul.mubr.f32.gmra.mxu1 %v4827_v25  ;;  %13319 = vmatmul.mubr.msk.f32.gmra.mxu0 %vm4938_vm4, %v4841_v42  ;;  %v4901_v25 = vld [vmem:[%s20608_s4 + $0x2b0] sm:$0xff]  ;;  %v4891_v42 = vld [vmem:[%s20608_s4 + $0x260] sm:$0xff] }
 0x414   : > { %5151 = vmatprep.mubr.f32.mxu1 %v4831_v45  ;;  %13321 = vmatprep.mubr.msk.f32.mxu0 %vm14484_vm3, %v20819_v36  ;;  %v4890_v45 = vld [vmem:[%s20608_s4 + $0x258] sm:$0xff] }
 0x417   : > { %5152 = vmatmul.mubr.f32.gmra.mxu1 %v4830_v50  ;;  %13322 = vmatmul.mubr.msk.f32.gmra.mxu0 %vm4938_vm4, %v4844_v1  ;;  %v4904_v50 = vld [vmem:[%s20608_s4 + $0x2c8] sm:$0xff]  ;;  %v4894_v1 = vld [vmem:[%s20608_s4 + $0x278] sm:$0xff] }
 0x418   : > { %5156 = vmatprep.mubr.f32.mxu1 %v4834_v9  ;;  %13324 = vmatprep.mubr.msk.f32.mxu0 %vm14484_vm3, %v20819_v36  ;;  %v4893_v9 = vld [vmem:[%s20608_s4 + $0x270] sm:$0xff] }
 0x41b   : > { %5157 = vmatmul.mubr.f32.gmra.mxu1 %v4833_v54  ;;  %13325 = vmatmul.mubr.msk.f32.gmra.mxu0 %vm4938_vm4, %v4847_v16  ;;  %v4907_v54 = vld [vmem:[%s20608_s4 + $0x2e0] sm:$0xff]  ;;  %v4897_v16 = vld [vmem:[%s20608_s4 + $0x290] sm:$0xff] }
 0x41c   : > { %5161 = vmatprep.mubr.f32.mxu1 %v4837_v29  ;;  %13327 = vmatprep.mubr.msk.f32.mxu0 %vm14484_vm3, %v20819_v36  ;;  %v7220_v29 = vld [vmem:[%s20612_s8 + $0x10] sm:$0xff] }
 0x41d   : > { %13419 = vmatprep.subr.mxu1 %v7220_v29 }
 0x41e   : > { %13420 = vmatpush3.msra.mxu1 %v7220_v29 }
 0x41f   : > { %5162 = vmatmul.mubr.f32.gmra.mxu1 %v4836_v39  ;;  %13328 = vmatmul.mubr.msk.f32.gmra.mxu0 %vm4938_vm4, %v4850_v60  ;;  %v7216_v39 = vld [vmem:[%s20611_s7 + $0x10] sm:$0xff]  ;;  %v7219_v60 = vld [vmem:[%s20612_s8 + $0x8] sm:$0xff] }
 0x420   : > { %5166 = vmatprep.mubr.f32.mxu1 %v4840_v38  ;;  %13330 = vmatprep.mubr.msk.f32.mxu0 %vm14484_vm3, %v20819_v36  ;;  %v7215_v38 = vld [vmem:[%s20611_s7 + $0x8] sm:$0xff] }
 0x421   : > { %13481 = vmatprep.subr.mxu0 %v7216_v39  ;;  %13421 = vmatprep.subr.mxu1 %v7219_v60 }
 0x422   : > { %13482 = vmatpush3.msra.mxu0 %v7216_v39  ;;  %13422 = vmatpush3.msra.mxu1 %v7219_v60 }
 0x423   : > { %5167 = vmatmul.mubr.f32.gmra.mxu1 %v4839_v17  ;;  %13331 = vmatmul.mubr.msk.f32.gmra.mxu0 %vm4938_vm4, %v4853_v43  ;;  %v4896_v17 = vld [vmem:[%s20608_s4 + $0x288] sm:$0xff]  ;;  %v4910_v43 = vld [vmem:[%s20608_s4 + $0x2f8] sm:$0xff] }
 0x424   : > { %5171 = vmatprep.mubr.f32.mxu1 %v4843_v0  ;;  %13333 = vmatprep.mubr.msk.f32.mxu0 %vm14484_vm3, %v20819_v36  ;;  %v4900_v0 = vld [vmem:[%s20608_s4 + $0x2a8] sm:$0xff] }
 0x425   : > { %13483 = vmatprep.subr.mxu0 %v7215_v38  ;;  %13423 = vmatprep.subr.mxu1 %v7218_v56 }
 0x426   : > { %13484 = vmatpush3.msra.mxu0 %v7215_v38  ;;  %13424 = vmatpush3.msra.mxu1 %v7218_v56  ;;  %v17149_v38 = vld [vmem:[%s20610_s6 + $0x1] ss:$0 sm:$0xff] }
 0x427   : > { %5172 = vmatmul.mubr.f32.gmra.mxu1 %v4842_v18  ;;  %13334 = vmatmul.mubr.msk.f32.gmra.mxu0 %vm4938_vm4, %v4856_v24  ;;  %v4899_v18 = vld [vmem:[%s20608_s4 + $0x2a0] sm:$0xff]  ;;  %v4913_v24 = vld [vmem:[%s20608_s4 + $0x310] sm:$0xff] }
 0x428   : > { %5176 = vmatprep.mubr.f32.mxu1 %v4846_v34  ;;  %13336 = vmatprep.mubr.msk.f32.mxu0 %vm14484_vm3, %v20819_v36  ;;  %v4903_v34 = vld [vmem:[%s20608_s4 + $0x2c0] sm:$0xff] }
 0x429   : > { %13485 = vmatprep.subr.mxu0 %v7214_v33  ;;  %8121 = vmatprep.subr.mxu1 %v20819_v36  ;;  %v17161_v56 = vld [vmem:[%s20609_s5 + $0x1] ss:$0 sm:$0xff] }
 0x42a   : > { %13486 = vmatpush3.msra.mxu0 %v7214_v33 }
 0x42b   : > { %5177 = vmatmul.mubr.f32.gmra.mxu1 %v4845_v13  ;;  %13337 = vmatmul.mubr.msk.f32.gmra.mxu0 %vm4938_vm4, %v4859_v59  ;;  %v4902_v13 = vld [vmem:[%s20608_s4 + $0x2b8] sm:$0xff]  ;;  %v4916_v59 = vld [vmem:[%s20608_s4 + $0x328] sm:$0xff] }
 0x42c   : > { %5181 = vmatprep.mubr.f32.mxu1 %v4849_v19  ;;  %13339 = vmatprep.mubr.msk.f32.mxu0 %vm14484_vm3, %v20819_v36  ;;  %v4906_v19 = vld [vmem:[%s20608_s4 + $0x2d8] sm:$0xff] }
 0x42d   : > { %13541 = vmatprep.subr.mxu0 %v20819_v36 }
 0x42f   : > { %5182 = vmatmul.mubr.f32.gmra.mxu1 %v4848_v22  ;;  %13340 = vmatmul.mubr.msk.f32.gmra.mxu0 %vm4938_vm4, %v4862_v27  ;;  %v4905_v22 = vld [vmem:[%s20608_s4 + $0x2d0] sm:$0xff]  ;;  %v4919_v27 = vld [vmem:[%s20608_s4 + $0x340] sm:$0xff] }
 0x430   : > { %5186 = vmatprep.mubr.f32.mxu1 %v4852_v11  ;;  %13342 = vmatprep.mubr.msk.f32.mxu0 %vm14484_vm3, %v20819_v36  ;;  %v4909_v11 = vld [vmem:[%s20608_s4 + $0x2f0] sm:$0xff] }
 0x433   : > { %5187 = vmatmul.mubr.f32.gmra.mxu1 %v4851_v40  ;;  %13343 = vmatmul.mubr.msk.f32.gmra.mxu0 %vm4938_vm4, %v4865_v7  ;;  %v4908_v40 = vld [vmem:[%s20608_s4 + $0x2e8] sm:$0xff]  ;;  %v4922_v7 = vld [vmem:[%s20608_s4 + $0x358] sm:$0xff] }
 0x434   : > { %5191 = vmatprep.mubr.f32.mxu1 %v4855_v53  ;;  %13345 = vmatprep.mubr.msk.f32.mxu0 %vm14484_vm3, %v20819_v36  ;;  %v4912_v53 = vld [vmem:[%s20608_s4 + $0x308] sm:$0xff] }
 0x437   : > { %5192 = vmatmul.mubr.f32.gmra.mxu1 %v4854_v20  ;;  %13346 = vmatmul.mubr.msk.f32.gmra.mxu0 %vm4938_vm4, %v4868_v47  ;;  %v4911_v20 = vld [vmem:[%s20608_s4 + $0x300] sm:$0xff]  ;;  %v4925_v47 = vld [vmem:[%s20608_s4 + $0x370] sm:$0xff] }
 0x438   : > { %5196 = vmatprep.mubr.f32.mxu1 %v4858_v57  ;;  %13348 = vmatprep.mubr.msk.f32.mxu0 %vm14484_vm3, %v20819_v36  ;;  %v4915_v57 = vld [vmem:[%s20608_s4 + $0x320] sm:$0xff] }
 0x43b   : > { %5197 = vmatmul.mubr.f32.gmra.mxu1 %v4857_v4  ;;  %13349 = vmatmul.mubr.msk.f32.gmra.mxu0 %vm4938_vm4, %v4871_v51  ;;  %v4914_v4 = vld [vmem:[%s20608_s4 + $0x318] sm:$0xff]  ;;  %v4928_v51 = vld [vmem:[%s20608_s4 + $0x388] sm:$0xff] }
 0x43c   : > { %5201 = vmatprep.mubr.f32.mxu1 %v4861_v62  ;;  %13351 = vmatprep.mubr.msk.f32.mxu0 %vm14484_vm3, %v20819_v36  ;;  %v4918_v62 = vld [vmem:[%s20608_s4 + $0x338] sm:$0xff] }
 0x43f   : > { %5202 = vmatmul.mubr.f32.gmra.mxu1 %v4860_v8  ;;  %13352 = vmatmul.mubr.msk.f32.gmra.mxu0 %vm4938_vm4, %v4874_v21  ;;  %v4917_v8 = vld [vmem:[%s20608_s4 + $0x330] sm:$0xff]  ;;  %v4931_v21 = vld [vmem:[%s20608_s4 + $0x3a0] sm:$0xff] }
 0x440   : > { %5206 = vmatprep.mubr.f32.mxu1 %v4864_v41  ;;  %13354 = vmatprep.mubr.msk.f32.mxu0 %vm14484_vm3, %v20819_v36  ;;  %v4921_v41 = vld [vmem:[%s20608_s4 + $0x350] sm:$0xff] }
 0x443   : > { %5207 = vmatmul.mubr.f32.gmra.mxu1 %v4863_v48  ;;  %13355 = vmatmul.mubr.msk.f32.gmra.mxu0 %vm4938_vm4, %v4877_v52  ;;  %v4920_v48 = vld [vmem:[%s20608_s4 + $0x348] sm:$0xff]  ;;  %v4934_v52 = vld [vmem:[%s20608_s4 + $0x3b8] sm:$0xff] }
 0x444   : > { %5211 = vmatprep.mubr.f32.mxu1 %v4867_v28  ;;  %13357 = vmatprep.mubr.msk.f32.mxu0 %vm14484_vm3, %v20819_v36  ;;  %v4924_v28 = vld [vmem:[%s20608_s4 + $0x368] sm:$0xff] }
 0x447   : > { %5212 = vmatmul.mubr.f32.gmra.mxu1 %v4866_v55  ;;  %13358 = vmatmul.mubr.msk.f32.gmra.mxu0 %vm4938_vm4, %v4880_v2  ;;  %v4923_v55 = vld [vmem:[%s20608_s4 + $0x360] sm:$0xff]  ;;  %v4937_v2 = vld [vmem:[%s20608_s4 + $0x3d0] sm:$0x3f] }
 0x448   : > { %5216 = vmatprep.mubr.f32.mxu1 %v4870_v61  ;;  %13360 = vmatprep.mubr.msk.f32.mxu0 %vm14484_vm3, %v20819_v36  ;;  %v4927_v61 = vld [vmem:[%s20608_s4 + $0x380] sm:$0xff] }
 0x44b   : > { %5217 = vmatmul.mubr.f32.gmra.mxu1 %v4869_v35  ;;  %13361 = vmatmul.mubr.msk.f32.gmra.mxu0 %vm4938_vm4, %v4883_v63  ;;  %v4926_v35 = vld [vmem:[%s20608_s4 + $0x378] sm:$0xff] }
 0x44c   : > { %5221 = vmatprep.mubr.f32.mxu1 %v4873_v10  ;;  %13363 = vmatprep.mubr.msk.f32.mxu0 %vm14484_vm3, %v20819_v36  ;;  %v4930_v63 = vld [vmem:[%s20608_s4 + $0x398] sm:$0xff]  ;;  %v4929_v10 = vld [vmem:[%s20608_s4 + $0x390] sm:$0xff] }
 0x44f   : > { %5222 = vmatmul.mubr.f32.gmra.mxu1 %v4872_v6  ;;  %13364 = vmatmul.mubr.msk.f32.gmra.mxu0 %vm4938_vm4, %v4886_v15  ;;  %v4933_v6 = vld [vmem:[%s20608_s4 + $0x3b0] sm:$0xff]  ;;  %v4932_v15 = vld [vmem:[%s20608_s4 + $0x3a8] sm:$0xff] }
 0x450   : > { %5226 = vmatprep.mubr.f32.mxu1 %v4876_v26  ;;  %13366 = vmatprep.mubr.msk.f32.mxu0 %vm14484_vm3, %v20819_v36  ;;  %v4936_v26 = vld [vmem:[%s20608_s4 + $0x3c8] sm:$0x3f] }
 0x453   : > { %5227 = vmatmul.mubr.f32.gmra.mxu1 %v4875_v58  ;;  %13367 = vmatmul.mubr.msk.f32.gmra.mxu0 %vm4938_vm4, %v4889_v37  ;;  %v4935_v58 = vld [vmem:[%s20608_s4 + $0x3c0] sm:$0x3f] }
 0x454   : > { %5231 = vmatprep.mubr.f32.mxu1 %v4879_v3  ;;  %13369 = vmatprep.mubr.msk.f32.mxu0 %vm14484_vm3, %v20819_v36 }
 0x457   : > { %5232 = vmatmul.mubr.f32.gmra.mxu1 %v4878_v46  ;;  %13370 = vmatmul.mubr.msk.f32.gmra.mxu0 %vm4938_vm4, %v4892_v32 }
 0x458   : > { %5236 = vmatprep.mubr.f32.mxu1 %v4882_v14  ;;  %13372 = vmatprep.mubr.msk.f32.mxu0 %vm14484_vm3, %v20819_v36 }
 0x45b   : > { %5237 = vmatmul.mubr.f32.gmra.mxu1 %v4881_v23  ;;  %13373 = vmatmul.mubr.msk.f32.gmra.mxu0 %vm4938_vm4, %v4895_v31 }
 0x45c   : > { %5241 = vmatprep.mubr.f32.mxu1 %v4885_v49  ;;  %13375 = vmatprep.mubr.msk.f32.mxu0 %vm14484_vm3, %v20819_v36 }
 0x45f   : > { %5242 = vmatmul.mubr.f32.gmra.mxu1 %v4884_v44  ;;  %13376 = vmatmul.mubr.msk.f32.gmra.mxu0 %vm4938_vm4, %v4898_v12 }
 0x460   : > { %5246 = vmatprep.mubr.f32.mxu1 %v4888_v5  ;;  %13378 = vmatprep.mubr.msk.f32.mxu0 %vm14484_vm3, %v20819_v36 }
 0x463   : > { %5247 = vmatmul.mubr.f32.gmra.mxu1 %v4887_v30  ;;  %13379 = vmatmul.mubr.msk.f32.gmra.mxu0 %vm4938_vm4, %v4901_v25 }
 0x464   : > { %5251 = vmatprep.mubr.f32.mxu1 %v4891_v42  ;;  %13381 = vmatprep.mubr.msk.f32.mxu0 %vm14484_vm3, %v20819_v36 }
 0x467   : > { %5252 = vmatmul.mubr.f32.gmra.mxu1 %v4890_v45  ;;  %13382 = vmatmul.mubr.msk.f32.gmra.mxu0 %vm4938_vm4, %v4904_v50 }
 0x468   : > { %5256 = vmatprep.mubr.f32.mxu1 %v4894_v1  ;;  %13384 = vmatprep.mubr.msk.f32.mxu0 %vm14484_vm3, %v20819_v36 }
 0x46b   : > { %5257 = vmatmul.mubr.f32.gmra.mxu1 %v4893_v9  ;;  %13385 = vmatmul.mubr.msk.f32.gmra.mxu0 %vm4938_vm4, %v4907_v54 }
 0x46c   : > { %5261 = vmatprep.mubr.f32.mxu1 %v4897_v16  ;;  %13387 = vmatprep.mubr.msk.f32.mxu0 %vm14484_vm3, %v20819_v36 }
 0x46f   : > { %5262 = vmatmul.mubr.f32.gmra.mxu1 %v4896_v17  ;;  %13388 = vmatmul.mubr.msk.f32.gmra.mxu0 %vm4938_vm4, %v4910_v43 }
 0x470   : > { %5266 = vmatprep.mubr.f32.mxu1 %v4900_v0  ;;  %13390 = vmatprep.mubr.msk.f32.mxu0 %vm14484_vm3, %v20819_v36  ;;  %v17156_v0 = vld [vmem:[%s20610_s6] ss:$0 sm:$0xff] }
 0x473   : > { %5267 = vmatmul.mubr.f32.gmra.mxu1 %v4899_v18  ;;  %13391 = vmatmul.mubr.msk.f32.gmra.mxu0 %vm4938_vm4, %v4913_v24  ;;  %v17166_v24 = vld [vmem:[%s20609_s5] ss:$0 sm:$0xff] }
 0x474   : > { %5271 = vmatprep.mubr.f32.mxu1 %v4903_v34  ;;  %13393 = vmatprep.mubr.msk.f32.mxu0 %vm14484_vm3, %v20819_v36 }
 0x477   : > { %5272 = vmatmul.mubr.f32.gmra.mxu1 %v4902_v13  ;;  %13394 = vmatmul.mubr.msk.f32.gmra.mxu0 %vm4938_vm4, %v4916_v59 }
 0x478   : > { %5276 = vmatprep.mubr.f32.mxu1 %v4906_v19  ;;  %13396 = vmatprep.mubr.msk.f32.mxu0 %vm14484_vm3, %v20819_v36 }
 0x47b   : > { %5277 = vmatmul.mubr.f32.gmra.mxu1 %v4905_v22  ;;  %13397 = vmatmul.mubr.msk.f32.gmra.mxu0 %vm4938_vm4, %v4919_v27 }
 0x47c   : > { %5281 = vmatprep.mubr.f32.mxu1 %v4909_v11  ;;  %13399 = vmatprep.mubr.msk.f32.mxu0 %vm14484_vm3, %v20819_v36 }
 0x47f   : > { %5282 = vmatmul.mubr.f32.gmra.mxu1 %v4908_v40  ;;  %13400 = vmatmul.mubr.msk.f32.gmra.mxu0 %vm4938_vm4, %v4922_v7 }
 0x480   : > { %5286 = vmatprep.mubr.f32.mxu1 %v4912_v53  ;;  %13402 = vmatprep.mubr.msk.f32.mxu0 %vm14484_vm3, %v20819_v36  ;;  %v17177_v53 = vld [vmem:[%s20610_s6 + $0x2] ss:$0 sm:$0xff] }
 0x483   : > { %5287 = vmatmul.mubr.f32.gmra.mxu1 %v4911_v20  ;;  %13403 = vmatmul.mubr.msk.f32.gmra.mxu0 %vm4938_vm4, %v4925_v47 }
 0x484   : > { %5291 = vmatprep.mubr.f32.mxu1 %v4915_v57  ;;  %13405 = vmatprep.mubr.msk.f32.mxu0 %vm14484_vm3, %v20819_v36 }
 0x487   : > { %5292 = vmatmul.mubr.f32.gmra.mxu1 %v4914_v4  ;;  %13406 = vmatmul.mubr.msk.f32.gmra.mxu0 %vm4938_vm4, %v4928_v51 }
 0x488   : > { %5296 = vmatprep.mubr.f32.mxu1 %v4918_v62  ;;  %13408 = vmatprep.mubr.msk.f32.mxu0 %vm14484_vm3, %v20819_v36  ;;  %v17183_v62 = vld [vmem:[%s20609_s5 + $0x2] ss:$0 sm:$0xff] }
 0x48b   : > { %5297 = vmatmul.mubr.f32.gmra.mxu1 %v4917_v8  ;;  %13409 = vmatmul.mubr.msk.f32.gmra.mxu0 %vm4938_vm4, %v4931_v21 }
 0x48c   : > { %5301 = vmatprep.mubr.f32.mxu1 %v4921_v41  ;;  %13411 = vmatprep.mubr.msk.f32.mxu0 %vm14484_vm3, %v20819_v36 }
 0x48f   : > { %5302 = vmatmul.mubr.f32.gmra.mxu1 %v4920_v48  ;;  %13412 = vmatmul.mubr.msk.f32.gmra.mxu0 %vm4938_vm4, %v4934_v52 }
 0x490   : > { %5306 = vmatprep.mubr.f32.mxu1 %v4924_v28  ;;  %13414 = vmatprep.mubr.msk.f32.mxu0 %vm14484_vm3, %v20819_v36  ;;  %v17191_v28 = vld [vmem:[%s20610_s6 + $0x3] ss:$0 sm:$0xff] }
 0x493   : > { %5307 = vmatmul.mubr.f32.gmra.mxu1 %v4923_v55  ;;  %13415 = vmatmul.mubr.msk.f32.gmra.mxu0 %vm4938_vm4, %v4937_v2 }
 0x494   : > { %5311 = vmatprep.mubr.f32.mxu1 %v4927_v61 }
 0x497   : > { %5312 = vmatmul.mubr.f32.gmra.mxu1 %v4926_v35 }
 0x498   : > { %5316 = vmatprep.mubr.f32.mxu1 %v4930_v63 }
 0x49b   : > { %5317 = vmatmul.mubr.f32.gmra.mxu1 %v4929_v10 }
 0x49c   : > { %5321 = vmatprep.mubr.f32.mxu1 %v4933_v6  ;;  %v17201_v6 = vld [vmem:[%s20610_s6 + $0x4] ss:$0 sm:$0xff] }
 0x49f   : > { %5322 = vmatmul.mubr.f32.gmra.mxu1 %v4932_v15  ;;  %v17206_v15 = vld [vmem:[%s20609_s5 + $0x3] ss:$0 sm:$0xff] }
 0x4a0   : > { %5326 = vmatprep.mubr.f32.mxu1 %v4936_v26 }
 0x4a3   : > { %5327 = vmatmul.mubr.f32.gmra.mxu1 %v4935_v58 }
 0x4b3   : > { %v5398_v37 = vpop.f32.mrf.mxu0 }
 0x4b5   : > { %v13296_v3 = vpop.f32.mrf.mxu0 }
 0x4b6   : > { %v17212_v3 = vld [vmem:[%s20610_s6 + $0x5] ss:$0 sm:$0xff] }
 0x4b7   : > { %v5403_v46 = vpop.f32.mrf.mxu0 }
 0x4b9   : > { %v13299_v32 = vpop.f32.mrf.mxu0 }
 0x4ba   : > { %v17218_v32 = vld [vmem:[%s20609_s5 + $0x4] ss:$0 sm:$0xff] }
 0x4bb   : > { %v5408_v14 = vpop.f32.mrf.mxu0 }
 0x4bd   : > { %v13302_v23 = vpop.f32.mrf.mxu0 }
 0x4bf   : > { %v5413_v31 = vpop.f32.mrf.mxu0 }
 0x4c1   : > { %v13305_v49 = vpop.f32.mrf.mxu0 }
 0x4c3   : > { %v5128_v44 = vpop.f32.mrf.mxu1  ;;  %v5418_v12 = vpop.f32.mrf.mxu0 }
 0x4c4   : > { %v5399_v5 = vadd.f32 %v5398_v37, %v5128_v44 }
 0x4c5   : > { %v5130_v30 = vpop.f32.mrf.mxu1  ;;  %v13308_v25 = vpop.f32.mrf.mxu0 }
 0x4c6   : > { %5602 = vst.msk [vmem:[#allocation3] sm:$0xff] %vm4938_vm4, %v5399_v5 }
 0x4c7   : > { %v5133_v42 = vpop.f32.mrf.mxu1  ;;  %v5423_v45 = vpop.f32.mrf.mxu0 }
 0x4c8   : > { %v5404_v50 = vadd.f32 %v5403_v46, %v5133_v42 }
 0x4c9   : > { %v5135_v1 = vpop.f32.mrf.mxu1  ;;  %v13311_v9 = vpop.f32.mrf.mxu0 }
 0x4ca   : > { %5603 = vst.msk [vmem:[#allocation3 + $0x8] sm:$0xff] %vm4938_vm4, %v5404_v50 }
 0x4cb   : > { %v5138_v54 = vpop.f32.mrf.mxu1  ;;  %v17143_v16 = vpop.f32.mrf.mxu0 }
 0x4cc   : > { %v5409_v29 = vadd.f32 %v5408_v14, %v5138_v54  ;;  %v17223_v14 = vld [vmem:[%s20609_s5 + $0x5] ss:$0 sm:$0xff] }
 0x4cd   : > { %v5140_v39 = vpop.f32.mrf.mxu1  ;;  %v13314_v60 = vpop.f32.mrf.mxu0  ;;  %v5644_v18 = vld [vmem:[#allocation3] sm:$0xff] }
 0x4ce   : > { %5604 = vst.msk [vmem:[#allocation3 + $0x10] sm:$0xff] %vm4938_vm4, %v5409_v29  ;;  %v5726_v11 = vmul.f32 %v17156_v0, %v5644_v18  ;;  %v5685_v57 = vmul.f32 %v17166_v24, %v5644_v18 }
 0x4cf   : > { %v5143_v17 = vpop.f32.mrf.mxu1  ;;  %v17151_v43 = vpop.f32.mrf.mxu0 }
 0x4d0   : > { %v5414_v33 = vadd.f32 %v5413_v31, %v5143_v17 }
 0x4d1   : > { %v5145_v34 = vpop.f32.mrf.mxu1  ;;  %v13317_v13 = vpop.f32.mrf.mxu0  ;;  %v5762_v59 = vld [vmem:[#allocation3 + $0x1] sm:$0xff] }
 0x4d2   : > { %5605 = vst.msk [vmem:[#allocation3 + $0x18] sm:$0xff] %vm4938_vm4, %v5414_v33  ;;  %v5844_v19 = vmul.f32 %v17149_v38, %v5762_v59  ;;  %v5803_v40 = vmul.f32 %v17161_v56, %v5762_v59  ;;  %v5645_v7 = vld [vmem:[#allocation3 + $0x8] sm:$0xff] }
 0x4d3   : > { %v5148_v22 = vpop.f32.mrf.mxu1  ;;  %v17170_v27 = vpop.f32.mrf.mxu0  ;;  %v5952_v47 = vld [vmem:[#allocation3 + $0x2] sm:$0xff]  ;;  %v5686_v2 = vmul.f32 %v17166_v24, %v5645_v7  ;;  %v5727_v61 = vmul.f32 %v17156_v0, %v5645_v7 }
 0x4d4   : > { %v5419_v20 = vadd.f32 %v5418_v12, %v5148_v22  ;;  %v5916_v41 = vadd.f32 %v5844_v19, %v5726_v11  ;;  %v5880_v55 = vadd.f32 %v5803_v40, %v5685_v57  ;;  %v6034_v10 = vmul.f32 %v17177_v53, %v5952_v47 }
 0x4d5   : > { %v5763_v4 = vld [vmem:[#allocation3 + $0x9] sm:$0xff]  ;;  %v5150_v8 = vpop.f32.mrf.mxu1  ;;  %v13320_v21 = vpop.f32.mrf.mxu0  ;;  %v5993_v46 = vmul.f32 %v17183_v62, %v5952_v47 }
 0x4d6   : > { %v5953_v51 = vld [vmem:[#allocation3 + $0xa] sm:$0xff]  ;;  %v5804_v48 = vmul.f32 %v17161_v56, %v5763_v4  ;;  %v5845_v52 = vmul.f32 %v17149_v38, %v5763_v4  ;;  %5606 = vst.msk [vmem:[#allocation3 + $0x20] sm:$0xff] %vm4938_vm4, %v5419_v20  ;;  %v6106_v30 = vadd.f32 %v6034_v10, %v5916_v41 }
 0x4d7   : > { %v5153_v35 = vpop.f32.mrf.mxu1  ;;  %v17195_v63 = vpop.f32.mrf.mxu0  ;;  %v5646_v26 = vld [vmem:[#allocation3 + $0x10] sm:$0xff]  ;;  %v5994_v58 = vmul.f32 %v17183_v62, %v5953_v51  ;;  %v6035_v49 = vmul.f32 %v17177_v53, %v5953_v51  ;;  %v6070_v50 = vadd.f32 %v5993_v46, %v5880_v55  ;;  %v17254_v55 = vld [vmem:[%s20609_s5 + $0x6] ss:$0 sm:$0xff]  ;;  %v17271_v46 = vld [vmem:[%s20610_s6 + $0x7] ss:$0 sm:$0xff] }
 0x4d8   : > { %v5424_v37 = vadd.f32 %v5423_v45, %v5153_v35  ;;  %v5881_v23 = vadd.f32 %v5804_v48, %v5686_v2  ;;  %v5917_v31 = vadd.f32 %v5845_v52, %v5727_v61  ;;  %v5728_v9 = vmul.f32 %v17156_v0, %v5646_v26  ;;  %v17249_v52 = vld [vmem:[%s20610_s6 + $0x6] ss:$0 sm:$0xff] }
 0x4d9   : > { %v5155_v44 = vpop.f32.mrf.mxu1  ;;  %v13323_v12 = vpop.f32.mrf.mxu0  ;;  %v5954_v5 = vld [vmem:[#allocation3 + $0x12] sm:$0xff]  ;;  %v5687_v18 = vmul.f32 %v17166_v24, %v5646_v26 }
 0x4da   : > { %v6298_v25 = vld [vmem:[#allocation3 + $0x13] sm:$0xff]  ;;  %5607 = vst.msk [vmem:[#allocation3 + $0x28] sm:$0xff] %vm4938_vm4, %v5424_v37  ;;  %v6190_v45 = vmul.f32 %v17191_v28, %v5954_v5  ;;  %v6149_v1 = vmul.f32 %v17206_v15, %v5954_v5  ;;  %v6107_v20 = vadd.f32 %v6035_v49, %v5917_v31  ;;  %v6071_v57 = vadd.f32 %v5994_v58, %v5881_v23  ;;  %v17276_v23 = vld [vmem:[%s20610_s6 + $0x8] ss:$0 sm:$0xff]  ;;  %v17281_v31 = vld [vmem:[%s20609_s5 + $0x7] ss:$0 sm:$0xff] }
 0x4db   : > { %v6488_v42 = vld [vmem:[#allocation3 + $0x14] sm:$0xff]  ;;  %v5158_v29 = vpop.f32.mrf.mxu1  ;;  %v17230_v39 = vpop.f32.mrf.mxu0  ;;  %v6380_v60 = vmul.f32 %v17201_v6, %v6298_v25  ;;  %v6339_v33 = vmul.f32 %v17218_v32, %v6298_v25  ;;  %v6036_v51 = vmul.f32 %v17177_v53, %v5954_v5  ;;  %v17263_v26 = vmul.f32 %v17183_v62, %v5954_v5 }
 0x4dc   : > { %v5764_v54 = vld [vmem:[#allocation3 + $0x11] sm:$0xff]  ;;  %v6570_v17 = vmul.f32 %v17212_v3, %v6488_v42  ;;  %v5429_v34 = vadd.f32 %v17143_v16, %v5158_v29  ;;  %v6262_v13 = vadd.f32 %v6190_v45, %v6106_v30  ;;  %v6226_v59 = vadd.f32 %v6149_v1, %v6070_v50 }
 0x4dd   : > { %v6529_v19 = vmul.f32 %v17223_v14, %v6488_v42  ;;  %v17238_v22 = vld [vmem:[#allocation3 + $0x1a] sm:$0xff]  ;;  %v5160_v40 = vpop.f32.mrf.mxu1  ;;  %v13326_v7 = vpop.f32.mrf.mxu0  ;;  %v5846_v4 = vmul.f32 %v17149_v38, %v5764_v54  ;;  %v5805_v41 = vmul.f32 %v17161_v56, %v5764_v54 }
 0x4de   : > { %v6299_v11 = vld [vmem:[#allocation3 + $0x1b] sm:$0xff]  ;;  %5608 = vst.msk [vmem:[#allocation3 + $0x30] sm:$0xff] %vm4938_vm4, %v5429_v34  ;;  %v6452_v8 = vadd.f32 %v6380_v60, %v6262_v13  ;;  %v6416_v16 = vadd.f32 %v6339_v33, %v6226_v59  ;;  %v6191_v21 = vmul.f32 %v17191_v28, %v17238_v22  ;;  %v6150_v10 = vmul.f32 %v17206_v15, %v17238_v22 }
 0x4df   : > { %v6489_v47 = vld [vmem:[#allocation3 + $0x1c] sm:$0xff]  ;;  %v5163_v48 = vpop.f32.mrf.mxu1  ;;  %v17256_v2 = vpop.f32.mrf.mxu0  ;;  %v6381_v61 = vmul.f32 %v17201_v6, %v6299_v11  ;;  %v6340_v44 = vmul.f32 %v17218_v32, %v6299_v11  ;;  %v5918_v54 = vadd.f32 %v5846_v4, %v5728_v9  ;;  %v5882_v34 = vadd.f32 %v5805_v41, %v5687_v18 }
 0x4e0   : > { %v6571_v35 = vmul.f32 %v17212_v3, %v6489_v47  ;;  %v17265_v58 = vld [vmem:[#allocation3 + $0x19] sm:$0xff]  ;;  %v5434_v37 = vadd.f32 %v17151_v43, %v5163_v48  ;;  %v6263_v49 = vadd.f32 %v6191_v21, %v6107_v20  ;;  %v6530_v43 = vmul.f32 %v17223_v14, %v6489_v47 }
 0x4e1   : > { %v5165_v12 = vpop.f32.mrf.mxu1  ;;  %v17285_v5 = vld [vmem:[#allocation3 + $0x24] sm:$0xff]  ;;  %v6642_v30 = vadd.f32 %v6570_v17, %v6452_v8  ;;  %v6606_v45 = vadd.f32 %v6529_v19, %v6416_v16  ;;  %v6227_v50 = vadd.f32 %v6150_v10, %v6071_v57  ;;  %v13329_v1 = vpop.f32.mrf.mxu0  ;;  %v17295_v33 = vld [vmem:[%s20609_s5 + $0x8] ss:$0 sm:$0xff]  ;;  %v17301_v13 = vmul.f32 %v17149_v38, %v17265_v58 }
 0x4e2   : > { %v6834_v25 = vld [vmem:[#allocation3 + $0x25] sm:$0xff]  ;;  %5609 = vst.msk [vmem:[#allocation3 + $0x38] sm:$0xff] %vm4938_vm4, %v5434_v37  ;;  %v6726_v29 = vmul.f32 %v17249_v52, %v17285_v5  ;;  %v6685_v60 = vmul.f32 %v17254_v55, %v17285_v5  ;;  %v6453_v11 = vadd.f32 %v6381_v61, %v6263_v49  ;;  %v6108_v37 = vadd.f32 %v6036_v51, %v5918_v54 }
 0x4e3   : > { %v7024_v42 = vld [vmem:[#allocation3 + $0x26] sm:$0xff]  ;;  %v5168_v9 = vpop.f32.mrf.mxu1  ;;  %v6916_v59 = vmul.f32 %v17271_v46, %v6834_v25  ;;  %v6417_v40 = vadd.f32 %v6340_v44, %v6227_v50  ;;  %v17305_v7 = vpop.f32.mrf.mxu0  ;;  %v6875_v4 = vmul.f32 %v17281_v31, %v6834_v25 }
 0x4e4   : > { %v17297_v17 = vld [vmem:[#allocation3 + $0x22] sm:$0xff]  ;;  %v7106_v19 = vmul.f32 %v17276_v23, %v7024_v42  ;;  %v5439_v20 = vadd.f32 %v17170_v27, %v5168_v9  ;;  %v6798_v47 = vadd.f32 %v6726_v29, %v6642_v30  ;;  %v6762_v57 = vadd.f32 %v6685_v60, %v6606_v45 }
 0x4e5   : > { %v6300_v18 = vld [vmem:[#allocation3 + $0x23] sm:$0xff]  ;;  %v5170_v8 = vpop.f32.mrf.mxu1  ;;  %v7065_v16 = vmul.f32 %v17295_v33, %v7024_v42  ;;  %v17310_v21 = vld [vmem:[#allocation3 + $0x2c] sm:$0xff]  ;;  %v6643_v41 = vadd.f32 %v6571_v35, %v6453_v11  ;;  %v6192_v61 = vmul.f32 %v17191_v28, %v17297_v17  ;;  %v13332_v49 = vpop.f32.mrf.mxu0  ;;  %v6607_v30 = vadd.f32 %v6530_v43, %v6417_v40 }
 0x4e6   : > { %v6835_v48 = vld [vmem:[#allocation3 + $0x2d] sm:$0xff]  ;;  %5610 = vst.msk [vmem:[#allocation3 + $0x40] sm:$0xff] %vm4938_vm4, %v5439_v20  ;;  %v6988_v27 = vadd.f32 %v6916_v59, %v6798_v47  ;;  %v6952_v44 = vadd.f32 %v6875_v4, %v6762_v57  ;;  %v6727_v12 = vmul.f32 %v17249_v52, %v17310_v21  ;;  %v6686_v51 = vmul.f32 %v17254_v55, %v17310_v21  ;;  %v5647_v47 = vld [vmem:[#allocation3 + $0x18] sm:$0xff] }
 0x4e7   : > { %v7025_v10 = vld [vmem:[#allocation3 + $0x2e] sm:$0xff]  ;;  %v5173_v25 = vpop.f32.mrf.mxu1  ;;  %v6917_v42 = vmul.f32 %v17271_v46, %v6835_v48  ;;  %v6382_v45 = vmul.f32 %v17201_v6, %v6300_v18  ;;  %v17322_v50 = vpop.f32.mrf.mxu0  ;;  %v6876_v43 = vmul.f32 %v17281_v31, %v6835_v48  ;;  %v6264_v40 = vadd.f32 %v6192_v61, %v6108_v37 }
 0x4e8   : > { %v7107_v35 = vmul.f32 %v17276_v23, %v7025_v10  ;;  %v5444_v1 = vadd.f32 %v17195_v63, %v5173_v25  ;;  %v7178_v54 = vadd.f32 %v7106_v19, %v6988_v27  ;;  %v7142_v29 = vadd.f32 %v7065_v16, %v6952_v44 }
 0x4e9   : > { %v6799_v60 = vadd.f32 %v6727_v12, %v6643_v41  ;;  %v5175_v9 = vpop.f32.mrf.mxu1  ;;  %v6763_v59 = vadd.f32 %v6686_v51, %v6607_v30  ;;  %v7066_v11 = vmul.f32 %v17295_v33, %v7025_v10  ;;  %v17327_v20 = vld [vmem:[#allocation3 + $0x34] sm:$0xff]  ;;  %v13335_v57 = vpop.f32.mrf.mxu0  ;;  %v6572_v19 = vmul.f32 %v17212_v3, %v17285_v5  ;;  %v17343_v12 = vld [vmem:[#allocation3 + $0x2a] sm:$0xff] }
 0x4ea   : > { %5611 = vst.msk [vmem:[#allocation3 + $0x48] sm:$0xff] %vm4938_vm4, %v5444_v1  ;;  %13425 = vmatprep.mubr.msk.f32.mxu1 %vm4938_vm4, %v7178_v54  ;;  %13487 = vmatprep.mubr.msk.f32.mxu0 %vm4938_vm4, %v7142_v29  ;;  %v6072_v4 = vadd.f32 %v17263_v26, %v5882_v34  ;;  %v6454_v41 = vadd.f32 %v6382_v45, %v6264_v40  ;;  %v6836_v10 = vld [vmem:[#allocation3 + $0x35] sm:$0xff]  ;;  %v6301_v29 = vld [vmem:[#allocation3 + $0x2b] sm:$0xff] }
 0x4eb   : > { %v6989_v63 = vadd.f32 %v6917_v42, %v6799_v60  ;;  %v5178_v8 = vpop.f32.mrf.mxu1  ;;  %v6953_v16 = vadd.f32 %v6876_v43, %v6763_v59  ;;  %v6728_v48 = vmul.f32 %v17249_v52, %v17327_v20  ;;  %v6151_v37 = vmul.f32 %v17206_v15, %v17297_v17  ;;  %v17339_v61 = vpop.f32.mrf.mxu0  ;;  %v7026_v25 = vld [vmem:[#allocation3 + $0x36] sm:$0xff] }
 0x4ec   : > { %v5449_v49 = vadd.f32 %v17230_v39, %v5178_v8  ;;  %v5729_v44 = vmul.f32 %v17156_v0, %v5647_v47  ;;  %v6644_v30 = vadd.f32 %v6572_v19, %v6454_v41  ;;  %v6341_v51 = vmul.f32 %v17218_v32, %v6300_v18 }
 0x4ed   : > { %v7179_v27 = vadd.f32 %v7107_v35, %v6989_v63  ;;  %v5180_v26 = vpop.f32.mrf.mxu1  ;;  %v7143_v34 = vadd.f32 %v7066_v11, %v6953_v16  ;;  %v6228_v42 = vadd.f32 %v6151_v37, %v6072_v4  ;;  %v13338_v45 = vpop.f32.mrf.mxu0  ;;  %v6918_v1 = vmul.f32 %v17271_v46, %v6836_v10  ;;  %v17363_v57 = vld [vmem:[#allocation3 + $0x3c] sm:$0xff] }
 0x4ee   : > { %5612 = vst.msk [vmem:[#allocation3 + $0x50] sm:$0xff] %vm4938_vm4, %v5449_v49  ;;  %v6531_v39 = vmul.f32 %v17223_v14, %v17285_v5  ;;  %v5919_v35 = vadd.f32 %v17301_v13, %v5729_v44  ;;  %v6037_v54 = vmul.f32 %v17177_v53, %v17238_v22  ;;  %v6800_v18 = vadd.f32 %v6728_v48, %v6644_v30 }
 0x4ef   : > { %13426 = vmatmul.mubr.msk.f32.vlgmr.msra.gmra.mxu1 %vm4938_vm4, %v7179_v27  ;;  %13488 = vmatmul.mubr.msk.f32.vlgmr.msra.gmra.mxu0 %vm4938_vm4, %v7143_v34  ;;  %v5183_v60 = vpop.f32.mrf.mxu1  ;;  %v6418_v9 = vadd.f32 %v6341_v51, %v6228_v42  ;;  %v6687_v59 = vmul.f32 %v17254_v55, %v17327_v20  ;;  %v6193_v43 = vmul.f32 %v17191_v28, %v17343_v12  ;;  %v17359_v11 = vpop.f32.mrf.mxu0  ;;  %v5648_v42 = vld [vmem:[#allocation3 + $0x20] sm:$0xff] }
 0x4f0   : > { %v5454_v5 = vadd.f32 %v17256_v2, %v5183_v60  ;;  %v7108_v13 = vmul.f32 %v17276_v23, %v7026_v25  ;;  %v6109_v40 = vadd.f32 %v6037_v54, %v5919_v35  ;;  %v6990_v19 = vadd.f32 %v6918_v1, %v6800_v18  ;;  %v6837_v2 = vld [vmem:[#allocation3 + $0x3d] sm:$0xff]  ;;  %v17382_v35 = vld [vmem:[#allocation3 + $0x32] sm:$0xff] }
 0x4f1   : > { %v5185_v63 = vpop.f32.mrf.mxu1  ;;  %v6608_v4 = vadd.f32 %v6531_v39, %v6418_v9  ;;  %v6877_v8 = vmul.f32 %v17281_v31, %v6836_v10  ;;  %v6383_v16 = vmul.f32 %v17201_v6, %v6301_v29  ;;  %v13341_v41 = vpop.f32.mrf.mxu0  ;;  %v6573_v37 = vmul.f32 %v17212_v3, %v17310_v21  ;;  %v5766_v51 = vld [vmem:[#allocation3 + $0x21] sm:$0xff] }
 0x4f2   : > { %5613 = vst.msk [vmem:[#allocation3 + $0x58] sm:$0xff] %vm4938_vm4, %v5454_v5  ;;  %v6265_v48 = vadd.f32 %v6193_v43, %v6109_v40  ;;  %v5688_v49 = vmul.f32 %v17166_v24, %v5647_v47  ;;  %v5806_v27 = vmul.f32 %v17161_v56, %v17265_v58  ;;  %v7180_v44 = vadd.f32 %v7108_v13, %v6990_v19 }
 0x4f3   : > { %v6764_v26 = vadd.f32 %v6687_v59, %v6608_v4  ;;  %v5188_v34 = vpop.f32.mrf.mxu1  ;;  %v6729_v10 = vmul.f32 %v17249_v52, %v17363_v57  ;;  %v5996_v30 = vmul.f32 %v17183_v62, %v17238_v22  ;;  %v17377_v45 = vpop.f32.mrf.mxu0  ;;  %v6152_v58 = vmul.f32 %v17206_v15, %v17343_v12 }
 0x4f4   : > { %v5459_v1 = vadd.f32 %v17305_v7, %v5188_v34  ;;  %v6455_v39 = vadd.f32 %v6383_v16, %v6265_v48  ;;  %v5883_v47 = vadd.f32 %v5806_v27, %v5688_v49  ;;  %13428 = vmatprep.mubr.msk.f32.mxu1 %vm4938_vm4, %v7180_v44  ;;  %v7067_v60 = vmul.f32 %v17295_v33, %v7026_v25  ;;  %v7027_v7 = vld [vmem:[#allocation3 + $0x3e] sm:$0xff]  ;;  %v6302_v49 = vld [vmem:[#allocation3 + $0x33] sm:$0xff] }
 0x4f5   : > { %v6954_v54 = vadd.f32 %v6877_v8, %v6764_v26  ;;  %v5190_v18 = vpop.f32.mrf.mxu1  ;;  %v6919_v22 = vmul.f32 %v17271_v46, %v6837_v2  ;;  %v13344_v9 = vpop.f32.mrf.mxu0  ;;  %v5730_v5 = vmul.f32 %v17156_v0, %v5648_v42  ;;  %v5848_v13 = vmul.f32 %v17149_v38, %v5766_v51 }
 0x4f6   : > { %5614 = vst.msk [vmem:[#allocation3 + $0x60] sm:$0xff] %vm4938_vm4, %v5459_v1  ;;  %v6645_v59 = vadd.f32 %v6573_v37, %v6455_v39  ;;  %v6073_v43 = vadd.f32 %v5996_v30, %v5883_v47  ;;  %v6342_v63 = vmul.f32 %v17218_v32, %v6301_v29  ;;  %v6038_v25 = vmul.f32 %v17177_v53, %v17297_v17  ;;  %v17406_v39 = vld [vmem:[#allocation3 + $0x44] sm:$0xff] }
 0x4f7   : > { %v7144_v40 = vadd.f32 %v7067_v60, %v6954_v54  ;;  %v5193_v19 = vpop.f32.mrf.mxu1  ;;  %v6194_v4 = vmul.f32 %v17191_v28, %v17382_v35  ;;  %v17395_v8 = vpop.f32.mrf.mxu0  ;;  %v5920_v37 = vadd.f32 %v5848_v13, %v5730_v5  ;;  %v7109_v27 = vmul.f32 %v17276_v23, %v7027_v7  ;;  %v6838_v54 = vld [vmem:[#allocation3 + $0x45] sm:$0xff] }
 0x4f8   : > { %v6801_v16 = vadd.f32 %v6729_v10, %v6645_v59  ;;  %v6229_v41 = vadd.f32 %v6152_v58, %v6073_v43  ;;  %v5464_v48 = vadd.f32 %v17322_v50, %v5193_v19  ;;  %v6532_v29 = vmul.f32 %v17223_v14, %v17310_v21  ;;  %v7028_v5 = vld [vmem:[#allocation3 + $0x46] sm:$0xff] }
 0x4f9   : > { %13490 = vmatprep.mubr.msk.f32.mxu0 %vm4938_vm4, %v7144_v40  ;;  %v6688_v44 = vmul.f32 %v17254_v55, %v17363_v57  ;;  %v5195_v26 = vpop.f32.mrf.mxu1  ;;  %v13347_v34 = vpop.f32.mrf.mxu0  ;;  %v6878_v10 = vmul.f32 %v17281_v31, %v6837_v2  ;;  %v6110_v50 = vadd.f32 %v6038_v25, %v5920_v37  ;;  %v7068_v47 = vmul.f32 %v17295_v33, %v7027_v7  ;;  %v5649_v13 = vld [vmem:[#allocation3 + $0x28] sm:$0xff]  ;;  %v17425_v37 = vld [vmem:[#allocation3 + $0x3a] sm:$0xff] }
 0x4fa   : > { %v6991_v30 = vadd.f32 %v6919_v22, %v6801_v16  ;;  %v6419_v1 = vadd.f32 %v6342_v63, %v6229_v41  ;;  %5615 = vst.msk [vmem:[#allocation3 + $0x68] sm:$0xff] %vm4938_vm4, %v5464_v48  ;;  %v6384_v58 = vmul.f32 %v17201_v6, %v6302_v49  ;;  %v5689_v21 = vmul.f32 %v17166_v24, %v5648_v42  ;;  %v5767_v40 = vld [vmem:[#allocation3 + $0x29] sm:$0xff] }
 0x4fb   : > { %v5807_v60 = vmul.f32 %v17161_v56, %v5766_v51  ;;  %v5198_v18 = vpop.f32.mrf.mxu1  ;;  %v17412_v9 = vpop.f32.mrf.mxu0  ;;  %v6266_v2 = vadd.f32 %v6194_v4, %v6110_v50  ;;  %v6574_v43 = vmul.f32 %v17212_v3, %v17327_v20  ;;  %v6730_v7 = vmul.f32 %v17249_v52, %v17406_v39 }
 0x4fc   : > { %v7181_v22 = vadd.f32 %v7109_v27, %v6991_v30  ;;  %v6609_v59 = vadd.f32 %v6532_v29, %v6419_v1  ;;  %v5997_v42 = vmul.f32 %v17183_v62, %v17297_v17  ;;  %v6153_v51 = vmul.f32 %v17206_v15, %v17382_v35 }
 0x4fd   : > { %v5884_v63 = vadd.f32 %v5807_v60, %v5689_v21  ;;  %v5200_v19 = vpop.f32.mrf.mxu1  ;;  %v13350_v25 = vpop.f32.mrf.mxu0  ;;  %v6456_v16 = vadd.f32 %v6384_v58, %v6266_v2  ;;  %v6920_v41 = vmul.f32 %v17271_v46, %v6838_v54  ;;  %v5469_v48 = vadd.f32 %v17339_v61, %v5198_v18 }
 0x4fe   : > { %13429 = vmatmul.mubr.msk.f32.gmra.mxu1 %vm4938_vm4, %v7181_v22  ;;  %v6765_v4 = vadd.f32 %v6688_v44, %v6609_v59  ;;  %v7110_v27 = vmul.f32 %v17276_v23, %v7028_v5  ;;  %v5731_v17 = vmul.f32 %v17156_v0, %v5649_v13  ;;  %v5849_v26 = vmul.f32 %v17149_v38, %v5767_v40  ;;  %v6303_v22 = vld [vmem:[#allocation3 + $0x3b] sm:$0xff] }
 0x4ff   : > { %v6074_v29 = vadd.f32 %v5997_v42, %v5884_v63  ;;  %v5203_v34 = vpop.f32.mrf.mxu1  ;;  %v17430_v30 = vpop.f32.mrf.mxu0  ;;  %v6646_v50 = vadd.f32 %v6574_v43, %v6456_v16  ;;  %v6343_v44 = vmul.f32 %v17218_v32, %v6302_v49  ;;  %v6533_v58 = vmul.f32 %v17223_v14, %v17327_v20  ;;  %5616 = vst.msk [vmem:[#allocation3 + $0x70] sm:$0xff] %vm4938_vm4, %v5469_v48 }
 0x500   : > { %v6955_v1 = vadd.f32 %v6878_v10, %v6765_v4  ;;  %v5921_v21 = vadd.f32 %v5849_v26, %v5731_v17  ;;  %v6039_v60 = vmul.f32 %v17177_v53, %v17343_v12  ;;  %v6195_v18 = vmul.f32 %v17191_v28, %v17425_v37 }
 0x501   : > { %v6230_v61 = vadd.f32 %v6153_v51, %v6074_v29  ;;  %v5205_v59 = vpop.f32.mrf.mxu1  ;;  %v13353_v2 = vpop.f32.mrf.mxu0  ;;  %v6802_v43 = vadd.f32 %v6730_v7, %v6646_v50  ;;  %v6689_v49 = vmul.f32 %v17254_v55, %v17406_v39  ;;  %v6879_v20 = vmul.f32 %v17281_v31, %v6838_v54  ;;  %v17443_v51 = vld [vmem:[#allocation3 + $0x4c] sm:$0xff] }
 0x502   : > { %v7145_v10 = vadd.f32 %v7068_v47, %v6955_v1  ;;  %v6111_v42 = vadd.f32 %v6039_v60, %v5921_v21  ;;  %v5690_v19 = vmul.f32 %v17166_v24, %v5649_v13  ;;  %v5808_v25 = vmul.f32 %v17161_v56, %v5767_v40  ;;  %v6839_v54 = vld [vmem:[#allocation3 + $0x4d] sm:$0xff] }
 0x503   : > { %v6420_v63 = vadd.f32 %v6343_v44, %v6230_v61  ;;  %v17447_v4 = vpop.f32.mrf.mxu1  ;;  %v17449_v16 = vpop.f32.mrf.mxu0  ;;  %v6992_v47 = vadd.f32 %v6920_v41, %v6802_v43  ;;  %v7069_v7 = vmul.f32 %v17295_v33, %v7028_v5  ;;  %v6385_v48 = vmul.f32 %v17201_v6, %v6303_v22  ;;  %v7029_v13 = vld [vmem:[#allocation3 + $0x4e] sm:$0xff] }
 0x504   : > { %13491 = vmatmul.mubr.msk.f32.gmra.mxu0 %vm4938_vm4, %v7145_v10  ;;  %v5998_v29 = vmul.f32 %v17183_v62, %v17343_v12  ;;  %v6267_v26 = vadd.f32 %v6195_v18, %v6111_v42  ;;  %v5885_v1 = vadd.f32 %v5808_v25, %v5690_v19  ;;  %v6154_v40 = vmul.f32 %v17206_v15, %v17425_v37  ;;  %v5650_v50 = vld [vmem:[#allocation3 + $0x30] sm:$0xff]  ;;  %v17464_v10 = vld [vmem:[#allocation3 + $0x42] sm:$0xff] }
 0x505   : > { %v6610_v17 = vadd.f32 %v6533_v58, %v6420_v63  ;;  %v5768_v44 = vld [vmem:[#allocation3 + $0x31] sm:$0xff]  ;;  %v5210_v61 = vpop.f32.mrf.mxu1  ;;  %v13356_v21 = vpop.f32.mrf.mxu0  ;;  %v7182_v41 = vadd.f32 %v7110_v27, %v6992_v47  ;;  %v6575_v5 = vmul.f32 %v17212_v3, %v17363_v57  ;;  %v6731_v60 = vmul.f32 %v17249_v52, %v17443_v51 }
 0x506   : > { %v5474_v12 = vadd.f32 %v17359_v11, %v5203_v34  ;;  %v6457_v18 = vadd.f32 %v6385_v48, %v6267_v26  ;;  %v6921_v59 = vmul.f32 %v17271_v46, %v6839_v54  ;;  %v6075_v2 = vadd.f32 %v5998_v29, %v5885_v1  ;;  %v6304_v61 = vld [vmem:[#allocation3 + $0x43] sm:$0xff] }
 0x507   : > { %v6766_v58 = vadd.f32 %v6689_v49, %v6610_v17  ;;  %v17466_v43 = vpop.f32.mrf.mxu1  ;;  %v17468_v63 = vpop.f32.mrf.mxu0  ;;  %13431 = vmatprep.mubr.msk.f32.mxu1 %vm4938_vm4, %v7182_v41  ;;  %v7111_v27 = vmul.f32 %v17276_v23, %v7029_v13  ;;  %v6344_v42 = vmul.f32 %v17218_v32, %v6303_v22  ;;  %v5732_v11 = vmul.f32 %v17156_v0, %v5650_v50 }
 0x508   : > { %5617 = vst.msk [vmem:[#allocation3 + $0x78] sm:$0xff] %vm4938_vm4, %v5474_v12  ;;  %v5850_v34 = vmul.f32 %v17149_v38, %v5768_v44  ;;  %v6647_v19 = vadd.f32 %v6575_v5, %v6457_v18  ;;  %v6231_v25 = vadd.f32 %v6154_v40, %v6075_v2  ;;  %v6534_v47 = vmul.f32 %v17223_v14, %v17363_v57  ;;  %v17490_v18 = vld [vmem:[#allocation3 + $0x54] sm:$0xff] }
 0x509   : > { %v6956_v49 = vadd.f32 %v6879_v20, %v6766_v58  ;;  %v5215_v48 = vpop.f32.mrf.mxu1  ;;  %v13359_v29 = vpop.f32.mrf.mxu0  ;;  %v6690_v17 = vmul.f32 %v17254_v55, %v17443_v51  ;;  %v6040_v22 = vmul.f32 %v17177_v53, %v17382_v35  ;;  %v6196_v1 = vmul.f32 %v17191_v28, %v17464_v10 }
 0x50a   : > { %v5922_v26 = vadd.f32 %v5850_v34, %v5732_v11  ;;  %v6803_v20 = vadd.f32 %v6731_v60, %v6647_v19  ;;  %v6421_v41 = vadd.f32 %v6344_v42, %v6231_v25  ;;  %v6880_v40 = vmul.f32 %v17281_v31, %v6839_v54  ;;  %v5651_v34 = vld [vmem:[#allocation3 + $0x38] sm:$0xff] }
 0x50b   : > { %v7146_v21 = vadd.f32 %v7069_v7, %v6956_v49  ;;  %v17485_v5 = vpop.f32.mrf.mxu1  ;;  %v17487_v57 = vpop.f32.mrf.mxu0  ;;  %v7070_v12 = vmul.f32 %v17295_v33, %v7029_v13  ;;  %v5691_v2 = vmul.f32 %v17166_v24, %v5650_v50  ;;  %v5809_v11 = vmul.f32 %v17161_v56, %v5768_v44  ;;  %v5769_v49 = vld [vmem:[#allocation3 + $0x39] sm:$0xff] }
 0x50c   : > { %v6112_v58 = vadd.f32 %v6040_v22, %v5922_v26  ;;  %v6993_v7 = vadd.f32 %v6921_v59, %v6803_v20  ;;  %v6611_v60 = vadd.f32 %v6534_v47, %v6421_v41  ;;  %v6386_v42 = vmul.f32 %v17201_v6, %v6304_v61  ;;  %v6840_v48 = vld [vmem:[#allocation3 + $0x55] sm:$0xff] }
 0x50d   : > { %13493 = vmatprep.mubr.msk.f32.mxu0 %vm4938_vm4, %v7146_v21  ;;  %v6576_v54 = vmul.f32 %v17212_v3, %v17406_v39  ;;  %v5220_v19 = vpop.f32.mrf.mxu1  ;;  %v13362_v13 = vpop.f32.mrf.mxu0  ;;  %v5886_v29 = vadd.f32 %v5809_v11, %v5691_v2  ;;  %v5999_v50 = vmul.f32 %v17183_v62, %v17382_v35  ;;  %v6155_v44 = vmul.f32 %v17206_v15, %v17464_v10  ;;  %v17506_v21 = vld [vmem:[#allocation3 + $0x4a] sm:$0xff] }
 0x50e   : > { %v6268_v25 = vadd.f32 %v6196_v1, %v6112_v58  ;;  %v7183_v59 = vadd.f32 %v7111_v27, %v6993_v7  ;;  %v6767_v47 = vadd.f32 %v6690_v17, %v6611_v60  ;;  %v6732_v26 = vmul.f32 %v17249_v52, %v17490_v18  ;;  %v7030_v58 = vld [vmem:[#allocation3 + $0x56] sm:$0xff] }
 0x50f   : > { %v5479_v22 = vadd.f32 %v17377_v45, %v17447_v4  ;;  %v17508_v20 = vpop.f32.mrf.mxu1  ;;  %v17510_v1 = vpop.f32.mrf.mxu0  ;;  %v6076_v35 = vadd.f32 %v5999_v50, %v5886_v29  ;;  %v5733_v2 = vmul.f32 %v17156_v0, %v5651_v34  ;;  %v5851_v27 = vmul.f32 %v17149_v38, %v5769_v49  ;;  %v6305_v29 = vld [vmem:[#allocation3 + $0x4b] sm:$0xff] }
 0x510   : > { %20964 = vst [vmem:[#allocation54_spill] sm:$0xff] %v17510_v1  ;;  %v6458_v41 = vadd.f32 %v6386_v42, %v6268_v25  ;;  %13432 = vmatmul.mubr.msk.f32.gmra.mxu1 %vm4938_vm4, %v7183_v59  ;;  %v6957_v17 = vadd.f32 %v6880_v40, %v6767_v47  ;;  %v6922_v11 = vmul.f32 %v17271_v46, %v6840_v48 }
 0x511   : > { %v6345_v45 = vmul.f32 %v17218_v32, %v6304_v61  ;;  %5618 = vst.msk [vmem:[#allocation3 + $0x80] sm:$0xff] %vm4938_vm4, %v5479_v22  ;;  %v6041_v4 = vmul.f32 %v17177_v53, %v17425_v37  ;;  %v5225_v7 = vpop.f32.mrf.mxu1  ;;  %v13365_v60 = vpop.f32.mrf.mxu0  ;;  %v6232_v19 = vadd.f32 %v6155_v44, %v6076_v35  ;;  %v5923_v13 = vadd.f32 %v5851_v27, %v5733_v2  ;;  %v17532_v2 = vld [vmem:[#allocation3 + $0x5c] sm:$0xff] }
 0x512   : > { %v6648_v42 = vadd.f32 %v6576_v54, %v6458_v41  ;;  %v6197_v25 = vmul.f32 %v17191_v28, %v17506_v21  ;;  %v7147_v50 = vadd.f32 %v7070_v12, %v6957_v17  ;;  %v7112_v40 = vmul.f32 %v17276_v23, %v7030_v58 }
 0x513   : > { %v6535_v61 = vmul.f32 %v17223_v14, %v17406_v39  ;;  %v6691_v59 = vmul.f32 %v17254_v55, %v17490_v18  ;;  %v17527_v47 = vpop.f32.mrf.mxu1  ;;  %v17529_v22 = vpop.f32.mrf.mxu0  ;;  %v6422_v44 = vadd.f32 %v6345_v45, %v6232_v19  ;;  %v6881_v41 = vmul.f32 %v17281_v31, %v6840_v48  ;;  %v5770_v19 = vld [vmem:[#allocation3 + $0x41] sm:$0xff] }
 0x514   : > { %20965 = vst [vmem:[#allocation56_spill] sm:$0xff] %v17529_v22  ;;  %v6804_v54 = vadd.f32 %v6732_v26, %v6648_v42  ;;  %v6113_v35 = vadd.f32 %v6041_v4, %v5923_v13  ;;  %13494 = vmatmul.mubr.msk.f32.gmra.mxu0 %vm4938_vm4, %v7147_v50  ;;  %v7071_v12 = vmul.f32 %v17295_v33, %v7030_v58  ;;  %v6841_v4 = vld [vmem:[#allocation3 + $0x5d] sm:$0xff] }
 0x515   : > { %v6387_v39 = vmul.f32 %v17201_v6, %v6305_v29  ;;  %v5692_v27 = vmul.f32 %v17166_v24, %v5651_v34  ;;  %v5810_v17 = vmul.f32 %v17161_v56, %v5769_v49  ;;  %v5230_v7 = vpop.f32.mrf.mxu1  ;;  %v13368_v60 = vpop.f32.mrf.mxu0  ;;  %v6612_v26 = vadd.f32 %v6535_v61, %v6422_v44  ;;  %v5652_v42 = vld [vmem:[#allocation3 + $0x40] sm:$0xff] }
 0x516   : > { %v6994_v36 = vadd.f32 %v6922_v11, %v6804_v54  ;;  %v6269_v45 = vadd.f32 %v6197_v25, %v6113_v35  ;;  %v6577_v48 = vmul.f32 %v17212_v3, %v17443_v51  ;;  %v6733_v58 = vmul.f32 %v17249_v52, %v17532_v2  ;;  %v7031_v13 = vld [vmem:[#allocation3 + $0x5e] sm:$0xff]  ;;  %v17553_v7 = vld [vmem:[#allocation3 + $0x52] sm:$0xff] }
 0x517   : > { %v5887_v50 = vadd.f32 %v5810_v17, %v5692_v27  ;;  %v6000_v34 = vmul.f32 %v17183_v62, %v17425_v37  ;;  %v6156_v49 = vmul.f32 %v17206_v15, %v17506_v21  ;;  %v17547_v11 = vpop.f32.mrf.mxu1  ;;  %v17549_v25 = vpop.f32.mrf.mxu0  ;;  %v6768_v54 = vadd.f32 %v6691_v59, %v6612_v26 }
 0x518   : > { %20966 = vst [vmem:[#allocation52_spill] sm:$0xff] %v17549_v25  ;;  %v7184_v61 = vadd.f32 %v7112_v40, %v6994_v36  ;;  %v6459_v44 = vadd.f32 %v6387_v39, %v6269_v45  ;;  %v5484_v35 = vadd.f32 %v17395_v8, %v17466_v43  ;;  %v6923_v27 = vmul.f32 %v17271_v46, %v6841_v4 }
 0x519   : > { %v6077_v17 = vadd.f32 %v6000_v34, %v5887_v50  ;;  %v5734_v37 = vmul.f32 %v17156_v0, %v5652_v42  ;;  %v5852_v60 = vmul.f32 %v17149_v38, %v5770_v19  ;;  %v5235_v22 = vpop.f32.mrf.mxu1  ;;  %v13371_v1 = vpop.f32.mrf.mxu0  ;;  %v6958_v25 = vadd.f32 %v6881_v41, %v6768_v54 }
 0x51a   : > { %13434 = vmatprep.mubr.msk.f32.mxu1 %vm4938_vm4, %v7184_v61  ;;  %v6649_v36 = vadd.f32 %v6577_v48, %v6459_v44  ;;  %v7113_v40 = vmul.f32 %v17276_v23, %v7031_v13  ;;  %v6346_v59 = vmul.f32 %v17218_v32, %v6305_v29  ;;  %5619 = vst.msk [vmem:[#allocation3 + $0x88] sm:$0xff] %vm4938_vm4, %v5484_v35  ;;  %v6306_v22 = vld [vmem:[#allocation3 + $0x53] sm:$0xff]  ;;  %v17574_v61 = vld [vmem:[#allocation3 + $0x64] sm:$0xff] }
 0x51b   : > { %v6233_v8 = vadd.f32 %v6156_v49, %v6077_v17  ;;  %v5924_v43 = vadd.f32 %v5852_v60, %v5734_v37  ;;  %v6042_v39 = vmul.f32 %v17177_v53, %v17464_v10  ;;  %v6198_v26 = vmul.f32 %v17191_v28, %v17553_v7  ;;  %v17566_v1 = vpop.f32.mrf.mxu1  ;;  %v17568_v45 = vpop.f32.mrf.mxu0  ;;  %v5653_v37 = vld [vmem:[#allocation3 + $0x48] sm:$0xff] }
 0x51c   : > { %v7148_v41 = vadd.f32 %v7071_v12, %v6958_v25  ;;  %v6805_v48 = vadd.f32 %v6733_v58, %v6649_v36  ;;  %v6536_v29 = vmul.f32 %v17223_v14, %v17443_v51  ;;  %v6692_v50 = vmul.f32 %v17254_v55, %v17532_v2 }
 0x51d   : > { %v6423_v34 = vadd.f32 %v6346_v59, %v6233_v8  ;;  %v6114_v49 = vadd.f32 %v6042_v39, %v5924_v43  ;;  %v5693_v54 = vmul.f32 %v17166_v24, %v5652_v42  ;;  %v5811_v44 = vmul.f32 %v17161_v56, %v5770_v19  ;;  %v5240_v35 = vpop.f32.mrf.mxu1  ;;  %v13374_v17 = vpop.f32.mrf.mxu0  ;;  %v6842_v59 = vld [vmem:[#allocation3 + $0x65] sm:$0xff] }
 0x51e   : > { %13496 = vmatprep.mubr.msk.f32.mxu0 %vm4938_vm4, %v7148_v41  ;;  %v6995_v12 = vadd.f32 %v6923_v27, %v6805_v48  ;;  %v6882_v58 = vmul.f32 %v17281_v31, %v6841_v4  ;;  %v6388_v51 = vmul.f32 %v17201_v6, %v6306_v22  ;;  %v6001_v25 = vmul.f32 %v17183_v62, %v17464_v10  ;;  %v7032_v8 = vld [vmem:[#allocation3 + $0x66] sm:$0xff] }
 0x51f   : > { %v6613_v60 = vadd.f32 %v6536_v29, %v6423_v34  ;;  %v6270_v36 = vadd.f32 %v6198_v26, %v6114_v49  ;;  %v5888_v24 = vadd.f32 %v5811_v44, %v5693_v54  ;;  %v6157_v56 = vmul.f32 %v17206_v15, %v17553_v7  ;;  %v5771_v42 = vld [vmem:[#allocation3 + $0x49] sm:$0xff]  ;;  %v17585_v19 = vpop.f32.mrf.mxu1  ;;  %v17587_v27 = vpop.f32.mrf.mxu0  ;;  %v17596_v29 = vld [vmem:[#allocation3 + $0x5a] sm:$0xff] }
 0x520   : > { %v7185_v4 = vadd.f32 %v7113_v40, %v6995_v12  ;;  %v7072_v43 = vmul.f32 %v17295_v33, %v7031_v13  ;;  %v6578_v62 = vmul.f32 %v17212_v3, %v17490_v18  ;;  %v6734_v10 = vmul.f32 %v17249_v52, %v17574_v61 }
 0x521   : > { %v6769_v39 = vadd.f32 %v6692_v50, %v6613_v60  ;;  %v6460_v26 = vadd.f32 %v6388_v51, %v6270_v36  ;;  %v6078_v41 = vadd.f32 %v6001_v25, %v5888_v24  ;;  %v5489_v48 = vadd.f32 %v17412_v9, %v17485_v5  ;;  %v5245_v34 = vpop.f32.mrf.mxu1  ;;  %v13377_v49 = vpop.f32.mrf.mxu0 }
 0x522   : > { %13435 = vmatmul.mubr.msk.f32.gmra.mxu1 %vm4938_vm4, %v7185_v4  ;;  %v6924_v13 = vmul.f32 %v17271_v46, %v6842_v59  ;;  %v7114_v40 = vmul.f32 %v17276_v23, %v7032_v8  ;;  %v5735_v54 = vmul.f32 %v17156_v0, %v5653_v37  ;;  %v5853_v44 = vmul.f32 %v17149_v38, %v5771_v42  ;;  %v7033_v49 = vld [vmem:[#allocation3 + $0x6e] sm:$0xff] }
 0x523   : > { %v6959_v50 = vadd.f32 %v6882_v58, %v6769_v39  ;;  %v6650_v35 = vadd.f32 %v6578_v62, %v6460_v26  ;;  %v6234_v17 = vadd.f32 %v6157_v56, %v6078_v41  ;;  %v6347_v12 = vmul.f32 %v17218_v32, %v6306_v22  ;;  %5620 = vst.msk [vmem:[#allocation3 + $0x90] sm:$0xff] %vm4938_vm4, %v5489_v48  ;;  %v17605_v9 = vpop.f32.mrf.mxu1  ;;  %v17607_v5 = vpop.f32.mrf.mxu0  ;;  %v6307_v58 = vld [vmem:[#allocation3 + $0x5b] sm:$0xff]  ;;  %v6843_v41 = vld [vmem:[#allocation3 + $0x6d] sm:$0xff] }
 0x524   : > { %20967 = vst [vmem:[#allocation49_spill] sm:$0xff] %v17607_v5  ;;  %v6537_v51 = vmul.f32 %v17223_v14, %v17490_v18  ;;  %v5925_v25 = vadd.f32 %v5853_v44, %v5735_v54  ;;  %v6043_v0 = vmul.f32 %v17177_v53, %v17506_v21  ;;  %v6199_v38 = vmul.f32 %v17191_v28, %v17596_v29  ;;  %v17618_v14 = vld [vmem:[#allocation3 + $0x6c] sm:$0xff]  ;;  %v17623_v53 = vld [vmem:[%s20609_s5] ss:$0 sm:$0xff]  ;;  %v17629_v18 = vld [vmem:[%s20609_s5 + $0x1] ss:$0 sm:$0xff] }
 0x525   : > { %v7149_v60 = vadd.f32 %v7072_v43, %v6959_v50  ;;  %v6806_v36 = vadd.f32 %v6734_v10, %v6650_v35  ;;  %v6424_v32 = vadd.f32 %v6347_v12, %v6234_v17  ;;  %v6693_v22 = vmul.f32 %v17254_v55, %v17574_v61  ;;  %v5250_v24 = vpop.f32.mrf.mxu1  ;;  %v13380_v56 = vpop.f32.mrf.mxu0  ;;  %v5772_v44 = vld [vmem:[#allocation3 + $0x51] sm:$0xff] }
 0x526   : > { %v6883_v4 = vmul.f32 %v17281_v31, %v6842_v59  ;;  %v6115_v62 = vadd.f32 %v6043_v0, %v5925_v25  ;;  %v5694_v28 = vmul.f32 %v17623_v53, %v5653_v37  ;;  %v5812_v43 = vmul.f32 %v17629_v18, %v5771_v42  ;;  %v17642_v42 = vld [vmem:[%s20609_s5 + $0x2] ss:$0 sm:$0xff]  ;;  %v17678_v24 = vld [vmem:[%s20609_s5 + $0x4] ss:$0 sm:$0xff] }
 0x527   : > { %13497 = vmatmul.mubr.msk.f32.gmra.mxu0 %vm4938_vm4, %v7149_v60  ;;  %v6996_v59 = vadd.f32 %v6924_v13, %v6806_v36  ;;  %v6614_v10 = vadd.f32 %v6537_v51, %v6424_v32  ;;  %v7073_v39 = vmul.f32 %v17295_v33, %v7032_v8  ;;  %v6389_v26 = vmul.f32 %v17201_v6, %v6307_v58  ;;  %v17635_v48 = vpop.f32.mrf.mxu1  ;;  %v17637_v34 = vpop.f32.mrf.mxu0  ;;  %v5654_v6 = vld [vmem:[#allocation3 + $0x50] sm:$0xff] }
 0x528   : > { %20968 = vst [vmem:[#allocation46_spill] sm:$0xff] %v17637_v34  ;;  %v6271_v37 = vadd.f32 %v6199_v38, %v6115_v62  ;;  %v5889_v54 = vadd.f32 %v5812_v43, %v5694_v28  ;;  %v6002_v13 = vmul.f32 %v17642_v42, %v17506_v21  ;;  %v6158_v8 = vmul.f32 %v17206_v15, %v17596_v29  ;;  %v17655_v15 = vld [vmem:[#allocation3 + $0x62] sm:$0xff] }
 0x529   : > { %v7186_v50 = vadd.f32 %v7114_v40, %v6996_v59  ;;  %v6770_v35 = vadd.f32 %v6693_v22, %v6614_v10  ;;  %v6579_v17 = vmul.f32 %v17212_v3, %v17532_v2  ;;  %v6735_v12 = vmul.f32 %v17249_v52, %v17618_v14  ;;  %v5255_v51 = vpop.f32.mrf.mxu1  ;;  %v13383_v25 = vpop.f32.mrf.mxu0  ;;  %v17662_v3 = vld [vmem:[%s20610_s6] ss:$0 sm:$0xff]  ;;  %v17692_v59 = vld [vmem:[%s20610_s6 + $0x2] ss:$0 sm:$0xff]  ;;  %v17699_v10 = vld [vmem:[%s20610_s6 + $0x3] ss:$0 sm:$0xff] }
 0x52a   : > { %v6461_v0 = vadd.f32 %v6389_v26, %v6271_v37  ;;  %v6925_v38 = vmul.f32 %v17271_v46, %v6843_v41  ;;  %v6079_v60 = vadd.f32 %v6002_v13, %v5889_v54  ;;  %v5494_v21 = vadd.f32 %v17430_v30, %v17508_v20  ;;  %v17668_v46 = vld [vmem:[%s20610_s6 + $0x1] ss:$0 sm:$0xff]  ;;  %v6308_v26 = vld [vmem:[#allocation3 + $0x63] sm:$0xff] }
 0x52b   : > { %13437 = vmatprep.mubr.msk.f32.mxu1 %vm4938_vm4, %v7186_v50  ;;  %v6960_v40 = vadd.f32 %v6883_v4, %v6770_v35  ;;  %v7115_v36 = vmul.f32 %v17276_v23, %v7033_v49  ;;  %v5736_v52 = vmul.f32 %v17662_v3, %v5654_v6  ;;  %v5854_v30 = vmul.f32 %v17668_v46, %v5772_v44  ;;  %v17671_v20 = vpop.f32.mrf.mxu1  ;;  %v17673_v32 = vpop.f32.mrf.mxu0  ;;  %v17684_v4 = vld [vmem:[%s20609_s5 + $0x5] ss:$0 sm:$0xff]  ;;  %v17708_v51 = vld [vmem:[#allocation3 + $0x74] sm:$0xff] }
 0x52c   : > { %20969 = vst [vmem:[#allocation44_spill] sm:$0xff] %v17673_v32  ;;  %v6651_v22 = vadd.f32 %v6579_v17, %v6461_v0  ;;  %v6235_v23 = vadd.f32 %v6158_v8, %v6079_v60  ;;  %v6348_v56 = vmul.f32 %v17678_v24, %v6307_v58  ;;  %v6538_v62 = vmul.f32 %v17684_v4, %v17532_v2 }
 0x52d   : > { %5621 = vst.msk [vmem:[#allocation3 + $0x98] sm:$0xff] %vm4938_vm4, %v5494_v21  ;;  %v7150_v28 = vadd.f32 %v7073_v39, %v6960_v40  ;;  %v5926_v43 = vadd.f32 %v5854_v30, %v5736_v52  ;;  %v6044_v58 = vmul.f32 %v17692_v59, %v17553_v7  ;;  %v6200_v2 = vmul.f32 %v17699_v10, %v17655_v15  ;;  %v5260_v37 = vpop.f32.mrf.mxu1  ;;  %v13386_v39 = vpop.f32.mrf.mxu0 }
 0x52e   : > { %v6807_v54 = vadd.f32 %v6735_v12, %v6651_v22  ;;  %v6425_v13 = vadd.f32 %v6348_v56, %v6235_v23  ;;  %v6694_v8 = vmul.f32 %v17254_v55, %v17618_v14  ;;  %v6884_v50 = vmul.f32 %v17281_v31, %v6843_v41  ;;  %v17719_v55 = vld [vmem:[%s20610_s6 + $0x4] ss:$0 sm:$0xff]  ;;  %v17734_v22 = vld [vmem:[%s20609_s5 + $0x3] ss:$0 sm:$0xff]  ;;  %v17747_v37 = vld [vmem:[#allocation3 + $0x6a] sm:$0xff] }
 0x52f   : > { %13499 = vmatprep.mubr.msk.f32.mxu0 %vm4938_vm4, %v7150_v28  ;;  %v7074_v35 = vmul.f32 %v17295_v33, %v7033_v49  ;;  %v6116_v17 = vadd.f32 %v6044_v58, %v5926_v43  ;;  %v5695_v25 = vmul.f32 %v17623_v53, %v5654_v6  ;;  %v5813_v0 = vmul.f32 %v17629_v18, %v5772_v44  ;;  %v17712_v60 = vpop.f32.mrf.mxu1  ;;  %v17714_v12 = vpop.f32.mrf.mxu0  ;;  %v17725_v33 = vld [vmem:[%s20610_s6 + $0x5] ss:$0 sm:$0xff]  ;;  %v17741_v58 = vld [vmem:[%s20610_s6 + $0x6] ss:$0 sm:$0xff] }
 0x530   : > { %20970 = vst [vmem:[#allocation42_spill] sm:$0xff] %v17714_v12  ;;  %v6997_v21 = vadd.f32 %v6925_v38, %v6807_v54  ;;  %v6615_v40 = vadd.f32 %v6538_v62, %v6425_v13  ;;  %v6390_v31 = vmul.f32 %v17719_v55, %v6308_v26  ;;  %v6580_v41 = vmul.f32 %v17725_v33, %v17574_v61  ;;  %v5655_v49 = vld [vmem:[#allocation3 + $0x58] sm:$0xff]  ;;  %v5774_v12 = vld [vmem:[#allocation3 + $0x61] sm:$0xff] }
 0x531   : > { %v5773_v6 = vld [vmem:[#allocation3 + $0x59] sm:$0xff]  ;;  %v6272_v44 = vadd.f32 %v6200_v2, %v6116_v17  ;;  %v5890_v52 = vadd.f32 %v5813_v0, %v5695_v25  ;;  %v6003_v30 = vmul.f32 %v17642_v42, %v17553_v7  ;;  %v6159_v23 = vmul.f32 %v17734_v22, %v17655_v15  ;;  %v5265_v56 = vpop.f32.mrf.mxu1  ;;  %v13389_v62 = vpop.f32.mrf.mxu0 }
 0x532   : > { %v6844_v38 = vld [vmem:[#allocation3 + $0x75] sm:$0xff]  ;;  %v7187_v28 = vadd.f32 %v7115_v36, %v6997_v21  ;;  %v6771_v43 = vadd.f32 %v6694_v8, %v6615_v40  ;;  %v6736_v7 = vmul.f32 %v17741_v58, %v17708_v51  ;;  %v5499_v2 = vadd.f32 %v17449_v16, %v17527_v47  ;;  %v17759_v16 = vld [vmem:[%s20610_s6 + $0x7] ss:$0 sm:$0xff] }
 0x533   : > { %v6462_v39 = vadd.f32 %v6390_v31, %v6272_v44  ;;  %v7034_v54 = vld [vmem:[#allocation3 + $0x76] sm:$0xff]  ;;  %v6080_v13 = vadd.f32 %v6003_v30, %v5890_v52  ;;  %v5737_v17 = vmul.f32 %v17662_v3, %v5655_v49  ;;  %v5855_v36 = vmul.f32 %v17668_v46, %v5773_v6  ;;  %v17751_v8 = vpop.f32.mrf.mxu1  ;;  %v17753_v25 = vpop.f32.mrf.mxu0  ;;  %v6309_v30 = vld [vmem:[#allocation3 + $0x6b] sm:$0xff] }
 0x534   : > { %20971 = vst [vmem:[#allocation18_spill] sm:$0xff] %v17753_v25  ;;  %13438 = vmatmul.mubr.msk.f32.gmra.mxu1 %vm4938_vm4, %v7187_v28  ;;  %v6961_v0 = vadd.f32 %v6884_v50, %v6771_v43  ;;  %v6926_v47 = vmul.f32 %v17759_v16, %v6844_v38  ;;  %v6349_v21 = vmul.f32 %v17678_v24, %v6308_v26  ;;  %5622 = vst.msk [vmem:[#allocation3 + $0xa0] sm:$0xff] %vm4938_vm4, %v5499_v2  ;;  %v17771_v43 = vld [vmem:[%s20610_s6 + $0x8] ss:$0 sm:$0xff] }
 0x535   : > { %v6045_v40 = vmul.f32 %v17692_v59, %v17596_v29  ;;  %v6652_v31 = vadd.f32 %v6580_v41, %v6462_v39  ;;  %v6236_v44 = vadd.f32 %v6159_v23, %v6080_v13  ;;  %v5927_v52 = vadd.f32 %v5855_v36, %v5737_v17  ;;  %v5270_v56 = vpop.f32.mrf.mxu1  ;;  %v13392_v62 = vpop.f32.mrf.mxu0  ;;  %v17779_v41 = vld [vmem:[%s20609_s5 + $0x6] ss:$0 sm:$0xff]  ;;  %v17786_v13 = vld [vmem:[%s20609_s5 + $0x7] ss:$0 sm:$0xff]  ;;  %v5656_v25 = vld [vmem:[#allocation3 + $0x60] sm:$0xff] }
 0x536   : > { %v6201_v50 = vmul.f32 %v17699_v10, %v17747_v37  ;;  %v7151_v28 = vadd.f32 %v7074_v35, %v6961_v0  ;;  %v7116_v26 = vmul.f32 %v17771_v43, %v7034_v54  ;;  %v6539_v2 = vmul.f32 %v17684_v4, %v17574_v61  ;;  %v17789_v0 = vld [vmem:[#allocation3 + $0x7c] sm:$0xff] }
 0x537   : > { %v6695_v23 = vmul.f32 %v17779_v41, %v17708_v51  ;;  %v6808_v39 = vadd.f32 %v6736_v7, %v6652_v31  ;;  %v6426_v35 = vadd.f32 %v6349_v21, %v6236_v44  ;;  %v6885_v17 = vmul.f32 %v17786_v13, %v6844_v38  ;;  %v17791_v61 = vpop.f32.mrf.mxu1  ;;  %v17793_v56 = vpop.f32.mrf.mxu0  ;;  %v17799_v7 = vld [vmem:[%s20609_s5 + $0x8] ss:$0 sm:$0xff] }
 0x538   : > { %v6117_v36 = vadd.f32 %v6045_v40, %v5927_v52  ;;  %20972 = vst [vmem:[#allocation48_spill] sm:$0xff] %v17791_v61  ;;  %20973 = vst [vmem:[#allocation74_spill] sm:$0xff] %v17793_v56  ;;  %13500 = vmatmul.mubr.msk.f32.gmra.mxu0 %vm4938_vm4, %v7151_v28  ;;  %v7075_v21 = vmul.f32 %v17799_v7, %v7034_v54  ;;  %v6391_v31 = vmul.f32 %v17719_v55, %v6309_v30  ;;  %v6845_v28 = vld [vmem:[#allocation3 + $0x7d] sm:$0xff] }
 0x539   : > { %v5696_v38 = vmul.f32 %v17623_v53, %v5655_v49  ;;  %v5814_v40 = vmul.f32 %v17629_v18, %v5773_v6  ;;  %v6998_v44 = vadd.f32 %v6926_v47, %v6808_v39  ;;  %v6616_v52 = vadd.f32 %v6539_v2, %v6426_v35  ;;  %v5275_v32 = vpop.f32.mrf.mxu1  ;;  %v13395_v34 = vpop.f32.mrf.mxu0  ;;  %v7035_v61 = vld [vmem:[#allocation3 + $0x7e] sm:$0xff]  ;;  %v17815_v35 = vld [vmem:[#allocation3 + $0x72] sm:$0xff] }
 0x53a   : > { %v6273_v62 = vadd.f32 %v6201_v50, %v6117_v36  ;;  %v6581_v56 = vmul.f32 %v17725_v33, %v17618_v14  ;;  %v6737_v54 = vmul.f32 %v17741_v58, %v17789_v0  ;;  %v6004_v49 = vmul.f32 %v17642_v42, %v17596_v29 }
 0x53b   : > { %v5891_v5 = vadd.f32 %v5814_v40, %v5696_v38  ;;  %v6160_v6 = vmul.f32 %v17734_v22, %v17747_v37  ;;  %v7188_v47 = vadd.f32 %v7116_v26, %v6998_v44  ;;  %v6772_v50 = vadd.f32 %v6695_v23, %v6616_v52  ;;  %v17817_v34 = vpop.f32.mrf.mxu1  ;;  %v17819_v32 = vpop.f32.mrf.mxu0 }
 0x53c   : > { %v6463_v2 = vadd.f32 %v6391_v31, %v6273_v62  ;;  %v5504_v39 = vadd.f32 %v17468_v63, %v17547_v11  ;;  %20974 = vst [vmem:[#allocation50_spill] sm:$0xff] %v17819_v32  ;;  %v6927_v36 = vmul.f32 %v17759_v16, %v6845_v28  ;;  %v5738_v29 = vmul.f32 %v17662_v3, %v5656_v25  ;;  %v6310_v32 = vld [vmem:[#allocation3 + $0x73] sm:$0xff] }
 0x53d   : > { %v6081_v38 = vadd.f32 %v6004_v49, %v5891_v5  ;;  %v5856_v40 = vmul.f32 %v17668_v46, %v5774_v12  ;;  %13440 = vmatprep.mubr.msk.f32.mxu1 %vm4938_vm4, %v7188_v47  ;;  %v6962_v26 = vadd.f32 %v6885_v17, %v6772_v50  ;;  %v7117_v31 = vmul.f32 %v17771_v43, %v7035_v61  ;;  %v5280_v11 = vpop.f32.mrf.mxu1  ;;  %v13398_v44 = vpop.f32.mrf.mxu0 }
 0x53e   : > { %v6653_v23 = vadd.f32 %v6581_v56, %v6463_v2  ;;  %v6350_v63 = vmul.f32 %v17678_v24, %v6309_v30  ;;  %5623 = vst.msk [vmem:[#allocation3 + $0xa8] sm:$0xff] %vm4938_vm4, %v5504_v39  ;;  %v6046_v5 = vmul.f32 %v17692_v59, %v17655_v15  ;;  %v6202_v49 = vmul.f32 %v17699_v10, %v17815_v35 }
 0x53f   : > { %v6237_v52 = vadd.f32 %v6160_v6, %v6081_v38  ;;  %v5928_v62 = vadd.f32 %v5856_v40, %v5738_v29  ;;  %v7152_v47 = vadd.f32 %v7075_v21, %v6962_v26  ;;  %v6540_v56 = vmul.f32 %v17684_v4, %v17618_v14  ;;  %v17836_v50 = vpop.f32.mrf.mxu1  ;;  %v17838_v2 = vpop.f32.mrf.mxu0  ;;  %v17840_v38 = vld [vmem:[#allocation3 + $0x84] sm:$0xff] }
 0x540   : > { %v6809_v17 = vadd.f32 %v6737_v54, %v6653_v23  ;;  %v6696_v30 = vmul.f32 %v17779_v41, %v17789_v0  ;;  %20975 = vst [vmem:[#allocation75_spill] sm:$0xff] %v17838_v2  ;;  %v5697_v29 = vmul.f32 %v17623_v53, %v5656_v25  ;;  %v5815_v40 = vmul.f32 %v17629_v18, %v5774_v12  ;;  %v5657_v23 = vld [vmem:[#allocation3 + $0x68] sm:$0xff]  ;;  %v6311_v2 = vld [vmem:[#allocation3 + $0x7b] sm:$0xff] }
 0x541   : > { %v6427_v6 = vadd.f32 %v6350_v63, %v6237_v52  ;;  %v6118_v39 = vadd.f32 %v6046_v5, %v5928_v62  ;;  %13502 = vmatprep.mubr.msk.f32.mxu0 %vm4938_vm4, %v7152_v47  ;;  %v6886_v14 = vmul.f32 %v17786_v13, %v6845_v28  ;;  %v6392_v54 = vmul.f32 %v17719_v55, %v6310_v32  ;;  %v5285_v11 = vpop.f32.mrf.mxu1  ;;  %v13401_v63 = vpop.f32.mrf.mxu0  ;;  %v6846_v62 = vld [vmem:[#allocation3 + $0x85] sm:$0xff] }
 0x542   : > { %v6999_v21 = vadd.f32 %v6927_v36, %v6809_v17  ;;  %v6005_v26 = vmul.f32 %v17642_v42, %v17655_v15  ;;  %v7036_v5 = vld [vmem:[#allocation3 + $0x86] sm:$0xff]  ;;  %v5892_v25 = vadd.f32 %v5815_v40, %v5697_v29  ;;  %v6161_v12 = vmul.f32 %v17734_v22, %v17815_v35  ;;  %v17860_v29 = vld [vmem:[#allocation3 + $0x7a] sm:$0xff] }
 0x543   : > { %v6617_v44 = vadd.f32 %v6540_v56, %v6427_v6  ;;  %v6274_v52 = vadd.f32 %v6202_v49, %v6118_v39  ;;  %v5775_v47 = vld [vmem:[#allocation3 + $0x69] sm:$0xff]  ;;  %v7076_v28 = vmul.f32 %v17799_v7, %v7035_v61  ;;  %v6582_v17 = vmul.f32 %v17725_v33, %v17708_v51  ;;  %v17856_v11 = vpop.f32.mrf.mxu1  ;;  %v17862_v40 = vpop.f32.mrf.mxu0 }
 0x544   : > { %v7189_v36 = vadd.f32 %v7117_v31, %v6999_v21  ;;  %v6738_v15 = vmul.f32 %v17741_v58, %v17840_v38  ;;  %v6082_v6 = vadd.f32 %v6005_v26, %v5892_v25  ;;  %v5509_v39 = vadd.f32 %v17487_v57, %v17566_v1  ;;  %20976 = vst [vmem:[#allocation26_spill] sm:$0xff] %v17862_v40 }
 0x545   : > { %v6773_v56 = vadd.f32 %v6696_v30, %v6617_v44  ;;  %v6464_v49 = vadd.f32 %v6392_v54, %v6274_v52  ;;  %v6928_v61 = vmul.f32 %v17759_v16, %v6846_v62  ;;  %v7118_v31 = vmul.f32 %v17771_v43, %v7036_v5  ;;  %v5290_v30 = vpop.f32.mrf.mxu1  ;;  %v13404_v1 = vpop.f32.mrf.mxu0 }
 0x546   : > { %13441 = vmatmul.mubr.msk.f32.gmra.mxu1 %vm4938_vm4, %v7189_v36  ;;  %v5739_v21 = vmul.f32 %v17662_v3, %v5657_v23  ;;  %v5857_v63 = vmul.f32 %v17668_v46, %v5775_v47  ;;  %v6238_v44 = vadd.f32 %v6161_v12, %v6082_v6  ;;  %v6351_v57 = vmul.f32 %v17678_v24, %v6310_v32 }
 0x547   : > { %v6963_v54 = vadd.f32 %v6886_v14, %v6773_v56  ;;  %v6654_v26 = vadd.f32 %v6582_v17, %v6464_v49  ;;  %5624 = vst.msk [vmem:[#allocation3 + $0xb0] sm:$0xff] %vm4938_vm4, %v5509_v39  ;;  %v6541_v52 = vmul.f32 %v17684_v4, %v17708_v51  ;;  %v6047_v36 = vmul.f32 %v17692_v59, %v17747_v37  ;;  %v17877_v30 = vpop.f32.mrf.mxu1  ;;  %v17882_v51 = vld [vmem:[#allocation3 + $0x8c] sm:$0xff] }
 0x548   : > { %v5929_v25 = vadd.f32 %v5857_v63, %v5739_v21  ;;  %v6203_v40 = vmul.f32 %v17699_v10, %v17860_v29  ;;  %v6428_v17 = vadd.f32 %v6351_v57, %v6238_v44  ;;  %v6697_v32 = vmul.f32 %v17779_v41, %v17840_v38  ;;  %v7037_v44 = vld [vmem:[#allocation3 + $0x8e] sm:$0xff] }
 0x549   : > { %v7153_v14 = vadd.f32 %v7076_v28, %v6963_v54  ;;  %v6810_v12 = vadd.f32 %v6738_v15, %v6654_v26  ;;  %v6887_v56 = vmul.f32 %v17786_v13, %v6846_v62  ;;  %v5698_v6 = vmul.f32 %v17623_v53, %v5657_v23  ;;  %v5295_v21 = vpop.f32.mrf.mxu1  ;;  %v6847_v54 = vld [vmem:[#allocation3 + $0x8d] sm:$0xff] }
 0x54a   : > { %v6119_v49 = vadd.f32 %v6047_v36, %v5929_v25  ;;  %v5816_v39 = vmul.f32 %v17629_v18, %v5775_v47  ;;  %v6618_v1 = vadd.f32 %v6541_v52, %v6428_v17  ;;  %v7077_v28 = vmul.f32 %v17799_v7, %v7036_v5  ;;  %v5658_v47 = vld [vmem:[#allocation3 + $0x70] sm:$0xff]  ;;  %v17904_v21 = vpop.f32.mrf.mxu0 }
 0x54b   : > { %13503 = vmatmul.mubr.msk.f32.gmra.mxu0 %vm4938_vm4, %v7153_v14  ;;  %v7000_v63 = vadd.f32 %v6928_v61, %v6810_v12  ;;  %v6393_v15 = vmul.f32 %v17719_v55, %v6311_v2  ;;  %v6006_v57 = vmul.f32 %v17642_v42, %v17747_v37  ;;  %v6162_v23 = vmul.f32 %v17734_v22, %v17860_v29  ;;  %v5776_v25 = vld [vmem:[#allocation3 + $0x71] sm:$0xff]  ;;  %v17893_v36 = vpop.f32.mrf.mxu1 }
 0x54c   : > { %v6275_v26 = vadd.f32 %v6203_v40, %v6119_v49  ;;  %v5893_v62 = vadd.f32 %v5816_v39, %v5698_v6  ;;  %v6774_v52 = vadd.f32 %v6697_v32, %v6618_v1  ;;  %v6583_v5 = vmul.f32 %v17725_v33, %v17789_v0  ;;  %v20977_v37 = vld [vmem:[#allocation54_spill] sm:$0xff]  ;;  %v17902_v6 = vld [vmem:[#allocation3 + $0x82] sm:$0xff]  ;;  %20978 = vst [vmem:[#allocation119_spill] sm:$0xff] %v17904_v21  ;;  %v17942_v21 = vld [vmem:[#allocation3 + $0x8a] sm:$0xff] }
 0x54d   : > { %v7190_v61 = vadd.f32 %v7118_v31, %v7000_v63  ;;  %v6739_v40 = vmul.f32 %v17741_v58, %v17882_v51  ;;  %v6929_v12 = vmul.f32 %v17759_v16, %v6847_v54  ;;  %v5514_v49 = vadd.f32 %v20977_v37, %v17585_v19  ;;  %v5300_v39 = vpop.f32.mrf.mxu1  ;;  %v13407_v37 = vpop.f32.mrf.mxu0 }
 0x54e   : > { %v6465_v14 = vadd.f32 %v6393_v15, %v6275_v26  ;;  %v6083_v17 = vadd.f32 %v6006_v57, %v5893_v62  ;;  %v6964_v31 = vadd.f32 %v6887_v56, %v6774_v52  ;;  %v7119_v32 = vmul.f32 %v17771_v43, %v7037_v44 }
 0x54f   : > { %13443 = vmatprep.mubr.msk.f32.mxu1 %vm4938_vm4, %v7190_v61  ;;  %v5740_v63 = vmul.f32 %v17662_v3, %v5658_v47  ;;  %v5858_v1 = vmul.f32 %v17668_v46, %v5776_v25  ;;  %v6352_v62 = vmul.f32 %v17678_v24, %v6311_v2  ;;  %v6542_v19 = vmul.f32 %v17684_v4, %v17789_v0  ;;  %v17914_v57 = vpop.f32.mrf.mxu1 }
 0x550   : > { %v6655_v15 = vadd.f32 %v6583_v5, %v6465_v14  ;;  %v6239_v26 = vadd.f32 %v6162_v23, %v6083_v17  ;;  %5625 = vst.msk [vmem:[#allocation3 + $0xb8] sm:$0xff] %vm4938_vm4, %v5514_v49  ;;  %20979 = vst [vmem:[#allocation57_spill] sm:$0xff] %v17914_v57  ;;  %v7154_v61 = vadd.f32 %v7077_v28, %v6964_v31  ;;  %v6312_v5 = vld [vmem:[#allocation3 + $0x83] sm:$0xff]  ;;  %v17925_v31 = vld [vmem:[#allocation3 + $0x94] sm:$0xff]  ;;  %v17946_v57 = vpop.f32.mrf.mxu0 }
 0x551   : > { %v5930_v56 = vadd.f32 %v5858_v1, %v5740_v63  ;;  %v6048_v52 = vmul.f32 %v17692_v59, %v17815_v35  ;;  %v6204_v39 = vmul.f32 %v17699_v10, %v17902_v6  ;;  %v6698_v2 = vmul.f32 %v17779_v41, %v17882_v51  ;;  %v5305_v17 = vpop.f32.mrf.mxu1  ;;  %20982 = vst [vmem:[#allocation27_spill] sm:$0xff] %v17946_v57 }
 0x552   : > { %v6811_v23 = vadd.f32 %v6739_v40, %v6655_v15  ;;  %v6429_v14 = vadd.f32 %v6352_v62, %v6239_v26  ;;  %v6888_v0 = vmul.f32 %v17786_v13, %v6847_v54  ;;  %13505 = vmatprep.mubr.msk.f32.mxu0 %vm4938_vm4, %v7154_v61  ;;  %v7078_v28 = vmul.f32 %v17799_v7, %v7037_v44  ;;  %v5659_v54 = vld [vmem:[#allocation3 + $0x78] sm:$0xff] }
 0x553   : > { %v6120_v49 = vadd.f32 %v6048_v52, %v5930_v56  ;;  %v5699_v63 = vmul.f32 %v17623_v53, %v5658_v47  ;;  %v5817_v1 = vmul.f32 %v17629_v18, %v5776_v25  ;;  %v6394_v15 = vmul.f32 %v17719_v55, %v6312_v5  ;;  %v5777_v62 = vld [vmem:[#allocation3 + $0x79] sm:$0xff]  ;;  %v17932_v17 = vpop.f32.mrf.mxu1 }
 0x554   : > { %v7001_v37 = vadd.f32 %v6929_v12, %v6811_v23  ;;  %v6619_v40 = vadd.f32 %v6542_v19, %v6429_v14  ;;  %v6584_v26 = vmul.f32 %v17725_v33, %v17840_v38  ;;  %20980 = vst [vmem:[#allocation23_spill] sm:$0xff] %v17932_v17  ;;  %v6848_v44 = vld [vmem:[#allocation3 + $0x95] sm:$0xff]  ;;  %v6007_v52 = vmul.f32 %v17642_v42, %v17815_v35  ;;  %v20981_v23 = vld [vmem:[#allocation56_spill] sm:$0xff] }
 0x555   : > { %v6276_v61 = vadd.f32 %v6204_v39, %v6120_v49  ;;  %v5894_v56 = vadd.f32 %v5817_v1, %v5699_v63  ;;  %v6163_v47 = vmul.f32 %v17734_v22, %v17902_v6  ;;  %v6740_v19 = vmul.f32 %v17741_v58, %v17925_v31  ;;  %v5310_v17 = vpop.f32.mrf.mxu1  ;;  %v7038_v49 = vld [vmem:[#allocation3 + $0x96] sm:$0xff] }
 0x556   : > { %v7191_v25 = vadd.f32 %v7119_v32, %v7001_v37  ;;  %v6775_v12 = vadd.f32 %v6698_v2, %v6619_v40  ;;  %v5519_v14 = vadd.f32 %v20981_v23, %v17605_v9  ;;  %v5741_v1 = vmul.f32 %v17662_v3, %v5659_v54 }
 0x557   : > { %v6466_v39 = vadd.f32 %v6394_v15, %v6276_v61  ;;  %v6084_v63 = vadd.f32 %v6007_v52, %v5894_v56  ;;  %v5859_v35 = vmul.f32 %v17668_v46, %v5777_v62  ;;  %v6930_v2 = vmul.f32 %v17759_v16, %v6848_v44  ;;  %v17954_v40 = vpop.f32.mrf.mxu1  ;;  %v6313_v52 = vld [vmem:[#allocation3 + $0x8b] sm:$0xff] }
 0x558   : > { %13444 = vmatmul.mubr.msk.f32.gmra.mxu1 %vm4938_vm4, %v7191_v25  ;;  %v6965_v32 = vadd.f32 %v6888_v0, %v6775_v12  ;;  %v6353_v37 = vmul.f32 %v17678_v24, %v6312_v5  ;;  %5626 = vst.msk [vmem:[#allocation3 + $0xc0] sm:$0xff] %vm4938_vm4, %v5519_v14  ;;  %v6049_v9 = vmul.f32 %v17692_v59, %v17860_v29  ;;  %20983 = vst [vmem:[#allocation79_spill] sm:$0xff] %v17954_v40  ;;  %v13410_v25 = vpop.f32.mrf.mxu0 }
 0x559   : > { %v6656_v15 = vadd.f32 %v6584_v26, %v6466_v39  ;;  %v6240_v17 = vadd.f32 %v6163_v47, %v6084_v63  ;;  %v5931_v61 = vadd.f32 %v5859_v35, %v5741_v1  ;;  %v6205_v56 = vmul.f32 %v17699_v10, %v17942_v21  ;;  %v5315_v14 = vpop.f32.mrf.mxu1  ;;  %v17964_v39 = vld [vmem:[#allocation3 + $0x9c] sm:$0xff] }
 0x55a   : > { %v7155_v0 = vadd.f32 %v7078_v28, %v6965_v32  ;;  %v7120_v12 = vmul.f32 %v17771_v43, %v7038_v49  ;;  %v6543_v5 = vmul.f32 %v17684_v4, %v17840_v38  ;;  %v6699_v23 = vmul.f32 %v17779_v41, %v17925_v31  ;;  %v17985_v14 = vpop.f32.mrf.mxu0 }
 0x55b   : > { %v6812_v57 = vadd.f32 %v6740_v19, %v6656_v15  ;;  %v6430_v40 = vadd.f32 %v6353_v37, %v6240_v17  ;;  %v6889_v26 = vmul.f32 %v17786_v13, %v6848_v44  ;;  %v6121_v47 = vadd.f32 %v6049_v9, %v5931_v61  ;;  %v6849_v44 = vld [vmem:[#allocation3 + $0x9d] sm:$0xff]  ;;  %20985 = vst [vmem:[#allocation40_spill] sm:$0xff] %v17985_v14  ;;  %v6314_v14 = vld [vmem:[#allocation3 + $0x93] sm:$0xff] }
 0x55c   : > { %13506 = vmatmul.mubr.msk.f32.gmra.mxu0 %vm4938_vm4, %v7155_v0  ;;  %v7079_v28 = vmul.f32 %v17799_v7, %v7038_v49  ;;  %v6395_v63 = vmul.f32 %v17719_v55, %v6313_v52  ;;  %v5700_v1 = vmul.f32 %v17623_v53, %v5659_v54  ;;  %v5818_v38 = vmul.f32 %v17629_v18, %v5777_v62  ;;  %v5660_v37 = vld [vmem:[#allocation3 + $0x80] sm:$0xff]  ;;  %v17981_v0 = vld [vmem:[#allocation3 + $0x92] sm:$0xff] }
 0x55d   : > { %v7002_v35 = vadd.f32 %v6930_v2, %v6812_v57  ;;  %v6620_v32 = vadd.f32 %v6543_v5, %v6430_v40  ;;  %v6277_v25 = vadd.f32 %v6205_v56, %v6121_v47  ;;  %v6585_v19 = vmul.f32 %v17725_v33, %v17882_v51  ;;  %v5778_v9 = vld [vmem:[#allocation3 + $0x81] sm:$0xff]  ;;  %v17983_v5 = vpop.f32.mrf.mxu1 }
 0x55e   : > { %v6741_v15 = vmul.f32 %v17741_v58, %v17964_v39  ;;  %v7039_v17 = vld [vmem:[#allocation3 + $0x9e] sm:$0xff]  ;;  %v5895_v49 = vadd.f32 %v5818_v38, %v5700_v1  ;;  %v6008_v61 = vmul.f32 %v17642_v42, %v17860_v29  ;;  %v6164_v54 = vmul.f32 %v17734_v22, %v17942_v21 }
 0x55f   : > { %v7192_v57 = vadd.f32 %v7120_v12, %v7002_v35  ;;  %v6776_v62 = vadd.f32 %v6699_v23, %v6620_v32  ;;  %v6467_v2 = vadd.f32 %v6395_v63, %v6277_v25  ;;  %v20984_v40 = vld [vmem:[#allocation52_spill] sm:$0xff]  ;;  %v6931_v47 = vmul.f32 %v17759_v16, %v6849_v44  ;;  %v5320_v35 = vpop.f32.mrf.mxu1  ;;  %v13413_v32 = vpop.f32.mrf.mxu0 }
 0x560   : > { %v5524_v56 = vadd.f32 %v20984_v40, %v17635_v48  ;;  %v6085_v1 = vadd.f32 %v6008_v61, %v5895_v49  ;;  %v5742_v29 = vmul.f32 %v17662_v3, %v5660_v37  ;;  %v5860_v38 = vmul.f32 %v17668_v46, %v5778_v9  ;;  %v7040_v35 = vld [vmem:[#allocation3 + $0xa6] sm:$0xff] }
 0x561   : > { %13446 = vmatprep.mubr.msk.f32.mxu1 %vm4938_vm4, %v7192_v57  ;;  %v6966_v12 = vadd.f32 %v6889_v26, %v6776_v62  ;;  %v6657_v23 = vadd.f32 %v6585_v19, %v6467_v2  ;;  %v7121_v63 = vmul.f32 %v17771_v43, %v7039_v17  ;;  %v6354_v48 = vmul.f32 %v17678_v24, %v6313_v52 }
 0x562   : > { %5627 = vst.msk [vmem:[#allocation3 + $0xc8] sm:$0xff] %vm4938_vm4, %v5524_v56  ;;  %v6241_v25 = vadd.f32 %v6164_v54, %v6085_v1  ;;  %v5932_v40 = vadd.f32 %v5860_v38, %v5742_v29  ;;  %v6050_v49 = vmul.f32 %v17692_v59, %v17902_v6  ;;  %v6206_v61 = vmul.f32 %v17699_v10, %v17981_v0  ;;  %v18002_v56 = vld [vmem:[#allocation3 + $0xa4] sm:$0xff] }
 0x563   : > { %v7156_v57 = vadd.f32 %v7079_v28, %v6966_v12  ;;  %v6813_v26 = vadd.f32 %v6741_v15, %v6657_v23  ;;  %v6544_v19 = vmul.f32 %v17684_v4, %v17882_v51  ;;  %v6700_v52 = vmul.f32 %v17779_v41, %v17964_v39  ;;  %v5661_v38 = vld [vmem:[#allocation3 + $0x88] sm:$0xff] }
 0x564   : > { %v6431_v62 = vadd.f32 %v6354_v48, %v6241_v25  ;;  %v6122_v2 = vadd.f32 %v6050_v49, %v5932_v40  ;;  %v5701_v54 = vmul.f32 %v17623_v53, %v5660_v37  ;;  %v5819_v1 = vmul.f32 %v17629_v18, %v5778_v9  ;;  %v6850_v48 = vld [vmem:[#allocation3 + $0xa5] sm:$0xff] }
 0x565   : > { %13508 = vmatprep.mubr.msk.f32.mxu0 %vm4938_vm4, %v7156_v57  ;;  %v7003_v29 = vadd.f32 %v6931_v47, %v6813_v26  ;;  %v6890_v28 = vmul.f32 %v17786_v13, %v6849_v44  ;;  %v6396_v15 = vmul.f32 %v17719_v55, %v6314_v14  ;;  %v6009_v51 = vmul.f32 %v17642_v42, %v17902_v6  ;;  %v5779_v9 = vld [vmem:[#allocation3 + $0x89] sm:$0xff]  ;;  %v18020_v26 = vld [vmem:[#allocation3 + $0x9a] sm:$0xff] }
 0x566   : > { %v6621_v12 = vadd.f32 %v6544_v19, %v6431_v62  ;;  %v6278_v23 = vadd.f32 %v6206_v61, %v6122_v2  ;;  %v5896_v32 = vadd.f32 %v5819_v1, %v5701_v54  ;;  %v6165_v37 = vmul.f32 %v17734_v22, %v17981_v0  ;;  %v18022_v19 = vpop.f32.mrf.mxu1  ;;  %v18024_v62 = vpop.f32.mrf.mxu0 }
 0x567   : > { %v7193_v25 = vadd.f32 %v7121_v63, %v7003_v29  ;;  %v7080_v47 = vmul.f32 %v17799_v7, %v7039_v17  ;;  %v6586_v44 = vmul.f32 %v17725_v33, %v17925_v31  ;;  %v6742_v40 = vmul.f32 %v17741_v58, %v18002_v56 }
 0x568   : > { %v6777_v6 = vadd.f32 %v6700_v52, %v6621_v12  ;;  %v6468_v49 = vadd.f32 %v6396_v15, %v6278_v23  ;;  %v6086_v57 = vadd.f32 %v6009_v51, %v5896_v32  ;;  %v5529_v61 = vadd.f32 %v17568_v45, %v17671_v20  ;;  %v5325_v20 = vpop.f32.mrf.mxu1  ;;  %v13416_v15 = vpop.f32.mrf.mxu0 }
 0x569   : > { %13447 = vmatmul.mubr.msk.f32.gmra.mxu1 %vm4938_vm4, %v7193_v25  ;;  %v6932_v17 = vmul.f32 %v17759_v16, %v6850_v48  ;;  %v7122_v63 = vmul.f32 %v17771_v43, %v7040_v35  ;;  %v5743_v2 = vmul.f32 %v17662_v3, %v5661_v38  ;;  %v5861_v52 = vmul.f32 %v17668_v46, %v5779_v9  ;;  %v6315_v25 = vld [vmem:[#allocation3 + $0x9b] sm:$0xff]  ;;  %v5662_v20 = vld [vmem:[#allocation3 + $0x90] sm:$0xff] }
 0x56a   : > { %v6967_v54 = vadd.f32 %v6890_v28, %v6777_v6  ;;  %v6658_v1 = vadd.f32 %v6586_v44, %v6468_v49  ;;  %v6242_v29 = vadd.f32 %v6165_v37, %v6086_v57  ;;  %v6355_v45 = vmul.f32 %v17678_v24, %v6314_v14  ;;  %5628 = vst.msk [vmem:[#allocation3 + $0xd0] sm:$0xff] %vm4938_vm4, %v5529_v61  ;;  %v18042_v57 = vld [vmem:[#allocation3 + $0xac] sm:$0xff] }
 0x56b   : > { %v6545_v51 = vmul.f32 %v17684_v4, %v17925_v31  ;;  %v5933_v12 = vadd.f32 %v5861_v52, %v5743_v2  ;;  %v6051_v23 = vmul.f32 %v17692_v59, %v17942_v21  ;;  %v6207_v32 = vmul.f32 %v17699_v10, %v18020_v26 }
 0x56c   : > { %v7157_v28 = vadd.f32 %v7080_v47, %v6967_v54  ;;  %v6814_v44 = vadd.f32 %v6742_v40, %v6658_v1  ;;  %v6432_v37 = vadd.f32 %v6355_v45, %v6242_v29  ;;  %v6701_v14 = vmul.f32 %v17779_v41, %v18002_v56  ;;  %v6851_v54 = vld [vmem:[#allocation3 + $0xad] sm:$0xff] }
 0x56d   : > { %v6891_v6 = vmul.f32 %v17786_v13, %v6850_v48  ;;  %v6123_v49 = vadd.f32 %v6051_v23, %v5933_v12  ;;  %v5702_v31 = vmul.f32 %v17623_v53, %v5661_v38  ;;  %v5820_v61 = vmul.f32 %v17629_v18, %v5779_v9  ;;  %v7041_v29 = vld [vmem:[#allocation3 + $0xae] sm:$0xff] }
 0x56e   : > { %13509 = vmatmul.mubr.msk.f32.gmra.mxu0 %vm4938_vm4, %v7157_v28  ;;  %v7004_v2 = vadd.f32 %v6932_v17, %v6814_v44  ;;  %v6622_v52 = vadd.f32 %v6545_v51, %v6432_v37  ;;  %v7081_v47 = vmul.f32 %v17799_v7, %v7040_v35  ;;  %v6397_v40 = vmul.f32 %v17719_v55, %v6315_v25  ;;  %v5780_v9 = vld [vmem:[#allocation3 + $0x91] sm:$0xff]  ;;  %v18060_v28 = vld [vmem:[#allocation3 + $0xa2] sm:$0xff]  ;;  %v18062_v44 = vpop.f32.mrf.mxu1 }
 0x56f   : > { %v6279_v1 = vadd.f32 %v6207_v32, %v6123_v49  ;;  %v5897_v45 = vadd.f32 %v5820_v61, %v5702_v31  ;;  %v6010_v48 = vmul.f32 %v17642_v42, %v17942_v21  ;;  %v6166_v38 = vmul.f32 %v17734_v22, %v18020_v26 }
 0x570   : > { %v7194_v15 = vadd.f32 %v7122_v63, %v7004_v2  ;;  %v6778_v12 = vadd.f32 %v6701_v14, %v6622_v52  ;;  %v6587_v17 = vmul.f32 %v17725_v33, %v17964_v39  ;;  %v6743_v35 = vmul.f32 %v17741_v58, %v18042_v57 }
 0x571   : > { %v6469_v51 = vadd.f32 %v6397_v40, %v6279_v1  ;;  %v6933_v23 = vmul.f32 %v17759_v16, %v6851_v54  ;;  %v6087_v32 = vadd.f32 %v6010_v48, %v5897_v45  ;;  %v5534_v21 = vadd.f32 %v17587_v27, %v17712_v60  ;;  %v5330_v60 = vpop.f32.mrf.mxu1  ;;  %v6316_v45 = vld [vmem:[#allocation3 + $0xa3] sm:$0xff] }
 0x572   : > { %13449 = vmatprep.mubr.msk.f32.mxu1 %vm4938_vm4, %v7194_v15  ;;  %v6968_v63 = vadd.f32 %v6891_v6, %v6778_v12  ;;  %v7123_v37 = vmul.f32 %v17771_v43, %v7041_v29  ;;  %v5744_v14 = vmul.f32 %v17662_v3, %v5662_v20  ;;  %v5862_v49 = vmul.f32 %v17668_v46, %v5780_v9  ;;  %v18081_v12 = vld [vmem:[#allocation3 + $0xb4] sm:$0xff] }
 0x573   : > { %v6659_v31 = vadd.f32 %v6587_v17, %v6469_v51  ;;  %v6243_v61 = vadd.f32 %v6166_v38, %v6087_v32  ;;  %v6356_v2 = vmul.f32 %v17678_v24, %v6315_v25  ;;  %v6546_v27 = vmul.f32 %v17684_v4, %v17964_v39  ;;  %5629 = vst.msk [vmem:[#allocation3 + $0xd8] sm:$0xff] %vm4938_vm4, %v5534_v21 }
 0x574   : > { %v7158_v52 = vadd.f32 %v7081_v47, %v6968_v63  ;;  %v5934_v40 = vadd.f32 %v5862_v49, %v5744_v14  ;;  %v6052_v6 = vmul.f32 %v17692_v59, %v17981_v0  ;;  %v6208_v1 = vmul.f32 %v17699_v10, %v18060_v28  ;;  %v5663_v14 = vld [vmem:[#allocation3 + $0x98] sm:$0xff] }
 0x575   : > { %v6815_v48 = vadd.f32 %v6743_v35, %v6659_v31  ;;  %v6433_v15 = vadd.f32 %v6356_v2, %v6243_v61  ;;  %v6702_v25 = vmul.f32 %v17779_v41, %v18042_v57  ;;  %v6892_v38 = vmul.f32 %v17786_v13, %v6851_v54  ;;  %v5781_v54 = vld [vmem:[#allocation3 + $0x99] sm:$0xff] }
 0x576   : > { %13511 = vmatprep.mubr.msk.f32.mxu0 %vm4938_vm4, %v7158_v52  ;;  %v7082_v39 = vmul.f32 %v17799_v7, %v7041_v29  ;;  %v6124_v47 = vadd.f32 %v6052_v6, %v5934_v40  ;;  %v5703_v17 = vmul.f32 %v17623_v53, %v5662_v20  ;;  %v5821_v51 = vmul.f32 %v17629_v18, %v5780_v9  ;;  %v6852_v31 = vld [vmem:[#allocation3 + $0xb5] sm:$0xff]  ;;  %v18096_v52 = vld [vmem:[#allocation3 + $0xaa] sm:$0xff] }
 0x577   : > { %v7005_v32 = vadd.f32 %v6933_v23, %v6815_v48  ;;  %v6623_v21 = vadd.f32 %v6546_v27, %v6433_v15  ;;  %v6398_v35 = vmul.f32 %v17719_v55, %v6316_v45  ;;  %v6588_v63 = vmul.f32 %v17725_v33, %v18002_v56  ;;  %v20986_v27 = vld [vmem:[#allocation49_spill] sm:$0xff]  ;;  %v7042_v6 = vld [vmem:[#allocation3 + $0xb6] sm:$0xff] }
 0x578   : > { %v6280_v49 = vadd.f32 %v6208_v1, %v6124_v47  ;;  %v5898_v61 = vadd.f32 %v5821_v51, %v5703_v17  ;;  %v6011_v29 = vmul.f32 %v17642_v42, %v17981_v0  ;;  %v6167_v20 = vmul.f32 %v17734_v22, %v18060_v28 }
 0x579   : > { %v7195_v2 = vadd.f32 %v7123_v37, %v7005_v32  ;;  %v6779_v9 = vadd.f32 %v6702_v25, %v6623_v21  ;;  %v6744_v23 = vmul.f32 %v17741_v58, %v18081_v12  ;;  %v5539_v60 = vadd.f32 %v20986_v27, %v17751_v8  ;;  %v6317_v21 = vld [vmem:[#allocation3 + $0xab] sm:$0xff] }
 0x57a   : > { %v6470_v40 = vadd.f32 %v6398_v35, %v6280_v49  ;;  %v6088_v1 = vadd.f32 %v6011_v29, %v5898_v61  ;;  %v5745_v48 = vmul.f32 %v17662_v3, %v5663_v14  ;;  %v5863_v0 = vmul.f32 %v17668_v46, %v5781_v54 }
 0x57b   : > { %13450 = vmatmul.mubr.msk.f32.gmra.mxu1 %vm4938_vm4, %v7195_v2  ;;  %v6969_v15 = vadd.f32 %v6892_v38, %v6779_v9  ;;  %v6934_v37 = vmul.f32 %v17759_v16, %v6852_v31  ;;  %v6357_v25 = vmul.f32 %v17678_v24, %v6316_v45  ;;  %5630 = vst.msk [vmem:[#allocation3 + $0xe0] sm:$0xff] %vm4938_vm4, %v5539_v60 }
 0x57c   : > { %v6053_v8 = vmul.f32 %v17692_v59, %v18020_v26  ;;  %v6660_v47 = vadd.f32 %v6588_v63, %v6470_v40  ;;  %v6244_v17 = vadd.f32 %v6167_v20, %v6088_v1  ;;  %v5935_v51 = vadd.f32 %v5863_v0, %v5745_v48  ;;  %v18114_v20 = vld [vmem:[#allocation3 + $0xbc] sm:$0xff] }
 0x57d   : > { %v6209_v32 = vmul.f32 %v17699_v10, %v18096_v52  ;;  %v7159_v35 = vadd.f32 %v7082_v39, %v6969_v15  ;;  %v7124_v49 = vmul.f32 %v17771_v43, %v7042_v6  ;;  %v6547_v38 = vmul.f32 %v17684_v4, %v18002_v56  ;;  %v5664_v48 = vld [vmem:[#allocation3 + $0xa0] sm:$0xff] }
 0x57e   : > { %v6703_v45 = vmul.f32 %v17779_v41, %v18081_v12  ;;  %v6816_v61 = vadd.f32 %v6744_v23, %v6660_v47  ;;  %v6434_v29 = vadd.f32 %v6357_v25, %v6244_v17  ;;  %v6893_v2 = vmul.f32 %v17786_v13, %v6852_v31  ;;  %v6853_v31 = vld [vmem:[#allocation3 + $0xbd] sm:$0xff]  ;;  %v20988_v47 = vld [vmem:[#allocation46_spill] sm:$0xff] }
 0x57f   : > { %v6125_v63 = vadd.f32 %v6053_v8, %v5935_v51  ;;  %13512 = vmatmul.mubr.msk.f32.gmra.mxu0 %vm4938_vm4, %v7159_v35  ;;  %v7083_v9 = vmul.f32 %v17799_v7, %v7042_v6  ;;  %v6399_v39 = vmul.f32 %v17719_v55, %v6317_v21  ;;  %v5704_v27 = vmul.f32 %v17623_v53, %v5663_v14  ;;  %v5782_v0 = vld [vmem:[#allocation3 + $0xa1] sm:$0xff]  ;;  %v18131_v51 = vld [vmem:[#allocation3 + $0xb2] sm:$0xff] }
 0x580   : > { %v5822_v56 = vmul.f32 %v17629_v18, %v5781_v54  ;;  %v7006_v60 = vadd.f32 %v6934_v37, %v6816_v61  ;;  %v6624_v40 = vadd.f32 %v6547_v38, %v6434_v29  ;;  %v6589_v23 = vmul.f32 %v17725_v33, %v18042_v57  ;;  %v7043_v25 = vld [vmem:[#allocation3 + $0xbe] sm:$0xff] }
 0x581   : > { %v6281_v1 = vadd.f32 %v6209_v32, %v6125_v63  ;;  %v6745_v15 = vmul.f32 %v17741_v58, %v18114_v20  ;;  %v6012_v8 = vmul.f32 %v17642_v42, %v18020_v26  ;;  %v6168_v53 = vmul.f32 %v17734_v22, %v18096_v52  ;;  %v20987_v37 = vld [vmem:[#allocation48_spill] sm:$0xff] }
 0x582   : > { %v5899_v6 = vadd.f32 %v5822_v56, %v5704_v27  ;;  %v7196_v18 = vadd.f32 %v7124_v49, %v7006_v60  ;;  %v6780_v14 = vadd.f32 %v6703_v45, %v6624_v40  ;;  %v5544_v17 = vadd.f32 %v20988_v47, %v20987_v37  ;;  %v6318_v27 = vld [vmem:[#allocation3 + $0xb3] sm:$0xff]  ;;  %v18148_v40 = vld [vmem:[#allocation3 + $0xc4] sm:$0xff] }
 0x583   : > { %v6471_v54 = vadd.f32 %v6399_v39, %v6281_v1  ;;  %v6935_v32 = vmul.f32 %v17759_v16, %v6853_v31  ;;  %v5746_v38 = vmul.f32 %v17662_v3, %v5664_v48  ;;  %v5864_v61 = vmul.f32 %v17668_v46, %v5782_v0 }
 0x584   : > { %v6089_v35 = vadd.f32 %v6012_v8, %v5899_v6  ;;  %13452 = vmatprep.mubr.msk.f32.mxu1 %vm4938_vm4, %v7196_v18  ;;  %v6970_v42 = vadd.f32 %v6893_v2, %v6780_v14  ;;  %v7125_v49 = vmul.f32 %v17771_v43, %v7043_v25  ;;  %v6358_v45 = vmul.f32 %v17678_v24, %v6317_v21  ;;  %v5665_v6 = vld [vmem:[#allocation3 + $0xa8] sm:$0xff] }
 0x585   : > { %v6661_v26 = vadd.f32 %v6589_v23, %v6471_v54  ;;  %5631 = vst.msk [vmem:[#allocation3 + $0xe8] sm:$0xff] %vm4938_vm4, %v5544_v17  ;;  %v5936_v63 = vadd.f32 %v5864_v61, %v5746_v38  ;;  %v6054_v39 = vmul.f32 %v17692_v59, %v18060_v28  ;;  %v6210_v3 = vmul.f32 %v17699_v10, %v18131_v51  ;;  %v18153_v59 = vld [vmem:[%s20609_s5] ss:$0 sm:$0xff]  ;;  %v6854_v18 = vld [vmem:[#allocation3 + $0xc5] sm:$0xff] }
 0x586   : > { %v6245_v29 = vadd.f32 %v6168_v53, %v6089_v35  ;;  %v7160_v46 = vadd.f32 %v7083_v9, %v6970_v42  ;;  %v6548_v2 = vmul.f32 %v17684_v4, %v18042_v57  ;;  %v6704_v60 = vmul.f32 %v17779_v41, %v18114_v20  ;;  %v18159_v9 = vld [vmem:[%s20609_s5 + $0x1] ss:$0 sm:$0xff]  ;;  %v20989_v38 = vld [vmem:[#allocation44_spill] sm:$0xff]  ;;  %v18181_v42 = vld [vmem:[#allocation3 + $0xba] sm:$0xff] }
 0x587   : > { %v6817_v56 = vadd.f32 %v6745_v15, %v6661_v26  ;;  %v6126_v21 = vadd.f32 %v6054_v39, %v5936_v63  ;;  %v5705_v10 = vmul.f32 %v18153_v59, %v5664_v48  ;;  %v5823_v4 = vmul.f32 %v18159_v9, %v5782_v0  ;;  %v18168_v15 = vld [vmem:[%s20609_s5 + $0x2] ss:$0 sm:$0xff]  ;;  %v7044_v0 = vld [vmem:[#allocation3 + $0xc6] sm:$0xff]  ;;  %v18195_v26 = vld [vmem:[%s20610_s6 + $0x1] ss:$0 sm:$0xff] }
 0x588   : > { %v6435_v24 = vadd.f32 %v6358_v45, %v6245_v29  ;;  %13514 = vmatprep.mubr.msk.f32.mxu0 %vm4938_vm4, %v7160_v46  ;;  %v6894_v1 = vmul.f32 %v17786_v13, %v6853_v31  ;;  %v6400_v23 = vmul.f32 %v17719_v55, %v6318_v27  ;;  %v6013_v48 = vmul.f32 %v18168_v15, %v18060_v28  ;;  %v5783_v31 = vld [vmem:[#allocation3 + $0xa9] sm:$0xff]  ;;  %v18208_v63 = vld [vmem:[%s20609_s5 + $0x5] ss:$0 sm:$0xff]  ;;  %v18215_v46 = vld [vmem:[%s20610_s6 + $0x2] ss:$0 sm:$0xff] }
 0x589   : > { %v7007_v57 = vadd.f32 %v6935_v32, %v6817_v56  ;;  %v6282_v53 = vadd.f32 %v6210_v3, %v6126_v21  ;;  %v5900_v14 = vadd.f32 %v5823_v4, %v5705_v10  ;;  %v6169_v54 = vmul.f32 %v17734_v22, %v18131_v51 }
 0x58a   : > { %v6625_v8 = vadd.f32 %v6548_v2, %v6435_v24  ;;  %v7084_v55 = vmul.f32 %v17799_v7, %v7043_v25  ;;  %v6590_v47 = vmul.f32 %v17725_v33, %v18081_v12  ;;  %v6746_v17 = vmul.f32 %v17741_v58, %v18148_v40  ;;  %v18189_v33 = vld [vmem:[%s20610_s6] ss:$0 sm:$0xff] }
 0x58b   : > { %v7197_v37 = vadd.f32 %v7125_v49, %v7007_v57  ;;  %v6472_v32 = vadd.f32 %v6400_v23, %v6282_v53  ;;  %v6090_v35 = vadd.f32 %v6013_v48, %v5900_v14  ;;  %v5549_v61 = vadd.f32 %v20989_v38, %v17817_v34 }
 0x58c   : > { %v6781_v28 = vadd.f32 %v6704_v60, %v6625_v8  ;;  %v6936_v22 = vmul.f32 %v17759_v16, %v6854_v18  ;;  %v7126_v25 = vmul.f32 %v17771_v43, %v7044_v0  ;;  %v5747_v58 = vmul.f32 %v18189_v33, %v5665_v6  ;;  %v18201_v16 = vld [vmem:[%s20609_s5 + $0x4] ss:$0 sm:$0xff] }
 0x58d   : > { %13453 = vmatmul.mubr.msk.f32.gmra.mxu1 %vm4938_vm4, %v7197_v37  ;;  %v5865_v34 = vmul.f32 %v18195_v26, %v5783_v31  ;;  %v6662_v45 = vadd.f32 %v6590_v47, %v6472_v32  ;;  %v6246_v29 = vadd.f32 %v6169_v54, %v6090_v35  ;;  %v6359_v43 = vmul.f32 %v18201_v16, %v6318_v27  ;;  %v18222_v27 = vld [vmem:[%s20610_s6 + $0x3] ss:$0 sm:$0xff]  ;;  %v18238_v54 = vld [vmem:[%s20610_s6 + $0x4] ss:$0 sm:$0xff]  ;;  %v7045_v37 = vld [vmem:[#allocation3 + $0xce] sm:$0xff] }
 0x58e   : > { %v6971_v49 = vadd.f32 %v6894_v1, %v6781_v28  ;;  %5632 = vst.msk [vmem:[#allocation3 + $0xf0] sm:$0xff] %vm4938_vm4, %v5549_v61  ;;  %v6549_v39 = vmul.f32 %v18208_v63, %v18081_v12  ;;  %v6055_v56 = vmul.f32 %v18215_v46, %v18096_v52  ;;  %v6211_v2 = vmul.f32 %v18222_v27, %v18181_v42  ;;  %v6319_v60 = vld [vmem:[#allocation3 + $0xbb] sm:$0xff]  ;;  %v18229_v1 = vld [vmem:[#allocation3 + $0xcc] sm:$0xff] }
 0x58f   : > { %v5937_v3 = vadd.f32 %v5865_v34, %v5747_v58  ;;  %v6818_v12 = vadd.f32 %v6746_v17, %v6662_v45  ;;  %v6436_v21 = vadd.f32 %v6359_v43, %v6246_v29  ;;  %v6705_v10 = vmul.f32 %v17779_v41, %v18148_v40  ;;  %v5784_v47 = vld [vmem:[#allocation3 + $0xb1] sm:$0xff]  ;;  %v18253_v32 = vld [vmem:[%s20610_s6 + $0x5] ss:$0 sm:$0xff]  ;;  %v18260_v35 = vld [vmem:[%s20610_s6 + $0x6] ss:$0 sm:$0xff] }
 0x590   : > { %v7161_v24 = vadd.f32 %v7084_v55, %v6971_v49  ;;  %v6895_v4 = vmul.f32 %v17786_v13, %v6854_v18  ;;  %v5706_v23 = vmul.f32 %v18153_v59, %v5665_v6  ;;  %v5824_v48 = vmul.f32 %v18159_v9, %v5783_v31  ;;  %v6855_v13 = vld [vmem:[#allocation3 + $0xcd] sm:$0xff]  ;;  %v18246_v31 = vld [vmem:[%s20609_s5 + $0x3] ss:$0 sm:$0xff]  ;;  %v18272_v45 = vld [vmem:[#allocation3 + $0xc2] sm:$0xff] }
 0x591   : > { %v6127_v57 = vadd.f32 %v6055_v56, %v5937_v3  ;;  %v7008_v8 = vadd.f32 %v6936_v22, %v6818_v12  ;;  %v6626_v53 = vadd.f32 %v6549_v39, %v6436_v21  ;;  %v7085_v14 = vmul.f32 %v17799_v7, %v7044_v0  ;;  %v5666_v0 = vld [vmem:[#allocation3 + $0xb0] sm:$0xff]  ;;  %v18267_v22 = vld [vmem:[%s20610_s6 + $0x7] ss:$0 sm:$0xff]  ;;  %v18278_v43 = vld [vmem:[%s20610_s6 + $0x8] ss:$0 sm:$0xff] }
 0x592   : > { %13515 = vmatmul.mubr.msk.f32.gmra.mxu0 %vm4938_vm4, %v7161_v24  ;;  %v6401_v41 = vmul.f32 %v18238_v54, %v6319_v60  ;;  %v5901_v55 = vadd.f32 %v5824_v48, %v5706_v23  ;;  %v6014_v6 = vmul.f32 %v18168_v15, %v18096_v52  ;;  %v6170_v7 = vmul.f32 %v18246_v31, %v18181_v42  ;;  %v20990_v34 = vld [vmem:[#allocation42_spill] sm:$0xff]  ;;  %v6320_v23 = vld [vmem:[#allocation3 + $0xc3] sm:$0xff] }
 0x593   : > { %v6283_v18 = vadd.f32 %v6211_v2, %v6127_v57  ;;  %v7198_v17 = vadd.f32 %v7126_v25, %v7008_v8  ;;  %v6782_v28 = vadd.f32 %v6705_v10, %v6626_v53  ;;  %v6591_v52 = vmul.f32 %v18253_v32, %v18114_v20  ;;  %v18301_v53 = vld [vmem:[%s20609_s5 + $0x7] ss:$0 sm:$0xff] }
 0x594   : > { %v6747_v38 = vmul.f32 %v18260_v35, %v18229_v1  ;;  %v6937_v25 = vmul.f32 %v18267_v22, %v6855_v13  ;;  %v6091_v58 = vadd.f32 %v6014_v6, %v5901_v55  ;;  %v5554_v49 = vadd.f32 %v20990_v34, %v17836_v50  ;;  %v18311_v6 = vld [vmem:[#allocation3 + $0xd4] sm:$0xff] }
 0x595   : > { %v6473_v61 = vadd.f32 %v6401_v41, %v6283_v18  ;;  %13455 = vmatprep.mubr.msk.f32.mxu1 %vm4938_vm4, %v7198_v17  ;;  %v6972_v29 = vadd.f32 %v6895_v4, %v6782_v28  ;;  %v7127_v39 = vmul.f32 %v18278_v43, %v7045_v37  ;;  %v5748_v3 = vmul.f32 %v18189_v33, %v5666_v0  ;;  %v18308_v41 = vld [vmem:[%s20609_s5 + $0x8] ss:$0 sm:$0xff] }
 0x596   : > { %v5866_v56 = vmul.f32 %v18195_v26, %v5784_v47  ;;  %v6247_v24 = vadd.f32 %v6170_v7, %v6091_v58  ;;  %v6360_v50 = vmul.f32 %v18201_v16, %v6319_v60  ;;  %v6550_v12 = vmul.f32 %v18208_v63, %v18114_v20  ;;  %5633 = vst.msk [vmem:[#allocation3 + $0xf8] sm:$0xff] %vm4938_vm4, %v5554_v49  ;;  %v18294_v60 = vld [vmem:[%s20609_s5 + $0x6] ss:$0 sm:$0xff]  ;;  %v6856_v49 = vld [vmem:[#allocation3 + $0xd5] sm:$0xff] }
 0x597   : > { %v6663_v2 = vadd.f32 %v6591_v52, %v6473_v61  ;;  %v7162_v21 = vadd.f32 %v7085_v14, %v6972_v29  ;;  %v6056_v4 = vmul.f32 %v18215_v46, %v18131_v51  ;;  %v6212_v57 = vmul.f32 %v18222_v27, %v18272_v45  ;;  %v5667_v61 = vld [vmem:[#allocation3 + $0xb8] sm:$0xff] }
 0x598   : > { %v5938_v10 = vadd.f32 %v5866_v56, %v5748_v3  ;;  %v6437_v8 = vadd.f32 %v6360_v50, %v6247_v24  ;;  %v6706_v20 = vmul.f32 %v18294_v60, %v18229_v1  ;;  %v6896_v14 = vmul.f32 %v18301_v53, %v6855_v13  ;;  %v5785_v58 = vld [vmem:[#allocation3 + $0xb9] sm:$0xff]  ;;  %v18326_v24 = vld [vmem:[#allocation3 + $0xca] sm:$0xff] }
 0x599   : > { %v6819_v48 = vadd.f32 %v6747_v38, %v6663_v2  ;;  %13517 = vmatprep.mubr.msk.f32.mxu0 %vm4938_vm4, %v7162_v21  ;;  %v7086_v18 = vmul.f32 %v18308_v41, %v7045_v37  ;;  %v5707_v7 = vmul.f32 %v18153_v59, %v5666_v0  ;;  %v5825_v17 = vmul.f32 %v18159_v9, %v5784_v47  ;;  %v20991_v56 = vld [vmem:[#allocation18_spill] sm:$0xff] }
 0x59a   : > { %v6128_v55 = vadd.f32 %v6056_v4, %v5938_v10  ;;  %v6627_v52 = vadd.f32 %v6550_v12, %v6437_v8  ;;  %v6402_v13 = vmul.f32 %v18238_v54, %v6320_v23  ;;  %v6592_v38 = vmul.f32 %v18253_v32, %v18148_v40  ;;  %v7046_v12 = vld [vmem:[#allocation3 + $0xd6] sm:$0xff] }
 0x59b   : > { %v7009_v28 = vadd.f32 %v6937_v25, %v6819_v48  ;;  %v5902_v29 = vadd.f32 %v5825_v17, %v5707_v7  ;;  %v6015_v37 = vmul.f32 %v18168_v15, %v18131_v51  ;;  %v6171_v0 = vmul.f32 %v18246_v31, %v18272_v45  ;;  %v6321_v7 = vld [vmem:[#allocation3 + $0xcb] sm:$0xff] }
 0x59c   : > { %v6284_v34 = vadd.f32 %v6212_v57, %v6128_v55  ;;  %v6783_v47 = vadd.f32 %v6706_v20, %v6627_v52  ;;  %v6748_v25 = vmul.f32 %v18260_v35, %v18311_v6  ;;  %v5559_v2 = vadd.f32 %v20991_v56, %v17856_v11 }
 0x59d   : > { %v7199_v3 = vadd.f32 %v7127_v39, %v7009_v28  ;;  %v6092_v21 = vadd.f32 %v6015_v37, %v5902_v29  ;;  %v5749_v10 = vmul.f32 %v18189_v33, %v5667_v61  ;;  %v5867_v51 = vmul.f32 %v18195_v26, %v5785_v58  ;;  %v18344_v29 = vld [vmem:[#allocation3 + $0xdc] sm:$0xff] }
 0x59e   : > { %v6474_v50 = vadd.f32 %v6402_v13, %v6284_v34  ;;  %v6973_v4 = vadd.f32 %v6896_v14, %v6783_v47  ;;  %v6938_v39 = vmul.f32 %v18267_v22, %v6856_v49  ;;  %v6361_v57 = vmul.f32 %v18201_v16, %v6320_v23  ;;  %5634 = vst.msk [vmem:[#allocation3 + $0x100] sm:$0xff] %vm4938_vm4, %v5559_v2  ;;  %v5668_v2 = vld [vmem:[#allocation3 + $0xc0] sm:$0xff] }
 0x59f   : > { %13456 = vmatmul.mubr.msk.f32.gmra.mxu1 %vm4938_vm4, %v7199_v3  ;;  %v6057_v11 = vmul.f32 %v18215_v46, %v18181_v42  ;;  %v6248_v8 = vadd.f32 %v6171_v0, %v6092_v21  ;;  %v5939_v20 = vadd.f32 %v5867_v51, %v5749_v10  ;;  %v6213_v55 = vmul.f32 %v18222_v27, %v18326_v24  ;;  %v7047_v10 = vld [vmem:[#allocation3 + $0xde] sm:$0xff] }
 0x5a0   : > { %v6664_v48 = vadd.f32 %v6592_v38, %v6474_v50  ;;  %v7163_v17 = vadd.f32 %v7086_v18, %v6973_v4  ;;  %v7128_v28 = vmul.f32 %v18278_v43, %v7046_v12  ;;  %v6551_v14 = vmul.f32 %v18208_v63, %v18148_v40  ;;  %v5786_v50 = vld [vmem:[#allocation3 + $0xc1] sm:$0xff] }
 0x5a1   : > { %v6707_v23 = vmul.f32 %v18294_v60, %v18311_v6  ;;  %v6438_v13 = vadd.f32 %v6361_v57, %v6248_v8  ;;  %v6897_v34 = vmul.f32 %v18301_v53, %v6856_v49  ;;  %v6129_v38 = vadd.f32 %v6057_v11, %v5939_v20  ;;  %v6857_v49 = vld [vmem:[#allocation3 + $0xdd] sm:$0xff]  ;;  %v20992_v57 = vld [vmem:[#allocation74_spill] sm:$0xff] }
 0x5a2   : > { %v6820_v52 = vadd.f32 %v6748_v25, %v6664_v48  ;;  %13518 = vmatmul.mubr.msk.f32.gmra.mxu0 %vm4938_vm4, %v7163_v17  ;;  %v7087_v37 = vmul.f32 %v18308_v41, %v7046_v12  ;;  %v6403_v18 = vmul.f32 %v18238_v54, %v6321_v7  ;;  %v5708_v0 = vmul.f32 %v18153_v59, %v5667_v61  ;;  %v18361_v48 = vld [vmem:[#allocation3 + $0xd2] sm:$0xff] }
 0x5a3   : > { %v5826_v40 = vmul.f32 %v18159_v9, %v5785_v58  ;;  %v6628_v47 = vadd.f32 %v6551_v14, %v6438_v13  ;;  %v6285_v56 = vadd.f32 %v6213_v55, %v6129_v38  ;;  %v6593_v25 = vmul.f32 %v18253_v32, %v18229_v1 }
 0x5a4   : > { %v7010_v3 = vadd.f32 %v6938_v39, %v6820_v52  ;;  %v6749_v21 = vmul.f32 %v18260_v35, %v18344_v29  ;;  %v6016_v51 = vmul.f32 %v18168_v15, %v18181_v42  ;;  %v6172_v61 = vmul.f32 %v18246_v31, %v18326_v24 }
 0x5a5   : > { %v5903_v12 = vadd.f32 %v5826_v40, %v5708_v0  ;;  %v6784_v4 = vadd.f32 %v6707_v23, %v6628_v47  ;;  %v6475_v39 = vadd.f32 %v6403_v18, %v6285_v56  ;;  %v5564_v11 = vadd.f32 %v20992_v57, %v17877_v30  ;;  %v6322_v18 = vld [vmem:[#allocation3 + $0xd3] sm:$0xff]  ;;  %v18378_v56 = vld [vmem:[#allocation3 + $0xe4] sm:$0xff] }
 0x5a6   : > { %v7200_v58 = vadd.f32 %v7128_v28, %v7010_v3  ;;  %v6939_v8 = vmul.f32 %v18267_v22, %v6857_v49  ;;  %v5750_v55 = vmul.f32 %v18189_v33, %v5668_v2  ;;  %v5868_v17 = vmul.f32 %v18195_v26, %v5786_v50  ;;  %v7048_v57 = vld [vmem:[#allocation3 + $0xe6] sm:$0xff] }
 0x5a7   : > { %v6093_v20 = vadd.f32 %v6016_v51, %v5903_v12  ;;  %v6974_v42 = vadd.f32 %v6897_v34, %v6784_v4  ;;  %v6665_v14 = vadd.f32 %v6593_v25, %v6475_v39  ;;  %v7129_v28 = vmul.f32 %v18278_v43, %v7047_v10  ;;  %5635 = vst.msk [vmem:[#allocation3 + $0x108] sm:$0xff] %vm4938_vm4, %v5564_v11  ;;  %v6858_v39 = vld [vmem:[#allocation3 + $0xe5] sm:$0xff] }
 0x5a8   : > { %13458 = vmatprep.mubr.msk.f32.mxu1 %vm4938_vm4, %v7200_v58  ;;  %v6362_v23 = vmul.f32 %v18201_v16, %v6321_v7  ;;  %v5940_v52 = vadd.f32 %v5868_v17, %v5750_v55  ;;  %v6058_v13 = vmul.f32 %v18215_v46, %v18272_v45  ;;  %v6214_v38 = vmul.f32 %v18222_v27, %v18361_v48 }
 0x5a9   : > { %v6249_v30 = vadd.f32 %v6172_v61, %v6093_v20  ;;  %v7164_v0 = vadd.f32 %v7087_v37, %v6974_v42  ;;  %v6821_v40 = vadd.f32 %v6749_v21, %v6665_v14  ;;  %v6552_v34 = vmul.f32 %v18208_v63, %v18229_v1  ;;  %v5669_v61 = vld [vmem:[#allocation3 + $0xc8] sm:$0xff]  ;;  %v20993_v14 = vld [vmem:[#allocation50_spill] sm:$0xff] }
 0x5aa   : > { %v6708_v3 = vmul.f32 %v18294_v60, %v18344_v29  ;;  %v6130_v47 = vadd.f32 %v6058_v13, %v5940_v52  ;;  %v5709_v25 = vmul.f32 %v18153_v59, %v5668_v2  ;;  %v5827_v12 = vmul.f32 %v18159_v9, %v5786_v50  ;;  %v5787_v50 = vld [vmem:[#allocation3 + $0xc9] sm:$0xff] }
 0x5ab   : > { %v6439_v7 = vadd.f32 %v6362_v23, %v6249_v30  ;;  %13520 = vmatprep.mubr.msk.f32.mxu0 %vm4938_vm4, %v7164_v0  ;;  %v7011_v51 = vadd.f32 %v6939_v8, %v6821_v40  ;;  %v6898_v37 = vmul.f32 %v18301_v53, %v6857_v49  ;;  %v6404_v21 = vmul.f32 %v18238_v54, %v6322_v18  ;;  %v18396_v30 = vld [vmem:[#allocation3 + $0xda] sm:$0xff] }
 0x5ac   : > { %v6017_v1 = vmul.f32 %v18168_v15, %v18272_v45  ;;  %v6286_v4 = vadd.f32 %v6214_v38, %v6130_v47  ;;  %v5904_v11 = vadd.f32 %v5827_v12, %v5709_v25  ;;  %v6173_v2 = vmul.f32 %v18246_v31, %v18361_v48  ;;  %v6323_v25 = vld [vmem:[#allocation3 + $0xdb] sm:$0xff] }
 0x5ad   : > { %v6629_v58 = vadd.f32 %v6552_v34, %v6439_v7  ;;  %v7201_v20 = vadd.f32 %v7129_v28, %v7011_v51  ;;  %v7088_v8 = vmul.f32 %v18308_v41, %v7047_v10  ;;  %v6594_v49 = vmul.f32 %v18253_v32, %v18311_v6 }
 0x5ae   : > { %v6750_v55 = vmul.f32 %v18260_v35, %v18378_v56  ;;  %v6476_v17 = vadd.f32 %v6404_v21, %v6286_v4  ;;  %v6094_v42 = vadd.f32 %v6017_v1, %v5904_v11  ;;  %v5569_v23 = vadd.f32 %v20993_v14, %v17893_v36 }
 0x5af   : > { %v6785_v45 = vadd.f32 %v6708_v3, %v6629_v58  ;;  %13459 = vmatmul.mubr.msk.f32.gmra.mxu1 %vm4938_vm4, %v7201_v20  ;;  %v6940_v28 = vmul.f32 %v18267_v22, %v6858_v39  ;;  %v7130_v10 = vmul.f32 %v18278_v43, %v7048_v57  ;;  %v5751_v52 = vmul.f32 %v18189_v33, %v5669_v61  ;;  %v18414_v58 = vld [vmem:[#allocation3 + $0xec] sm:$0xff] }
 0x5b0   : > { %v5869_v13 = vmul.f32 %v18195_v26, %v5787_v50  ;;  %v6666_v0 = vadd.f32 %v6594_v49, %v6476_v17  ;;  %v6250_v40 = vadd.f32 %v6173_v2, %v6094_v42  ;;  %v6363_v34 = vmul.f32 %v18201_v16, %v6322_v18  ;;  %5636 = vst.msk [vmem:[#allocation3 + $0x110] sm:$0xff] %vm4938_vm4, %v5569_v23  ;;  %v6859_v49 = vld [vmem:[#allocation3 + $0xed] sm:$0xff] }
 0x5b1   : > { %v6975_v38 = vadd.f32 %v6898_v37, %v6785_v45  ;;  %v6553_v36 = vmul.f32 %v18208_v63, %v18311_v6  ;;  %v6059_v7 = vmul.f32 %v18215_v46, %v18326_v24  ;;  %v6215_v47 = vmul.f32 %v18222_v27, %v18396_v30  ;;  %v7049_v45 = vld [vmem:[#allocation3 + $0xee] sm:$0xff] }
 0x5b2   : > { %v5941_v3 = vadd.f32 %v5869_v13, %v5751_v52  ;;  %v6822_v51 = vadd.f32 %v6750_v55, %v6666_v0  ;;  %v6440_v37 = vadd.f32 %v6363_v34, %v6250_v40  ;;  %v6709_v21 = vmul.f32 %v18294_v60, %v18378_v56  ;;  %v5670_v42 = vld [vmem:[#allocation3 + $0xd0] sm:$0xff]  ;;  %v20995_v40 = vld [vmem:[#allocation75_spill] sm:$0xff]  ;;  %v18432_v34 = vld [vmem:[#allocation3 + $0xe2] sm:$0xff] }
 0x5b3   : > { %v7165_v12 = vadd.f32 %v7088_v8, %v6975_v38  ;;  %v6899_v18 = vmul.f32 %v18301_v53, %v6858_v39  ;;  %v5710_v6 = vmul.f32 %v18153_v59, %v5669_v61  ;;  %v5828_v4 = vmul.f32 %v18159_v9, %v5787_v50  ;;  %v5788_v50 = vld [vmem:[#allocation3 + $0xd1] sm:$0xff] }
 0x5b4   : > { %v6131_v1 = vadd.f32 %v6059_v7, %v5941_v3  ;;  %v7012_v11 = vadd.f32 %v6940_v28, %v6822_v51  ;;  %v6630_v2 = vadd.f32 %v6553_v36, %v6440_v37  ;;  %v7089_v20 = vmul.f32 %v18308_v41, %v7048_v57  ;;  %v20994_v0 = vld [vmem:[#allocation57_spill] sm:$0xff] }
 0x5b5   : > { %13521 = vmatmul.mubr.msk.f32.gmra.mxu0 %vm4938_vm4, %v7165_v12  ;;  %v6405_v8 = vmul.f32 %v18238_v54, %v6323_v25  ;;  %v5905_v17 = vadd.f32 %v5828_v4, %v5710_v6  ;;  %v6018_v39 = vmul.f32 %v18168_v15, %v18326_v24  ;;  %v6174_v61 = vmul.f32 %v18246_v31, %v18396_v30  ;;  %v6324_v4 = vld [vmem:[#allocation3 + $0xe3] sm:$0xff] }
 0x5b6   : > { %v6287_v55 = vadd.f32 %v6215_v47, %v6131_v1  ;;  %v7202_v14 = vadd.f32 %v7130_v10, %v7012_v11  ;;  %v6786_v23 = vadd.f32 %v6709_v21, %v6630_v2  ;;  %v6595_v28 = vmul.f32 %v18253_v32, %v18344_v29 }
 0x5b7   : > { %v6751_v57 = vmul.f32 %v18260_v35, %v18414_v58  ;;  %v6941_v13 = vmul.f32 %v18267_v22, %v6859_v49  ;;  %v6095_v38 = vadd.f32 %v6018_v39, %v5905_v17  ;;  %v5574_v24 = vadd.f32 %v20995_v40, %v20994_v0 }
 0x5b8   : > { %v6477_v52 = vadd.f32 %v6405_v8, %v6287_v55  ;;  %13461 = vmatprep.mubr.msk.f32.mxu1 %vm4938_vm4, %v7202_v14  ;;  %v6976_v36 = vadd.f32 %v6899_v18, %v6786_v23  ;;  %v7131_v10 = vmul.f32 %v18278_v43, %v7049_v45  ;;  %v5752_v3 = vmul.f32 %v18189_v33, %v5670_v42  ;;  %v18451_v55 = vld [vmem:[#allocation3 + $0xf4] sm:$0xff] }
 0x5b9   : > { %v5870_v7 = vmul.f32 %v18195_v26, %v5788_v50  ;;  %v6251_v12 = vadd.f32 %v6174_v61, %v6095_v38  ;;  %v6364_v51 = vmul.f32 %v18201_v16, %v6323_v25  ;;  %v6554_v37 = vmul.f32 %v18208_v63, %v18344_v29  ;;  %5637 = vst.msk [vmem:[#allocation3 + $0x118] sm:$0xff] %vm4938_vm4, %v5574_v24  ;;  %v6860_v38 = vld [vmem:[#allocation3 + $0xf5] sm:$0xff] }
 0x5ba   : > { %v6667_v47 = vadd.f32 %v6595_v28, %v6477_v52  ;;  %v7166_v21 = vadd.f32 %v7089_v20, %v6976_v36  ;;  %v6060_v18 = vmul.f32 %v18215_v46, %v18361_v48  ;;  %v6216_v6 = vmul.f32 %v18222_v27, %v18432_v34  ;;  %v20996_v24 = vld [vmem:[#allocation23_spill] sm:$0xff]  ;;  %v20997_v36 = vld [vmem:[#allocation26_spill] sm:$0xff] }
 0x5bb   : > { %v5942_v1 = vadd.f32 %v5870_v7, %v5752_v3  ;;  %v6441_v2 = vadd.f32 %v6364_v51, %v6251_v12  ;;  %v6710_v8 = vmul.f32 %v18294_v60, %v18414_v58  ;;  %v6900_v25 = vmul.f32 %v18301_v53, %v6859_v49  ;;  %v5789_v49 = vld [vmem:[#allocation3 + $0xd9] sm:$0xff]  ;;  %v18466_v7 = vld [vmem:[#allocation3 + $0xea] sm:$0xff] }
 0x5bc   : > { %v6823_v11 = vadd.f32 %v6751_v57, %v6667_v47  ;;  %13523 = vmatprep.mubr.msk.f32.mxu0 %vm4938_vm4, %v7166_v21  ;;  %v7090_v29 = vmul.f32 %v18308_v41, %v7049_v45  ;;  %v5711_v17 = vmul.f32 %v18153_v59, %v5670_v42  ;;  %v5829_v39 = vmul.f32 %v18159_v9, %v5788_v50  ;;  %v5671_v57 = vld [vmem:[#allocation3 + $0xd8] sm:$0xff] }
 0x5bd   : > { %v6132_v20 = vadd.f32 %v6060_v18, %v5942_v1  ;;  %v6631_v14 = vadd.f32 %v6554_v37, %v6441_v2  ;;  %v6406_v23 = vmul.f32 %v18238_v54, %v6324_v4  ;;  %v6596_v28 = vmul.f32 %v18253_v32, %v18378_v56  ;;  %v7050_v12 = vld [vmem:[#allocation3 + $0xf6] sm:$0xff] }
 0x5be   : > { %v7013_v61 = vadd.f32 %v6941_v13, %v6823_v11  ;;  %v5906_v0 = vadd.f32 %v5829_v39, %v5711_v17  ;;  %v6019_v45 = vmul.f32 %v18168_v15, %v18361_v48  ;;  %v6175_v42 = vmul.f32 %v18246_v31, %v18432_v34 }
 0x5bf   : > { %v6288_v52 = vadd.f32 %v6216_v6, %v6132_v20  ;;  %v6787_v50 = vadd.f32 %v6710_v8, %v6631_v14  ;;  %v6752_v13 = vmul.f32 %v18260_v35, %v18451_v55  ;;  %v5579_v3 = vadd.f32 %v20997_v36, %v20996_v24  ;;  %v6325_v20 = vld [vmem:[#allocation3 + $0xeb] sm:$0xff]  ;;  %v5672_v24 = vld [vmem:[#allocation3 + $0xe0] sm:$0xff] }
 0x5c0   : > { %v7203_v40 = vadd.f32 %v7131_v10, %v7013_v61  ;;  %v6096_v51 = vadd.f32 %v6019_v45, %v5906_v0  ;;  %v5753_v37 = vmul.f32 %v18189_v33, %v5671_v57  ;;  %v5871_v48 = vmul.f32 %v18195_v26, %v5789_v49  ;;  %v5790_v36 = vld [vmem:[#allocation3 + $0xe1] sm:$0xff] }
 0x5c1   : > { %v6478_v47 = vadd.f32 %v6406_v23, %v6288_v52  ;;  %v6977_v21 = vadd.f32 %v6900_v25, %v6787_v50  ;;  %v6942_v10 = vmul.f32 %v18267_v22, %v6860_v38  ;;  %v6365_v1 = vmul.f32 %v18201_v16, %v6324_v4  ;;  %5638 = vst.msk [vmem:[#allocation3 + $0x120] sm:$0xff] %vm4938_vm4, %v5579_v3  ;;  %v18484_v52 = vld [vmem:[#allocation3 + $0xfc] sm:$0xff] }
 0x5c2   : > { %13462 = vmatmul.mubr.msk.f32.gmra.mxu1 %vm4938_vm4, %v7203_v40  ;;  %v6061_v18 = vmul.f32 %v18215_v46, %v18396_v30  ;;  %v6252_v11 = vadd.f32 %v6175_v42, %v6096_v51  ;;  %v5943_v2 = vadd.f32 %v5871_v48, %v5753_v37  ;;  %v6217_v8 = vmul.f32 %v18222_v27, %v18466_v7 }
 0x5c3   : > { %v6668_v6 = vadd.f32 %v6596_v28, %v6478_v47  ;;  %v7167_v17 = vadd.f32 %v7090_v29, %v6977_v21  ;;  %v7132_v39 = vmul.f32 %v18278_v43, %v7050_v12  ;;  %v6555_v25 = vmul.f32 %v18208_v63, %v18378_v56  ;;  %v7051_v47 = vld [vmem:[#allocation3 + $0xfe] sm:$0xff] }
 0x5c4   : > { %v6711_v4 = vmul.f32 %v18294_v60, %v18451_v55  ;;  %v6442_v14 = vadd.f32 %v6365_v1, %v6252_v11  ;;  %v6901_v23 = vmul.f32 %v18301_v53, %v6860_v38  ;;  %v6133_v28 = vadd.f32 %v6061_v18, %v5943_v2  ;;  %v6861_v38 = vld [vmem:[#allocation3 + $0xfd] sm:$0xff]  ;;  %v18501_v18 = vld [vmem:[#allocation3 + $0xf2] sm:$0xff] }
 0x5c5   : > { %v6824_v61 = vadd.f32 %v6752_v13, %v6668_v6  ;;  %13524 = vmatmul.mubr.msk.f32.gmra.mxu0 %vm4938_vm4, %v7167_v17  ;;  %v7091_v0 = vmul.f32 %v18308_v41, %v7050_v12  ;;  %v6407_v29 = vmul.f32 %v18238_v54, %v6325_v20  ;;  %v5712_v45 = vmul.f32 %v18153_v59, %v5671_v57  ;;  %v20998_v21 = vld [vmem:[#allocation79_spill] sm:$0xff] }
 0x5c6   : > { %v5830_v56 = vmul.f32 %v18159_v9, %v5789_v49  ;;  %v6632_v40 = vadd.f32 %v6555_v25, %v6442_v14  ;;  %v6289_v50 = vadd.f32 %v6217_v8, %v6133_v28  ;;  %v6597_v13 = vmul.f32 %v18253_v32, %v18414_v58 }
 0x5c7   : > { %v7014_v42 = vadd.f32 %v6942_v10, %v6824_v61  ;;  %v6753_v3 = vmul.f32 %v18260_v35, %v18484_v52  ;;  %v6020_v51 = vmul.f32 %v18168_v15, %v18396_v30  ;;  %v6176_v57 = vmul.f32 %v18246_v31, %v18466_v7  ;;  %v20999_v10 = vld [vmem:[#allocation119_spill] sm:$0xff] }
 0x5c8   : > { %v5907_v12 = vadd.f32 %v5830_v56, %v5712_v45  ;;  %v6788_v37 = vadd.f32 %v6711_v4, %v6632_v40  ;;  %v6479_v48 = vadd.f32 %v6407_v29, %v6289_v50  ;;  %v5584_v1 = vadd.f32 %v20999_v10, %v20998_v21  ;;  %v6326_v29 = vld [vmem:[#allocation3 + $0xf3] sm:$0xff]  ;;  %v18518_v50 = vld [vmem:[#allocation3 + $0x104] sm:$0xff] }
 0x5c9   : > { %v7204_v49 = vadd.f32 %v7132_v39, %v7014_v42  ;;  %v6943_v6 = vmul.f32 %v18267_v22, %v6861_v38  ;;  %v5754_v2 = vmul.f32 %v18189_v33, %v5672_v24  ;;  %v5872_v8 = vmul.f32 %v18195_v26, %v5790_v36  ;;  %v7052_v21 = vld [vmem:[#allocation3 + $0x106] sm:$0xff] }
 0x5ca   : > { %v6097_v11 = vadd.f32 %v6020_v51, %v5907_v12  ;;  %v6978_v30 = vadd.f32 %v6901_v23, %v6788_v37  ;;  %v6669_v17 = vadd.f32 %v6597_v13, %v6479_v48  ;;  %v7133_v39 = vmul.f32 %v18278_v43, %v7051_v47  ;;  %5639 = vst.msk [vmem:[#allocation3 + $0x128] sm:$0xff] %vm4938_vm4, %v5584_v1  ;;  %v6862_v48 = vld [vmem:[#allocation3 + $0x105] sm:$0xff] }
 0x5cb   : > { %13464 = vmatprep.mubr.msk.f32.mxu1 %vm4938_vm4, %v7204_v49  ;;  %v6366_v25 = vmul.f32 %v18201_v16, %v6325_v20  ;;  %v5944_v61 = vadd.f32 %v5872_v8, %v5754_v2  ;;  %v6062_v14 = vmul.f32 %v18215_v46, %v18432_v34  ;;  %v6218_v28 = vmul.f32 %v18222_v27, %v18501_v18 }
 0x5cc   : > { %v6253_v4 = vadd.f32 %v6176_v57, %v6097_v11  ;;  %v7168_v45 = vadd.f32 %v7091_v0, %v6978_v30  ;;  %v6825_v56 = vadd.f32 %v6753_v3, %v6669_v17  ;;  %v6556_v23 = vmul.f32 %v18208_v63, %v18414_v58  ;;  %v5673_v57 = vld [vmem:[#allocation3 + $0xe8] sm:$0xff]  ;;  %v21000_v30 = vld [vmem:[#allocation27_spill] sm:$0xff] }
 0x5cd   : > { %v6712_v42 = vmul.f32 %v18294_v60, %v18484_v52  ;;  %v6134_v40 = vadd.f32 %v6062_v14, %v5944_v61  ;;  %v5713_v13 = vmul.f32 %v18153_v59, %v5672_v24  ;;  %v5831_v12 = vmul.f32 %v18159_v9, %v5790_v36  ;;  %v5791_v36 = vld [vmem:[#allocation3 + $0xe9] sm:$0xff] }
 0x5ce   : > { %v6443_v20 = vadd.f32 %v6366_v25, %v6253_v4  ;;  %13526 = vmatprep.mubr.msk.f32.mxu0 %vm4938_vm4, %v7168_v45  ;;  %v7015_v51 = vadd.f32 %v6943_v6, %v6825_v56  ;;  %v6902_v0 = vmul.f32 %v18301_v53, %v6861_v38  ;;  %v6408_v3 = vmul.f32 %v18238_v54, %v6326_v29  ;;  %v18536_v25 = vld [vmem:[#allocation3 + $0xfa] sm:$0xff] }
 0x5cf   : > { %v6021_v58 = vmul.f32 %v18168_v15, %v18432_v34  ;;  %v6290_v37 = vadd.f32 %v6218_v28, %v6134_v40  ;;  %v5908_v10 = vadd.f32 %v5831_v12, %v5713_v13  ;;  %v6177_v24 = vmul.f32 %v18246_v31, %v18501_v18  ;;  %v6327_v40 = vld [vmem:[#allocation3 + $0xfb] sm:$0xff] }
 0x5d0   : > { %v6633_v49 = vadd.f32 %v6556_v23, %v6443_v20  ;;  %v7205_v1 = vadd.f32 %v7133_v39, %v7015_v51  ;;  %v7092_v6 = vmul.f32 %v18308_v41, %v7051_v47  ;;  %v6598_v38 = vmul.f32 %v18253_v32, %v18451_v55 }
 0x5d1   : > { %v6754_v11 = vmul.f32 %v18260_v35, %v18518_v50  ;;  %v6480_v2 = vadd.f32 %v6408_v3, %v6290_v37  ;;  %v6098_v8 = vadd.f32 %v6021_v58, %v5908_v10  ;;  %v5589_v17 = vadd.f32 %v21000_v30, %v17983_v5  ;;  %v18554_v58 = vld [vmem:[#allocation3 + $0x10c] sm:$0xff] }
 0x5d2   : > { %v6789_v34 = vadd.f32 %v6712_v42, %v6633_v49  ;;  %13465 = vmatmul.mubr.msk.f32.gmra.mxu1 %vm4938_vm4, %v7205_v1  ;;  %v6944_v39 = vmul.f32 %v18267_v22, %v6862_v48  ;;  %v7134_v47 = vmul.f32 %v18278_v43, %v7052_v21  ;;  %v5755_v4 = vmul.f32 %v18189_v33, %v5673_v57 }
 0x5d3   : > { %v5873_v61 = vmul.f32 %v18195_v26, %v5791_v36  ;;  %v6670_v28 = vadd.f32 %v6598_v38, %v6480_v2  ;;  %v6254_v45 = vadd.f32 %v6177_v24, %v6098_v8  ;;  %v6367_v56 = vmul.f32 %v18201_v16, %v6326_v29  ;;  %5640 = vst.msk [vmem:[#allocation3 + $0x130] sm:$0xff] %vm4938_vm4, %v5589_v17  ;;  %v5674_v2 = vld [vmem:[#allocation3 + $0xf0] sm:$0xff] }
 0x5d4   : > { %v6979_v14 = vadd.f32 %v6902_v0, %v6789_v34  ;;  %v6557_v5 = vmul.f32 %v18208_v63, %v18451_v55  ;;  %v6063_v42 = vmul.f32 %v18215_v46, %v18466_v7  ;;  %v6219_v20 = vmul.f32 %v18222_v27, %v18536_v25 }
 0x5d5   : > { %v5945_v23 = vadd.f32 %v5873_v61, %v5755_v4  ;;  %v6826_v12 = vadd.f32 %v6754_v11, %v6670_v28  ;;  %v6444_v51 = vadd.f32 %v6367_v56, %v6254_v45  ;;  %v6713_v0 = vmul.f32 %v18294_v60, %v18518_v50  ;;  %v7053_v11 = vld [vmem:[#allocation3 + $0x10e] sm:$0xff]  ;;  %v18572_v28 = vld [vmem:[#allocation3 + $0x102] sm:$0xff] }
 0x5d6   : > { %v7169_v13 = vadd.f32 %v7092_v6, %v6979_v14  ;;  %v6903_v29 = vmul.f32 %v18301_v53, %v6862_v48  ;;  %v5714_v55 = vmul.f32 %v18153_v59, %v5673_v57  ;;  %v5832_v49 = vmul.f32 %v18159_v9, %v5791_v36  ;;  %v6863_v6 = vld [vmem:[#allocation3 + $0x10d] sm:$0xff]  ;;  %v21001_v14 = vld [vmem:[#allocation40_spill] sm:$0xff] }
 0x5d7   : > { %v6135_v3 = vadd.f32 %v6063_v42, %v5945_v23  ;;  %v7016_v37 = vadd.f32 %v6944_v39, %v6826_v12  ;;  %v6634_v10 = vadd.f32 %v6557_v5, %v6444_v51  ;;  %v7093_v24 = vmul.f32 %v18308_v41, %v7052_v21  ;;  %v5792_v36 = vld [vmem:[#allocation3 + $0xf1] sm:$0xff] }
 0x5d8   : > { %13527 = vmatmul.mubr.msk.f32.gmra.mxu0 %vm4938_vm4, %v7169_v13  ;;  %v6409_v1 = vmul.f32 %v18238_v54, %v6327_v40  ;;  %v5909_v34 = vadd.f32 %v5832_v49, %v5714_v55  ;;  %v6022_v48 = vmul.f32 %v18168_v15, %v18466_v7  ;;  %v6178_v57 = vmul.f32 %v18246_v31, %v18536_v25 }
 0x5d9   : > { %v6291_v38 = vadd.f32 %v6219_v20, %v6135_v3  ;;  %v7206_v8 = vadd.f32 %v7134_v47, %v7016_v37  ;;  %v6790_v30 = vadd.f32 %v6713_v0, %v6634_v10  ;;  %v6599_v17 = vmul.f32 %v18253_v32, %v18484_v52  ;;  %v18591_v10 = vld [vmem:[#allocation3 + $0x114] sm:$0xff] }
 0x5da   : > { %v6755_v21 = vmul.f32 %v18260_v35, %v18554_v58  ;;  %v6945_v4 = vmul.f32 %v18267_v22, %v6863_v6  ;;  %v6099_v61 = vadd.f32 %v6022_v48, %v5909_v34  ;;  %v5594_v7 = vadd.f32 %v21001_v14, %v18022_v19 }
 0x5db   : > { %v6481_v39 = vadd.f32 %v6409_v1, %v6291_v38  ;;  %13467 = vmatprep.mubr.msk.f32.mxu1 %vm4938_vm4, %v7206_v8  ;;  %v6980_v45 = vadd.f32 %v6903_v29, %v6790_v30  ;;  %v7135_v47 = vmul.f32 %v18278_v43, %v7053_v11  ;;  %v5756_v56 = vmul.f32 %v18189_v33, %v5674_v2  ;;  %v6328_v29 = vld [vmem:[#allocation3 + $0x103] sm:$0xff]  ;;  %v6864_v8 = vld [vmem:[#allocation3 + $0x115] sm:$0xff] }
 0x5dc   : > { %v5874_v5 = vmul.f32 %v18195_v26, %v5792_v36  ;;  %v6255_v42 = vadd.f32 %v6178_v57, %v6099_v61  ;;  %v6368_v20 = vmul.f32 %v18201_v16, %v6327_v40  ;;  %v6558_v13 = vmul.f32 %v18208_v63, %v18484_v52  ;;  %5641 = vst.msk [vmem:[#allocation3 + $0x138] sm:$0xff] %vm4938_vm4, %v5594_v7  ;;  %v7054_v30 = vld [vmem:[#allocation3 + $0x116] sm:$0xff] }
 0x5dd   : > { %v6671_v23 = vadd.f32 %v6599_v17, %v6481_v39  ;;  %v7170_v19 = vadd.f32 %v7093_v24, %v6980_v45  ;;  %v6064_v51 = vmul.f32 %v18215_v46, %v18501_v18  ;;  %v6220_v0 = vmul.f32 %v18222_v27, %v18572_v28  ;;  %v5793_v39 = vld [vmem:[#allocation3 + $0xf9] sm:$0xff] }
 0x5de   : > { %v5946_v12 = vadd.f32 %v5874_v5, %v5756_v56  ;;  %v6445_v55 = vadd.f32 %v6368_v20, %v6255_v42  ;;  %v6714_v49 = vmul.f32 %v18294_v60, %v18554_v58  ;;  %v6904_v40 = vmul.f32 %v18301_v53, %v6863_v6  ;;  %v18607_v5 = vld [vmem:[#allocation3 + $0x10a] sm:$0xff] }
 0x5df   : > { %v6827_v3 = vadd.f32 %v6755_v21, %v6671_v23  ;;  %13529 = vmatprep.mubr.msk.f32.mxu0 %vm4938_vm4, %v7170_v19  ;;  %v7094_v52 = vmul.f32 %v18308_v41, %v7053_v11  ;;  %v5715_v24 = vmul.f32 %v18153_v59, %v5674_v2  ;;  %v5833_v1 = vmul.f32 %v18159_v9, %v5792_v36  ;;  %v5675_v2 = vld [vmem:[#allocation3 + $0xf8] sm:$0xff] }
 0x5e0   : > { %v6136_v37 = vadd.f32 %v6064_v51, %v5946_v12  ;;  %v6635_v34 = vadd.f32 %v6558_v13, %v6445_v55  ;;  %v6410_v48 = vmul.f32 %v18238_v54, %v6328_v29  ;;  %v6600_v57 = vmul.f32 %v18253_v32, %v18518_v50 }
 0x5e1   : > { %v7017_v38 = vadd.f32 %v6945_v4, %v6827_v3  ;;  %v5910_v17 = vadd.f32 %v5833_v1, %v5715_v24  ;;  %v6023_v11 = vmul.f32 %v18168_v15, %v18501_v18  ;;  %v6179_v21 = vmul.f32 %v18246_v31, %v18572_v28  ;;  %v6329_v3 = vld [vmem:[#allocation3 + $0x10b] sm:$0xff]  ;;  %v6865_v24 = vld [vmem:[#allocation3 + $0x11d] sm:$0xff] }
 0x5e2   : > { %v6292_v6 = vadd.f32 %v6220_v0, %v6136_v37  ;;  %v6791_v4 = vadd.f32 %v6714_v49, %v6635_v34  ;;  %v6756_v61 = vmul.f32 %v18260_v35, %v18591_v10  ;;  %v5599_v14 = vadd.f32 %v18024_v62, %v18062_v44 }
 0x5e3   : > { %v7207_v36 = vadd.f32 %v7135_v47, %v7017_v38  ;;  %v6946_v45 = vmul.f32 %v18267_v22, %v6864_v8  ;;  %v6100_v56 = vadd.f32 %v6023_v11, %v5910_v17  ;;  %v7136_v23 = vmul.f32 %v18278_v43, %v7054_v30  ;;  %v5794_v17 = vld [vmem:[#allocation3 + $0x101] sm:$0xff] }
 0x5e4   : > { %v6482_v7 = vadd.f32 %v6410_v48, %v6292_v6  ;;  %v6981_v18 = vadd.f32 %v6904_v40, %v6791_v4  ;;  %5643 = vst.msk [vmem:[#allocation3 + $0x140] sm:$0x3f] %vm5642_vm5, %v5599_v14  ;;  %v5757_v47 = vmul.f32 %v18189_v33, %v5675_v2  ;;  %v5875_v42 = vmul.f32 %v18195_v26, %v5793_v39 }
 0x5e5   : > { %13468 = vmatmul.mubr.msk.f32.gmra.mxu1 %vm4938_vm4, %v7207_v36  ;;  %v6256_v13 = vadd.f32 %v6179_v21, %v6100_v56  ;;  %v6369_v62 = vmul.f32 %v18201_v16, %v6328_v29  ;;  %v6559_v44 = vmul.f32 %v18208_v63, %v18518_v50  ;;  %v6065_v51 = vmul.f32 %v18215_v46, %v18536_v25  ;;  %v7055_v21 = vld [vmem:[#allocation3 + $0x11e] sm:$0xff] }
 0x5e6   : > { %v6672_v20 = vadd.f32 %v6600_v57, %v6482_v7  ;;  %v7171_v19 = vadd.f32 %v7094_v52, %v6981_v18  ;;  %v5947_v12 = vadd.f32 %v5875_v42, %v5757_v47  ;;  %v6221_v0 = vmul.f32 %v18222_v27, %v18607_v5  ;;  %v18625_v52 = vld [vmem:[#allocation3 + $0x11c] sm:$0xff] }
 0x5e7   : > { %v6446_v49 = vadd.f32 %v6369_v62, %v6256_v13  ;;  %v6715_v40 = vmul.f32 %v18294_v60, %v18591_v10  ;;  %v6905_v37 = vmul.f32 %v18301_v53, %v6864_v8  ;;  %v7095_v50 = vmul.f32 %v18308_v41, %v7054_v30  ;;  %v5676_v8 = vld [vmem:[#allocation3 + $0x100] sm:$0xff]  ;;  %v6330_v62 = vld [vmem:[#allocation3 + $0x113] sm:$0xff] }
 0x5e8   : > { %v6828_v55 = vadd.f32 %v6756_v61, %v6672_v20  ;;  %13530 = vmatmul.mubr.msk.f32.gmra.mxu0 %vm4938_vm4, %v7171_v19  ;;  %v6137_v29 = vadd.f32 %v6065_v51, %v5947_v12  ;;  %v5716_v1 = vmul.f32 %v18153_v59, %v5675_v2  ;;  %v5834_v38 = vmul.f32 %v18159_v9, %v5793_v39  ;;  %v18639_v61 = vld [vmem:[#allocation3 + $0x112] sm:$0xff] }
 0x5e9   : > { %v6636_v48 = vadd.f32 %v6559_v44, %v6446_v49  ;;  %v6411_v57 = vmul.f32 %v18238_v54, %v6329_v3  ;;  %v6601_v6 = vmul.f32 %v18253_v32, %v18554_v58  ;;  %v6024_v36 = vmul.f32 %v18168_v15, %v18536_v25  ;;  %v18674_v49 = vld [vmem:[%s20609_s5 + $0x2] ss:$0 sm:$0xff] }
 0x5ea   : > { %v7018_v34 = vadd.f32 %v6946_v45, %v6828_v55  ;;  %v6293_v11 = vadd.f32 %v6221_v0, %v6137_v29  ;;  %v5911_v30 = vadd.f32 %v5834_v38, %v5716_v1  ;;  %v6180_v59 = vmul.f32 %v18246_v31, %v18607_v5  ;;  %v18660_v0 = vld [vmem:[#allocation3 + $0x124] sm:$0xff] }
 0x5eb   : > { %v6792_v9 = vadd.f32 %v6715_v40, %v6636_v48  ;;  %v6757_v39 = vmul.f32 %v18260_v35, %v18625_v52  ;;  %v6947_v4 = vmul.f32 %v18267_v22, %v6865_v24  ;;  %v5758_v45 = vmul.f32 %v18189_v33, %v5676_v8  ;;  %v7056_v38 = vld [vmem:[#allocation3 + $0x126] sm:$0xff] }
 0x5ec   : > { %v7208_v2 = vadd.f32 %v7136_v23, %v7018_v34  ;;  %v6483_v14 = vadd.f32 %v6411_v57, %v6293_v11  ;;  %v6101_v7 = vadd.f32 %v6024_v36, %v5911_v30  ;;  %v5876_v56 = vmul.f32 %v18195_v26, %v5794_v17  ;;  %v5677_v48 = vld [vmem:[#allocation3 + $0x108] sm:$0xff]  ;;  %v18686_v30 = vld [vmem:[#allocation3 + $0x11a] sm:$0xff] }
 0x5ed   : > { %v6982_v15 = vadd.f32 %v6905_v37, %v6792_v9  ;;  %v7137_v25 = vmul.f32 %v18278_v43, %v7055_v21  ;;  %v6370_v18 = vmul.f32 %v18201_v16, %v6329_v3  ;;  %v6066_v23 = vmul.f32 %v18215_v46, %v18572_v28  ;;  %v18657_v16 = vld [vmem:[%s20609_s5] ss:$0 sm:$0xff] }
 0x5ee   : > { %13470 = vmatprep.mubr.msk.f32.mxu1 %vm4938_vm4, %v7208_v2  ;;  %v6673_v47 = vadd.f32 %v6601_v6, %v6483_v14  ;;  %v6257_v42 = vadd.f32 %v6180_v59, %v6101_v7  ;;  %v5948_v20 = vadd.f32 %v5876_v56, %v5758_v45  ;;  %v6222_v13 = vmul.f32 %v18222_v27, %v18639_v61  ;;  %v6866_v27 = vld [vmem:[#allocation3 + $0x125] sm:$0xff]  ;;  %v18704_v59 = vld [vmem:[%s20610_s6 + $0x1] ss:$0 sm:$0xff]  ;;  %v18720_v56 = vld [vmem:[%s20610_s6 + $0x2] ss:$0 sm:$0xff] }
 0x5ef   : > { %v7172_v33 = vadd.f32 %v7095_v50, %v6982_v15  ;;  %v6560_v26 = vmul.f32 %v18208_v63, %v18554_v58  ;;  %v6716_v44 = vmul.f32 %v18294_v60, %v18625_v52  ;;  %v5717_v46 = vmul.f32 %v18657_v16, %v5676_v8  ;;  %v18665_v63 = vld [vmem:[%s20609_s5 + $0x1] ss:$0 sm:$0xff] }
 0x5f0   : > { %v6829_v19 = vadd.f32 %v6757_v39, %v6673_v47  ;;  %v6447_v12 = vadd.f32 %v6370_v18, %v6257_v42  ;;  %v6138_v51 = vadd.f32 %v6066_v23, %v5948_v20  ;;  %v5835_v58 = vmul.f32 %v18665_v63, %v5794_v17  ;;  %v6331_v18 = vld [vmem:[#allocation3 + $0x11b] sm:$0xff] }
 0x5f1   : > { %13532 = vmatprep.mubr.msk.f32.mxu0 %vm4938_vm4, %v7172_v33  ;;  %v6906_v3 = vmul.f32 %v18301_v53, %v6865_v24  ;;  %v6412_v55 = vmul.f32 %v18238_v54, %v6330_v62  ;;  %v6025_v40 = vmul.f32 %v18674_v49, %v18572_v28  ;;  %v6181_v37 = vmul.f32 %v18246_v31, %v18639_v61  ;;  %v5795_v24 = vld [vmem:[#allocation3 + $0x109] sm:$0xff] }
 0x5f2   : > { %v7019_v50 = vadd.f32 %v6947_v4, %v6829_v19  ;;  %v6637_v29 = vadd.f32 %v6560_v26, %v6447_v12  ;;  %v6294_v1 = vadd.f32 %v6222_v13, %v6138_v51  ;;  %v5912_v34 = vadd.f32 %v5835_v58, %v5717_v46  ;;  %v18711_v4 = vld [vmem:[%s20609_s5 + $0x5] ss:$0 sm:$0xff]  ;;  %v6867_v33 = vld [vmem:[#allocation3 + $0x12d] sm:$0xff]  ;;  %v18741_v12 = vld [vmem:[%s20610_s6 + $0x4] ss:$0 sm:$0xff] }
 0x5f3   : > { %v7096_v54 = vmul.f32 %v18308_v41, %v7055_v21  ;;  %v6602_v57 = vmul.f32 %v18253_v32, %v18591_v10  ;;  %v6758_v6 = vmul.f32 %v18260_v35, %v18660_v0  ;;  %v6948_v28 = vmul.f32 %v18267_v22, %v6866_v27  ;;  %v18692_v21 = vld [vmem:[%s20609_s5 + $0x4] ss:$0 sm:$0xff]  ;;  %v18698_v35 = vld [vmem:[%s20610_s6] ss:$0 sm:$0xff] }
 0x5f4   : > { %v7209_v8 = vadd.f32 %v7137_v25, %v7019_v50  ;;  %v6793_v17 = vadd.f32 %v6716_v44, %v6637_v29  ;;  %v6484_v31 = vadd.f32 %v6412_v55, %v6294_v1  ;;  %v6102_v11 = vadd.f32 %v6025_v40, %v5912_v34  ;;  %v18727_v25 = vld [vmem:[%s20610_s6 + $0x3] ss:$0 sm:$0xff]  ;;  %v5796_v58 = vld [vmem:[#allocation3 + $0x111] sm:$0xff]  ;;  %v18763_v34 = vld [vmem:[%s20610_s6 + $0x6] ss:$0 sm:$0xff] }
 0x5f5   : > { %v7138_v36 = vmul.f32 %v18278_v43, %v7056_v38  ;;  %v6371_v32 = vmul.f32 %v18692_v21, %v6330_v62  ;;  %v5759_v22 = vmul.f32 %v18698_v35, %v5677_v48  ;;  %v5877_v43 = vmul.f32 %v18704_v59, %v5795_v24  ;;  %v18733_v62 = vld [vmem:[#allocation3 + $0x12c] sm:$0xff]  ;;  %v18756_v50 = vld [vmem:[%s20609_s5 + $0x3] ss:$0 sm:$0xff] }
 0x5f6   : > { %13471 = vmatmul.mubr.msk.f32.gmra.mxu1 %vm4938_vm4, %v7209_v8  ;;  %v6983_v2 = vadd.f32 %v6906_v3, %v6793_v17  ;;  %v6674_v9 = vadd.f32 %v6602_v57, %v6484_v31  ;;  %v6258_v39 = vadd.f32 %v6181_v37, %v6102_v11  ;;  %v6561_v14 = vmul.f32 %v18711_v4, %v18591_v10  ;;  %v7057_v55 = vld [vmem:[#allocation3 + $0x12e] sm:$0xff]  ;;  %v18779_v31 = vld [vmem:[%s20610_s6 + $0x8] ss:$0 sm:$0xff] }
 0x5f7   : > { %v6717_v7 = vmul.f32 %v18294_v60, %v18660_v0  ;;  %v5949_v45 = vadd.f32 %v5877_v43, %v5759_v22  ;;  %v6067_v15 = vmul.f32 %v18720_v56, %v18607_v5  ;;  %v6223_v10 = vmul.f32 %v18727_v25, %v18686_v30 }
 0x5f8   : > { %v7173_v23 = vadd.f32 %v7096_v54, %v6983_v2  ;;  %v6830_v60 = vadd.f32 %v6758_v6, %v6674_v9  ;;  %v6448_v47 = vadd.f32 %v6371_v32, %v6258_v39  ;;  %v6907_v42 = vmul.f32 %v18301_v53, %v6866_v27  ;;  %v5678_v27 = vld [vmem:[#allocation3 + $0x110] sm:$0xff]  ;;  %v6142_v54 = vld [vmem:[#allocation3 + $0x122] sm:$0xff] }
 0x5f9   : > { %v7097_v20 = vmul.f32 %v18308_v41, %v7056_v38  ;;  %v6139_v13 = vadd.f32 %v6067_v15, %v5949_v45  ;;  %v5718_v26 = vmul.f32 %v18657_v16, %v5677_v48  ;;  %v5836_v44 = vmul.f32 %v18665_v63, %v5795_v24  ;;  %v18747_v41 = vld [vmem:[%s20610_s6 + $0x5] ss:$0 sm:$0xff]  ;;  %v6332_v39 = vld [vmem:[#allocation3 + $0x123] sm:$0xff]  ;;  %v18791_v45 = vld [vmem:[%s20609_s5 + $0x6] ss:$0 sm:$0xff] }
 0x5fa   : > { %13533 = vmatmul.mubr.msk.f32.gmra.mxu0 %vm4938_vm4, %v7173_v23  ;;  %v7020_v46 = vadd.f32 %v6948_v28, %v6830_v60  ;;  %v6638_v19 = vadd.f32 %v6561_v14, %v6448_v47  ;;  %v6413_v53 = vmul.f32 %v18741_v12, %v6331_v18  ;;  %v6603_v51 = vmul.f32 %v18747_v41, %v18625_v52 }
 0x5fb   : > { %v6295_v3 = vadd.f32 %v6223_v10, %v6139_v13  ;;  %v5913_v40 = vadd.f32 %v5836_v44, %v5718_v26  ;;  %v6026_v37 = vmul.f32 %v18674_v49, %v18607_v5  ;;  %v6182_v29 = vmul.f32 %v18756_v50, %v18686_v30  ;;  %v18770_v5 = vld [vmem:[%s20610_s6 + $0x7] ss:$0 sm:$0xff] }
 0x5fc   : > { %v7210_v1 = vadd.f32 %v7138_v36, %v7020_v46  ;;  %v6794_v38 = vadd.f32 %v6717_v7, %v6638_v19  ;;  %v6759_v48 = vmul.f32 %v18763_v34, %v18733_v62  ;;  %v6949_v24 = vmul.f32 %v18770_v5, %v6867_v33  ;;  %v5679_v19 = vld [vmem:[#allocation3 + $0x118] sm:$0xff] }
 0x5fd   : > { %v6485_v57 = vadd.f32 %v6413_v53, %v6295_v3  ;;  %v6103_v6 = vadd.f32 %v6026_v37, %v5913_v40  ;;  %v5760_v28 = vmul.f32 %v18698_v35, %v5678_v27  ;;  %v5878_v8 = vmul.f32 %v18704_v59, %v5796_v58  ;;  %v7058_v3 = vld [vmem:[#allocation3 + $0x136] sm:$0xff] }
 0x5fe   : > { %13473 = vmatprep.mubr.msk.f32.mxu1 %vm4938_vm4, %v7210_v1  ;;  %v6984_v17 = vadd.f32 %v6907_v42, %v6794_v38  ;;  %v7139_v11 = vmul.f32 %v18779_v31, %v7057_v55  ;;  %v6372_v36 = vmul.f32 %v18692_v21, %v6331_v18  ;;  %v6068_v32 = vmul.f32 %v18720_v56, %v18639_v61  ;;  %v18796_v18 = vpop.f32.mrf.mxu1  ;;  %v6678_v42 = vld [vmem:[#allocation3 + $0x134] sm:$0xff]  ;;  %v18819_v38 = vpop.f32.mrf.mxu0 }
 0x5ff   : > { %v6675_v22 = vadd.f32 %v6603_v51, %v6485_v57  ;;  %v6259_v43 = vadd.f32 %v6182_v29, %v6103_v6  ;;  %v5950_v2 = vadd.f32 %v5878_v8, %v5760_v28  ;;  %v6224_v9 = vmul.f32 %v18727_v25, %v6142_v54  ;;  %v5797_v37 = vld [vmem:[#allocation3 + $0x119] sm:$0xff]  ;;  %v6143_v28 = vld [vmem:[#allocation3 + $0x12a] sm:$0xff] }
 0x600   : > { %v7174_v14 = vadd.f32 %v7097_v20, %v6984_v17  ;;  %v6562_v7 = vmul.f32 %v18711_v4, %v18625_v52  ;;  %v6718_v15 = vmul.f32 %v18791_v45, %v18733_v62  ;;  %v5719_v10 = vmul.f32 %v18657_v16, %v5678_v27  ;;  %v18803_v52 = vld [vmem:[%s20609_s5 + $0x7] ss:$0 sm:$0xff]  ;;  %v18813_v29 = vld [vmem:[%s20609_s5 + $0x8] ss:$0 sm:$0xff] }
 0x601   : > { %v6831_v23 = vadd.f32 %v6759_v48, %v6675_v22  ;;  %v6449_v60 = vadd.f32 %v6372_v36, %v6259_v43  ;;  %v6140_v47 = vadd.f32 %v6068_v32, %v5950_v2  ;;  %v5837_v20 = vmul.f32 %v18665_v63, %v5796_v58  ;;  %v6868_v58 = vld [vmem:[#allocation3 + $0x135] sm:$0xff]  ;;  %v18821_v48 = vpop.f32.mrf.mxu1 }
 0x602   : > { %13535 = vmatprep.mubr.msk.f32.mxu0 %vm4938_vm4, %v7174_v14  ;;  %v6908_v13 = vmul.f32 %v18803_v52, %v6867_v33  ;;  %v6414_v26 = vmul.f32 %v18741_v12, %v6332_v39  ;;  %v6027_v44 = vmul.f32 %v18674_v49, %v18639_v61  ;;  %v6183_v46 = vmul.f32 %v18756_v50, %v6142_v54 }
 0x603   : > { %v7021_v53 = vadd.f32 %v6949_v24, %v6831_v23  ;;  %v6639_v51 = vadd.f32 %v6562_v7, %v6449_v60  ;;  %v6296_v27 = vadd.f32 %v6224_v9, %v6140_v47  ;;  %v5914_v40 = vadd.f32 %v5837_v20, %v5719_v10  ;;  %v18827_v32 = vpop.f32.mrf.mxu1  ;;  %v6333_v9 = vld [vmem:[#allocation3 + $0x12b] sm:$0xff] }
 0x604   : > { %v7098_v33 = vmul.f32 %v18813_v29, %v7057_v55  ;;  %v6604_v61 = vmul.f32 %v18747_v41, %v18660_v0  ;;  %v6760_v1 = vmul.f32 %v18763_v34, %v6678_v42  ;;  %v6950_v8 = vmul.f32 %v18770_v5, %v6868_v58 }
 0x605   : > { %v7211_v24 = vadd.f32 %v7139_v11, %v7021_v53  ;;  %v6795_v54 = vadd.f32 %v6718_v15, %v6639_v51  ;;  %v6486_v57 = vadd.f32 %v6414_v26, %v6296_v27  ;;  %v6104_v6 = vadd.f32 %v6027_v44, %v5914_v40  ;;  %v18844_v44 = vpop.f32.mrf.mxu1  ;;  %v6679_v53 = vld [vmem:[#allocation3 + $0x13c] sm:$0xff] }
 0x606   : > { %v7140_v17 = vmul.f32 %v18779_v31, %v7058_v3  ;;  %v5761_v55 = vmul.f32 %v18698_v35, %v5679_v19  ;;  %v5879_v36 = vmul.f32 %v18704_v59, %v5797_v37  ;;  %v6373_v11 = vmul.f32 %v18692_v21, %v6332_v39  ;;  %v18836_v59 = vpop.f32.mrf.mxu0 }
 0x607   : > { %13474 = vmatmul.mubr.msk.f32.gmra.mxu1 %vm4938_vm4, %v7211_v24  ;;  %v6985_v22 = vadd.f32 %v6908_v13, %v6795_v54  ;;  %v6676_v43 = vadd.f32 %v6604_v61, %v6486_v57  ;;  %v6260_v2 = vadd.f32 %v6183_v46, %v6104_v6  ;;  %v6563_v14 = vmul.f32 %v18711_v4, %v18660_v0 }
 0x608   : > { %v5951_v7 = vadd.f32 %v5879_v36, %v5761_v55  ;;  %v6069_v15 = vmul.f32 %v18720_v56, %v18686_v30  ;;  %v6225_v35 = vmul.f32 %v18727_v25, %v6143_v28  ;;  %v6719_v47 = vmul.f32 %v18791_v45, %v6678_v42  ;;  %v18842_v26 = vpop.f32.mrf.mxu0 }
 0x609   : > { %v7175_v10 = vadd.f32 %v7098_v33, %v6985_v22  ;;  %v6832_v23 = vadd.f32 %v6760_v1, %v6676_v43  ;;  %v6450_v60 = vadd.f32 %v6373_v11, %v6260_v2  ;;  %v6415_v39 = vmul.f32 %v18741_v12, %v6333_v9  ;;  %v6869_v33 = vld [vmem:[#allocation3 + $0x13d] sm:$0xff] }
 0x60a   : > { %v6141_v20 = vadd.f32 %v6069_v15, %v5951_v7  ;;  %v5720_v13 = vmul.f32 %v18657_v16, %v5679_v19  ;;  %v5838_v0 = vmul.f32 %v18665_v63, %v5797_v37  ;;  %v6909_v46 = vmul.f32 %v18803_v52, %v6868_v58  ;;  %v18853_v19 = vpop.f32.mrf.mxu1  ;;  %v18858_v24 = vpop.f32.mrf.mxu0 }
 0x60b   : > { %13536 = vmatmul.mubr.msk.f32.gmra.mxu0 %vm4938_vm4, %v7175_v10  ;;  %v7022_v56 = vadd.f32 %v6950_v8, %v6832_v23  ;;  %v6640_v25 = vadd.f32 %v6563_v14, %v6450_v60  ;;  %v6605_v42 = vmul.f32 %v18747_v41, %v18733_v62  ;;  %v6028_v16 = vmul.f32 %v18674_v49, %v18686_v30  ;;  %v7059_v30 = vld [vmem:[#allocation3 + $0x13e] sm:$0xff] }
 0x60c   : > { %v6297_v51 = vadd.f32 %v6225_v35, %v6141_v20  ;;  %v5915_v12 = vadd.f32 %v5838_v0, %v5720_v13  ;;  %v6184_v63 = vmul.f32 %v18756_v50, %v6143_v28  ;;  %v7099_v37 = vmul.f32 %v18813_v29, %v7058_v3  ;;  %v18864_v6 = vpop.f32.mrf.mxu0  ;;  %v18866_v28 = vpop.f32.mrf.mxu1 }
 0x60d   : > { %v7212_v27 = vadd.f32 %v7140_v17, %v7022_v56  ;;  %v6796_v40 = vadd.f32 %v6719_v47, %v6640_v25  ;;  %v6761_v58 = vmul.f32 %v18763_v34, %v6679_v53  ;;  %v6374_v41 = vmul.f32 %v18692_v21, %v6333_v9 }
 0x60e   : > { %v6487_v61 = vadd.f32 %v6415_v39, %v6297_v51  ;;  %v6105_v1 = vadd.f32 %v6028_v16, %v5915_v12  ;;  %v6951_v54 = vmul.f32 %v18770_v5, %v6869_v33  ;;  %v6564_v3 = vmul.f32 %v18711_v4, %v18733_v62  ;;  %v13436_v36 = vpop.f32.mrf.mxu1  ;;  %v18872_v2 = vpop.f32.mrf.mxu0 }
 0x60f   : > { %13476 = vmatprep.mubr.msk.f32.mxu1 %vm4938_vm4, %v7212_v27  ;;  %v6986_v49 = vadd.f32 %v6909_v46, %v6796_v40  ;;  %v7141_v21 = vmul.f32 %v18779_v31, %v7059_v30  ;;  %v6720_v55 = vmul.f32 %v18791_v45, %v6679_v53  ;;  %v6910_v43 = vmul.f32 %v18803_v52, %v6869_v33  ;;  %v18882_v40 = vld [vmem:[%s20613_s9] ss:$0 sm:$0xff] }
 0x610   : > { %v6677_v50 = vadd.f32 %v6605_v42, %v6487_v61  ;;  %v6261_v57 = vadd.f32 %v6184_v63, %v6105_v1  ;;  %v7100_v11 = vmul.f32 %v18813_v29, %v7059_v30  ;;  %v13498_v9 = vpop.f32.mrf.mxu0  ;;  %v7426_v14 = vpop.f32.mrf.mxu1  ;;  %v21002_v23 = vmov 0.0  }
 0x611   : > { %v7176_v34 = vadd.f32 %v7099_v37, %v6986_v49 }
 0x612   : > { %v6833_v8 = vadd.f32 %v6761_v58, %v6677_v50  ;;  %v6451_v17 = vadd.f32 %v6374_v41, %v6261_v57  ;;  %v13439_v7 = vpop.f32.mrf.mxu1  ;;  %v7779_v15 = vpop.f32.mrf.mxu0 }
 0x613   : > { %13538 = vmatprep.mubr.msk.f32.mxu0 %vm4938_vm4, %v7176_v34 }
 0x614   : > { %v7023_v22 = vadd.f32 %v6951_v54, %v6833_v8  ;;  %v6641_v5 = vadd.f32 %v6564_v3, %v6451_v17  ;;  %v13501_v35 = vpop.f32.mrf.mxu0  ;;  %v7436_v10 = vpop.f32.mrf.mxu1  ;;  %v7785_v8 = vadd.f32 %v13498_v9, %v13436_v36  ;;  %v7770_v36 = vadd.f32 %v18872_v2, %v18866_v28 }
 0x615   : > { %v7795_v30 = vadd.f32 %v13501_v35, %v13439_v7  ;;  %v7755_v2 = vadd.f32 %v18819_v38, %v18796_v18 }
 0x616   : > { %v7213_v4 = vadd.f32 %v7141_v21, %v7023_v22  ;;  %v6797_v62 = vadd.f32 %v6720_v55, %v6641_v5  ;;  %v13442_v52 = vpop.f32.mrf.mxu1  ;;  %v7789_v60 = vpop.f32.mrf.mxu0  ;;  %v7780_v55 = vadd.f32 %v7779_v15, %v7426_v14  ;;  %v7765_v14 = vadd.f32 %v18842_v26, %v18827_v32 }
 0x617   : > { %v7790_v57 = vadd.f32 %v7789_v60, %v7436_v10  ;;  %v7937_v21 = vmax.f32 %v7795_v30, 0.0  ;;  %v7932_v7 = vmax.f32 %v7770_v36, 0.0  ;;  %v7750_v26 = vadd.f32 %v18836_v59, %v18821_v48  ;;  %v8008_v10 = vld [vmem:[%s20614_s10 + $0x8] sm:$0xff] }
 0x618   : > { %13477 = vmatmul.mubr.msk.f32.gmra.mxu1 %vm4938_vm4, %v7213_v4  ;;  %v6987_v31 = vadd.f32 %v6910_v43, %v6797_v62  ;;  %v13504_v47 = vpop.f32.mrf.mxu0  ;;  %v7446_v20 = vpop.f32.mrf.mxu1  ;;  %v7775_v43 = vadd.f32 %v18864_v6, %v18853_v19  ;;  %v7935_v4 = vmax.f32 %v7785_v8, 0.0  ;;  %v7760_v6 = vadd.f32 %v18858_v24, %v18844_v44 }
 0x619   : > { %v7805_v37 = vadd.f32 %v13504_v47, %v13442_v52  ;;  %v7936_v22 = vmax.f32 %v7790_v57, 0.0  ;;  %v7980_v62 = vadd.f32 %v18882_v40, %v7937_v21  ;;  %v7975_v44 = vadd.f32 %v18882_v40, %v7932_v7  ;;  %8185 = vmatprep.mubr.f32.mxu1 %v8008_v10 }
 0x61a   : > { %v7177_v45 = vadd.f32 %v7100_v11, %v6987_v31  ;;  %v13445_v29 = vpop.f32.mrf.mxu1  ;;  %v7799_v39 = vpop.f32.mrf.mxu0  ;;  %v7934_v11 = vmax.f32 %v7780_v55, 0.0  ;;  %v7933_v31 = vmax.f32 %v7775_v43, 0.0  ;;  %v7978_v19 = vadd.f32 %v18882_v40, %v7935_v4 }
 0x61b   : > { %v7800_v1 = vadd.f32 %v7799_v39, %v7446_v20  ;;  %v7939_v50 = vmax.f32 %v7805_v37, 0.0  ;;  %v7979_v9 = vadd.f32 %v18882_v40, %v7936_v22  ;;  %v7930_v15 = vmax.f32 %v7760_v6, 0.0 }
 0x61c   : > { %13539 = vmatmul.mubr.msk.f32.gmra.mxu0 %vm4938_vm4, %v7177_v45  ;;  %v13507_v13 = vpop.f32.mrf.mxu0  ;;  %v7456_v0 = vpop.f32.mrf.mxu1  ;;  %v7977_v28 = vadd.f32 %v18882_v40, %v7934_v11  ;;  %v7931_v45 = vmax.f32 %v7765_v14, 0.0  ;;  %v7976_v32 = vadd.f32 %v18882_v40, %v7933_v31  ;;  %v7929_v24 = vmax.f32 %v7755_v2, 0.0 }
 0x61d   : > { %13549 = vmatprep.mubr.msk.f32.mxu0 %vm14484_vm3, %v21002_v23  ;;  %v7815_v53 = vadd.f32 %v13507_v13, %v13445_v29  ;;  %v7938_v3 = vmax.f32 %v7800_v1, 0.0  ;;  %v7982_v17 = vadd.f32 %v18882_v40, %v7939_v50  ;;  %v7928_v18 = vmax.f32 %v7750_v26, 0.0 }
 0x61e   : > { %v7809_v25 = vpop.f32.mrf.mxu0  ;;  %v7974_v35 = vadd.f32 %v18882_v40, %v7931_v45  ;;  %v7973_v38 = vadd.f32 %v18882_v40, %v7930_v15  ;;  %v7972_v48 = vadd.f32 %v18882_v40, %v7929_v24 }
 0x61f   : > { %v7810_v16 = vadd.f32 %v7809_v25, %v7456_v0  ;;  %v7941_v33 = vmax.f32 %v7815_v53, 0.0  ;;  %v7981_v5 = vadd.f32 %v18882_v40, %v7938_v3  ;;  %v7971_v59 = vadd.f32 %v18882_v40, %v7928_v18 }
 0x621   : > { %v7940_v41 = vmax.f32 %v7810_v16, 0.0  ;;  %v7984_v54 = vadd.f32 %v18882_v40, %v7941_v33 }
 0x623   : > { %v7983_v34 = vadd.f32 %v18882_v40, %v7940_v41 }
 0x629   : > { %v13448_v56 = vpop.f32.mrf.mxu1 }
 0x62b   : > { %v7466_v42 = vpop.f32.mrf.mxu1 }
 0x62e   : > { %v13510_v46 = vpop.f32.mrf.mxu0 }
 0x62f   : > { %v7825_v51 = vadd.f32 %v13510_v46, %v13448_v56 }
 0x630   : > { %v7819_v12 = vpop.f32.mrf.mxu0 }
 0x631   : > { %v7943_v63 = vmax.f32 %v7825_v51, 0.0  ;;  %v7820_v27 = vadd.f32 %v7819_v12, %v7466_v42 }
 0x633   : > { %v7986_v61 = vadd.f32 %v18882_v40, %v7943_v63  ;;  %v7942_v58 = vmax.f32 %v7820_v27, 0.0 }
 0x635   : > { %v7985_v49 = vadd.f32 %v18882_v40, %v7942_v58  ;;  %8122 = vmatpush1.msra.mxu1 %v7986_v61 }
 0x636   : > { %8123 = vmatprep.subr.mxu1 %v21002_v23 }
 0x637   : > { %8124 = vmatpush1.msra.mxu1 %v7985_v49 }
 0x638   : > { %8125 = vmatprep.subr.mxu1 %v21002_v23 }
 0x639   : > { %8126 = vmatpush1.msra.mxu1 %v7984_v54 }
 0x63a   : > { %8127 = vmatprep.subr.mxu1 %v21002_v23 }
 0x63b   : > { %8128 = vmatpush1.msra.mxu1 %v7983_v34  ;;  %v18931_v52 = vpop.f32.mrf.mxu1 }
 0x63c   : > { %8129 = vmatprep.subr.mxu1 %v21002_v23 }
 0x63d   : > { %8130 = vmatpush1.msra.mxu1 %v7982_v17  ;;  %v18935_v47 = vpop.f32.mrf.mxu1 }
 0x63e   : > { %8131 = vmatprep.subr.mxu1 %v21002_v23 }
 0x63f   : > { %8132 = vmatpush1.msra.mxu1 %v7981_v5  ;;  %v18933_v60 = vpop.f32.mrf.mxu0 }
 0x640   : > { %8133 = vmatprep.subr.mxu1 %v21002_v23 }
 0x641   : > { %8134 = vmatpush1.msra.mxu1 %v7980_v62  ;;  %v18939_v29 = vpop.f32.mrf.mxu0 }
 0x642   : > { %8135 = vmatprep.subr.mxu1 %v21002_v23 }
 0x643   : > { %8136 = vmatpush1.msra.mxu1 %v7979_v9 }
 0x644   : > { %8137 = vmatprep.subr.mxu1 %v21002_v23 }
 0x645   : > { %8138 = vmatpush1.msra.mxu1 %v7978_v19 }
 0x646   : > { %8139 = vmatprep.subr.mxu1 %v21002_v23 }
 0x647   : > { %8140 = vmatpush1.msra.mxu1 %v7977_v28 }
 0x648   : > { %8141 = vmatprep.subr.mxu1 %v21002_v23 }
 0x649   : > { %8142 = vmatpush1.msra.mxu1 %v7976_v32 }
 0x64a   : > { %8143 = vmatprep.subr.mxu1 %v21002_v23 }
 0x64b   : > { %8144 = vmatpush1.msra.mxu1 %v7975_v44 }
 0x64c   : > { %8145 = vmatprep.subr.mxu1 %v21002_v23 }
 0x64d   : > { %8146 = vmatpush1.msra.mxu1 %v7974_v35  ;;  %v18937_v20 = vpop.f32.mrf.mxu1 }
 0x64e   : > { %8147 = vmatprep.subr.mxu1 %v21002_v23 }
 0x64f   : > { %8148 = vmatpush1.msra.mxu1 %v7973_v38  ;;  %v18943_v13 = vpop.f32.mrf.mxu1 }
 0x650   : > { %8149 = vmatprep.subr.mxu1 %v21002_v23 }
 0x651   : > { %8150 = vmatpush1.msra.mxu1 %v7972_v48 }
 0x652   : > { %8151 = vmatprep.subr.mxu1 %v21002_v23  ;;  %v18941_v39 = vpop.f32.mrf.mxu0 }
 0x653   : > { %8152 = vmatpush1.msra.mxu1 %v7971_v59 }
 0x654   : > { %8153 = vmatprep.subr.mxu1 %v21002_v23  ;;  %v18945_v56 = vpop.f32.mrf.mxu0 }
 0x65f   : > { %v13457_v0 = vpop.f32.mrf.mxu1 }
 0x661   : > { %v7496_v46 = vpop.f32.mrf.mxu1 }
 0x662   : > { %v13519_v25 = vpop.f32.mrf.mxu0 }
 0x663   : > { %v7855_v35 = vadd.f32 %v13519_v25, %v13457_v0  ;;  %v7840_v0 = vadd.f32 %v18945_v56, %v18943_v13 }
 0x664   : > { %v7849_v53 = vpop.f32.mrf.mxu0 }
 0x665   : > { %v7850_v48 = vadd.f32 %v7849_v53, %v7496_v46  ;;  %v7946_v13 = vmax.f32 %v7840_v0, 0.0  ;;  %v8037_v0 = vld [vmem:[%s20614_s10 + $0xf0] sm:$0xff] }
 0x667   : > { %v7948_v25 = vmax.f32 %v7850_v48, 0.0  ;;  %v8031_v48 = vld [vmem:[%s20614_s10 + $0xc0] sm:$0xff] }
 0x669   : > { %v7991_v56 = vadd.f32 %v18882_v40, %v7948_v25  ;;  %v8041_v25 = vld [vmem:[%s20614_s10 + $0x110] sm:$0xff] }
 0x66f   : > { %v13460_v42 = vpop.f32.mrf.mxu1 }
 0x671   : > { %v7506_v12 = vpop.f32.mrf.mxu1 }
 0x675   : > { %v13522_v51 = vpop.f32.mrf.mxu0 }
 0x676   : > { %v7865_v45 = vadd.f32 %v13522_v51, %v13460_v42  ;;  %v7845_v42 = vadd.f32 %v18941_v39, %v18937_v20  ;;  %v7949_v51 = vmax.f32 %v7855_v35, 0.0  ;;  %v8028_v35 = vld [vmem:[%s20614_s10 + $0xa8] sm:$0xff] }
 0x677   : > { %v7859_v63 = vpop.f32.mrf.mxu0 }
 0x678   : > { %v7860_v15 = vadd.f32 %v7859_v63, %v7506_v12  ;;  %v7951_v18 = vmax.f32 %v7865_v45, 0.0  ;;  %v7947_v20 = vmax.f32 %v7845_v42, 0.0  ;;  %v7992_v39 = vadd.f32 %v18882_v40, %v7949_v51  ;;  %v8022_v45 = vld [vmem:[%s20614_s10 + $0x78] sm:$0xff] }
 0x679   : > { %v7830_v63 = vadd.f32 %v18939_v29, %v18935_v47  ;;  %v8034_v42 = vld [vmem:[%s20614_s10 + $0xd8] sm:$0xff] }
 0x67a   : > { %v7950_v59 = vmax.f32 %v7860_v15, 0.0  ;;  %v7994_v12 = vadd.f32 %v18882_v40, %v7951_v18  ;;  %v8025_v15 = vld [vmem:[%s20614_s10 + $0x90] sm:$0xff]  ;;  %v8032_v18 = vld [vmem:[%s20614_s10 + $0xc8] sm:$0xff]  ;;  %v8038_v51 = vld [vmem:[%s20614_s10 + $0xf8] sm:$0xff] }
 0x67c   : > { %v7993_v46 = vadd.f32 %v18882_v40, %v7950_v59  ;;  %v8035_v59 = vld [vmem:[%s20614_s10 + $0xe0] sm:$0xff] }
 0x682   : > { %v13463_v16 = vpop.f32.mrf.mxu1 }
 0x684   : > { %v7516_v37 = vpop.f32.mrf.mxu1 }
 0x685   : > { %v13525_v27 = vpop.f32.mrf.mxu0 }
 0x686   : > { %v7875_v31 = vadd.f32 %v13525_v27, %v13463_v16  ;;  %v7835_v16 = vadd.f32 %v18933_v60, %v18931_v52  ;;  %v7990_v52 = vadd.f32 %v18882_v40, %v7947_v20  ;;  %v8036_v20 = vld [vmem:[%s20614_s10 + $0xe8] sm:$0xff] }
 0x687   : > { %v7869_v61 = vpop.f32.mrf.mxu0 }
 0x688   : > { %v7870_v7 = vadd.f32 %v7869_v61, %v7516_v37  ;;  %v7953_v32 = vmax.f32 %v7875_v31, 0.0  ;;  %v7944_v61 = vmax.f32 %v7830_v63, 0.0  ;;  %v8009_v31 = vld [vmem:[%s20614_s10 + $0x10] sm:$0xff]  ;;  %v8047_v63 = vld [vmem:[%s20614_s10 + $0x140] sm:$0xff] }
 0x68a   : > { %v7952_v44 = vmax.f32 %v7870_v7, 0.0  ;;  %v7996_v38 = vadd.f32 %v18882_v40, %v7953_v32  ;;  %v8019_v7 = vld [vmem:[%s20614_s10 + $0x60] sm:$0xff]  ;;  %v8026_v32 = vld [vmem:[%s20614_s10 + $0x98] sm:$0xff] }
 0x68c   : > { %v7995_v10 = vadd.f32 %v18882_v40, %v7952_v44  ;;  %v8029_v44 = vld [vmem:[%s20614_s10 + $0xb0] sm:$0xff] }
 0x692   : > { %v13466_v33 = vpop.f32.mrf.mxu1 }
 0x694   : > { %v7526_v1 = vpop.f32.mrf.mxu1 }
 0x698   : > { %v13528_v58 = vpop.f32.mrf.mxu0 }
 0x699   : > { %v7885_v43 = vadd.f32 %v13528_v58, %v13466_v33  ;;  %v7945_v33 = vmax.f32 %v7835_v16, 0.0  ;;  %v7989_v58 = vadd.f32 %v18882_v40, %v7946_v13  ;;  %v8044_v16 = vld [vmem:[%s20614_s10 + $0x128] sm:$0xff]  ;;  %v8039_v13 = vld [vmem:[%s20614_s10 + $0x100] sm:$0xff] }
 0x69a   : > { %v7879_v49 = vpop.f32.mrf.mxu0 }
 0x69b   : > { %v7880_v11 = vadd.f32 %v7879_v49, %v7526_v1  ;;  %v7955_v19 = vmax.f32 %v7885_v43, 0.0  ;;  %v7988_v29 = vadd.f32 %v18882_v40, %v7945_v33  ;;  %v7987_v49 = vadd.f32 %v18882_v40, %v7944_v61  ;;  %v8014_v43 = vld [vmem:[%s20614_s10 + $0x38] sm:$0xff]  ;;  %v8049_v33 = vld [vmem:[%s20614_s10 + $0x150] sm:$0xff]  ;;  %v8052_v61 = vld [vmem:[%s20614_s10 + $0x168] sm:$0xff] }
 0x69d   : > { %v7954_v28 = vmax.f32 %v7880_v11, 0.0  ;;  %v7998_v26 = vadd.f32 %v18882_v40, %v7955_v19  ;;  %v8013_v11 = vld [vmem:[%s20614_s10 + $0x30] sm:$0xff]  ;;  %v8016_v19 = vld [vmem:[%s20614_s10 + $0x48] sm:$0xff] }
 0x69f   : > { %v7997_v24 = vadd.f32 %v18882_v40, %v7954_v28  ;;  %v8023_v28 = vld [vmem:[%s20614_s10 + $0x80] sm:$0xff] }
 0x6a5   : > { %v13469_v41 = vpop.f32.mrf.mxu1 }
 0x6a7   : > { %v7536_v50 = vpop.f32.mrf.mxu1 }
 0x6a8   : > { %v13531_v30 = vpop.f32.mrf.mxu0 }
 0x6a9   : > { %v7895_v8 = vadd.f32 %v13531_v30, %v13469_v41 }
 0x6aa   : > { %v7889_v57 = vpop.f32.mrf.mxu0 }
 0x6ab   : > { %v7890_v55 = vadd.f32 %v7889_v57, %v7536_v50  ;;  %v7957_v4 = vmax.f32 %v7895_v8, 0.0 }
 0x6ad   : > { %v7956_v9 = vmax.f32 %v7890_v55, 0.0  ;;  %v8000_v6 = vadd.f32 %v18882_v40, %v7957_v4 }
 0x6af   : > { %v7999_v2 = vadd.f32 %v18882_v40, %v7956_v9  ;;  %v8017_v9 = vld [vmem:[%s20614_s10 + $0x50] sm:$0xff] }
 0x6b6   : > { %v13472_v54 = vpop.f32.mrf.mxu1 }
 0x6b8   : > { %v7546_v34 = vpop.f32.mrf.mxu1 }
 0x6ba   : > { %v13534_v3 = vpop.f32.mrf.mxu0 }
 0x6bb   : > { %v7905_v21 = vadd.f32 %v13534_v3, %v13472_v54  ;;  %v8007_v54 = vld [vmem:[%s20614_s10] sm:$0xff] }
 0x6bc   : > { %v7899_v17 = vpop.f32.mrf.mxu0  ;;  %v8011_v3 = vld [vmem:[%s20614_s10 + $0x20] sm:$0xff] }
 0x6bd   : > { %v7959_v22 = vmax.f32 %v7905_v21, 0.0  ;;  %v7900_v5 = vadd.f32 %v7899_v17, %v7546_v34 }
 0x6bf   : > { %v8002_v62 = vadd.f32 %v18882_v40, %v7959_v22  ;;  %v7958_v36 = vmax.f32 %v7900_v5, 0.0  ;;  %v8010_v5 = vld [vmem:[%s20614_s10 + $0x18] sm:$0xff] }
 0x6c1   : > { %v8001_v14 = vadd.f32 %v18882_v40, %v7958_v36  ;;  %8154 = vmatpush2.msra.mxu1 %v8002_v62 }
 0x6c2   : > { %8155 = vmatprep.subr.mxu1 %v21002_v23 }
 0x6c3   : > { %8156 = vmatpush2.msra.mxu1 %v8001_v14 }
 0x6c4   : > { %8157 = vmatprep.subr.mxu1 %v21002_v23 }
 0x6c5   : > { %8158 = vmatpush2.msra.mxu1 %v8000_v6  ;;  %v8012_v6 = vld [vmem:[%s20614_s10 + $0x28] sm:$0xff] }
 0x6c6   : > { %8159 = vmatprep.subr.mxu1 %v21002_v23 }
 0x6c7   : > { %8160 = vmatpush2.msra.mxu1 %v7999_v2  ;;  %v13475_v53 = vpop.f32.mrf.mxu1  ;;  %v8015_v2 = vld [vmem:[%s20614_s10 + $0x40] sm:$0xff] }
 0x6c8   : > { %8161 = vmatprep.subr.mxu1 %v21002_v23 }
 0x6c9   : > { %8162 = vmatpush2.msra.mxu1 %v7998_v26  ;;  %v7556_v37 = vpop.f32.mrf.mxu1  ;;  %v8018_v26 = vld [vmem:[%s20614_s10 + $0x58] sm:$0xff] }
 0x6ca   : > { %8163 = vmatprep.subr.mxu1 %v21002_v23 }
 0x6cb   : > { %8164 = vmatpush2.msra.mxu1 %v7997_v24  ;;  %v13537_v27 = vpop.f32.mrf.mxu0  ;;  %v8021_v24 = vld [vmem:[%s20614_s10 + $0x70] sm:$0xff] }
 0x6cc   : > { %8165 = vmatprep.subr.mxu1 %v21002_v23  ;;  %v7915_v30 = vadd.f32 %v13537_v27, %v13475_v53  ;;  %v8040_v53 = vld [vmem:[%s20614_s10 + $0x108] sm:$0xff]  ;;  %v8050_v27 = vld [vmem:[%s20614_s10 + $0x158] sm:$0xff] }
 0x6cd   : > { %8166 = vmatpush2.msra.mxu1 %v7996_v38  ;;  %v7909_v47 = vpop.f32.mrf.mxu0  ;;  %v8024_v38 = vld [vmem:[%s20614_s10 + $0x88] sm:$0xff] }
 0x6ce   : > { %8167 = vmatprep.subr.mxu1 %v21002_v23  ;;  %v7910_v34 = vadd.f32 %v7909_v47, %v7556_v37  ;;  %v7961_v17 = vmax.f32 %v7915_v30, 0.0  ;;  %v8042_v37 = vld [vmem:[%s20614_s10 + $0x118] sm:$0xff]  ;;  %v8048_v47 = vld [vmem:[%s20614_s10 + $0x148] sm:$0xff] }
 0x6cf   : > { %8168 = vmatpush2.msra.mxu1 %v7995_v10  ;;  %v8027_v10 = vld [vmem:[%s20614_s10 + $0xa0] sm:$0xff]  ;;  %v8062_v30 = vld [vmem:[%s20614_s10 + $0x1b8] sm:$0xf] }
 0x6d0   : > { %8169 = vmatprep.subr.mxu1 %v21002_v23  ;;  %v7960_v4 = vmax.f32 %v7910_v34, 0.0  ;;  %v8004_v36 = vadd.f32 %v18882_v40, %v7961_v17  ;;  %v8063_v34 = vld [vmem:[%s20614_s10 + $0x1c0] sm:$0xf]  ;;  %v8501_v17 = vld [vmem:[%s20615_s11 + $0x78] sm:$0xff] }
 0x6d1   : > { %8170 = vmatpush2.msra.mxu1 %v7994_v12  ;;  %v8030_v12 = vld [vmem:[%s20614_s10 + $0xb8] sm:$0xff] }
 0x6d2   : > { %8171 = vmatprep.subr.mxu1 %v21002_v23  ;;  %v8003_v14 = vadd.f32 %v18882_v40, %v7960_v4  ;;  %v8477_v4 = vld [vmem:[%s20615_s11 + $0x18] sm:$0xff] }
 0x6d3   : > { %8172 = vmatpush2.msra.mxu1 %v7993_v46  ;;  %v8033_v46 = vld [vmem:[%s20614_s10 + $0xd0] sm:$0xff] }
 0x6d4   : > { %8173 = vmatprep.subr.mxu1 %v21002_v23 }
 0x6d5   : > { %8174 = vmatpush2.msra.mxu1 %v7992_v39  ;;  %v8043_v39 = vld [vmem:[%s20614_s10 + $0x120] sm:$0xff] }
 0x6d6   : > { %8175 = vmatprep.subr.mxu1 %v21002_v23 }
 0x6d7   : > { %8176 = vmatpush2.msra.mxu1 %v7991_v56  ;;  %v8046_v56 = vld [vmem:[%s20614_s10 + $0x138] sm:$0xff] }
 0x6d8   : > { %v13478_v60 = vpop.f32.mrf.mxu1  ;;  %8177 = vmatprep.subr.mxu1 %v21002_v23 }
 0x6d9   : > { %8178 = vmatpush2.msra.mxu1 %v7990_v52  ;;  %v8053_v52 = vld [vmem:[%s20614_s10 + $0x170] sm:$0xff] }
 0x6da   : > { %8179 = vmatprep.subr.mxu1 %v21002_v23  ;;  %v7566_v41 = vpop.f32.mrf.mxu1 }
 0x6db   : > { %8180 = vmatpush2.msra.mxu1 %v7989_v58  ;;  %v8056_v58 = vld [vmem:[%s20614_s10 + $0x188] sm:$0xff] }
 0x6dc   : > { %v13540_v1 = vpop.f32.mrf.mxu0  ;;  %8181 = vmatprep.subr.mxu1 %v21002_v23 }
 0x6dd   : > { %v7925_v50 = vadd.f32 %v13540_v1, %v13478_v60  ;;  %8182 = vmatpush2.msra.mxu1 %v7988_v29  ;;  %v8045_v60 = vld [vmem:[%s20614_s10 + $0x130] sm:$0xff]  ;;  %v8055_v29 = vld [vmem:[%s20614_s10 + $0x180] sm:$0xff] }
 0x6de   : > { %v7919_v57 = vpop.f32.mrf.mxu0  ;;  %8183 = vmatprep.subr.mxu1 %v21002_v23  ;;  %v8059_v1 = vld [vmem:[%s20614_s10 + $0x1a0] sm:$0xff] }
 0x6df   : > { %v7963_v8 = vmax.f32 %v7925_v50, 0.0  ;;  %v7920_v21 = vadd.f32 %v7919_v57, %v7566_v41  ;;  %8184 = vmatpush2.msra.mxu1 %v7987_v49  ;;  %v8051_v41 = vld [vmem:[%s20614_s10 + $0x160] sm:$0xff]  ;;  %v8058_v49 = vld [vmem:[%s20614_s10 + $0x198] sm:$0xff]  ;;  %v8057_v57 = vld [vmem:[%s20614_s10 + $0x190] sm:$0xff] }
 0x6e0   : > { %8186 = vmatmul.mubr.f32.vlgmr.msra.gmra.mxu1 %v8007_v54  ;;  %v8054_v50 = vld [vmem:[%s20614_s10 + $0x178] sm:$0xff]  ;;  %v8061_v54 = vld [vmem:[%s20614_s10 + $0x1b0] sm:$0xf]  ;;  %13606 = vmatprep.subr.mxu1 %v8501_v17 }
 0x6e1   : > { %v8006_v55 = vadd.f32 %v18882_v40, %v7963_v8  ;;  %v7962_v22 = vmax.f32 %v7920_v21, 0.0  ;;  %8190 = vmatprep.mubr.f32.mxu1 %v8011_v3  ;;  %v8060_v3 = vld [vmem:[%s20614_s10 + $0x1a8] sm:$0xff]  ;;  %v8481_v8 = vld [vmem:[%s20615_s11 + $0x38] sm:$0xff]  ;;  %v8480_v21 = vld [vmem:[%s20615_s11 + $0x30] sm:$0xff]  ;;  %13607 = vmatpush3.msra.mxu1 %v8501_v17 }
 0x6e2   : > { %v9032_v17 = vld [vmem:[%s20615_s11 + $0xd8] sm:$0xff] }
 0x6e3   : > { %v8005_v62 = vadd.f32 %v18882_v40, %v7962_v22  ;;  %13542 = vmatpush3.msra.mxu0 %v8006_v55  ;;  %v8020_v40 = vld [vmem:[%s20614_s10 + $0x68] sm:$0xff]  ;;  %v8500_v22 = vld [vmem:[%s20615_s11 + $0x70] sm:$0xff] }
 0x6e4   : > { %13543 = vmatprep.subr.mxu0 %v21002_v23  ;;  %8191 = vmatmul.mubr.f32.gmra.mxu1 %v8010_v5  ;;  %v8479_v55 = vld [vmem:[%s20615_s11 + $0x28] sm:$0xff]  ;;  %v8478_v5 = vld [vmem:[%s20615_s11 + $0x20] sm:$0xff] }
 0x6e5   : > { %13544 = vmatpush3.msra.mxu0 %v8005_v62  ;;  %8195 = vmatprep.mubr.f32.mxu1 %v8014_v43  ;;  %v8499_v43 = vld [vmem:[%s20615_s11 + $0x68] sm:$0xff]  ;;  %v8498_v62 = vld [vmem:[%s20615_s11 + $0x60] sm:$0xff] }
 0x6e6   : > { %13545 = vmatprep.subr.mxu0 %v21002_v23  ;;  %13608 = vmatprep.subr.mxu1 %v8500_v22 }
 0x6e7   : > { %13546 = vmatpush3.msra.mxu0 %v8004_v36  ;;  %13609 = vmatpush3.msra.mxu1 %v8500_v22  ;;  %v8476_v36 = vld [vmem:[%s20615_s11 + $0x10] sm:$0xff] }
 0x6e8   : > { %13547 = vmatprep.subr.mxu0 %v21002_v23  ;;  %8196 = vmatmul.mubr.f32.gmra.mxu1 %v8013_v11  ;;  %v8497_v11 = vld [vmem:[%s20615_s11 + $0x58] sm:$0xff] }
 0x6e9   : > { %13548 = vmatpush3.msra.mxu0 %v8003_v14  ;;  %8200 = vmatprep.mubr.f32.mxu1 %v8017_v9  ;;  %v8475_v9 = vld [vmem:[%s20615_s11 + $0x8] sm:$0xff]  ;;  %v8496_v14 = vld [vmem:[%s20615_s11 + $0x50] sm:$0xff] }
 0x6ea   : > { %13550 = vmatmul.mubr.msk.f32.vlgmr.msra.gmra.mxu0 %vm4938_vm4, %v8009_v31  ;;  %13640 = vmatprep.subr.mxu0 %v8481_v8  ;;  %v8474_v31 = vld [vmem:[%s20615_s11] sm:$0xff] }
 0x6eb   : > { %13552 = vmatprep.mubr.msk.f32.mxu0 %vm14484_vm3, %v21002_v23  ;;  %13641 = vmatpush3.msra.mxu0 %v8481_v8 }
 0x6ec   : > { %8201 = vmatmul.mubr.f32.gmra.mxu1 %v8016_v19  ;;  %13642 = vmatprep.subr.mxu0 %v8480_v21  ;;  %v8495_v19 = vld [vmem:[%s20615_s11 + $0x48] sm:$0xff] }
 0x6ed   : > { %8205 = vmatprep.mubr.f32.mxu1 %v8020_v40  ;;  %13643 = vmatpush3.msra.mxu0 %v8480_v21  ;;  %v8494_v40 = vld [vmem:[%s20615_s11 + $0x40] sm:$0xff] }
 0x6ee   : > { %13553 = vmatmul.mubr.msk.f32.gmra.mxu0 %vm4938_vm4, %v8012_v6  ;;  %13644 = vmatprep.subr.mxu0 %v8479_v55  ;;  %v9036_v6 = vld [vmem:[%s20615_s11 + $0xf8] sm:$0xff] }
 0x6ef   : > { %13555 = vmatprep.mubr.msk.f32.mxu0 %vm14484_vm3, %v21002_v23  ;;  %13645 = vmatpush3.msra.mxu0 %v8479_v55  ;;  %v8840_v55 = vld [vmem:[%s20615_s11 + $0xa0] sm:$0xff] }
 0x6f0   : > { %8206 = vmatmul.mubr.f32.gmra.mxu1 %v8019_v7  ;;  %13646 = vmatprep.subr.mxu0 %v8478_v5  ;;  %v8843_v7 = vld [vmem:[%s20615_s11 + $0xb8] sm:$0xff] }
 0x6f1   : > { %8210 = vmatprep.mubr.f32.mxu1 %v8023_v28  ;;  %13647 = vmatpush3.msra.mxu0 %v8478_v5 }
 0x6f2   : > { %13556 = vmatmul.mubr.msk.f32.gmra.mxu0 %vm4938_vm4, %v8015_v2  ;;  %13610 = vmatprep.subr.mxu1 %v8499_v43 }
 0x6f3   : > { %13558 = vmatprep.mubr.msk.f32.mxu0 %vm14484_vm3, %v21002_v23  ;;  %13648 = vmatprep.subr.mxu0 %v8477_v4 }
 0x6f4   : > { %8211 = vmatmul.mubr.f32.gmra.mxu1 %v8022_v45  ;;  %13649 = vmatpush3.msra.mxu0 %v8477_v4  ;;  %v9031_v4 = vld [vmem:[%s20615_s11 + $0xd0] sm:$0xff] }
 0x6f5   : > { %8215 = vmatprep.mubr.f32.mxu1 %v8026_v32  ;;  %13611 = vmatpush3.msra.mxu1 %v8499_v43 }
 0x6f6   : > { %13559 = vmatmul.mubr.msk.f32.gmra.mxu0 %vm4938_vm4, %v8018_v26  ;;  %13612 = vmatprep.subr.mxu1 %v8498_v62 }
 0x6f7   : > { %13561 = vmatprep.mubr.msk.f32.mxu0 %vm14484_vm3, %v21002_v23  ;;  %13650 = vmatprep.subr.mxu0 %v8476_v36 }
 0x6f8   : > { %8216 = vmatmul.mubr.f32.gmra.mxu1 %v8025_v15  ;;  %13651 = vmatpush3.msra.mxu0 %v8476_v36 }
 0x6f9   : > { %8220 = vmatprep.mubr.f32.mxu1 %v8029_v44  ;;  %13613 = vmatpush3.msra.mxu1 %v8498_v62 }
 0x6fa   : > { %13562 = vmatmul.mubr.msk.f32.gmra.mxu0 %vm4938_vm4, %v8021_v24  ;;  %13614 = vmatprep.subr.mxu1 %v8497_v11 }
 0x6fb   : > { %13564 = vmatprep.mubr.msk.f32.mxu0 %vm14484_vm3, %v21002_v23  ;;  %13652 = vmatprep.subr.mxu0 %v8475_v9 }
 0x6fc   : > { %8221 = vmatmul.mubr.f32.gmra.mxu1 %v8028_v35  ;;  %13653 = vmatpush3.msra.mxu0 %v8475_v9 }
 0x6fd   : > { %8225 = vmatprep.mubr.f32.mxu1 %v8032_v18  ;;  %13615 = vmatpush3.msra.mxu1 %v8497_v11 }
 0x6fe   : > { %13565 = vmatmul.mubr.msk.f32.gmra.mxu0 %vm4938_vm4, %v8024_v38  ;;  %13616 = vmatprep.subr.mxu1 %v8496_v14 }
 0x6ff   : > { %13567 = vmatprep.mubr.msk.f32.mxu0 %vm14484_vm3, %v21002_v23  ;;  %13654 = vmatprep.subr.mxu0 %v8474_v31 }
 0x700   : > { %8226 = vmatmul.mubr.f32.gmra.mxu1 %v8031_v48  ;;  %13655 = vmatpush3.msra.mxu0 %v8474_v31  ;;  %v9030_v31 = vld [vmem:[%s20615_s11 + $0xc8] sm:$0xff] }
 0x701   : > { %8230 = vmatprep.mubr.f32.mxu1 %v8035_v59  ;;  %13617 = vmatpush3.msra.mxu1 %v8496_v14  ;;  %v8839_v14 = vld [vmem:[%s20615_s11 + $0x98] sm:$0xff] }
 0x702   : > { %13568 = vmatmul.mubr.msk.f32.gmra.mxu0 %vm4938_vm4, %v8027_v10  ;;  %13618 = vmatprep.subr.mxu1 %v8495_v19 }
 0x703   : > { %13570 = vmatprep.mubr.msk.f32.mxu0 %vm14484_vm3, %v21002_v23  ;;  %13619 = vmatpush3.msra.mxu1 %v8495_v19 }
 0x704   : > { %8231 = vmatmul.mubr.f32.gmra.mxu1 %v8034_v42  ;;  %13620 = vmatprep.subr.mxu1 %v8494_v40 }
 0x705   : > { %8235 = vmatprep.mubr.f32.mxu1 %v8038_v51  ;;  %13621 = vmatpush3.msra.mxu1 %v8494_v40 }
 0x706   : > { %13571 = vmatmul.mubr.msk.f32.gmra.mxu0 %vm4938_vm4, %v8030_v12  ;;  %13708 = vmatprep.subr.mxu0 %v9036_v6 }
 0x707   : > { %13573 = vmatprep.mubr.msk.f32.mxu0 %vm14484_vm3, %v21002_v23  ;;  %13674 = vmatprep.subr.mxu1 %v8843_v7 }
 0x708   : > { %8236 = vmatmul.mubr.f32.gmra.mxu1 %v8037_v0 }
 0x709   : > { %8240 = vmatprep.mubr.f32.mxu1 %v8041_v25 }
 0x70a   : > { %13574 = vmatmul.mubr.msk.f32.gmra.mxu0 %vm4938_vm4, %v8033_v46 }
 0x70b   : > { %13576 = vmatprep.mubr.msk.f32.mxu0 %vm14484_vm3, %v21002_v23 }
 0x70c   : > { %8241 = vmatmul.mubr.f32.gmra.mxu1 %v8040_v53 }
 0x70d   : > { %8245 = vmatprep.mubr.f32.mxu1 %v8044_v16 }
 0x70e   : > { %13577 = vmatmul.mubr.msk.f32.gmra.mxu0 %vm4938_vm4, %v8036_v20 }
 0x70f   : > { %13579 = vmatprep.mubr.msk.f32.mxu0 %vm14484_vm3, %v21002_v23 }
 0x710   : > { %8246 = vmatmul.mubr.f32.gmra.mxu1 %v8043_v39 }
 0x711   : > { %8250 = vmatprep.mubr.f32.mxu1 %v8047_v63 }
 0x712   : > { %13580 = vmatmul.mubr.msk.f32.gmra.mxu0 %vm4938_vm4, %v8039_v13 }
 0x713   : > { %13582 = vmatprep.mubr.msk.f32.mxu0 %vm14484_vm3, %v21002_v23 }
 0x714   : > { %8251 = vmatmul.mubr.f32.gmra.mxu1 %v8046_v56 }
 0x715   : > { %8255 = vmatprep.mubr.f32.mxu1 %v8050_v27 }
 0x716   : > { %13583 = vmatmul.mubr.msk.f32.gmra.mxu0 %vm4938_vm4, %v8042_v37  ;;  %v9035_v37 = vld [vmem:[%s20615_s11 + $0xf0] sm:$0xff] }
 0x717   : > { %13585 = vmatprep.mubr.msk.f32.mxu0 %vm14484_vm3, %v21002_v23 }
 0x718   : > { %8256 = vmatmul.mubr.f32.gmra.mxu1 %v8049_v33 }
 0x719   : > { %8260 = vmatprep.mubr.f32.mxu1 %v8053_v52 }
 0x71a   : > { %13586 = vmatmul.mubr.msk.f32.gmra.mxu0 %vm4938_vm4, %v8045_v60 }
 0x71b   : > { %13588 = vmatprep.mubr.msk.f32.mxu0 %vm14484_vm3, %v21002_v23 }
 0x71c   : > { %8261 = vmatmul.mubr.f32.gmra.mxu1 %v8052_v61  ;;  %v9034_v61 = vld [vmem:[%s20615_s11 + $0xe8] sm:$0xff] }
 0x71d   : > { %8265 = vmatprep.mubr.f32.mxu1 %v8056_v58 }
 0x71e   : > { %13589 = vmatmul.mubr.msk.f32.gmra.mxu0 %vm4938_vm4, %v8048_v47 }
 0x71f   : > { %13591 = vmatprep.mubr.msk.f32.mxu0 %vm14484_vm3, %v21002_v23 }
 0x720   : > { %8266 = vmatmul.mubr.f32.gmra.mxu1 %v8055_v29 }
 0x721   : > { %8270 = vmatprep.mubr.f32.mxu1 %v8059_v1 }
 0x722   : > { %13592 = vmatmul.mubr.msk.f32.gmra.mxu0 %vm4938_vm4, %v8051_v41  ;;  %v8842_v41 = vld [vmem:[%s20615_s11 + $0xb0] sm:$0xff] }
 0x723   : > { %13594 = vmatprep.mubr.msk.f32.mxu0 %vm14484_vm3, %v21002_v23 }
 0x724   : > { %8271 = vmatmul.mubr.f32.gmra.mxu1 %v8058_v49  ;;  %v9033_v49 = vld [vmem:[%s20615_s11 + $0xe0] sm:$0xff] }
 0x725   : > { %8275 = vmatprep.mubr.f32.mxu1 %v8062_v30 }
 0x726   : > { %13595 = vmatmul.mubr.msk.f32.gmra.mxu0 %vm4938_vm4, %v8054_v50 }
 0x727   : > { %13597 = vmatprep.mubr.msk.f32.mxu0 %vm14484_vm3, %v21002_v23 }
 0x728   : > { %8276 = vmatmul.mubr.f32.gmra.mxu1 %v8061_v54 }
 0x72a   : > { %13598 = vmatmul.mubr.msk.f32.gmra.mxu0 %vm4938_vm4, %v8057_v57  ;;  %v8841_v57 = vld [vmem:[%s20615_s11 + $0xa8] sm:$0xff] }
 0x72b   : > { %13600 = vmatprep.mubr.msk.f32.mxu0 %vm14484_vm3, %v21002_v23 }
 0x72e   : > { %13601 = vmatmul.mubr.msk.f32.gmra.mxu0 %vm4938_vm4, %v8060_v3 }
 0x72f   : > { %13603 = vmatprep.mubr.msk.f32.mxu0 %vm14484_vm3, %v21002_v23 }
 0x732   : > { %13604 = vmatmul.mubr.msk.f32.gmra.mxu0 %vm4938_vm4, %v8063_v34 }
 0x7a0   : > { %v8187_v28 = vpop.f32.mrf.mxu1 }
 0x7a2   : > { %v8189_v2 = vpop.f32.mrf.mxu1 }
 0x7a4   : > { %v8192_v45 = vpop.f32.mrf.mxu1 }
 0x7a6   : > { %v8194_v32 = vpop.f32.mrf.mxu1 }
 0x7a8   : > { %v8197_v26 = vpop.f32.mrf.mxu1 }
 0x7aa   : > { %v8347_v15 = vpop.f32.mrf.mxu0  ;;  %v8199_v44 = vpop.f32.mrf.mxu1 }
 0x7ab   : > { %v8348_v24 = vadd.f32 %v8347_v15, %v8187_v28  ;;  %v8837_v15 = vld [vmem:[%s20615_s11 + $0x88] sm:$0xff] }
 0x7ac   : > { %v13551_v35 = vpop.f32.mrf.mxu0  ;;  %v8202_v18 = vpop.f32.mrf.mxu1 }
 0x7ad   : > { %8442 = vst.msk [vmem:[#allocation4] sm:$0xff] %vm8441_vm6, %v8348_v24 }
 0x7ae   : > { %v8352_v38 = vpop.f32.mrf.mxu0  ;;  %v8204_v48 = vpop.f32.mrf.mxu1 }
 0x7af   : > { %v8353_v59 = vadd.f32 %v8352_v38, %v8192_v45 }
 0x7b0   : > { %v13554_v10 = vpop.f32.mrf.mxu0  ;;  %v8207_v42 = vpop.f32.mrf.mxu1 }
 0x7b1   : > { %8443 = vst.msk [vmem:[#allocation4 + $0x8] sm:$0xff] %vm8441_vm6, %v8353_v59 }
 0x7b2   : > { %v8357_v51 = vpop.f32.mrf.mxu0  ;;  %v8209_v12 = vpop.f32.mrf.mxu1 }
 0x7b3   : > { %v8358_v0 = vadd.f32 %v8357_v51, %v8197_v26  ;;  %v9029_v26 = vld [vmem:[%s20615_s11 + $0xc0] sm:$0xff] }
 0x7b4   : > { %v13557_v25 = vpop.f32.mrf.mxu0  ;;  %v8212_v46 = vpop.f32.mrf.mxu1  ;;  %v8462_v53 = vld [vmem:[#allocation4] sm:$0xff] }
 0x7b5   : > { %8444 = vst.msk [vmem:[#allocation4 + $0x10] sm:$0xff] %vm8441_vm6, %v8358_v0  ;;  %13656 = vmatprep.mubr.msk.f32.mxu0 %vm8441_vm6, %v8462_v53  ;;  %v19364_v25 = vld [vmem:[%s20615_s11 + $0x138] sm:$0xff] }
 0x7b6   : > { %v8362_v16 = vpop.f32.mrf.mxu0  ;;  %v8214_v20 = vpop.f32.mrf.mxu1 }
 0x7b7   : > { %v8363_v39 = vadd.f32 %v8362_v16, %v8202_v18  ;;  %v19346_v18 = vld [vmem:[%s20615_s11 + $0x178] sm:$0xff] }
 0x7b8   : > { %v13560_v63 = vpop.f32.mrf.mxu0  ;;  %v8217_v13 = vpop.f32.mrf.mxu1  ;;  %v8463_v56 = vld [vmem:[#allocation4 + $0x8] sm:$0xff] }
 0x7b9   : > { %v8482_v27 = vld [vmem:[#allocation4 + $0x2] sm:$0xff]  ;;  %8445 = vst.msk [vmem:[#allocation4 + $0x18] sm:$0xff] %vm8441_vm6, %v8363_v39  ;;  %13657 = vmatmul.mubr.msk.f32.vlgmr.msra.gmra.mxu0 %vm8441_vm6, %v8463_v56 }
 0x7ba   : > { %13622 = vmatprep.mubr.msk.f32.mxu1 %vm8441_vm6, %v8482_v27  ;;  %v8367_v33 = vpop.f32.mrf.mxu0  ;;  %v8219_v52 = vpop.f32.mrf.mxu1  ;;  %13709 = vmatpush3.msra.mxu0 %v9036_v6 }
 0x7bb   : > { %v8368_v60 = vadd.f32 %v8367_v33, %v8207_v42  ;;  %13710 = vmatprep.subr.mxu0 %v9035_v37  ;;  %v8836_v42 = vld [vmem:[%s20615_s11 + $0x80] sm:$0xff] }
 0x7bc   : > { %v13563_v58 = vpop.f32.mrf.mxu0  ;;  %v8222_v47 = vpop.f32.mrf.mxu1  ;;  %v8464_v29 = vld [vmem:[#allocation4 + $0x10] sm:$0xff]  ;;  %13711 = vmatpush3.msra.mxu0 %v9035_v37 }
 0x7bd   : > { %v8483_v1 = vld [vmem:[#allocation4 + $0xa] sm:$0xff]  ;;  %8446 = vst.msk [vmem:[#allocation4 + $0x20] sm:$0xff] %vm8441_vm6, %v8368_v60  ;;  %13659 = vmatprep.mubr.msk.f32.mxu0 %vm8441_vm6, %v8464_v29  ;;  %13712 = vmatprep.subr.mxu0 %v9034_v61 }
 0x7be   : > { %13623 = vmatmul.mubr.msk.f32.vlgmr.msra.gmra.mxu1 %vm8441_vm6, %v8483_v1  ;;  %v8372_v30 = vpop.f32.mrf.mxu0  ;;  %v8224_v50 = vpop.f32.mrf.mxu1  ;;  %13713 = vmatpush3.msra.mxu0 %v9034_v61 }
 0x7bf   : > { %13675 = vmatpush3.msra.mxu1 %v8843_v7  ;;  %v8373_v54 = vadd.f32 %v8372_v30, %v8212_v46  ;;  %13714 = vmatprep.subr.mxu0 %v9033_v49  ;;  %v8838_v7 = vld [vmem:[%s20615_s11 + $0x90] sm:$0xff] }
 0x7c0   : > { %13676 = vmatprep.subr.mxu1 %v8842_v41  ;;  %v13566_v3 = vpop.f32.mrf.mxu0  ;;  %v8227_v34 = vpop.f32.mrf.mxu1  ;;  %v19295_v8 = vld [vmem:[#allocation4 + $0x18] sm:$0xff]  ;;  %13715 = vmatpush3.msra.mxu0 %v9033_v49 }
 0x7c1   : > { %v8484_v21 = vld [vmem:[#allocation4 + $0x12] sm:$0xff]  ;;  %13677 = vmatpush3.msra.mxu1 %v8842_v41  ;;  %8447 = vst.msk [vmem:[#allocation4 + $0x28] sm:$0xff] %vm8441_vm6, %v8373_v54  ;;  %13660 = vmatmul.mubr.msk.f32.gmra.mxu0 %vm8441_vm6, %v19295_v8 }
 0x7c2   : > { %13625 = vmatprep.mubr.msk.f32.mxu1 %vm8441_vm6, %v8484_v21  ;;  %v8377_v22 = vpop.f32.mrf.mxu0  ;;  %v8229_v5 = vpop.f32.mrf.mxu1  ;;  %13678 = vmatprep.subr.mxu1 %v8841_v57 }
 0x7c3   : > { %v8378_v43 = vadd.f32 %v8377_v22, %v8217_v13  ;;  %13716 = vmatprep.subr.mxu0 %v9032_v17  ;;  %13679 = vmatpush3.msra.mxu1 %v8841_v57 }
 0x7c4   : > { %v13569_v62 = vpop.f32.mrf.mxu0  ;;  %v8232_v36 = vpop.f32.mrf.mxu1  ;;  %v19310_v11 = vld [vmem:[#allocation4 + $0x20] sm:$0xff]  ;;  %13717 = vmatpush3.msra.mxu0 %v9032_v17  ;;  %13680 = vmatprep.subr.mxu1 %v8840_v55 }
 0x7c5   : > { %v19312_v9 = vld [vmem:[#allocation4 + $0x1a] sm:$0xff]  ;;  %8448 = vst.msk [vmem:[#allocation4 + $0x30] sm:$0xff] %vm8441_vm6, %v8378_v43  ;;  %13662 = vmatprep.mubr.msk.f32.mxu0 %vm8441_vm6, %v19310_v11  ;;  %13718 = vmatprep.subr.mxu0 %v9031_v4 }
 0x7c6   : > { %13626 = vmatmul.mubr.msk.f32.gmra.mxu1 %vm8441_vm6, %v19312_v9  ;;  %v8382_v19 = vpop.f32.mrf.mxu0  ;;  %v8234_v40 = vpop.f32.mrf.mxu1  ;;  %13719 = vmatpush3.msra.mxu0 %v9031_v4 }
 0x7c7   : > { %13681 = vmatpush3.msra.mxu1 %v8840_v55  ;;  %v8383_v6 = vadd.f32 %v8382_v19, %v8222_v47  ;;  %13720 = vmatprep.subr.mxu0 %v9030_v31  ;;  %v8824_v40 = vld [vmem:[#allocation4 + $0x4] sm:$0xff] }
 0x7c8   : > { %13682 = vmatprep.subr.mxu1 %v8839_v14  ;;  %v13572_v28 = vpop.f32.mrf.mxu0  ;;  %v8237_v2 = vpop.f32.mrf.mxu1  ;;  %v19328_v45 = vld [vmem:[#allocation4 + $0x28] sm:$0xff]  ;;  %13721 = vmatpush3.msra.mxu0 %v9030_v31 }
 0x7c9   : > { %v19330_v32 = vld [vmem:[#allocation4 + $0x22] sm:$0xff]  ;;  %13683 = vmatpush3.msra.mxu1 %v8839_v14  ;;  %8449 = vst.msk [vmem:[#allocation4 + $0x38] sm:$0xff] %vm8441_vm6, %v8383_v6  ;;  %13663 = vmatmul.mubr.msk.f32.gmra.mxu0 %vm8441_vm6, %v19328_v45 }
 0x7ca   : > { %13628 = vmatprep.mubr.msk.f32.mxu1 %vm8441_vm6, %v19330_v32  ;;  %v8387_v44 = vpop.f32.mrf.mxu0  ;;  %v8239_v24 = vpop.f32.mrf.mxu1  ;;  %13684 = vmatprep.subr.mxu1 %v8838_v7 }
 0x7cb   : > { %v8388_v35 = vadd.f32 %v8387_v44, %v8227_v34  ;;  %13722 = vmatprep.subr.mxu0 %v9029_v26  ;;  %13685 = vmatpush3.msra.mxu1 %v8838_v7  ;;  %v9420_v44 = vld [vmem:[%s20615_s11 + $0x168] sm:$0xff] }
 0x7cc   : > { %v13575_v38 = vpop.f32.mrf.mxu0  ;;  %v8242_v48 = vpop.f32.mrf.mxu1  ;;  %v19348_v59 = vld [vmem:[#allocation4 + $0x30] sm:$0xff]  ;;  %13723 = vmatpush3.msra.mxu0 %v9029_v26  ;;  %13686 = vmatprep.subr.mxu1 %v8837_v15 }
 0x7cd   : > { %v19350_v10 = vld [vmem:[#allocation4 + $0x2a] sm:$0xff]  ;;  %8450 = vst.msk [vmem:[#allocation4 + $0x40] sm:$0xff] %vm8441_vm6, %v8388_v35  ;;  %13665 = vmatprep.mubr.msk.f32.mxu0 %vm8441_vm6, %v19348_v59  ;;  %13687 = vmatpush3.msra.mxu1 %v8837_v15  ;;  %v8826_v15 = vld [vmem:[#allocation4 + $0x14] sm:$0xff]  ;;  %v8827_v38 = vld [vmem:[#allocation4 + $0x1c] sm:$0xff] }
 0x7ce   : > { %13629 = vmatmul.mubr.msk.f32.gmra.mxu1 %vm8441_vm6, %v19350_v10  ;;  %v8392_v51 = vpop.f32.mrf.mxu0  ;;  %v8244_v12 = vpop.f32.mrf.mxu1  ;;  %13776 = vmatprep.subr.mxu0 %v19346_v18 }
 0x7cf   : > { %v8393_v0 = vadd.f32 %v8392_v51, %v8232_v36  ;;  %13688 = vmatprep.subr.mxu1 %v8836_v42  ;;  %v9419_v51 = vld [vmem:[%s20615_s11 + $0x160] sm:$0xff]  ;;  %v9227_v12 = vld [vmem:[%s20615_s11 + $0x128] sm:$0xff] }
 0x7d0   : > { %v13578_v46 = vpop.f32.mrf.mxu0  ;;  %v19366_v53 = vld [vmem:[#allocation4 + $0x38] sm:$0xff]  ;;  %v8247_v16 = vpop.f32.mrf.mxu1  ;;  %13689 = vmatpush3.msra.mxu1 %v8836_v42  ;;  %v19445_v42 = vld [vmem:[#allocation4 + $0x24] sm:$0xff] }
 0x7d1   : > { %v19368_v20 = vld [vmem:[#allocation4 + $0x32] sm:$0xff]  ;;  %8451 = vst.msk [vmem:[#allocation4 + $0x48] sm:$0xff] %vm8441_vm6, %v8393_v0  ;;  %13666 = vmatmul.mubr.msk.f32.gmra.mxu0 %vm8441_vm6, %v19366_v53  ;;  %13742 = vmatprep.subr.mxu1 %v19364_v25 }
 0x7d2   : > { %13631 = vmatprep.mubr.msk.f32.mxu1 %vm8441_vm6, %v19368_v20  ;;  %v8397_v39 = vpop.f32.mrf.mxu0  ;;  %v8249_v63 = vpop.f32.mrf.mxu1  ;;  %v19458_v46 = vld [vmem:[#allocation4 + $0x2c] sm:$0xff] }
 0x7d3   : > { %v8398_v13 = vadd.f32 %v8397_v39, %v8237_v2  ;;  %v8825_v2 = vld [vmem:[#allocation4 + $0xc] sm:$0xff]  ;;  %v19464_v39 = vld [vmem:[#allocation4 + $0x34] sm:$0xff] }
 0x7d4   : > { %v13581_v56 = vpop.f32.mrf.mxu0  ;;  %v19376_v27 = vld [vmem:[#allocation4 + $0x40] sm:$0xff]  ;;  %v8252_v33 = vpop.f32.mrf.mxu1  ;;  %v9418_v63 = vld [vmem:[%s20615_s11 + $0x158] sm:$0xff] }
 0x7d5   : > { %v19378_v37 = vld [vmem:[#allocation4 + $0x3a] sm:$0xff]  ;;  %8452 = vst.msk [vmem:[#allocation4 + $0x50] sm:$0xff] %vm8441_vm6, %v8398_v13  ;;  %13668 = vmatprep.mubr.msk.f32.mxu0 %vm8441_vm6, %v19376_v27  ;;  %v9226_v13 = vld [vmem:[%s20615_s11 + $0x120] sm:$0xff] }
 0x7d6   : > { %13632 = vmatmul.mubr.msk.f32.gmra.mxu1 %vm8441_vm6, %v19378_v37  ;;  %v8402_v52 = vpop.f32.mrf.mxu0  ;;  %v8254_v60 = vpop.f32.mrf.mxu1 }
 0x7d7   : > { %v8403_v61 = vadd.f32 %v8402_v52, %v8242_v48  ;;  %v19480_v60 = vld [vmem:[#allocation4 + $0x3c] sm:$0xff] }
 0x7d8   : > { %v13584_v58 = vpop.f32.mrf.mxu0  ;;  %v19385_v47 = vld [vmem:[#allocation4 + $0x48] sm:$0xff]  ;;  %v8257_v1 = vpop.f32.mrf.mxu1 }
 0x7d9   : > { %v19387_v29 = vld [vmem:[#allocation4 + $0x42] sm:$0xff]  ;;  %8453 = vst.msk [vmem:[#allocation4 + $0x58] sm:$0xff] %vm8441_vm6, %v8403_v61  ;;  %13669 = vmatmul.mubr.msk.f32.gmra.mxu0 %vm8441_vm6, %v19385_v47 }
 0x7da   : > { %13634 = vmatprep.mubr.msk.f32.mxu1 %vm8441_vm6, %v19387_v29  ;;  %v8407_v41 = vpop.f32.mrf.mxu0  ;;  %v8259_v49 = vpop.f32.mrf.mxu1 }
 0x7db   : > { %v8408_v30 = vadd.f32 %v8407_v41, %v8247_v16  ;;  %v19490_v41 = vld [vmem:[#allocation4 + $0x44] sm:$0xff] }
 0x7dc   : > { %v19394_v50 = vld [vmem:[#allocation4 + $0x50] sm:$0xff]  ;;  %v13587_v57 = vpop.f32.mrf.mxu0  ;;  %v8262_v3 = vpop.f32.mrf.mxu1 }
 0x7dd   : > { %v19396_v54 = vld [vmem:[#allocation4 + $0x4a] sm:$0xff]  ;;  %8454 = vst.msk [vmem:[#allocation4 + $0x60] sm:$0xff] %vm8441_vm6, %v8408_v30  ;;  %13671 = vmatprep.mubr.msk.f32.mxu0 %vm8441_vm6, %v19394_v50  ;;  %v9416_v57 = vld [vmem:[%s20615_s11 + $0x148] sm:$0xff] }
 0x7de   : > { %13635 = vmatmul.mubr.msk.f32.gmra.mxu1 %vm8441_vm6, %v19396_v54  ;;  %v8412_v34 = vpop.f32.mrf.mxu0  ;;  %v8264_v21 = vpop.f32.mrf.mxu1  ;;  %v9225_v30 = vld [vmem:[%s20615_s11 + $0x118] sm:$0xff] }
 0x7df   : > { %v8413_v17 = vadd.f32 %v8412_v34, %v8252_v33  ;;  %v9417_v33 = vld [vmem:[%s20615_s11 + $0x150] sm:$0xff]  ;;  %v9415_v21 = vld [vmem:[%s20615_s11 + $0x140] sm:$0xff] }
 0x7e0   : > { %v19403_v55 = vld [vmem:[#allocation4 + $0x58] sm:$0xff]  ;;  %v13590_v5 = vpop.f32.mrf.mxu0  ;;  %v8267_v43 = vpop.f32.mrf.mxu1  ;;  %v9224_v34 = vld [vmem:[%s20615_s11 + $0x110] sm:$0xff] }
 0x7e1   : > { %v19405_v22 = vld [vmem:[#allocation4 + $0x52] sm:$0xff]  ;;  %13672 = vmatmul.mubr.msk.f32.gmra.mxu0 %vm8441_vm6, %v19403_v55  ;;  %8455 = vst.msk [vmem:[#allocation4 + $0x68] sm:$0xff] %vm8441_vm6, %v8413_v17 }
 0x7e2   : > { %13637 = vmatprep.mubr.msk.f32.mxu1 %vm8441_vm6, %v19405_v22  ;;  %13724 = vmatprep.mubr.msk.f32.mxu0 %vm8441_vm6, %v19295_v8  ;;  %v8417_v4 = vpop.f32.mrf.mxu0  ;;  %v8269_v62 = vpop.f32.mrf.mxu1  ;;  %v9421_v8 = vld [vmem:[%s20615_s11 + $0x170] sm:$0xff]  ;;  %v19517_v17 = vld [vmem:[#allocation4 + $0x54] sm:$0xff] }
 0x7e3   : > { %v8418_v36 = vadd.f32 %v8417_v4, %v8257_v1  ;;  %v9223_v5 = vld [vmem:[%s20615_s11 + $0x108] sm:$0xff]  ;;  %v9222_v4 = vld [vmem:[%s20615_s11 + $0x100] sm:$0xff]  ;;  %v9808_v62 = vld [vmem:[%s20615_s11 + $0x1f8] sm:$0xff] }
 0x7e4   : > { %v19414_v14 = vld [vmem:[#allocation4 + $0x5a] sm:$0xff]  ;;  %v13593_v31 = vpop.f32.mrf.mxu0  ;;  %v8272_v19 = vpop.f32.mrf.mxu1 }
 0x7e5   : > { %13638 = vmatmul.mubr.msk.f32.gmra.mxu1 %vm8441_vm6, %v19414_v14  ;;  %13725 = vmatmul.mubr.msk.f32.vlgmr.msra.gmra.mxu0 %vm8441_vm6, %v19310_v11  ;;  %8456 = vst.msk [vmem:[#allocation4 + $0x70] sm:$0xff] %vm8441_vm6, %v8418_v36  ;;  %v19482_v61 = vld [vmem:[#allocation4 + $0x60] sm:$0xff]  ;;  %v9615_v31 = vld [vmem:[%s20615_s11 + $0x1b8] sm:$0xff] }
 0x7e6   : > { %13690 = vmatprep.mubr.msk.f32.mxu1 %vm8441_vm6, %v8824_v40  ;;  %13727 = vmatprep.mubr.msk.f32.mxu0 %vm8441_vm6, %v19328_v45  ;;  %v8422_v6 = vpop.f32.mrf.mxu0  ;;  %v8274_v7 = vpop.f32.mrf.mxu1  ;;  %v9228_v45 = vld [vmem:[%s20615_s11 + $0x130] sm:$0xff]  ;;  %v9804_v40 = vld [vmem:[%s20615_s11 + $0x1d8] sm:$0xff] }
 0x7e7   : > { %13777 = vmatpush3.msra.mxu0 %v19346_v18  ;;  %v8423_v28 = vadd.f32 %v8422_v6, %v8262_v3  ;;  %v19504_v3 = vld [vmem:[#allocation4 + $0x4c] sm:$0xff]  ;;  %v9807_v36 = vld [vmem:[%s20615_s11 + $0x1f0] sm:$0xff] }
 0x7e8   : > { %13778 = vmatprep.subr.mxu0 %v9421_v8  ;;  %v13596_v11 = vpop.f32.mrf.mxu0  ;;  %v8277_v26 = vpop.f32.mrf.mxu1  ;;  %v19484_v58 = vld [vmem:[#allocation4 + $0x68] sm:$0xff]  ;;  %v9612_v6 = vld [vmem:[%s20615_s11 + $0x1a0] sm:$0xff]  ;;  %v9803_v7 = vld [vmem:[%s20615_s11 + $0x1d0] sm:$0xff] }
 0x7e9   : > { %13691 = vmatmul.mubr.msk.f32.vlgmr.msra.gmra.mxu1 %vm8441_vm6, %v8825_v2  ;;  %13728 = vmatmul.mubr.msk.f32.gmra.mxu0 %vm8441_vm6, %v19348_v59  ;;  %8457 = vst.msk [vmem:[#allocation4 + $0x78] sm:$0xff] %vm8441_vm6, %v8423_v28  ;;  %v9611_v11 = vld [vmem:[%s20615_s11 + $0x198] sm:$0xff] }
 0x7ea   : > { %13693 = vmatprep.mubr.msk.f32.mxu1 %vm8441_vm6, %v8826_v15  ;;  %13730 = vmatprep.mubr.msk.f32.mxu0 %vm8441_vm6, %v19366_v53  ;;  %v8427_v24 = vpop.f32.mrf.mxu0  ;;  %v8279_v35 = vpop.f32.mrf.mxu1  ;;  %v9219_v15 = vld [vmem:[#allocation4 + $0x62] sm:$0xff] }
 0x7eb   : > { %13779 = vmatpush3.msra.mxu0 %v9421_v8  ;;  %13743 = vmatpush3.msra.mxu1 %v19364_v25  ;;  %v8428_v18 = vadd.f32 %v8427_v24, %v8267_v43  ;;  %v19524_v43 = vld [vmem:[#allocation4 + $0x5c] sm:$0xff]  ;;  %v19587_v8 = vld [vmem:[#allocation4 + $0x64] sm:$0xff] }
 0x7ec   : > { %13780 = vmatprep.subr.mxu0 %v9420_v44  ;;  %13744 = vmatprep.subr.mxu1 %v9228_v45  ;;  %v13599_v48 = vpop.f32.mrf.mxu0  ;;  %v19494_v49 = vld [vmem:[#allocation4 + $0x70] sm:$0xff]  ;;  %v9609_v35 = vld [vmem:[%s20615_s11 + $0x188] sm:$0xff] }
 0x7ed   : > { %13694 = vmatmul.mubr.msk.f32.gmra.mxu1 %vm8441_vm6, %v8827_v38  ;;  %13731 = vmatmul.mubr.msk.f32.gmra.mxu0 %vm8441_vm6, %v19376_v27  ;;  %8458 = vst.msk [vmem:[#allocation4 + $0x80] sm:$0xff] %vm8441_vm6, %v8428_v18  ;;  %v19597_v28 = vld [vmem:[#allocation4 + $0x6c] sm:$0xff] }
 0x7ee   : > { %13696 = vmatprep.mubr.msk.f32.mxu1 %vm8441_vm6, %v19445_v42  ;;  %13733 = vmatprep.mubr.msk.f32.mxu0 %vm8441_vm6, %v19385_v47  ;;  %v8432_v0 = vpop.f32.mrf.mxu0  ;;  %v9220_v24 = vld [vmem:[#allocation4 + $0x6a] sm:$0xff] }
 0x7ef   : > { %13781 = vmatpush3.msra.mxu0 %v9420_v44  ;;  %13745 = vmatpush3.msra.mxu1 %v9228_v45  ;;  %v8433_v25 = vadd.f32 %v8432_v0, %v8272_v19  ;;  %v9613_v19 = vld [vmem:[%s20615_s11 + $0x1a8] sm:$0xff]  ;;  %v9610_v44 = vld [vmem:[%s20615_s11 + $0x190] sm:$0xff]  ;;  %v9801_v45 = vld [vmem:[%s20615_s11 + $0x1c0] sm:$0xff] }
 0x7f0   : > { %13782 = vmatprep.subr.mxu0 %v9419_v51  ;;  %13746 = vmatprep.subr.mxu1 %v9227_v12  ;;  %v13602_v16 = vpop.f32.mrf.mxu0  ;;  %v19599_v2 = vld [vmem:[#allocation4 + $0x74] sm:$0xff] }
 0x7f1   : > { %13697 = vmatmul.mubr.msk.f32.gmra.mxu1 %vm8441_vm6, %v19458_v46  ;;  %13734 = vmatmul.mubr.msk.f32.gmra.mxu0 %vm8441_vm6, %v19394_v50  ;;  %8459 = vst.msk [vmem:[#allocation4 + $0x88] sm:$0xff] %vm8441_vm6, %v8433_v25  ;;  %v9221_v18 = vld [vmem:[#allocation4 + $0x72] sm:$0xff] }
 0x7f2   : > { %13699 = vmatprep.mubr.msk.f32.mxu1 %vm8441_vm6, %v19464_v39  ;;  %13736 = vmatprep.mubr.msk.f32.mxu0 %vm8441_vm6, %v19403_v55  ;;  %v8437_v56 = vpop.f32.mrf.mxu0  ;;  %v9994_v48 = vld [vmem:[%s20615_s11 + $0x200] sm:$0xff] }
 0x7f3   : > { %13783 = vmatpush3.msra.mxu0 %v9419_v51  ;;  %13747 = vmatpush3.msra.mxu1 %v9227_v12  ;;  %v8438_v52 = vadd.f32 %v8437_v56, %v8277_v26  ;;  %v9802_v26 = vld [vmem:[%s20615_s11 + $0x1c8] sm:$0xff] }
 0x7f4   : > { %13784 = vmatprep.subr.mxu0 %v9418_v63  ;;  %13748 = vmatprep.subr.mxu1 %v9226_v13  ;;  %v13605_v1 = vpop.f32.mrf.mxu0  ;;  %v9991_v51 = vld [vmem:[#allocation4 + $0x7c] sm:$0xff] }
 0x7f5   : > { %13700 = vmatmul.mubr.msk.f32.gmra.mxu1 %vm8441_vm6, %v19480_v60  ;;  %13737 = vmatmul.mubr.msk.f32.gmra.mxu0 %vm8441_vm6, %v19482_v61  ;;  %8461 = vst.msk [vmem:[#allocation4 + $0x90] sm:$0xf] %vm8460_vm7, %v8438_v52 }
 0x7f6   : > { %13785 = vmatpush3.msra.mxu0 %v9418_v63  ;;  %13702 = vmatprep.mubr.msk.f32.mxu1 %vm8441_vm6, %v19490_v41 }
 0x7f7   : > { %13786 = vmatprep.subr.mxu0 %v9417_v33  ;;  %13739 = vmatprep.mubr.msk.f32.mxu0 %vm8441_vm6, %v19484_v58 }
 0x7f8   : > { %13749 = vmatpush3.msra.mxu1 %v9226_v13  ;;  %13787 = vmatpush3.msra.mxu0 %v9417_v33  ;;  %v9992_v12 = vld [vmem:[#allocation4 + $0x84] sm:$0xff] }
 0x7f9   : > { %13703 = vmatmul.mubr.msk.f32.gmra.mxu1 %vm8441_vm6, %v19504_v3  ;;  %13740 = vmatmul.mubr.msk.f32.gmra.mxu0 %vm8441_vm6, %v19494_v49 }
 0x7fa   : > { %13750 = vmatprep.subr.mxu1 %v9225_v30  ;;  %13788 = vmatprep.subr.mxu0 %v9416_v57 }
 0x7fb   : > { %13751 = vmatpush3.msra.mxu1 %v9225_v30  ;;  %13789 = vmatpush3.msra.mxu0 %v9416_v57 }
 0x7fc   : > { %13792 = vmatprep.mubr.msk.f32.mxu0 %vm8441_vm6, %v8827_v38  ;;  %13752 = vmatprep.subr.mxu1 %v9224_v34  ;;  %v9608_v38 = vld [vmem:[%s20615_s11 + $0x180] sm:$0xff] }
 0x7fd   : > { %13790 = vmatprep.subr.mxu0 %v9415_v21  ;;  %13705 = vmatprep.mubr.msk.f32.mxu1 %vm8441_vm6, %v19517_v17  ;;  %v9993_v0 = vld [vmem:[#allocation4 + $0x8c] sm:$0xff] }
 0x7fe   : > { %13753 = vmatpush3.msra.mxu1 %v9224_v34  ;;  %13791 = vmatpush3.msra.mxu0 %v9415_v21 }
 0x7ff   : > { %13706 = vmatmul.mubr.msk.f32.gmra.mxu1 %vm8441_vm6, %v19524_v43  ;;  %13754 = vmatprep.subr.mxu1 %v9223_v5 }
 0x800   : > { %13793 = vmatmul.mubr.msk.f32.vlgmr.msra.gmra.mxu0 %vm8441_vm6, %v19445_v42  ;;  %13755 = vmatpush3.msra.mxu1 %v9223_v5  ;;  %v9607_v42 = vld [vmem:[#allocation4 + $0x88] sm:$0xff] }
 0x801   : > { %13758 = vmatprep.mubr.msk.f32.mxu1 %vm8441_vm6, %v19312_v9  ;;  %13756 = vmatprep.subr.mxu1 %v9222_v4  ;;  %v9806_v9 = vld [vmem:[%s20615_s11 + $0x1e8] sm:$0xff] }
 0x802   : > { %13757 = vmatpush3.msra.mxu1 %v9222_v4  ;;  %13795 = vmatprep.mubr.msk.f32.mxu0 %vm8441_vm6, %v19458_v46 }
 0x803   : > { %13759 = vmatmul.mubr.msk.f32.vlgmr.msra.gmra.mxu1 %vm8441_vm6, %v19330_v32  ;;  %13844 = vmatprep.subr.mxu0 %v9808_v62  ;;  %v9614_v32 = vld [vmem:[%s20615_s11 + $0x1b0] sm:$0xff] }
 0x804   : > { %13796 = vmatmul.mubr.msk.f32.gmra.mxu0 %vm8441_vm6, %v19464_v39  ;;  %13761 = vmatprep.mubr.msk.f32.mxu1 %vm8441_vm6, %v19350_v10  ;;  %v9805_v10 = vld [vmem:[%s20615_s11 + $0x1e0] sm:$0xff] }
 0x805   : > { %13798 = vmatprep.mubr.msk.f32.mxu0 %vm8441_vm6, %v19480_v60  ;;  %13845 = vmatpush3.msra.mxu0 %v9808_v62 }
 0x806   : > { %13846 = vmatprep.subr.mxu0 %v9807_v36  ;;  %13810 = vmatprep.subr.mxu1 %v9615_v31 }
 0x807   : > { %13762 = vmatmul.mubr.msk.f32.gmra.mxu1 %vm8441_vm6, %v19368_v20  ;;  %13847 = vmatpush3.msra.mxu0 %v9807_v36 }
 0x808   : > { %13799 = vmatmul.mubr.msk.f32.gmra.mxu0 %vm8441_vm6, %v19490_v41  ;;  %13764 = vmatprep.mubr.msk.f32.mxu1 %vm8441_vm6, %v19378_v37 }
 0x809   : > { %13801 = vmatprep.mubr.msk.f32.mxu0 %vm8441_vm6, %v19504_v3  ;;  %13848 = vmatprep.subr.mxu0 %v9806_v9 }
 0x80a   : > { %13811 = vmatpush3.msra.mxu1 %v9615_v31  ;;  %13849 = vmatpush3.msra.mxu0 %v9806_v9 }
 0x80b   : > { %13765 = vmatmul.mubr.msk.f32.gmra.mxu1 %vm8441_vm6, %v19387_v29  ;;  %13812 = vmatprep.subr.mxu1 %v9614_v32 }
 0x80c   : > { %13802 = vmatmul.mubr.msk.f32.gmra.mxu0 %vm8441_vm6, %v19517_v17  ;;  %13850 = vmatprep.subr.mxu0 %v9805_v10 }
 0x80d   : > { %13767 = vmatprep.mubr.msk.f32.mxu1 %vm8441_vm6, %v19396_v54  ;;  %13804 = vmatprep.mubr.msk.f32.mxu0 %vm8441_vm6, %v19524_v43 }
 0x80e   : > { %13813 = vmatpush3.msra.mxu1 %v9614_v32  ;;  %13851 = vmatpush3.msra.mxu0 %v9805_v10 }
 0x80f   : > { %13768 = vmatmul.mubr.msk.f32.gmra.mxu1 %vm8441_vm6, %v19405_v22  ;;  %13814 = vmatprep.subr.mxu1 %v9613_v19 }
 0x810   : > { %13805 = vmatmul.mubr.msk.f32.gmra.mxu0 %vm8441_vm6, %v19587_v8  ;;  %13852 = vmatprep.subr.mxu0 %v9804_v40 }
 0x811   : > { %13815 = vmatpush3.msra.mxu1 %v9613_v19  ;;  %13853 = vmatpush3.msra.mxu0 %v9804_v40 }
 0x812   : > { %13816 = vmatprep.subr.mxu1 %v9612_v6  ;;  %13854 = vmatprep.subr.mxu0 %v9803_v7 }
 0x813   : > { %13770 = vmatprep.mubr.msk.f32.mxu1 %vm8441_vm6, %v19414_v14  ;;  %13807 = vmatprep.mubr.msk.f32.mxu0 %vm8441_vm6, %v19597_v28 }
 0x814   : > { %13817 = vmatpush3.msra.mxu1 %v9612_v6  ;;  %13855 = vmatpush3.msra.mxu0 %v9803_v7 }
 0x815   : > { %13771 = vmatmul.mubr.msk.f32.gmra.mxu1 %vm8441_vm6, %v9219_v15  ;;  %13808 = vmatmul.mubr.msk.f32.gmra.mxu0 %vm8441_vm6, %v19599_v2 }
 0x816   : > { %13818 = vmatprep.subr.mxu1 %v9611_v11  ;;  %13856 = vmatprep.subr.mxu0 %v9802_v26 }
 0x817   : > { %13819 = vmatpush3.msra.mxu1 %v9611_v11  ;;  %13857 = vmatpush3.msra.mxu0 %v9802_v26 }
 0x818   : > { %13860 = vmatprep.mubr.msk.f32.mxu0 %vm8441_vm6, %v19368_v20  ;;  %13820 = vmatprep.subr.mxu1 %v9610_v44  ;;  %v10001_v20 = vld [vmem:[%s20615_s11 + $0x238] sm:$0xff] }
 0x819   : > { %13858 = vmatprep.subr.mxu0 %v9801_v45  ;;  %13773 = vmatprep.mubr.msk.f32.mxu1 %vm8441_vm6, %v9220_v24 }
 0x81a   : > { %13821 = vmatpush3.msra.mxu1 %v9610_v44  ;;  %13859 = vmatpush3.msra.mxu0 %v9801_v45 }
 0x81b   : > { %13774 = vmatmul.mubr.msk.f32.gmra.mxu1 %vm8441_vm6, %v9221_v18  ;;  %13822 = vmatprep.subr.mxu1 %v9609_v35 }
 0x81c   : > { %13861 = vmatmul.mubr.msk.f32.vlgmr.msra.gmra.mxu0 %vm8441_vm6, %v19378_v37  ;;  %13823 = vmatpush3.msra.mxu1 %v9609_v35  ;;  %v9997_v37 = vld [vmem:[%s20615_s11 + $0x218] sm:$0xff] }
 0x81d   : > { %13826 = vmatprep.mubr.msk.f32.mxu1 %vm8441_vm6, %v19348_v59  ;;  %13863 = vmatprep.mubr.msk.f32.mxu0 %vm8441_vm6, %v19387_v29  ;;  %v10000_v59 = vld [vmem:[%s20615_s11 + $0x230] sm:$0xff] }
 0x81e   : > { %13824 = vmatprep.subr.mxu1 %v9608_v38  ;;  %13912 = vmatprep.subr.mxu0 %v21002_v23  ;;  %v9799_v29 = vld [vmem:[#allocation4 + $0x82] sm:$0xff] }
 0x81f   : > { %13825 = vmatpush3.msra.mxu1 %v9608_v38 }
 0x820   : > { %13827 = vmatmul.mubr.msk.f32.vlgmr.msra.gmra.mxu1 %vm8441_vm6, %v19366_v53  ;;  %13864 = vmatmul.mubr.msk.f32.gmra.mxu0 %vm8441_vm6, %v19396_v54  ;;  %v9999_v53 = vld [vmem:[%s20615_s11 + $0x228] sm:$0xff] }
 0x821   : > { %13829 = vmatprep.mubr.msk.f32.mxu1 %vm8441_vm6, %v19376_v27  ;;  %13866 = vmatprep.mubr.msk.f32.mxu0 %vm8441_vm6, %v19405_v22  ;;  %v9998_v27 = vld [vmem:[%s20615_s11 + $0x220] sm:$0xff]  ;;  %v9995_v54 = vld [vmem:[%s20615_s11 + $0x208] sm:$0xff] }
 0x822   : > { %13878 = vmatprep.subr.mxu1 %v10001_v20  ;;  %v9605_v22 = vld [vmem:[#allocation4 + $0x78] sm:$0xff] }
 0x823   : > { %13879 = vmatpush3.msra.mxu1 %v10001_v20 }
 0x824   : > { %13830 = vmatmul.mubr.msk.f32.gmra.mxu1 %vm8441_vm6, %v19385_v47  ;;  %13867 = vmatmul.mubr.msk.f32.gmra.mxu0 %vm8441_vm6, %v19414_v14  ;;  %v9996_v47 = vld [vmem:[%s20615_s11 + $0x210] sm:$0xff]  ;;  %v9800_v14 = vld [vmem:[#allocation4 + $0x8a] sm:$0xff] }
 0x825   : > { %13832 = vmatprep.mubr.msk.f32.mxu1 %vm8441_vm6, %v19394_v50  ;;  %13869 = vmatprep.mubr.msk.f32.mxu0 %vm8441_vm6, %v9219_v15  ;;  %v9798_v50 = vld [vmem:[#allocation4 + $0x7a] sm:$0xff] }
 0x826   : > { %13880 = vmatprep.subr.mxu1 %v10000_v59 }
 0x827   : > { %13881 = vmatpush3.msra.mxu1 %v10000_v59 }
 0x828   : > { %13833 = vmatmul.mubr.msk.f32.gmra.mxu1 %vm8441_vm6, %v19403_v55  ;;  %13882 = vmatprep.subr.mxu1 %v9999_v53  ;;  %v9606_v55 = vld [vmem:[#allocation4 + $0x80] sm:$0xff] }
 0x829   : > { %13835 = vmatprep.mubr.msk.f32.mxu1 %vm8441_vm6, %v19482_v61  ;;  %13883 = vmatpush3.msra.mxu1 %v9999_v53 }
 0x82a   : > { %13870 = vmatmul.mubr.msk.f32.gmra.mxu0 %vm8441_vm6, %v9220_v24  ;;  %13884 = vmatprep.subr.mxu1 %v9998_v27 }
 0x82b   : > { %13885 = vmatpush3.msra.mxu1 %v9998_v27  ;;  %13872 = vmatprep.mubr.msk.f32.mxu0 %vm8441_vm6, %v9221_v18 }
 0x82c   : > { %13836 = vmatmul.mubr.msk.f32.gmra.mxu1 %vm8441_vm6, %v19484_v58  ;;  %13886 = vmatprep.subr.mxu1 %v9997_v37 }
 0x82d   : > { %13838 = vmatprep.mubr.msk.f32.mxu1 %vm8441_vm6, %v19494_v49  ;;  %13887 = vmatpush3.msra.mxu1 %v9997_v37 }
 0x82e   : > { %13873 = vmatmul.mubr.msk.f32.gmra.mxu0 %vm8441_vm6, %v9798_v50  ;;  %13888 = vmatprep.subr.mxu1 %v9996_v47 }
 0x82f   : > { %13889 = vmatpush3.msra.mxu1 %v9996_v47  ;;  %13875 = vmatprep.mubr.msk.f32.mxu0 %vm8441_vm6, %v9799_v29 }
 0x830   : > { %13839 = vmatmul.mubr.msk.f32.gmra.mxu1 %vm8441_vm6, %v9605_v22  ;;  %13890 = vmatprep.subr.mxu1 %v9995_v54 }
 0x831   : > { %13841 = vmatprep.mubr.msk.f32.mxu1 %vm8441_vm6, %v9606_v55  ;;  %13891 = vmatpush3.msra.mxu1 %v9995_v54 }
 0x832   : > { %13876 = vmatmul.mubr.msk.f32.gmra.mxu0 %vm8441_vm6, %v9800_v14  ;;  %13892 = vmatprep.subr.mxu1 %v9994_v48 }
 0x833   : > { %13893 = vmatpush3.msra.mxu1 %v9994_v48  ;;  %13936 = vmatprep.mubr.msk.f32.mxu0 %vm14484_vm3, %v21002_v23 }
 0x834   : > { %13842 = vmatmul.mubr.msk.f32.gmra.mxu1 %vm8441_vm6, %v9607_v42  ;;  %13951 = vmatprep.subr.mxu1 %v21002_v23 }
 0x835   : > { %13894 = vmatprep.mubr.msk.f32.mxu1 %vm8441_vm6, %v19464_v39 }
 0x838   : > { %13895 = vmatmul.mubr.msk.f32.vlgmr.msra.gmra.mxu1 %vm8441_vm6, %v19480_v60 }
 0x839   : > { %13897 = vmatprep.mubr.msk.f32.mxu1 %vm8441_vm6, %v19490_v41 }
 0x83c   : > { %13898 = vmatmul.mubr.msk.f32.gmra.mxu1 %vm8441_vm6, %v19504_v3 }
 0x83d   : > { %13900 = vmatprep.mubr.msk.f32.mxu1 %vm8441_vm6, %v19517_v17 }
 0x840   : > { %13901 = vmatmul.mubr.msk.f32.gmra.mxu1 %vm8441_vm6, %v19524_v43 }
 0x841   : > { %13903 = vmatprep.mubr.msk.f32.mxu1 %vm8441_vm6, %v19587_v8 }
 0x844   : > { %13904 = vmatmul.mubr.msk.f32.gmra.mxu1 %vm8441_vm6, %v19597_v28 }
 0x845   : > { %13906 = vmatprep.mubr.msk.f32.mxu1 %vm8441_vm6, %v19599_v2 }
 0x848   : > { %13907 = vmatmul.mubr.msk.f32.gmra.mxu1 %vm8441_vm6, %v9991_v51 }
 0x849   : > { %13909 = vmatprep.mubr.msk.f32.mxu1 %vm8441_vm6, %v9992_v12 }
 0x84c   : > { %13910 = vmatmul.mubr.msk.f32.gmra.mxu1 %vm8441_vm6, %v9993_v0 }
 0x84d   : > { %13983 = vmatprep.mubr.msk.f32.mxu1 %vm14484_vm3, %v21002_v23 }
 0x879   : > { %v13658_v25 = vpop.f32.mrf.mxu0 }
 0x87b   : > { %v8765_v39 = vpop.f32.mrf.mxu0 }
 0x87e   : > { %v13624_v46 = vpop.f32.mrf.mxu1 }
 0x87f   : > { %v8771_v16 = vadd.f32 %v13658_v25, %v13624_v46 }
 0x880   : > { %v8604_v63 = vpop.f32.mrf.mxu1 }
 0x881   : > { %v8766_v13 = vadd.f32 %v8765_v39, %v8604_v63  ;;  %v13661_v56 = vpop.f32.mrf.mxu0 }
 0x883   : > { %v8775_v60 = vpop.f32.mrf.mxu0 }
 0x886   : > { %v13627_v33 = vpop.f32.mrf.mxu1 }
 0x887   : > { %v8781_v52 = vadd.f32 %v13661_v56, %v13627_v33  ;;  %v10359_v56 = vld [vmem:[%s20618_s14 + $0xf8] sm:$0xff] }
 0x888   : > { %v8614_v61 = vpop.f32.mrf.mxu1  ;;  %13952 = vmatpush3.msra.mxu1 %v10359_v56 }
 0x889   : > { %v8776_v58 = vadd.f32 %v8775_v60, %v8614_v61  ;;  %v13664_v1 = vpop.f32.mrf.mxu0  ;;  %13953 = vmatprep.subr.mxu1 %v21002_v23 }
 0x88b   : > { %v8785_v30 = vpop.f32.mrf.mxu0 }
 0x88e   : > { %v13630_v41 = vpop.f32.mrf.mxu1 }
 0x88f   : > { %v8791_v49 = vadd.f32 %v13664_v1, %v13630_v41  ;;  %v10356_v1 = vld [vmem:[%s20618_s14 + $0xe0] sm:$0xff] }
 0x890   : > { %v8624_v57 = vpop.f32.mrf.mxu1 }
 0x891   : > { %v8786_v3 = vadd.f32 %v8785_v30, %v8624_v57  ;;  %v13667_v34 = vpop.f32.mrf.mxu0  ;;  %v10355_v30 = vld [vmem:[%s20618_s14 + $0xd8] sm:$0xff] }
 0x893   : > { %v8795_v5 = vpop.f32.mrf.mxu0 }
 0x896   : > { %v13633_v21 = vpop.f32.mrf.mxu1 }
 0x897   : > { %v8801_v17 = vadd.f32 %v13667_v34, %v13633_v21  ;;  %v10354_v34 = vld [vmem:[%s20618_s14 + $0xd0] sm:$0xff] }
 0x898   : > { %v8634_v43 = vpop.f32.mrf.mxu1 }
 0x899   : > { %v8796_v4 = vadd.f32 %v8795_v5, %v8634_v43  ;;  %v13670_v62 = vpop.f32.mrf.mxu0  ;;  %v10353_v43 = vld [vmem:[%s20618_s14 + $0xc8] sm:$0xff] }
 0x89b   : > { %v8805_v9 = vpop.f32.mrf.mxu0 }
 0x89e   : > { %v13636_v36 = vpop.f32.mrf.mxu1 }
 0x89f   : > { %v8811_v31 = vadd.f32 %v13670_v62, %v13636_v36 }
 0x8a0   : > { %v8644_v32 = vpop.f32.mrf.mxu1 }
 0x8a1   : > { %v8806_v10 = vadd.f32 %v8805_v9, %v8644_v32  ;;  %v19718_v19 = vpop.f32.mrf.mxu0 }
 0x8a3   : > { %v19720_v40 = vpop.f32.mrf.mxu0 }
 0x8a5   : > { %v19722_v8 = vpop.f32.mrf.mxu1  ;;  %v13726_v6 = vpop.f32.mrf.mxu0 }
 0x8a7   : > { %v19724_v7 = vpop.f32.mrf.mxu1  ;;  %v9139_v28 = vpop.f32.mrf.mxu0 }
 0x8a9   : > { %v13692_v2 = vpop.f32.mrf.mxu1  ;;  %v13729_v11 = vpop.f32.mrf.mxu0 }
 0x8aa   : > { %v9006_v26 = vadd.f32 %v13692_v2, %v8771_v16 }
 0x8ab   : > { %v8946_v15 = vpop.f32.mrf.mxu1  ;;  %v9149_v44 = vpop.f32.mrf.mxu0 }
 0x8ac   : > { %v9005_v45 = vadd.f32 %v8946_v15, %v8766_v13  ;;  %v9199_v24 = vadd.f32 %v13726_v6, %v9006_v26  ;;  %v10351_v6 = vld [vmem:[%s20618_s14 + $0xb8] sm:$0xff]  ;;  %v10350_v26 = vld [vmem:[%s20618_s14 + $0xb0] sm:$0xff] }
 0x8ad   : > { %v13695_v35 = vpop.f32.mrf.mxu1  ;;  %v13732_v18 = vpop.f32.mrf.mxu0 }
 0x8ae   : > { %v9008_v38 = vadd.f32 %v13695_v35, %v8781_v52  ;;  %v9198_v20 = vadd.f32 %v9139_v28, %v9005_v45  ;;  %v10358_v52 = vld [vmem:[%s20618_s14 + $0xf0] sm:$0xff] }
 0x8af   : > { %v8956_v59 = vpop.f32.mrf.mxu1  ;;  %v9159_v53 = vpop.f32.mrf.mxu0  ;;  %13954 = vmatpush3.msra.mxu1 %v10358_v52 }
 0x8b0   : > { %v9007_v27 = vadd.f32 %v8956_v59, %v8776_v58  ;;  %v9201_v37 = vadd.f32 %v13729_v11, %v9008_v38  ;;  %v10357_v58 = vld [vmem:[%s20618_s14 + $0xe8] sm:$0xff]  ;;  %13955 = vmatprep.subr.mxu1 %v21002_v23 }
 0x8b1   : > { %v13698_v47 = vpop.f32.mrf.mxu1  ;;  %v19726_v29 = vpop.f32.mrf.mxu0  ;;  %13956 = vmatpush3.msra.mxu1 %v10357_v58 }
 0x8b2   : > { %v9010_v50 = vadd.f32 %v13698_v47, %v8791_v49  ;;  %v9200_v54 = vadd.f32 %v9149_v44, %v9007_v27  ;;  %13957 = vmatprep.subr.mxu1 %v21002_v23 }
 0x8b3   : > { %v8966_v55 = vpop.f32.mrf.mxu1  ;;  %v19728_v22 = vpop.f32.mrf.mxu0  ;;  %13958 = vmatpush3.msra.mxu1 %v10356_v1 }
 0x8b4   : > { %v9009_v14 = vadd.f32 %v8966_v55, %v8786_v3  ;;  %v9203_v48 = vadd.f32 %v13732_v18, %v9010_v50  ;;  %13959 = vmatprep.subr.mxu1 %v21002_v23 }
 0x8b5   : > { %v13701_v42 = vpop.f32.mrf.mxu1  ;;  %v19730_v51 = vpop.f32.mrf.mxu0  ;;  %13960 = vmatpush3.msra.mxu1 %v10355_v30 }
 0x8b6   : > { %v19732_v12 = vadd.f32 %v13701_v42, %v8801_v17  ;;  %v9202_v0 = vadd.f32 %v9159_v53, %v9009_v14  ;;  %13961 = vmatprep.subr.mxu1 %v21002_v23 }
 0x8b7   : > { %v8976_v25 = vpop.f32.mrf.mxu1  ;;  %v19734_v46 = vpop.f32.mrf.mxu0  ;;  %13962 = vmatpush3.msra.mxu1 %v10354_v34 }
 0x8b8   : > { %v19736_v16 = vadd.f32 %v8976_v25, %v8796_v4  ;;  %13963 = vmatprep.subr.mxu1 %v21002_v23 }
 0x8b9   : > { %v13704_v39 = vpop.f32.mrf.mxu1  ;;  %v19738_v63 = vpop.f32.mrf.mxu0  ;;  %13964 = vmatpush3.msra.mxu1 %v10353_v43 }
 0x8ba   : > { %v19740_v13 = vadd.f32 %v13704_v39, %v8811_v31  ;;  %v10352_v31 = vld [vmem:[%s20618_s14 + $0xc0] sm:$0xff]  ;;  %13965 = vmatprep.subr.mxu1 %v21002_v23 }
 0x8bb   : > { %v8986_v33 = vpop.f32.mrf.mxu1  ;;  %v19750_v61 = vpop.f32.mrf.mxu0  ;;  %13966 = vmatpush3.msra.mxu1 %v10352_v31 }
 0x8bc   : > { %v19748_v60 = vadd.f32 %v8986_v33, %v8806_v10  ;;  %13967 = vmatprep.subr.mxu1 %v21002_v23 }
 0x8bd   : > { %13968 = vmatpush3.msra.mxu1 %v10351_v6 }
 0x8be   : > { %13969 = vmatprep.subr.mxu1 %v21002_v23 }
 0x8bf   : > { %v19760_v41 = vpop.f32.mrf.mxu1  ;;  %13970 = vmatpush3.msra.mxu1 %v10350_v26 }
 0x8c0   : > { %v19762_v49 = vpop.f32.mrf.mxu0  ;;  %13971 = vmatprep.subr.mxu1 %v21002_v23 }
 0x8c1   : > { %v19768_v57 = vpop.f32.mrf.mxu1 }
 0x8c2   : > { %v19770_v3 = vpop.f32.mrf.mxu0 }
 0x8c3   : > { %21003 = vst [vmem:[#allocation99_spill] sm:$0xff] %v19770_v3  ;;  %v13760_v21 = vpop.f32.mrf.mxu1 }
 0x8c4   : > { %v19776_v17 = vadd.f32 %v13760_v21, %v9199_v24  ;;  %v19778_v5 = vpop.f32.mrf.mxu0 }
 0x8c5   : > { %v9332_v4 = vpop.f32.mrf.mxu1 }
 0x8c6   : > { %v19784_v62 = vadd.f32 %v9332_v4, %v9198_v20  ;;  %v19786_v36 = vpop.f32.mrf.mxu0 }
 0x8c7   : > { %v13763_v9 = vpop.f32.mrf.mxu1 }
 0x8c8   : > { %v19792_v32 = vadd.f32 %v13763_v9, %v9201_v37  ;;  %v19794_v10 = vpop.f32.mrf.mxu0 }
 0x8c9   : > { %v9342_v28 = vpop.f32.mrf.mxu1 }
 0x8ca   : > { %v19800_v2 = vadd.f32 %v9342_v28, %v9200_v54  ;;  %v19802_v11 = vpop.f32.mrf.mxu0  ;;  %v8821_v28 = vadd.f32 %v19718_v19, %v19722_v8 }
 0x8cb   : > { %v13766_v15 = vpop.f32.mrf.mxu1 }
 0x8cc   : > { %v19808_v44 = vadd.f32 %v13766_v15, %v9203_v48  ;;  %v19810_v45 = vpop.f32.mrf.mxu0 }
 0x8cd   : > { %v9352_v24 = vpop.f32.mrf.mxu1 }
 0x8ce   : > { %v19813_v35 = vadd.f32 %v9352_v24, %v9202_v0  ;;  %v19815_v18 = vpop.f32.mrf.mxu0  ;;  %v8816_v24 = vadd.f32 %v19720_v40, %v19724_v7  ;;  %v9206_v40 = vadd.f32 %v19734_v46, %v19748_v60 }
 0x8cf   : > { %v13769_v38 = vpop.f32.mrf.mxu1 }
 0x8d0   : > { %v13806_v59 = vpop.f32.mrf.mxu0 }
 0x8d1   : > { %v9362_v20 = vpop.f32.mrf.mxu1 }
 0x8d2   : > { %v9565_v27 = vpop.f32.mrf.mxu0 }
 0x8d5   : > { %v13772_v53 = vpop.f32.mrf.mxu1  ;;  %v13809_v47 = vpop.f32.mrf.mxu0 }
 0x8d7   : > { %v9372_v37 = vpop.f32.mrf.mxu1  ;;  %v9575_v55 = vpop.f32.mrf.mxu0 }
 0x8db   : > { %v13775_v50 = vpop.f32.mrf.mxu1 }
 0x8dc   : > { %v19820_v48 = vpop.f32.mrf.mxu0 }
 0x8dd   : > { %v9382_v54 = vpop.f32.mrf.mxu1  ;;  %21004 = vst [vmem:[#allocation17_spill] sm:$0xff] %v19820_v48 }
 0x8de   : > { %v19826_v25 = vpop.f32.mrf.mxu0 }
 0x8df   : > { %21006 = vst [vmem:[#allocation59_spill] sm:$0xff] %v19826_v25  ;;  %v9016_v25 = vadd.f32 %v19760_v41, %v8821_v28 }
 0x8e0   : > { %v19818_v14 = vpop.f32.mrf.mxu1  ;;  %v19832_v33 = vpop.f32.mrf.mxu0 }
 0x8e1   : > { %21007 = vst [vmem:[#allocation31_spill] sm:$0xff] %v19832_v33  ;;  %v9209_v19 = vadd.f32 %v19738_v63, %v9016_v25 }
 0x8e2   : > { %v19822_v42 = vpop.f32.mrf.mxu1  ;;  %v19836_v1 = vpop.f32.mrf.mxu0 }
 0x8e3   : > { %21005 = vst [vmem:[#allocation120_spill] sm:$0xff] %v19822_v42  ;;  %21008 = vst [vmem:[#allocation19_spill] sm:$0xff] %v19836_v1  ;;  %v9015_v1 = vadd.f32 %v19768_v57, %v8816_v24  ;;  %v9402_v7 = vadd.f32 %v13775_v50, %v9209_v19  ;;  %v9205_v57 = vadd.f32 %v19726_v29, %v19732_v12 }
 0x8e4   : > { %v19824_v0 = vpop.f32.mrf.mxu1  ;;  %v19838_v21 = vpop.f32.mrf.mxu0  ;;  %v9399_v24 = vadd.f32 %v9372_v37, %v9206_v40 }
 0x8e5   : > { %v9208_v41 = vadd.f32 %v19750_v61, %v9015_v1  ;;  %v9595_v25 = vadd.f32 %v13809_v47, %v9402_v7 }
 0x8e6   : > { %v19828_v39 = vpop.f32.mrf.mxu1  ;;  %v19840_v31 = vpop.f32.mrf.mxu0  ;;  %v9592_v61 = vadd.f32 %v9565_v27, %v9399_v24 }
 0x8e8   : > { %v19830_v56 = vpop.f32.mrf.mxu1 }
 0x8ea   : > { %v19834_v52 = vpop.f32.mrf.mxu1  ;;  %v13871_v26 = vpop.f32.mrf.mxu0 }
 0x8ec   : > { %v13837_v58 = vpop.f32.mrf.mxu1  ;;  %v9941_v42 = vpop.f32.mrf.mxu0 }
 0x8ee   : > { %v9748_v30 = vpop.f32.mrf.mxu1  ;;  %v13874_v28 = vpop.f32.mrf.mxu0 }
 0x8f0   : > { %v13840_v34 = vpop.f32.mrf.mxu1  ;;  %v9951_v46 = vpop.f32.mrf.mxu0 }
 0x8f2   : > { %v9758_v43 = vpop.f32.mrf.mxu1 }
 0x8f3   : > { %v9785_v12 = vadd.f32 %v9758_v43, %v9592_v61  ;;  %v9588_v43 = vadd.f32 %v19802_v11, %v19813_v35  ;;  %v21020_v61 = vld [vmem:[#allocation17_spill] sm:$0xff] }
 0x8f4   : > { %v13843_v4 = vpop.f32.mrf.mxu1 }
 0x8f5   : > { %v9788_v1 = vadd.f32 %v13843_v4, %v9595_v25  ;;  %v9978_v4 = vadd.f32 %v9951_v46, %v9785_v12 }
 0x8f6   : > { %v9768_v9 = vpop.f32.mrf.mxu1 }
 0x8f8   : > { %v19842_v6 = vpop.f32.mrf.mxu1 }
 0x8f9   : > { %21009 = vst [vmem:[#allocation77_spill] sm:$0xff] %v19842_v6  ;;  %v9207_v6 = vadd.f32 %v19730_v51, %v19740_v13  ;;  %v9204_v51 = vadd.f32 %v19728_v22, %v19736_v16  ;;  %v9398_v13 = vadd.f32 %v13769_v38, %v9205_v57 }
 0x8fa   : > { %v19846_v15 = vpop.f32.mrf.mxu1 }
 0x8fb   : > { %21010 = vst [vmem:[#allocation98_spill] sm:$0xff] %v19846_v15  ;;  %v9400_v15 = vadd.f32 %v13772_v53, %v9207_v6  ;;  %v9397_v6 = vadd.f32 %v9362_v20, %v9204_v51  ;;  %v9591_v29 = vadd.f32 %v19810_v45, %v9398_v13  ;;  %v9589_v20 = vadd.f32 %v19794_v10, %v19808_v44 }
 0x8fc   : > { %v19851_v48 = vpop.f32.mrf.mxu1  ;;  %v9587_v10 = vadd.f32 %v19778_v5, %v19792_v32  ;;  %v9781_v44 = vadd.f32 %v19834_v52, %v9588_v43 }
 0x8fd   : > { %21011 = vst [vmem:[#allocation25_spill] sm:$0xff] %v19851_v48  ;;  %v9593_v53 = vadd.f32 %v13806_v59, %v9400_v15  ;;  %v9784_v16 = vadd.f32 %v13837_v58, %v9591_v29  ;;  %v9782_v45 = vadd.f32 %v19830_v56, %v9589_v20 }
 0x8fe   : > { %v19854_v33 = vpop.f32.mrf.mxu1 }
 0x8ff   : > { %21012 = vst [vmem:[#allocation116_spill] sm:$0xff] %v19854_v33  ;;  %v9401_v33 = vadd.f32 %v9382_v54, %v9208_v41  ;;  %v9786_v50 = vadd.f32 %v13840_v34, %v9593_v53  ;;  %v9590_v54 = vadd.f32 %v19815_v18, %v9397_v6  ;;  %v9586_v41 = vadd.f32 %v19786_v36, %v19800_v2 }
 0x900   : > { %v19859_v8 = vpop.f32.mrf.mxu1  ;;  %v9975_v5 = vadd.f32 %v19838_v21, %v9782_v45  ;;  %v21014_v21 = vld [vmem:[#allocation99_spill] sm:$0xff] }
 0x901   : > { %v9594_v19 = vadd.f32 %v9575_v55, %v9401_v33  ;;  %v9979_v38 = vadd.f32 %v13874_v28, %v9786_v50  ;;  %v9783_v47 = vadd.f32 %v9748_v30, %v9590_v54  ;;  %v9585_v28 = vadd.f32 %v19762_v49, %v19776_v17  ;;  %v21015_v49 = vld [vmem:[#allocation31_spill] sm:$0xff]  ;;  %v21022_v54 = vld [vmem:[#allocation77_spill] sm:$0xff] }
 0x902   : > { %v19864_v48 = vpop.f32.mrf.mxu1  ;;  %v9779_v57 = vadd.f32 %v19828_v39, %v9586_v41  ;;  %v10168_v24 = vadd.f32 %v19859_v8, %v9975_v5  ;;  %v10332_v41 = vld [vmem:[%s20618_s14 + $0x38] sm:$0xff]  ;;  %v10331_v5 = vld [vmem:[%s20618_s14 + $0x30] sm:$0xff] }
 0x903   : > { %21013 = vst [vmem:[#allocation53_spill] sm:$0xff] %v19864_v48  ;;  %v13877_v48 = vpop.f32.mrf.mxu0  ;;  %v9787_v37 = vadd.f32 %v9768_v9, %v9594_v19  ;;  %v9977_v9 = vadd.f32 %v13871_v26, %v9784_v16  ;;  %v9976_v30 = vadd.f32 %v9941_v42, %v9783_v47  ;;  %v9780_v26 = vadd.f32 %v19824_v0, %v9587_v10  ;;  %v21023_v16 = vld [vmem:[#allocation59_spill] sm:$0xff]  ;;  %v21024_v47 = vld [vmem:[#allocation98_spill] sm:$0xff] }
 0x904   : > { %v13905_v63 = vpop.f32.mrf.mxu1  ;;  %v9981_v59 = vadd.f32 %v13877_v48, %v9788_v1  ;;  %v9974_v0 = vadd.f32 %v19840_v31, %v9781_v44  ;;  %v9778_v2 = vadd.f32 %v19818_v14, %v9585_v28  ;;  %v21017_v31 = vld [vmem:[#allocation120_spill] sm:$0xff]  ;;  %v21018_v6 = vld [vmem:[#allocation25_spill] sm:$0xff]  ;;  %v21019_v14 = vld [vmem:[#allocation19_spill] sm:$0xff]  ;;  %v10180_v50 = vmax.f32 %v10168_v24, 0.0 }
 0x905   : > { %v9961_v34 = vpop.f32.mrf.mxu0  ;;  %v10170_v56 = vadd.f32 %v13905_v63, %v9977_v9  ;;  %v9584_v63 = vadd.f32 %v21014_v21, %v19784_v62  ;;  %v9973_v17 = vadd.f32 %v21015_v49, %v9780_v26  ;;  %v10206_v9 = vld [vmem:[%s20617_s13] sm:$0xff]  ;;  %v10338_v10 = vld [vmem:[%s20618_s14 + $0x68] sm:$0xff]  ;;  %v10328_v28 = vld [vmem:[%s20618_s14 + $0x18] sm:$0xff] }
 0x906   : > { %v10134_v60 = vpop.f32.mrf.mxu1  ;;  %v9980_v55 = vadd.f32 %v9961_v34, %v9787_v37  ;;  %v9971_v1 = vadd.f32 %v21020_v61, %v9778_v2  ;;  %v21021_v19 = vld [vmem:[#allocation116_spill] sm:$0xff]  ;;  %v10337_v44 = vld [vmem:[%s20618_s14 + $0x60] sm:$0xff]  ;;  %v10636_v49 = vld [vmem:[%s20618_s14 + $0x1f8] sm:$0xff] }
 0x907   : > { %v10169_v32 = vadd.f32 %v10134_v60, %v9976_v30  ;;  %v10182_v51 = vmax.f32 %v10170_v56, 0.0  ;;  %v9777_v25 = vadd.f32 %v21017_v31, %v9584_v63  ;;  %v10166_v46 = vadd.f32 %v21018_v6, %v9973_v17  ;;  %v10208_v30 = vld [vmem:[%s20617_s13 + $0x10] sm:$0xff]  ;;  %v10210_v26 = vld [vmem:[%s20617_s13 + $0x20] sm:$0x3f]  ;;  %v10345_v21 = vld [vmem:[%s20618_s14 + $0x88] sm:$0xff] }
 0x908   : > { %v13908_v3 = vpop.f32.mrf.mxu1  ;;  %v9972_v60 = vadd.f32 %v21019_v14, %v9779_v57  ;;  %v10335_v56 = vld [vmem:[%s20618_s14 + $0x50] sm:$0xff]  ;;  %v10348_v57 = vld [vmem:[%s20618_s14 + $0xa0] sm:$0xff]  ;;  %v10632_v6 = vld [vmem:[%s20618_s14 + $0x1d8] sm:$0xff] }
 0x909   : > { %v10172_v33 = vadd.f32 %v13908_v3, %v9979_v38  ;;  %v19883_v3 = vld [vmem:[%s20616_s12] ss:$0 sm:$0xff]  ;;  %v10181_v53 = vmax.f32 %v10169_v32, 0.0  ;;  %v9970_v38 = vadd.f32 %v21023_v16, %v9777_v25  ;;  %v10330_v32 = vld [vmem:[%s20618_s14 + $0x28] sm:$0xff]  ;;  %v10327_v24 = vld [vmem:[%s20618_s14 + $0x10] sm:$0xff] }
 0x90a   : > { %v10144_v22 = vpop.f32.mrf.mxu1  ;;  %v21016_v39 = vld [vmem:[#allocation53_spill] sm:$0xff]  ;;  %v10201_v62 = vadd.f32 %v19883_v3, %v10182_v51  ;;  %v10165_v29 = vadd.f32 %v21021_v19, %v9972_v60  ;;  %v10199_v20 = vadd.f32 %v19883_v3, %v10180_v50  ;;  %v10326_v51 = vld [vmem:[%s20618_s14 + $0x8] sm:$0xff]  ;;  %v10325_v2 = vld [vmem:[%s20618_s14] sm:$0xff] }
 0x90b   : > { %v10171_v58 = vadd.f32 %v10144_v22, %v9978_v4  ;;  %v10184_v7 = vmax.f32 %v10172_v33, 0.0  ;;  %v10167_v13 = vadd.f32 %v21016_v39, %v9974_v0  ;;  %v10200_v37 = vadd.f32 %v19883_v3, %v10181_v53  ;;  %v10347_v0 = vld [vmem:[%s20618_s14 + $0x98] sm:$0xff]  ;;  %v10344_v63 = vld [vmem:[%s20618_s14 + $0x80] sm:$0xff]  ;;  %v10635_v39 = vld [vmem:[%s20618_s14 + $0x1f0] sm:$0xff] }
 0x90c   : > { %v13911_v27 = vpop.f32.mrf.mxu1  ;;  %v10164_v22 = vadd.f32 %v21022_v54, %v9971_v1  ;;  %v10163_v34 = vadd.f32 %v21024_v47, %v9970_v38  ;;  %v10634_v53 = vld [vmem:[%s20618_s14 + $0x1e8] sm:$0xff]  ;;  %v10633_v31 = vld [vmem:[%s20618_s14 + $0x1e0] sm:$0xff]  ;;  %v10631_v14 = vld [vmem:[%s20618_s14 + $0x1d0] sm:$0xff] }
 0x90d   : > { %v10174_v15 = vadd.f32 %v13911_v27, %v9981_v59  ;;  %v10183_v52 = vmax.f32 %v10171_v58, 0.0  ;;  %v10203_v36 = vadd.f32 %v19883_v3, %v10184_v7  ;;  %v10179_v12 = vmax.f32 %v10167_v13, 0.0  ;;  %v10340_v58 = vld [vmem:[%s20618_s14 + $0x78] sm:$0xff]  ;;  %v10535_v19 = vld [vmem:[%s20618_s14 + $0x170] sm:$0xff]  ;;  %v10533_v16 = vld [vmem:[%s20618_s14 + $0x160] sm:$0xff] }
 0x90e   : > { %v10154_v18 = vpop.f32.mrf.mxu1  ;;  %v10178_v59 = vmax.f32 %v10166_v46, 0.0  ;;  %v10177_v27 = vmax.f32 %v10165_v29, 0.0  ;;  %v10209_v7 = vld [vmem:[%s20617_s13 + $0x18] sm:$0xff]  ;;  %v10629_v29 = vld [vmem:[%s20618_s14 + $0x1c0] sm:$0xff]  ;;  %v10627_v38 = vld [vmem:[%s20618_s14 + $0x1b0] sm:$0xff] }
 0x90f   : > { %v10186_v40 = vmax.f32 %v10174_v15, 0.0  ;;  %v10173_v48 = vadd.f32 %v10154_v18, %v9980_v55  ;;  %v10202_v8 = vadd.f32 %v19883_v3, %v10183_v52  ;;  %v10198_v4 = vadd.f32 %v19883_v3, %v10179_v12  ;;  %v10329_v52 = vld [vmem:[%s20618_s14 + $0x20] sm:$0xff]  ;;  %v10536_v50 = vld [vmem:[%s20618_s14 + $0x178] sm:$0xff]  ;;  %v10626_v47 = vld [vmem:[%s20618_s14 + $0x1a8] sm:$0xff] }
 0x910   : > { %v10176_v55 = vmax.f32 %v10164_v22, 0.0  ;;  %v10197_v33 = vadd.f32 %v19883_v3, %v10178_v59  ;;  %v10175_v15 = vmax.f32 %v10163_v34, 0.0  ;;  %v10196_v45 = vadd.f32 %v19883_v3, %v10177_v27  ;;  %v10628_v54 = vld [vmem:[%s20618_s14 + $0x1b8] sm:$0xff]  ;;  %v10531_v34 = vld [vmem:[%s20618_s14 + $0x150] sm:$0xff]  ;;  %v10625_v27 = vld [vmem:[%s20618_s14 + $0x1a0] sm:$0xff] }
 0x911   : > { %v10205_v11 = vadd.f32 %v19883_v3, %v10186_v40  ;;  %v10185_v35 = vmax.f32 %v10173_v48, 0.0  ;;  %v10339_v40 = vld [vmem:[%s20618_s14 + $0x70] sm:$0xff]  ;;  %v10207_v48 = vld [vmem:[%s20617_s13 + $0x8] sm:$0xff] }
 0x912   : > { %v10195_v43 = vadd.f32 %v19883_v3, %v10176_v55  ;;  %v10194_v18 = vadd.f32 %v19883_v3, %v10175_v15  ;;  %v10624_v55 = vld [vmem:[%s20618_s14 + $0x198] sm:$0xff]  ;;  %v10623_v15 = vld [vmem:[%s20618_s14 + $0x190] sm:$0xff] }
 0x913   : > { %v10204_v42 = vadd.f32 %v19883_v3, %v10185_v35  ;;  %13913 = vmatpush3.msra.mxu0 %v10205_v11  ;;  %v10336_v3 = vld [vmem:[%s20618_s14 + $0x58] sm:$0xff]  ;;  %v10334_v11 = vld [vmem:[%s20618_s14 + $0x48] sm:$0xff]  ;;  %v10333_v35 = vld [vmem:[%s20618_s14 + $0x40] sm:$0xff] }
 0x914   : > { %13914 = vmatprep.subr.mxu0 %v21002_v23 }
 0x915   : > { %13915 = vmatpush3.msra.mxu0 %v10204_v42  ;;  %v10349_v42 = vld [vmem:[%s20618_s14 + $0xa8] sm:$0xff] }
 0x916   : > { %13916 = vmatprep.subr.mxu0 %v21002_v23  ;;  %13972 = vmatpush3.msra.mxu1 %v10349_v42  ;;  %v10832_v42 = vld [vmem:[%s20618_s14 + $0x2d8] sm:$0xff] }
 0x917   : > { %13917 = vmatpush3.msra.mxu0 %v10203_v36  ;;  %13973 = vmatprep.subr.mxu1 %v21002_v23  ;;  %v10346_v36 = vld [vmem:[%s20618_s14 + $0x90] sm:$0xff] }
 0x918   : > { %13918 = vmatprep.subr.mxu0 %v21002_v23  ;;  %13974 = vmatpush3.msra.mxu1 %v10348_v57  ;;  %v10831_v57 = vld [vmem:[%s20618_s14 + $0x2d0] sm:$0xff] }
 0x919   : > { %13919 = vmatpush3.msra.mxu0 %v10202_v8  ;;  %13975 = vmatprep.subr.mxu1 %v21002_v23 }
 0x91a   : > { %13920 = vmatprep.subr.mxu0 %v21002_v23  ;;  %13976 = vmatpush3.msra.mxu1 %v10347_v0  ;;  %v10830_v0 = vld [vmem:[%s20618_s14 + $0x2c8] sm:$0xff] }
 0x91b   : > { %13921 = vmatpush3.msra.mxu0 %v10201_v62  ;;  %13977 = vmatprep.subr.mxu1 %v21002_v23  ;;  %v10630_v62 = vld [vmem:[%s20618_s14 + $0x1c8] sm:$0xff] }
 0x91c   : > { %13922 = vmatprep.subr.mxu0 %v21002_v23  ;;  %13978 = vmatpush3.msra.mxu1 %v10346_v36  ;;  %v10829_v36 = vld [vmem:[%s20618_s14 + $0x2c0] sm:$0xff] }
 0x91d   : > { %13923 = vmatpush3.msra.mxu0 %v10200_v37  ;;  %13979 = vmatprep.subr.mxu1 %v21002_v23  ;;  %v10534_v37 = vld [vmem:[%s20618_s14 + $0x168] sm:$0xff] }
 0x91e   : > { %13924 = vmatprep.subr.mxu0 %v21002_v23  ;;  %13980 = vmatpush3.msra.mxu1 %v10345_v21  ;;  %v10828_v21 = vld [vmem:[%s20618_s14 + $0x2b8] sm:$0xff] }
 0x91f   : > { %13925 = vmatpush3.msra.mxu0 %v10199_v20  ;;  %13981 = vmatprep.subr.mxu1 %v21002_v23  ;;  %v10532_v20 = vld [vmem:[%s20618_s14 + $0x158] sm:$0xff] }
 0x920   : > { %13926 = vmatprep.subr.mxu0 %v21002_v23  ;;  %13982 = vmatpush3.msra.mxu1 %v10344_v63  ;;  %v10730_v63 = vld [vmem:[%s20618_s14 + $0x248] sm:$0xff] }
 0x921   : > { %13927 = vmatpush3.msra.mxu0 %v10198_v4  ;;  %14033 = vmatprep.subr.mxu1 %v21002_v23  ;;  %v10530_v4 = vld [vmem:[%s20618_s14 + $0x148] sm:$0xff] }
 0x922   : > { %13928 = vmatprep.subr.mxu0 %v21002_v23 }
 0x923   : > { %13929 = vmatpush3.msra.mxu0 %v10197_v33  ;;  %v10529_v33 = vld [vmem:[%s20618_s14 + $0x140] sm:$0xff] }
 0x924   : > { %13930 = vmatprep.subr.mxu0 %v21002_v23 }
 0x925   : > { %13931 = vmatpush3.msra.mxu0 %v10196_v45  ;;  %v10528_v45 = vld [vmem:[%s20618_s14 + $0x138] sm:$0xff] }
 0x926   : > { %13932 = vmatprep.subr.mxu0 %v21002_v23 }
 0x927   : > { %13933 = vmatpush3.msra.mxu0 %v10195_v43 }
 0x928   : > { %13934 = vmatprep.subr.mxu0 %v21002_v23 }
 0x929   : > { %13935 = vmatpush3.msra.mxu0 %v10194_v18  ;;  %v10527_v18 = vld [vmem:[%s20618_s14 + $0x130] sm:$0xff] }
 0x92a   : > { %13937 = vmatmul.mubr.msk.f32.vlgmr.msra.gmra.mxu0 %vm10211_vm8, %v10206_v9  ;;  %13992 = vmatprep.subr.mxu0 %v21002_v23  ;;  %v10622_v9 = vld [vmem:[%s20618_s14 + $0x188] sm:$0xff] }
 0x92b   : > { %13939 = vmatprep.mubr.msk.f32.mxu0 %vm14484_vm3, %v21002_v23  ;;  %13993 = vmatpush3.msra.mxu0 %v10340_v58  ;;  %v10526_v58 = vld [vmem:[%s20618_s14 + $0x128] sm:$0xff] }
 0x92c   : > { %13994 = vmatprep.subr.mxu0 %v21002_v23 }
 0x92d   : > { %13995 = vmatpush3.msra.mxu0 %v10339_v40  ;;  %v10621_v40 = vld [vmem:[%s20618_s14 + $0x180] sm:$0xff] }
 0x92e   : > { %13940 = vmatmul.mubr.msk.f32.gmra.mxu0 %vm10211_vm8, %v10207_v48  ;;  %13996 = vmatprep.subr.mxu0 %v21002_v23  ;;  %v10525_v48 = vld [vmem:[%s20618_s14 + $0x120] sm:$0xff] }
 0x92f   : > { %13942 = vmatprep.mubr.msk.f32.mxu0 %vm14484_vm3, %v21002_v23  ;;  %13997 = vmatpush3.msra.mxu0 %v10338_v10 }
 0x930   : > { %13998 = vmatprep.subr.mxu0 %v21002_v23 }
 0x931   : > { %13999 = vmatpush3.msra.mxu0 %v10337_v44  ;;  %v10524_v44 = vld [vmem:[%s20618_s14 + $0x118] sm:$0xff] }
 0x932   : > { %13943 = vmatmul.mubr.msk.f32.gmra.mxu0 %vm10211_vm8, %v10208_v30  ;;  %14000 = vmatprep.subr.mxu0 %v21002_v23  ;;  %v10836_v30 = vld [vmem:[%s20618_s14 + $0x2f8] sm:$0xff] }
 0x933   : > { %13945 = vmatprep.mubr.msk.f32.mxu0 %vm14484_vm3, %v21002_v23  ;;  %14001 = vmatpush3.msra.mxu0 %v10336_v3  ;;  %v10523_v3 = vld [vmem:[%s20618_s14 + $0x110] sm:$0xff] }
 0x934   : > { %14002 = vmatprep.subr.mxu0 %v21002_v23 }
 0x935   : > { %14003 = vmatpush3.msra.mxu0 %v10335_v56 }
 0x936   : > { %13946 = vmatmul.mubr.msk.f32.gmra.mxu0 %vm10211_vm8, %v10209_v7  ;;  %14004 = vmatprep.subr.mxu0 %v21002_v23  ;;  %v10835_v7 = vld [vmem:[%s20618_s14 + $0x2f0] sm:$0xff] }
 0x937   : > { %13948 = vmatprep.mubr.msk.f32.mxu0 %vm14484_vm3, %v21002_v23  ;;  %14005 = vmatpush3.msra.mxu0 %v10334_v11  ;;  %v10522_v11 = vld [vmem:[%s20618_s14 + $0x108] sm:$0xff] }
 0x938   : > { %14006 = vmatprep.subr.mxu0 %v21002_v23 }
 0x939   : > { %14007 = vmatpush3.msra.mxu0 %v10333_v35  ;;  %v10521_v35 = vld [vmem:[%s20618_s14 + $0x100] sm:$0xff] }
 0x93a   : > { %13949 = vmatmul.mubr.msk.f32.gmra.mxu0 %vm10211_vm8, %v10210_v26  ;;  %14008 = vmatprep.subr.mxu0 %v21002_v23  ;;  %v10834_v26 = vld [vmem:[%s20618_s14 + $0x2e8] sm:$0xff] }
 0x93b   : > { %14009 = vmatpush3.msra.mxu0 %v10332_v41  ;;  %14024 = vmatprep.mubr.msk.f32.mxu0 %vm14484_vm3, %v21002_v23  ;;  %v10736_v41 = vld [vmem:[%s20618_s14 + $0x278] sm:$0xff] }
 0x93c   : > { %14010 = vmatprep.subr.mxu0 %v21002_v23 }
 0x93d   : > { %14011 = vmatpush3.msra.mxu0 %v10331_v5 }
 0x93e   : > { %14012 = vmatprep.subr.mxu0 %v21002_v23 }
 0x93f   : > { %14013 = vmatpush3.msra.mxu0 %v10330_v32  ;;  %v10833_v32 = vld [vmem:[%s20618_s14 + $0x2e0] sm:$0xff] }
 0x940   : > { %14014 = vmatprep.subr.mxu0 %v21002_v23 }
 0x941   : > { %14015 = vmatpush3.msra.mxu0 %v10329_v52  ;;  %v10735_v52 = vld [vmem:[%s20618_s14 + $0x270] sm:$0xff] }
 0x942   : > { %14016 = vmatprep.subr.mxu0 %v21002_v23 }
 0x943   : > { %14017 = vmatpush3.msra.mxu0 %v10328_v28  ;;  %v10734_v28 = vld [vmem:[%s20618_s14 + $0x268] sm:$0xff] }
 0x944   : > { %14018 = vmatprep.subr.mxu0 %v21002_v23 }
 0x945   : > { %14019 = vmatpush3.msra.mxu0 %v10327_v24  ;;  %v10733_v24 = vld [vmem:[%s20618_s14 + $0x260] sm:$0xff] }
 0x946   : > { %14020 = vmatprep.subr.mxu0 %v21002_v23 }
 0x947   : > { %14021 = vmatpush3.msra.mxu0 %v10326_v51  ;;  %v10732_v51 = vld [vmem:[%s20618_s14 + $0x258] sm:$0xff] }
 0x948   : > { %14022 = vmatprep.subr.mxu0 %v21002_v23 }
 0x949   : > { %14023 = vmatpush3.msra.mxu0 %v10325_v2  ;;  %v10731_v2 = vld [vmem:[%s20618_s14 + $0x250] sm:$0xff] }
 0x94a   : > { %14074 = vmatprep.subr.mxu0 %v21002_v23 }
 0x9ea   : > { %v10293_v17 = vpop.f32.mrf.mxu0 }
 0x9eb   : > { %10317 = vst [vmem:[#allocation5] sm:$0xff] %v10293_v17  ;;  %14025 = vmatmul.mubr.f32.vlgmr.msra.gmra.mxu0 %v10293_v17  ;;  %v10729_v17 = vld [vmem:[%s20618_s14 + $0x240] sm:$0xff] }
 0x9ec   : > { %v13938_v13 = vpop.f32.mrf.mxu0  ;;  %14075 = vmatpush3.msra.mxu0 %v10636_v49  ;;  %14027 = vmatprep.mubr.msk.f32.mxu0 %vm14484_vm3, %v21002_v23  ;;  %v10827_v49 = vld [vmem:[%s20618_s14 + $0x2b0] sm:$0xff] }
 0x9ed   : > { %14076 = vmatprep.subr.mxu0 %v21002_v23  ;;  %v10728_v13 = vld [vmem:[%s20618_s14 + $0x238] sm:$0xff] }
 0x9ee   : > { %v20061_v8 = vpop.f32.mrf.mxu0  ;;  %14077 = vmatpush3.msra.mxu0 %v10635_v39  ;;  %v10826_v39 = vld [vmem:[%s20618_s14 + $0x2a8] sm:$0xff] }
 0x9ef   : > { %10318 = vst [vmem:[#allocation5 + $0x8] sm:$0xff] %v20061_v8  ;;  %14078 = vmatprep.subr.mxu0 %v21002_v23  ;;  %14028 = vmatmul.mubr.f32.gmra.mxu0 %v20061_v8 }
 0x9f0   : > { %14079 = vmatpush3.msra.mxu0 %v10634_v53  ;;  %v13941_v25 = vpop.f32.mrf.mxu0  ;;  %14030 = vmatprep.mubr.msk.f32.mxu0 %vm14484_vm3, %v21002_v23  ;;  %v10727_v53 = vld [vmem:[%s20618_s14 + $0x230] sm:$0xff] }
 0x9f1   : > { %14080 = vmatprep.subr.mxu0 %v21002_v23  ;;  %v10726_v25 = vld [vmem:[%s20618_s14 + $0x228] sm:$0xff] }
 0x9f2   : > { %14081 = vmatpush3.msra.mxu0 %v10633_v31  ;;  %v20075_v46 = vpop.f32.mrf.mxu0  ;;  %v10825_v31 = vld [vmem:[%s20618_s14 + $0x2a0] sm:$0xff] }
 0x9f3   : > { %14082 = vmatprep.subr.mxu0 %v21002_v23  ;;  %10319 = vst [vmem:[#allocation5 + $0x10] sm:$0xff] %v20075_v46  ;;  %14031 = vmatmul.mubr.f32.gmra.mxu0 %v20075_v46 }
 0x9f4   : > { %14083 = vmatpush3.msra.mxu0 %v10632_v6  ;;  %v13944_v60 = vpop.f32.mrf.mxu0  ;;  %14106 = vmatprep.mubr.msk.f32.mxu0 %vm14484_vm3, %v21002_v23 }
 0x9f5   : > { %14084 = vmatprep.subr.mxu0 %v21002_v23  ;;  %v10725_v60 = vld [vmem:[%s20618_s14 + $0x220] sm:$0xff] }
 0x9f6   : > { %v10341_v61 = vld [vmem:[#allocation5 + $0x1] sm:$0xff]  ;;  %14085 = vmatpush3.msra.mxu0 %v10631_v14  ;;  %v20092_v1 = vpop.f32.mrf.mxu0  ;;  %v10824_v14 = vld [vmem:[%s20618_s14 + $0x298] sm:$0xff] }
 0x9f7   : > { %13984 = vmatmul.mubr.f32.vlgmr.msra.gmra.mxu1 %v10341_v61  ;;  %14086 = vmatprep.subr.mxu0 %v21002_v23  ;;  %10320 = vst [vmem:[#allocation5 + $0x18] sm:$0xff] %v20092_v1  ;;  %v10618_v56 = vld [vmem:[#allocation5 + $0x6] sm:$0xff]  ;;  %v10724_v61 = vld [vmem:[%s20618_s14 + $0x218] sm:$0xff] }
 0x9f8   : > { %14034 = vmatpush3.msra.mxu1 %v10536_v50  ;;  %14087 = vmatpush3.msra.mxu0 %v10630_v62  ;;  %v13947_v12 = vpop.f32.mrf.mxu0  ;;  %v10518_v5 = vld [vmem:[#allocation5 + $0x2] sm:$0xff] }
 0x9f9   : > { %14035 = vmatprep.subr.mxu1 %v21002_v23  ;;  %14088 = vmatprep.subr.mxu0 %v21002_v23  ;;  %v10823_v50 = vld [vmem:[%s20618_s14 + $0x290] sm:$0xff] }
 0x9fa   : > { %14036 = vmatpush3.msra.mxu1 %v10535_v19  ;;  %14089 = vmatpush3.msra.mxu0 %v10629_v29  ;;  %v10313_v22 = vpop.f32.mrf.mxu0  ;;  %v10342_v43 = vld [vmem:[#allocation5 + $0x9] sm:$0xff]  ;;  %v10822_v29 = vld [vmem:[%s20618_s14 + $0x288] sm:$0xff] }
 0x9fb   : > { %14037 = vmatprep.subr.mxu1 %v21002_v23  ;;  %14090 = vmatprep.subr.mxu0 %v21002_v23  ;;  %10321 = vst [vmem:[#allocation5 + $0x20] sm:$0x3f] %v10313_v22  ;;  %v20291_v6 = vld [vmem:[#allocation5 + $0xe] sm:$0xff]  ;;  %v10722_v22 = vld [vmem:[%s20618_s14 + $0x208] sm:$0xff] }
 0x9fc   : > { %14038 = vmatpush3.msra.mxu1 %v10534_v37  ;;  %14091 = vmatpush3.msra.mxu0 %v10628_v54  ;;  %v13950_v59 = vpop.f32.mrf.mxu0  ;;  %v10519_v62 = vld [vmem:[#allocation5 + $0xa] sm:$0xff]  ;;  %v10821_v37 = vld [vmem:[%s20618_s14 + $0x280] sm:$0xff] }
 0x9fd   : > { %14039 = vmatprep.subr.mxu1 %v21002_v23  ;;  %14092 = vmatprep.subr.mxu0 %v21002_v23  ;;  %v10723_v12 = vld [vmem:[%s20618_s14 + $0x210] sm:$0xff] }
 0x9fe   : > { %14040 = vmatpush3.msra.mxu1 %v10533_v16  ;;  %14093 = vmatpush3.msra.mxu0 %v10627_v38  ;;  %v10343_v10 = vld [vmem:[#allocation5 + $0x11] sm:$0xff]  ;;  %v11035_v59 = vld [vmem:[%s20618_s14 + $0x3f0] sm:$0xff] }
 0x9ff   : > { %14041 = vmatprep.subr.mxu1 %v21002_v23  ;;  %14094 = vmatprep.subr.mxu0 %v21002_v23  ;;  %v20314_v19 = vld [vmem:[#allocation5 + $0x16] sm:$0xff] }
 0xa00   : > { %14042 = vmatpush3.msra.mxu1 %v10532_v20  ;;  %14095 = vmatpush3.msra.mxu0 %v10626_v47  ;;  %v10520_v54 = vld [vmem:[#allocation5 + $0x12] sm:$0xff]  ;;  %v10718_v20 = vld [vmem:[#allocation5 + $0x7] sm:$0xff] }
 0xa01   : > { %14043 = vmatprep.subr.mxu1 %v21002_v23  ;;  %14096 = vmatprep.subr.mxu0 %v21002_v23  ;;  %v11036_v16 = vld [vmem:[%s20618_s14 + $0x3f8] sm:$0xff]  ;;  %v10721_v38 = vld [vmem:[%s20618_s14 + $0x200] sm:$0xff]  ;;  %v11034_v47 = vld [vmem:[%s20618_s14 + $0x3e8] sm:$0xff] }
 0xa02   : > { %14044 = vmatpush3.msra.mxu1 %v10531_v34  ;;  %14097 = vmatpush3.msra.mxu0 %v10625_v27  ;;  %v10935_v34 = vld [vmem:[%s20618_s14 + $0x370] sm:$0xff]  ;;  %v11033_v27 = vld [vmem:[%s20618_s14 + $0x3e0] sm:$0xff] }
 0xa03   : > { %14045 = vmatprep.subr.mxu1 %v21002_v23  ;;  %14098 = vmatprep.subr.mxu0 %v21002_v23 }
 0xa04   : > { %14046 = vmatpush3.msra.mxu1 %v10530_v4  ;;  %14099 = vmatpush3.msra.mxu0 %v10624_v55  ;;  %v10719_v4 = vld [vmem:[#allocation5 + $0xf] sm:$0xff]  ;;  %v10934_v55 = vld [vmem:[%s20618_s14 + $0x368] sm:$0xff] }
 0xa05   : > { %14047 = vmatprep.subr.mxu1 %v21002_v23  ;;  %14100 = vmatprep.subr.mxu0 %v21002_v23 }
 0xa06   : > { %14048 = vmatpush3.msra.mxu1 %v10529_v33  ;;  %14101 = vmatpush3.msra.mxu0 %v10623_v15  ;;  %v11032_v33 = vld [vmem:[%s20618_s14 + $0x3d8] sm:$0xff]  ;;  %v10933_v15 = vld [vmem:[%s20618_s14 + $0x360] sm:$0xff] }
 0xa07   : > { %14049 = vmatprep.subr.mxu1 %v21002_v23  ;;  %13986 = vmatprep.mubr.msk.f32.mxu1 %vm14484_vm3, %v21002_v23 }
 0xa08   : > { %14050 = vmatpush3.msra.mxu1 %v10528_v45  ;;  %14102 = vmatprep.subr.mxu0 %v21002_v23  ;;  %v11031_v45 = vld [vmem:[%s20618_s14 + $0x3d0] sm:$0xff] }
 0xa09   : > { %14051 = vmatprep.subr.mxu1 %v21002_v23  ;;  %13987 = vmatmul.mubr.f32.gmra.mxu1 %v10342_v43  ;;  %v10932_v43 = vld [vmem:[%s20618_s14 + $0x358] sm:$0xff] }
 0xa0a   : > { %14052 = vmatpush3.msra.mxu1 %v10527_v18  ;;  %14103 = vmatpush3.msra.mxu0 %v10622_v9  ;;  %v11030_v18 = vld [vmem:[%s20618_s14 + $0x3c8] sm:$0xff]  ;;  %v11029_v9 = vld [vmem:[%s20618_s14 + $0x3c0] sm:$0xff] }
 0xa0b   : > { %14053 = vmatprep.subr.mxu1 %v21002_v23  ;;  %14104 = vmatprep.subr.mxu0 %v21002_v23 }
 0xa0c   : > { %14054 = vmatpush3.msra.mxu1 %v10526_v58  ;;  %14105 = vmatpush3.msra.mxu0 %v10621_v40  ;;  %v10930_v58 = vld [vmem:[%s20618_s14 + $0x348] sm:$0xff]  ;;  %v11028_v40 = vld [vmem:[%s20618_s14 + $0x3b8] sm:$0xff] }
 0xa0d   : > { %14055 = vmatprep.subr.mxu1 %v21002_v23  ;;  %13989 = vmatprep.mubr.msk.f32.mxu1 %vm14484_vm3, %v21002_v23 }
 0xa0e   : > { %14056 = vmatpush3.msra.mxu1 %v10525_v48  ;;  %14156 = vmatprep.subr.mxu0 %v21002_v23  ;;  %v10929_v48 = vld [vmem:[%s20618_s14 + $0x340] sm:$0xff] }
 0xa0f   : > { %14057 = vmatprep.subr.mxu1 %v21002_v23  ;;  %13990 = vmatmul.mubr.f32.gmra.mxu1 %v10343_v10  ;;  %v11027_v10 = vld [vmem:[%s20618_s14 + $0x3b0] sm:$0xff] }
 0xa10   : > { %14058 = vmatpush3.msra.mxu1 %v10524_v44  ;;  %14107 = vmatmul.mubr.f32.vlgmr.msra.gmra.mxu0 %v10618_v56  ;;  %v10928_v44 = vld [vmem:[%s20618_s14 + $0x338] sm:$0xff]  ;;  %v10927_v56 = vld [vmem:[%s20618_s14 + $0x330] sm:$0xff] }
 0xa11   : > { %14059 = vmatprep.subr.mxu1 %v21002_v23  ;;  %14157 = vmatpush3.msra.mxu0 %v10836_v30  ;;  %v10720_v30 = vld [vmem:[#allocation5 + $0x17] sm:$0xff] }
 0xa12   : > { %14060 = vmatpush3.msra.mxu1 %v10523_v3  ;;  %14158 = vmatprep.subr.mxu0 %v21002_v23  ;;  %v11026_v3 = vld [vmem:[%s20618_s14 + $0x3a8] sm:$0xff] }
 0xa13   : > { %14061 = vmatprep.subr.mxu1 %v21002_v23  ;;  %14159 = vmatpush3.msra.mxu0 %v10835_v7  ;;  %v11025_v7 = vld [vmem:[%s20618_s14 + $0x3a0] sm:$0xff] }
 0xa14   : > { %14062 = vmatpush3.msra.mxu1 %v10522_v11  ;;  %14065 = vmatprep.mubr.msk.f32.mxu1 %vm14484_vm3, %v21002_v23  ;;  %v10926_v11 = vld [vmem:[%s20618_s14 + $0x328] sm:$0xff] }
 0xa15   : > { %14063 = vmatprep.subr.mxu1 %v21002_v23  ;;  %14160 = vmatprep.subr.mxu0 %v21002_v23 }
 0xa16   : > { %14064 = vmatpush3.msra.mxu1 %v10521_v35  ;;  %14161 = vmatpush3.msra.mxu0 %v10834_v26  ;;  %v11024_v35 = vld [vmem:[%s20618_s14 + $0x398] sm:$0xff]  ;;  %v10925_v26 = vld [vmem:[%s20618_s14 + $0x320] sm:$0xff] }
 0xa17   : > { %14115 = vmatprep.subr.mxu1 %v21002_v23  ;;  %14066 = vmatmul.mubr.f32.vlgmr.msra.gmra.mxu1 %v10518_v5  ;;  %v11022_v5 = vld [vmem:[%s20618_s14 + $0x388] sm:$0xff] }
 0xa18   : > { %14116 = vmatpush3.msra.mxu1 %v10736_v41  ;;  %14162 = vmatprep.subr.mxu0 %v21002_v23  ;;  %v11023_v41 = vld [vmem:[%s20618_s14 + $0x390] sm:$0xff] }
 0xa19   : > { %14117 = vmatprep.subr.mxu1 %v21002_v23  ;;  %14163 = vmatpush3.msra.mxu0 %v10833_v32  ;;  %v10923_v32 = vld [vmem:[%s20618_s14 + $0x310] sm:$0xff] }
 0xa1a   : > { %14118 = vmatpush3.msra.mxu1 %v10735_v52  ;;  %14164 = vmatprep.subr.mxu0 %v21002_v23  ;;  %v11021_v52 = vld [vmem:[%s20618_s14 + $0x380] sm:$0xff] }
 0xa1b   : > { %14119 = vmatprep.subr.mxu1 %v21002_v23  ;;  %14165 = vmatpush3.msra.mxu0 %v10832_v42  ;;  %v10922_v42 = vld [vmem:[%s20618_s14 + $0x308] sm:$0xff] }
 0xa1c   : > { %14120 = vmatpush3.msra.mxu1 %v10734_v28  ;;  %14166 = vmatprep.subr.mxu0 %v21002_v23  ;;  %v11018_v28 = vld [vmem:[#allocation5 + $0xd] sm:$0xff] }
 0xa1d   : > { %14121 = vmatprep.subr.mxu1 %v21002_v23  ;;  %14167 = vmatpush3.msra.mxu0 %v10831_v57  ;;  %v10921_v57 = vld [vmem:[%s20618_s14 + $0x300] sm:$0xff] }
 0xa1e   : > { %14122 = vmatpush3.msra.mxu1 %v10733_v24  ;;  %14168 = vmatprep.subr.mxu0 %v21002_v23  ;;  %v10918_v24 = vld [vmem:[#allocation5 + $0xc] sm:$0xff] }
 0xa1f   : > { %14123 = vmatprep.subr.mxu1 %v21002_v23  ;;  %14169 = vmatpush3.msra.mxu0 %v10830_v0  ;;  %v11019_v0 = vld [vmem:[#allocation5 + $0x15] sm:$0xff] }
 0xa20   : > { %14124 = vmatpush3.msra.mxu1 %v10732_v51  ;;  %14170 = vmatprep.subr.mxu0 %v21002_v23  ;;  %v11136_v51 = vld [vmem:[%s20618_s14 + $0x478] sm:$0xff] }
 0xa21   : > { %14125 = vmatprep.subr.mxu1 %v21002_v23  ;;  %14171 = vmatpush3.msra.mxu0 %v10829_v36  ;;  %v11135_v36 = vld [vmem:[%s20618_s14 + $0x470] sm:$0xff] }
 0xa22   : > { %14126 = vmatpush3.msra.mxu1 %v10731_v2  ;;  %14172 = vmatprep.subr.mxu0 %v21002_v23  ;;  %v11020_v2 = vld [vmem:[#allocation5 + $0x1d] sm:$0xff] }
 0xa23   : > { %14127 = vmatprep.subr.mxu1 %v21002_v23  ;;  %14173 = vmatpush3.msra.mxu0 %v10828_v21  ;;  %v11134_v21 = vld [vmem:[%s20618_s14 + $0x468] sm:$0xff] }
 0xa24   : > { %14128 = vmatpush3.msra.mxu1 %v10730_v63  ;;  %14174 = vmatprep.subr.mxu0 %v21002_v23  ;;  %v10919_v63 = vld [vmem:[#allocation5 + $0x14] sm:$0xff] }
 0xa25   : > { %14129 = vmatprep.subr.mxu1 %v21002_v23  ;;  %14175 = vmatpush3.msra.mxu0 %v10827_v49  ;;  %v11133_v49 = vld [vmem:[%s20618_s14 + $0x460] sm:$0xff] }
 0xa26   : > { %14130 = vmatpush3.msra.mxu1 %v10729_v17  ;;  %14176 = vmatprep.subr.mxu0 %v21002_v23  ;;  %v11132_v17 = vld [vmem:[%s20618_s14 + $0x458] sm:$0xff] }
 0xa27   : > { %14131 = vmatprep.subr.mxu1 %v21002_v23  ;;  %14177 = vmatpush3.msra.mxu0 %v10826_v39  ;;  %v10920_v39 = vld [vmem:[#allocation5 + $0x1c] sm:$0xff] }
 0xa28   : > { %14132 = vmatpush3.msra.mxu1 %v10728_v13  ;;  %14178 = vmatprep.subr.mxu0 %v21002_v23  ;;  %v11131_v13 = vld [vmem:[%s20618_s14 + $0x450] sm:$0xff] }
 0xa29   : > { %14133 = vmatprep.subr.mxu1 %v21002_v23  ;;  %14109 = vmatprep.mubr.msk.f32.mxu0 %vm14484_vm3, %v21002_v23 }
 0xa2a   : > { %14134 = vmatpush3.msra.mxu1 %v10727_v53  ;;  %14179 = vmatpush3.msra.mxu0 %v10825_v31  ;;  %v11130_v53 = vld [vmem:[%s20618_s14 + $0x448] sm:$0xff]  ;;  %v11129_v31 = vld [vmem:[%s20618_s14 + $0x440] sm:$0xff] }
 0xa2b   : > { %14110 = vmatmul.mubr.f32.gmra.mxu0 %v20291_v6  ;;  %14135 = vmatprep.subr.mxu1 %v21002_v23 }
 0xa2c   : > { %14180 = vmatprep.subr.mxu0 %v21002_v23  ;;  %14136 = vmatpush3.msra.mxu1 %v10726_v25  ;;  %v11128_v25 = vld [vmem:[%s20618_s14 + $0x438] sm:$0xff] }
 0xa2d   : > { %14181 = vmatpush3.msra.mxu0 %v10824_v14  ;;  %14137 = vmatprep.subr.mxu1 %v21002_v23  ;;  %v11127_v14 = vld [vmem:[%s20618_s14 + $0x430] sm:$0xff] }
 0xa2e   : > { %14182 = vmatprep.subr.mxu0 %v21002_v23  ;;  %14068 = vmatprep.mubr.msk.f32.mxu1 %vm14484_vm3, %v21002_v23 }
 0xa2f   : > { %14112 = vmatprep.mubr.msk.f32.mxu0 %vm14484_vm3, %v21002_v23  ;;  %14138 = vmatpush3.msra.mxu1 %v10725_v60  ;;  %v11126_v60 = vld [vmem:[%s20618_s14 + $0x428] sm:$0xff] }
 0xa30   : > { %14183 = vmatpush3.msra.mxu0 %v10823_v50  ;;  %14069 = vmatmul.mubr.f32.gmra.mxu1 %v10519_v62  ;;  %v11125_v50 = vld [vmem:[%s20618_s14 + $0x420] sm:$0xff]  ;;  %v11124_v62 = vld [vmem:[%s20618_s14 + $0x418] sm:$0xff] }
 0xa31   : > { %14113 = vmatmul.mubr.f32.gmra.mxu0 %v20314_v19  ;;  %14139 = vmatprep.subr.mxu1 %v21002_v23 }
 0xa32   : > { %14184 = vmatprep.subr.mxu0 %v21002_v23  ;;  %14140 = vmatpush3.msra.mxu1 %v10724_v61  ;;  %v11123_v61 = vld [vmem:[%s20618_s14 + $0x410] sm:$0xff] }
 0xa33   : > { %14185 = vmatpush3.msra.mxu0 %v10822_v29  ;;  %14141 = vmatprep.subr.mxu1 %v21002_v23  ;;  %v11122_v29 = vld [vmem:[%s20618_s14 + $0x408] sm:$0xff] }
 0xa34   : > { %14186 = vmatprep.subr.mxu0 %v21002_v23  ;;  %14071 = vmatprep.mubr.msk.f32.mxu1 %vm14484_vm3, %v21002_v23 }
 0xa35   : > { %14142 = vmatpush3.msra.mxu1 %v10723_v12  ;;  %14187 = vmatpush3.msra.mxu0 %v10821_v37  ;;  %v11121_v12 = vld [vmem:[%s20618_s14 + $0x400] sm:$0xff] }
 0xa36   : > { %14188 = vmatprep.mubr.msk.f32.mxu0 %vm14484_vm3, %v21002_v23  ;;  %14072 = vmatmul.mubr.f32.gmra.mxu1 %v10520_v54  ;;  %v11120_v37 = vld [vmem:[#allocation5 + $0x1e] sm:$0xff] }
 0xa37   : > { %14143 = vmatprep.subr.mxu1 %v21002_v23  ;;  %14189 = vmatmul.mubr.f32.vlgmr.msra.gmra.mxu0 %v20061_v8  ;;  %v10936_v8 = vld [vmem:[%s20618_s14 + $0x378] sm:$0xff] }
 0xa38   : > { %14238 = vmatprep.subr.mxu0 %v21002_v23  ;;  %14144 = vmatpush3.msra.mxu1 %v10722_v22 }
 0xa39   : > { %14239 = vmatpush3.msra.mxu0 %v11036_v16  ;;  %14145 = vmatprep.subr.mxu1 %v21002_v23 }
 0xa3a   : > { %14240 = vmatprep.subr.mxu0 %v21002_v23  ;;  %14146 = vmatpush3.msra.mxu1 %v10721_v38 }
 0xa3b   : > { %14147 = vmatprep.mubr.msk.f32.mxu1 %vm14484_vm3, %v21002_v23  ;;  %14241 = vmatpush3.msra.mxu0 %v11035_v59 }
 0xa3c   : > { %14148 = vmatmul.mubr.f32.vlgmr.msra.gmra.mxu1 %v10718_v20  ;;  %14197 = vmatprep.subr.mxu1 %v21002_v23 }
 0xa3d   : > { %14242 = vmatprep.subr.mxu0 %v21002_v23  ;;  %14198 = vmatpush3.msra.mxu1 %v10936_v8 }
 0xa3e   : > { %14243 = vmatpush3.msra.mxu0 %v11034_v47  ;;  %14199 = vmatprep.subr.mxu1 %v21002_v23 }
 0xa3f   : > { %14244 = vmatprep.subr.mxu0 %v21002_v23  ;;  %14150 = vmatprep.mubr.msk.f32.mxu1 %vm14484_vm3, %v21002_v23 }
 0xa40   : > { %14200 = vmatpush3.msra.mxu1 %v10935_v34  ;;  %14245 = vmatpush3.msra.mxu0 %v11033_v27 }
 0xa41   : > { %14151 = vmatmul.mubr.f32.gmra.mxu1 %v10719_v4  ;;  %14201 = vmatprep.subr.mxu1 %v21002_v23 }
 0xa42   : > { %14246 = vmatprep.subr.mxu0 %v21002_v23  ;;  %14191 = vmatprep.mubr.msk.f32.mxu0 %vm14484_vm3, %v21002_v23 }
 0xa43   : > { %14202 = vmatpush3.msra.mxu1 %v10934_v55  ;;  %14247 = vmatpush3.msra.mxu0 %v11032_v33 }
 0xa44   : > { %14192 = vmatmul.mubr.f32.gmra.mxu0 %v20075_v46  ;;  %14203 = vmatprep.subr.mxu1 %v21002_v23  ;;  %v10931_v46 = vld [vmem:[%s20618_s14 + $0x350] sm:$0xff] }
 0xa45   : > { %14248 = vmatprep.subr.mxu0 %v21002_v23  ;;  %14204 = vmatpush3.msra.mxu1 %v10933_v15 }
 0xa46   : > { %14249 = vmatpush3.msra.mxu0 %v11031_v45  ;;  %14205 = vmatprep.subr.mxu1 %v21002_v23 }
 0xa47   : > { %14250 = vmatprep.subr.mxu0 %v21002_v23  ;;  %14206 = vmatpush3.msra.mxu1 %v10932_v43 }
 0xa48   : > { %14251 = vmatpush3.msra.mxu0 %v11030_v18  ;;  %14207 = vmatprep.subr.mxu1 %v21002_v23 }
 0xa49   : > { %14252 = vmatprep.subr.mxu0 %v21002_v23  ;;  %14208 = vmatpush3.msra.mxu1 %v10931_v46 }
 0xa4a   : > { %14253 = vmatpush3.msra.mxu0 %v11029_v9  ;;  %14209 = vmatprep.subr.mxu1 %v21002_v23 }
 0xa4b   : > { %14254 = vmatprep.subr.mxu0 %v21002_v23  ;;  %14210 = vmatpush3.msra.mxu1 %v10930_v58 }
 0xa4c   : > { %14255 = vmatpush3.msra.mxu0 %v11028_v40  ;;  %14211 = vmatprep.subr.mxu1 %v21002_v23 }
 0xa4d   : > { %14256 = vmatprep.subr.mxu0 %v21002_v23  ;;  %14153 = vmatprep.mubr.msk.f32.mxu1 %vm14484_vm3, %v21002_v23 }
 0xa4e   : > { %14212 = vmatpush3.msra.mxu1 %v10929_v48  ;;  %14257 = vmatpush3.msra.mxu0 %v11027_v10 }
 0xa4f   : > { %14154 = vmatmul.mubr.f32.gmra.mxu1 %v10720_v30  ;;  %14213 = vmatprep.subr.mxu1 %v21002_v23 }
 0xa50   : > { %14258 = vmatprep.subr.mxu0 %v21002_v23  ;;  %14214 = vmatpush3.msra.mxu1 %v10928_v44 }
 0xa51   : > { %14259 = vmatpush3.msra.mxu0 %v11026_v3  ;;  %14215 = vmatprep.subr.mxu1 %v21002_v23 }
 0xa52   : > { %14260 = vmatprep.subr.mxu0 %v21002_v23  ;;  %14194 = vmatprep.mubr.msk.f32.mxu0 %vm14484_vm3, %v21002_v23 }
 0xa53   : > { %14216 = vmatpush3.msra.mxu1 %v10927_v56  ;;  %14261 = vmatpush3.msra.mxu0 %v11025_v7 }
 0xa54   : > { %14195 = vmatmul.mubr.f32.gmra.mxu0 %v20092_v1  ;;  %14217 = vmatprep.subr.mxu1 %v21002_v23  ;;  %v10924_v1 = vld [vmem:[%s20618_s14 + $0x318] sm:$0xff] }
 0xa55   : > { %14262 = vmatprep.subr.mxu0 %v21002_v23  ;;  %14218 = vmatpush3.msra.mxu1 %v10926_v11 }
 0xa56   : > { %14263 = vmatpush3.msra.mxu0 %v11024_v35  ;;  %14219 = vmatprep.subr.mxu1 %v21002_v23 }
 0xa57   : > { %14264 = vmatprep.subr.mxu0 %v21002_v23  ;;  %14220 = vmatpush3.msra.mxu1 %v10925_v26 }
 0xa58   : > { %14265 = vmatpush3.msra.mxu0 %v11023_v41  ;;  %14221 = vmatprep.subr.mxu1 %v21002_v23 }
 0xa59   : > { %14266 = vmatprep.subr.mxu0 %v21002_v23  ;;  %14222 = vmatpush3.msra.mxu1 %v10924_v1 }
 0xa5a   : > { %14267 = vmatpush3.msra.mxu0 %v11022_v5  ;;  %14223 = vmatprep.subr.mxu1 %v21002_v23 }
 0xa5b   : > { %14268 = vmatprep.subr.mxu0 %v21002_v23  ;;  %14224 = vmatpush3.msra.mxu1 %v10923_v32 }
 0xa5c   : > { %14269 = vmatpush3.msra.mxu0 %v11021_v52  ;;  %14270 = vmatprep.mubr.msk.f32.mxu0 %vm14484_vm3, %v21002_v23 }
 0xa5d   : > { %14225 = vmatprep.subr.mxu1 %v21002_v23  ;;  %14271 = vmatmul.mubr.f32.vlgmr.msra.gmra.mxu0 %v11018_v28 }
 0xa5e   : > { %14226 = vmatpush3.msra.mxu1 %v10922_v42  ;;  %14229 = vmatprep.mubr.msk.f32.mxu1 %vm14484_vm3, %v21002_v23 }
 0xa5f   : > { %14227 = vmatprep.subr.mxu1 %v21002_v23  ;;  %14273 = vmatprep.mubr.msk.f32.mxu0 %vm14484_vm3, %v21002_v23 }
 0xa60   : > { %14228 = vmatpush3.msra.mxu1 %v10921_v57 }
 0xa61   : > { %14230 = vmatmul.mubr.f32.vlgmr.msra.gmra.mxu1 %v10918_v24  ;;  %14274 = vmatmul.mubr.f32.gmra.mxu0 %v11019_v0 }
 0xa62   : > { %14279 = vmatprep.subr.mxu1 %v21002_v23  ;;  %14232 = vmatprep.mubr.msk.f32.mxu1 %vm14484_vm3, %v21002_v23 }
 0xa63   : > { %14280 = vmatpush3.msra.mxu1 %v11136_v51  ;;  %14276 = vmatprep.mubr.msk.f32.mxu0 %vm14484_vm3, %v21002_v23 }
 0xa64   : > { %14281 = vmatprep.subr.mxu1 %v21002_v23 }
 0xa65   : > { %14282 = vmatpush3.msra.mxu1 %v11135_v36  ;;  %14277 = vmatmul.mubr.f32.gmra.mxu0 %v11020_v2 }
 0xa66   : > { %14233 = vmatmul.mubr.f32.gmra.mxu1 %v10919_v63  ;;  %14283 = vmatprep.subr.mxu1 %v21002_v23 }
 0xa67   : > { %14284 = vmatpush3.msra.mxu1 %v11134_v21  ;;  %14235 = vmatprep.mubr.msk.f32.mxu1 %vm14484_vm3, %v21002_v23 }
 0xa68   : > { %14285 = vmatprep.subr.mxu1 %v21002_v23 }
 0xa69   : > { %14286 = vmatpush3.msra.mxu1 %v11133_v49 }
 0xa6a   : > { %14236 = vmatmul.mubr.f32.gmra.mxu1 %v10920_v39  ;;  %14287 = vmatprep.subr.mxu1 %v21002_v23 }
 0xa6b   : > { %14288 = vmatpush3.msra.mxu1 %v11132_v17  ;;  %14311 = vmatprep.mubr.msk.f32.mxu1 %vm14484_vm3, %v21002_v23 }
 0xa6c   : > { %14289 = vmatprep.subr.mxu1 %v21002_v23 }
 0xa6d   : > { %14290 = vmatpush3.msra.mxu1 %v11131_v13 }
 0xa6e   : > { %14291 = vmatprep.subr.mxu1 %v21002_v23 }
 0xa6f   : > { %14292 = vmatpush3.msra.mxu1 %v11130_v53 }
 0xa70   : > { %14293 = vmatprep.subr.mxu1 %v21002_v23 }
 0xa71   : > { %14294 = vmatpush3.msra.mxu1 %v11129_v31 }
 0xa72   : > { %14295 = vmatprep.subr.mxu1 %v21002_v23 }
 0xa73   : > { %14296 = vmatpush3.msra.mxu1 %v11128_v25 }
 0xa74   : > { %14297 = vmatprep.subr.mxu1 %v21002_v23 }
 0xa75   : > { %14298 = vmatpush3.msra.mxu1 %v11127_v14 }
 0xa76   : > { %14299 = vmatprep.subr.mxu1 %v21002_v23 }
 0xa77   : > { %14300 = vmatpush3.msra.mxu1 %v11126_v60 }
 0xa78   : > { %14301 = vmatprep.subr.mxu1 %v21002_v23 }
 0xa79   : > { %14302 = vmatpush3.msra.mxu1 %v11125_v50 }
 0xa7a   : > { %14303 = vmatprep.subr.mxu1 %v21002_v23 }
 0xa7b   : > { %14304 = vmatpush3.msra.mxu1 %v11124_v62 }
 0xa7c   : > { %14305 = vmatprep.subr.mxu1 %v21002_v23 }
 0xa7d   : > { %14306 = vmatpush3.msra.mxu1 %v11123_v61 }
 0xa7e   : > { %14307 = vmatprep.subr.mxu1 %v21002_v23 }
 0xa7f   : > { %14308 = vmatpush3.msra.mxu1 %v11122_v29 }
 0xa80   : > { %14309 = vmatprep.subr.mxu1 %v21002_v23 }
 0xa81   : > { %14310 = vmatpush3.msra.mxu1 %v11121_v12 }
 0xa82   : > { %14312 = vmatmul.mubr.f32.vlgmr.msra.gmra.mxu1 %v20291_v6 }
 0xa83   : > { %14314 = vmatprep.mubr.msk.f32.mxu1 %vm14484_vm3, %v21002_v23 }
 0xa86   : > { %14315 = vmatmul.mubr.f32.gmra.mxu1 %v20314_v19 }
 0xa87   : > { %14317 = vmatprep.mubr.msk.f32.mxu1 %vm14484_vm3, %v21002_v23 }
 0xa8a   : > { %14318 = vmatmul.mubr.f32.gmra.mxu1 %v11120_v37  ;;  %v11928_v37 = vld [vmem:[%s20619_s15] ss:$0 sm:$0xff] }
 0xaab   : > { %v10505_v54 = vpop.f32.mrf.mxu0 }
 0xaad   : > { %v14026_v22 = vpop.f32.mrf.mxu0 }
 0xaaf   : > { %v10510_v16 = vpop.f32.mrf.mxu0 }
 0xab1   : > { %v14029_v38 = vpop.f32.mrf.mxu0 }
 0xab3   : > { %v10515_v59 = vpop.f32.mrf.mxu0 }
 0xab5   : > { %v14032_v8 = vpop.f32.mrf.mxu0 }
 0xab7   : > { %v10426_v20 = vpop.f32.mrf.mxu1 }
 0xab8   : > { %v10506_v47 = vadd.f32 %v10505_v54, %v10426_v20 }
 0xab9   : > { %v13985_v34 = vpop.f32.mrf.mxu1 }
 0xac9   : > { %v10431_v6 = vpop.f32.mrf.mxu1 }
 0xaca   : > { %v10511_v27 = vadd.f32 %v10510_v16, %v10431_v6 }
 0xacb   : > { %v13988_v4 = vpop.f32.mrf.mxu1 }
 0xacf   : > { %v10436_v55 = vpop.f32.mrf.mxu1 }
 0xad0   : > { %v10703_v33 = vpop.f32.mrf.mxu0 }
 0xad1   : > { %v13991_v19 = vpop.f32.mrf.mxu1 }
 0xad2   : > { %v14108_v15 = vpop.f32.mrf.mxu0 }
 0xad7   : > { %v10603_v45 = vpop.f32.mrf.mxu1 }
 0xad8   : > { %v10616_v23 = vadd.f32 %v10603_v45, %v10506_v47 }
 0xad9   : > { %v14067_v43 = vpop.f32.mrf.mxu1 }
 0xada   : > { %v10716_v18 = vadd.f32 %v10703_v33, %v10616_v23 }
 0xaeb   : > { %v10708_v46 = vpop.f32.mrf.mxu0 }
 0xaed   : > { %v14111_v9 = vpop.f32.mrf.mxu0 }
 0xaf0   : > { %v10608_v58 = vpop.f32.mrf.mxu1 }
 0xaf1   : > { %v10617_v40 = vadd.f32 %v10608_v58, %v10511_v27  ;;  %v10713_v48 = vpop.f32.mrf.mxu0 }
 0xaf2   : > { %v14070_v10 = vpop.f32.mrf.mxu1 }
 0xaf3   : > { %v14114_v44 = vpop.f32.mrf.mxu0  ;;  %v10717_v30 = vadd.f32 %v10708_v46, %v10617_v40 }
 0xaf6   : > { %v10613_v3 = vpop.f32.mrf.mxu1 }
 0xaf7   : > { %v10903_v56 = vpop.f32.mrf.mxu0 }
 0xaf8   : > { %v14073_v7 = vpop.f32.mrf.mxu1 }
 0xaf9   : > { %v14190_v11 = vpop.f32.mrf.mxu0 }
 0xafc   : > { %v10803_v35 = vpop.f32.mrf.mxu1 }
 0xafd   : > { %v10816_v26 = vadd.f32 %v10803_v35, %v10716_v18 }
 0xafe   : > { %v14149_v41 = vpop.f32.mrf.mxu1 }
 0xaff   : > { %v10916_v1 = vadd.f32 %v10903_v56, %v10816_v26 }
 0xb01   : > { %v10808_v5 = vpop.f32.mrf.mxu1 }
 0xb02   : > { %v10817_v14 = vadd.f32 %v10808_v5, %v10717_v30 }
 0xb03   : > { %v14152_v32 = vpop.f32.mrf.mxu1 }
 0xb04   : > { %v10908_v52 = vpop.f32.mrf.mxu0 }
 0xb05   : > { %v10917_v50 = vadd.f32 %v10908_v52, %v10817_v14 }
 0xb06   : > { %v14193_v42 = vpop.f32.mrf.mxu0 }
 0xb0f   : > { %v10813_v28 = vpop.f32.mrf.mxu1 }
 0xb11   : > { %v14155_v57 = vpop.f32.mrf.mxu1 }
 0xb14   : > { %v10913_v24 = vpop.f32.mrf.mxu0 }
 0xb16   : > { %v14196_v0 = vpop.f32.mrf.mxu0 }
 0xb1d   : > { %v11103_v51 = vpop.f32.mrf.mxu0 }
 0xb1f   : > { %v14272_v36 = vpop.f32.mrf.mxu0 }
 0xb21   : > { %v11003_v2 = vpop.f32.mrf.mxu1  ;;  %v11108_v21 = vpop.f32.mrf.mxu0 }
 0xb22   : > { %v11016_v60 = vadd.f32 %v11003_v2, %v10916_v1 }
 0xb23   : > { %v14231_v63 = vpop.f32.mrf.mxu1  ;;  %v14275_v49 = vpop.f32.mrf.mxu0 }
 0xb24   : > { %v11116_v61 = vadd.f32 %v11103_v51, %v11016_v60 }
 0xb25   : > { %v11113_v17 = vpop.f32.mrf.mxu0 }
 0xb26   : > { %v11008_v39 = vpop.f32.mrf.mxu1 }
 0xb27   : > { %v14278_v13 = vpop.f32.mrf.mxu0  ;;  %v11017_v62 = vadd.f32 %v11008_v39, %v10917_v50 }
 0xb28   : > { %v14234_v53 = vpop.f32.mrf.mxu1 }
 0xb29   : > { %v11117_v16 = vadd.f32 %v11108_v21, %v11017_v62 }
 0xb2a   : > { %v11013_v31 = vpop.f32.mrf.mxu1 }
 0xb2c   : > { %v14237_v25 = vpop.f32.mrf.mxu1 }
 0xb42   : > { %v11203_v29 = vpop.f32.mrf.mxu1 }
 0xb43   : > { %v11216_v12 = vadd.f32 %v11203_v29, %v11116_v61 }
 0xb44   : > { %v14313_v54 = vpop.f32.mrf.mxu1 }
 0xb45   : > { %v11218_v22 = vmax.f32 %v11216_v12, 0.0 }
 0xb46   : > { %v11208_v38 = vpop.f32.mrf.mxu1 }
 0xb47   : > { %v11227_v59 = vadd.f32 %v11928_v37, %v11218_v22  ;;  %v11217_v8 = vadd.f32 %v11208_v38, %v11117_v16 }
 0xb48   : > { %v14316_v20 = vpop.f32.mrf.mxu1 }
 0xb49   : > { %v11230_v47 = vrot.slane %v11227_v59, 2  ;;  %v11219_v34 = vmax.f32 %v11217_v8, 0.0 }
 0xb4a   : > { %v11213_v6 = vpop.f32.mrf.mxu1 }
 0xb4b   : > { %v11228_v27 = vadd.f32 %v11928_v37, %v11219_v34  ;;  %v11232_v55 = vadd.f32 %v11230_v47, %v11227_v59 }
 0xb4c   : > { %v14319_v4 = vpop.f32.mrf.mxu1 }
 0xb4d   : > { %v11234_v33 = vrot.slane %v11228_v27, 4  ;;  %v11237_v15 = vrot.slane %v11228_v27, 6 }
 0xb4f   : > { %v11236_v19 = vadd.f32 %v11234_v33, %v11232_v55 }
 0xb51   : > { %v11239_v45 = vadd.f32 %v11237_v15, %v11236_v19 }
 0xb53   : > { %v11240_v23 = vmul.f32 0.25, %v11239_v45 }
 0xb55   : > { %v11242_v43 = vsel %vm11241_vm9, %v11240_v23, -inf }
 0xb56   : > { %11243 = vmax.xlane.f32.xlu0 %v11242_v43 }
 0xbdf   : > { %v11244_v18 = vpop.xlane.xlu0 %11243 }
 0xbe0   : > { %v11245_v46 = vsub.f32 %v11240_v23, %v11244_v18 }
 0xbe2   : > { %v11246_v9 = vmul.f32 1.442695, %v11245_v46 }
 0xbe4   : > { %14363 = vpow2.f32 %v11246_v9 }
 0xbf1   : > { %v14364_v58 = vpop.eup %14363 }
 0xbf2   : > { %v11248_v40 = vsel %vm11241_vm9, %v14364_v58, 0.0 }
 0xbf3   : > { %11249 = vadd.xlane.f32.xlu0 %v11248_v40 }
 0xc7c   : > { %v11250_v48 = vpop.xlane.xlu0 %11249 }
 0xc7d   : > { %14365 = vlog2.f32 %v11250_v48 }
 0xc8a   : > { %v14366_v10 = vpop.eup %14365 }
 0xc8b   : > { %v11252_v44 = vmul.f32 0.6931472, %v14366_v10 }
 0xc8d   : > { %v11253_v30 = vsub.f32 %v11245_v46, %v11252_v44 }
 0xc8f   : > { %11254 = vst [vmem:[%s513_s17] sm:$0x1] %v11253_v30 }
 0xc90   : > { %14434 = shalt.err (!%p14431_p3)
}
 0xc91   : > { %s14435_s2 = scalar_lea.hbm %s11266_s29, 16  ;;  %s14439_s17 = scalar_lea.hbm %s20620_s16, 32 }
 0xc92   : > { %p14436_p4 = scmp.ne.s32.totalorder %s11266_s29, %s14435_s2  ;;  %p14440_p9 = scmp.lt.s32.totalorder %s11266_s29, %s20620_s16 }
 0xc93   : > { %p14441_p10 = scmp.lt.s32.totalorder %s14439_s17, %s14435_s2 }
 0xc94   : > { %p14437_p7 = pnand %p14436_p4, %p14609_p5 }
 0xc95   : > { %p14442_p11 = por %p14441_p10, %p14440_p9 }
 0xc96   : > { %p14438_p8 = pneg %p14437_p7 }
 0xc98   : > { %p14443_p12 = pnand %p14442_p11, %p14438_p8 }
 0xc9a   : > { %14446 = shalt.err (!%p14443_p12)
}
 0xc9b   : > { %14322 = dma.vmem_to_hbm [thread:$0]  (%p14609_p5), %s11269_s20, 16, %s11266_s29, %s11256_s23  }
 0xc9c PF: > { %p14328_p13 = scmp.ge.s32.totalorder %s14481_s24, 2  ;;  %s11280_s30 = sand.u32 1, %s14469_s21  }
 0xc9d   : > { %s11281_s18 = scalar_lea.sflag [#allocation7], %s11280_s30 }
 0xc9e   : > { %p14325_p0 = pnand %p14328_p13, %p14613_p6 }
 0xca0   : > { %p14326_p1 = pneg %p14325_p0 }
 0xca2   : > { %14464 = dma.done.wait (%p14326_p1), %s11281_s18, 16  }
 0xca3   : > { %14466 = vsyncadd (%p14326_p1), %s11281_s18, 4294967280  ;;  %s21026_s24 = sld [smem:[#allocation10_spill]]  ;;  %s21029_s21 = smov %s14473_s22 }
 0xca4   : > { %s21027_s2 = sld [smem:[#allocation9_spill]] }
 0xca5   : > { %s21028_s23 = sld [smem:[#allocation11_spill]] }
 0xca9   : > { %p26_p2 = scmp.ge.s32.totalorder %s21026_s24, 4  }
 0xcaa   : > { %s21030_s22 = smov %s21027_s2 }
 0xcab   :  { %28 = sbr.rel (!%p26_p2) target bundleno = 7 (0x7), region = 119 }
 0xcb0   :  { %11285 = vsyncpa [#allocation7], 1 }
 0xcb1   :  { %11287 = vsyncpa [#allocation7 + $0x1], 1 }

</bundles_post_ra>
